<compile_context>
chip_gen: v7x
topology: tpu7x:2x2x1
jax: 0.10.0
libtpu: 0.0.40
codegen_flags: <defaults>
</compile_context>

<pallas_src>
import jax
import jax.numpy as jnp
from jax.experimental import pallas as pl
from jax.experimental.pallas import tpu as pltpu

BN_EPS = 1e-5

# [row-parity a][effective tap r] -> contributing 3x3 kernel row indices ky
# (same table is used for columns: [col-parity b][tap c] -> kx).
_GROUPS = (((0,), (1, 2)), ((0, 1), (2,)))


# --------------------------------------------------------------------------
# Pass 1: sub-pixel conv (one MXU matmul per phase), per-tile BN statistics.
# --------------------------------------------------------------------------
def conv_subpixel_kernel(xs_ref, w_ref, y_ref, psum_ref, psq_ref):
    # xs_ref   : (TR+2, W+2, Cin)  bf16  zero-padded original-resolution strip
    # w_ref    : (4, 4*Cin, Cout)  bf16  folded weights, tap-concatenated per phase
    # y_ref    : (4, TR*W, Cout)   bf16  conv output, phase-major (bias dropped:
    #                                    it is cancelled exactly by batch-stat BN)
    # psum_ref : (1, Cout)         f32   per-tile per-channel sum (f32 accumulator)
    # psq_ref  : (1, Cout)         f32   per-tile per-channel sum of squares
    trp2, wp2, cin = xs_ref.shape
    tr, w_out = trp2 - 2, wp2 - 2
    cout = y_ref.shape[-1]

    # Load each of the 9 unique shifted windows exactly once via ref slices.
    win = [[xs_ref[dy:dy + tr, dx:dx + w_out, :].reshape(tr * w_out, cin)
            for dx in range(3)] for dy in range(3)]

    s = jnp.zeros((1, cout), jnp.float32)
    sq = jnp.zeros((1, cout), jnp.float32)

    for a in range(2):              # output-row parity
        for b in range(2):          # output-col parity
            p = 2 * a + b
            # One matmul per phase: concat the four 2x2 taps along channels.
            lhs = jnp.concatenate(
                [win[a][b], win[a][b + 1], win[a + 1][b], win[a + 1][b + 1]],
                axis=-1)                                   # (TR*W, 4*Cin)
            acc = jnp.dot(lhs, w_ref[p],
                          preferred_element_type=jnp.float32)  # (TR*W, Cout) f32
            # BN partial stats from the f32 accumulator, before the bf16 cast.
            s = s + jnp.sum(acc, axis=0, keepdims=True)
            sq = sq + jnp.sum(acc * acc, axis=0, keepdims=True)
            y_ref[p] = acc.astype(y_ref.dtype)

    psum_ref[...] = s
    psq_ref[...] = sq


# --------------------------------------------------------------------------
# Pass 2: BatchNorm (precomputed scale/shift, f32 math) + ReLU, bf16 storage.
# --------------------------------------------------------------------------
def bn_relu_kernel(y_ref, scale_ref, shift_ref, o_ref):
    # y_ref: (4, TR*W, Cout) bf16;  scale/shift: (1, Cout) f32;  o_ref bf16
    z = y_ref[...].astype(jnp.float32) * scale_ref[...] + shift_ref[...]
    o_ref[...] = jnp.maximum(z, 0.0).astype(o_ref.dtype)


# --------------------------------------------------------------------------
# Wrapper-side helpers.
# --------------------------------------------------------------------------
def _fold_subpixel_weights(w_oihw):
    """(Cout, Cin, 3, 3) -> (4, 4*Cin, Cout) bf16, taps concatenated per phase."""
    cout, cin = w_oihw.shape[0], w_oihw.shape[1]
    wt = jnp.transpose(w_oihw, (2, 3, 1, 0)).astype(jnp.float32)  # (ky,kx,Cin,Cout)
    phases = []
    for a in range(2):
        for b in range(2):
            taps = []
            for r in range(2):
                for c in range(2):
                    acc = jnp.zeros((cin, cout), jnp.float32)
                    for ky in _GROUPS[a][r]:
                        for kx in _GROUPS[b][c]:
                            acc = acc + wt[ky, kx]
                    taps.append(acc)
            phases.append(jnp.concatenate(taps, axis=0))            # (4*Cin, Cout)
    return jnp.stack(phases, axis=0).astype(jnp.bfloat16)           # (4,4*Cin,Cout)


def _vmem_limit_bytes():
    """Per-generation scoped-VMEM limit (<=48 MiB on v7x's 64 MiB VMEM,
    ~96 MiB on v5e/v6e's 128 MiB)."""
    try:
        cap = int(pltpu.get_tpu_info().vmem_capacity_bytes)
    except Exception:
        cap = 64 << 20                     # conservative fallback (v7x per-core)
    return min(cap * 3 // 4, 96 << 20)


def _pick_row_tile(N, H, W, Cin, Cout, budget_bytes):
    """Largest row tile dividing H whose per-step working set fits the budget,
    while keeping >= 2 grid steps alive for megacore occupancy."""
    w_bytes = 4 * 4 * Cin * Cout * 2                   # resident folded weights
    best = 1
    for tr in range(1, H + 1):
        if H % tr:
            continue
        if N * (H // tr) < min(2, N * H):              # megacore: >= 2 parallel steps
            continue
        strip = (tr + 2) * (W + 2) * Cin * 2           # bf16 input strip
        ytile = 4 * tr * W * Cout * 2                  # bf16 conv tile
        pass1 = 2 * (strip + ytile) + w_bytes          # double-buffered in/out
        pass2 = 2 * 2 * ytile                          # y in + out, double-buffered
        if max(pass1, pass2) <= budget_bytes:
            best = tr
    return best


def up_conv_forward(x_nchw, w_oihw, bias, gamma, beta):
    """Forward pass matching PyTorch up_conv (training-mode BN). NCHW in/out.

    `bias` is accepted for parameter parity but is not applied: under
    training-mode BatchNorm (batch statistics) the conv bias is cancelled
    exactly, so dropping it is output-equivalent and saves a per-phase add.
    """
    del bias
    N, Cin, H, W = x_nchw.shape
    Cout = w_oihw.shape[0]
    Ho, Wo = 2 * H, 2 * W

    vmem_limit = _vmem_limit_bytes()
    TR = _pick_row_tile(N, H, W, Cin, Cout, vmem_limit // 2)
    nt = H // TR

    # ---- glue (plain JAX, original resolution only): NHWC, bf16, pad, strips ----
    # TODO(synk): for very deep layers (Cin>=256) the pad/strip materialisation
    # could be removed entirely with memory_space=pl.ANY + manual halo DMA.
    x = jnp.transpose(x_nchw, (0, 2, 3, 1)).astype(jnp.bfloat16)       # NHWC
    xpad = jnp.pad(x, ((0, 0), (1, 1), (1, 1), (0, 0)))                # (N,H+2,W+2,Cin)
    if nt == 1:
        strips = xpad[:, None]                                         # no gather
    else:
        row_idx = (jnp.arange(nt) * TR)[:, None] + jnp.arange(TR + 2)[None, :]
        strips = xpad[:, row_idx]                                      # (N,nt,TR+2,W+2,Cin)

    w_eff = _fold_subpixel_weights(w_oihw)                             # (4,4*Cin,Cout)

    cparams = pltpu.CompilerParams(
        dimension_semantics=("parallel", "parallel"),
        vmem_limit_bytes=vmem_limit)

    # ---- pass 1: sub-pixel conv (bf16 intermediate), per-tile BN partial stats ----
    y, psum, psq = pl.pallas_call(
        conv_subpixel_kernel,
        out_shape=(
            jax.ShapeDtypeStruct((N, nt, 4, TR * W, Cout), jnp.bfloat16),
            jax.ShapeDtypeStruct((N, nt, 1, Cout), jnp.float32),
            jax.ShapeDtypeStruct((N, nt, 1, Cout), jnp.float32),
        ),
        grid=(N, nt),
        in_specs=[
            pl.BlockSpec((None, None, TR + 2, W + 2, Cin),
                         lambda n, t: (n, t, 0, 0, 0)),
            pl.BlockSpec((4, 4 * Cin, Cout), lambda n, t: (0, 0, 0)),
        ],
        out_specs=(
            pl.BlockSpec((None, None, 4, TR * W, Cout),
                         lambda n, t: (n, t, 0, 0, 0)),
            pl.BlockSpec((None, None, 1, Cout), lambda n, t: (n, t, 0, 0)),
            pl.BlockSpec((None, None, 1, Cout), lambda n, t: (n, t, 0, 0)),
        ),
        compiler_params=cparams,
    )(strips, w_eff)

    # ---- tiny JAX reduction: exact batch statistics -> BN scale/shift ----
    # TODO(synk): PyTorch also updates BN running_mean/running_var buffers in
    # training mode; that side effect does not affect the forward output.
    cnt = jnp.float32(N * Ho * Wo)
    mean = jnp.sum(psum, axis=(0, 1, 2)) / cnt
    var = jnp.maximum(jnp.sum(psq, axis=(0, 1, 2)) / cnt - mean * mean, 0.0)
    scale = (gamma.astype(jnp.float32) * jax.lax.rsqrt(var + BN_EPS)).reshape(1, Cout)
    shift = beta.astype(jnp.float32).reshape(1, Cout) - mean.reshape(1, Cout) * scale

    # ---- pass 2: BN apply (f32 math) + ReLU, bf16 storage ----
    y_bn = pl.pallas_call(
        bn_relu_kernel,
        out_shape=jax.ShapeDtypeStruct((N, nt, 4, TR * W, Cout), jnp.bfloat16),
        grid=(N, nt),
        in_specs=[
            pl.BlockSpec((None, None, 4, TR * W, Cout),
                         lambda n, t: (n, t, 0, 0, 0)),
            pl.BlockSpec((1, Cout), lambda n, t: (0, 0)),
            pl.BlockSpec((1, Cout), lambda n, t: (0, 0)),
        ],
        out_specs=pl.BlockSpec((None, None, 4, TR * W, Cout),
                               lambda n, t: (n, t, 0, 0, 0)),
        compiler_params=cparams,
    )(y, scale, shift)

    # ---- glue: de-interleave sub-pixel phases + channels-last -> NCHW ----
    # Single fused XLA copy (reads bf16, writes f32); the phase interleave and
    # the mandatory NCHW conversion share one HBM round trip.
    out7 = y_bn.reshape(N, nt, 2, 2, TR, W, Cout)        # (n, t, a, b, il, j, c)
    out = jnp.transpose(out7, (0, 6, 1, 4, 2, 5, 3))     # (n, c, t, il, a, j, b)
    return out.reshape(N, Cout, Ho, Wo).astype(jnp.float32)


# --------------------------------------------------------------------------
# Pure-JAX reference (same bf16 input/weight rounding as the kernel path).
# --------------------------------------------------------------------------
def _reference_up_conv(x_nchw, w_oihw, bias, gamma, beta):
    xb = x_nchw.astype(jnp.bfloat16).astype(jnp.float32)
    wb = w_oihw.astype(jnp.bfloat16).astype(jnp.float32)
    x_up = jnp.repeat(jnp.repeat(xb, 2, axis=2), 2, axis=3)      # nearest x2
    y = jax.lax.conv_general_dilated(
        x_up, wb, window_strides=(1, 1), padding=((1, 1), (1, 1)),
        dimension_numbers=("NCHW", "OIHW", "NCHW"),
        preferred_element_type=jnp.float32)
    y = y + bias.reshape(1, -1, 1, 1)
    mean = jnp.mean(y, axis=(0, 2, 3), keepdims=True)
    var = jnp.mean((y - mean) ** 2, axis=(0, 2, 3), keepdims=True)
    y = (y - mean) * jax.lax.rsqrt(var + BN_EPS)
    y = y * gamma.reshape(1, -1, 1, 1) + beta.reshape(1, -1, 1, 1)
    return jnp.maximum(y, 0.0)


if __name__ == "__main__":
    # Small shapes: batch=2, ch_in=4, ch_out=8, spatial 16x16 -> output 32x32.
    N, Cin, Cout, H, W = 2, 4, 8, 16, 16

    key = jax.random.PRNGKey(0)
    kx, kw, kb, kg, kbe = jax.random.split(key, 5)

    x = jax.random.normal(kx, (N, Cin, H, W), dtype=jnp.float32)
    w_oihw = jax.random.normal(kw, (Cout, Cin, 3, 3), dtype=jnp.float32) * 0.1
    bias = jax.random.normal(kb, (Cout,), dtype=jnp.float32) * 0.05
    gamma = 1.0 + 0.1 * jax.random.normal(kg, (Cout,), dtype=jnp.float32)
    beta = 0.05 * jax.random.normal(kbe, (Cout,), dtype=jnp.float32)

    fwd = jax.jit(up_conv_forward)
    out = jax.block_until_ready(fwd(x, w_oihw, bias, gamma, beta))
    assert out.shape == (N, Cout, 2 * H, 2 * W), out.shape

    ref = jax.block_until_ready(_reference_up_conv(x, w_oihw, bias, gamma, beta))
    max_err = float(jnp.max(jnp.abs(out - ref)))
    assert max_err < 1e-1, f"max |err| = {max_err}"

    print("KERNEL_OK")
</pallas_src>

<mosaic_0001>
module attributes {stable_mosaic.version = 11 : i64} {
  func.func @bn_relu_kernel(%arg0: i32, %arg1: i32, %arg2: memref<1x1x4x256x8xbf16, #tpu.memory_space<vmem>>, %arg3: memref<1x8xf32, #tpu.memory_space<vmem>>, %arg4: memref<1x8xf32, #tpu.memory_space<vmem>>, %arg5: memref<1x1x4x256x8xbf16, #tpu.memory_space<vmem>>) attributes {dimension_semantics = [#tpu.dimension_semantics<parallel>, #tpu.dimension_semantics<parallel>], iteration_bounds = array<i64: 2, 1>, scalar_prefetch = 0 : i64, scratch_operands = 0 : i64, tpu.core_type = #tpu.core_type<tc>, window_params = [{transform_indices = @transform_0, window_bounds = array<i64: 1, 1, 4, 256, 8>}, {pipeline_mode = #tpu.pipeline_mode<synchronous>, transform_indices = @transform_1, window_bounds = array<i64: 1, 8>}, {pipeline_mode = #tpu.pipeline_mode<synchronous>, transform_indices = @transform_2, window_bounds = array<i64: 1, 8>}, {transform_indices = @transform_3, window_bounds = array<i64: 1, 1, 4, 256, 8>}]} {
    %c0 = arith.constant 0 : index
    %c0_0 = arith.constant 0 : index
    %c0_1 = arith.constant 0 : index
    %c0_2 = arith.constant 0 : index
    %c0_3 = arith.constant 0 : index
    %0 = vector.load %arg2[%c0, %c0_0, %c0_1, %c0_2, %c0_3] : memref<1x1x4x256x8xbf16, #tpu.memory_space<vmem>>, vector<1x1x4x256x8xbf16>
    %1 = vector.shape_cast %0 : vector<1x1x4x256x8xbf16> to vector<4x256x8xbf16>
    %2 = arith.extf %1 : vector<4x256x8xbf16> to vector<4x256x8xf32>
    %c0_4 = arith.constant 0 : index
    %c0_5 = arith.constant 0 : index
    %3 = vector.load %arg3[%c0_4, %c0_5] : memref<1x8xf32, #tpu.memory_space<vmem>>, vector<1x8xf32>
    %4 = vector.shape_cast %3 : vector<1x8xf32> to vector<1x1x8xf32>
    %5 = vector.broadcast %4 : vector<1x1x8xf32> to vector<4x256x8xf32>
    %6 = arith.mulf %2, %5 : vector<4x256x8xf32>
    %c0_6 = arith.constant 0 : index
    %c0_7 = arith.constant 0 : index
    %7 = vector.load %arg4[%c0_6, %c0_7] : memref<1x8xf32, #tpu.memory_space<vmem>>, vector<1x8xf32>
    %8 = vector.shape_cast %7 : vector<1x8xf32> to vector<1x1x8xf32>
    %9 = vector.broadcast %8 : vector<1x1x8xf32> to vector<4x256x8xf32>
    %10 = arith.addf %6, %9 : vector<4x256x8xf32>
    %cst = arith.constant 0.000000e+00 : f32
    %11 = vector.broadcast %cst : f32 to vector<4x256x8xf32>
    %12 = arith.maximumf %10, %11 : vector<4x256x8xf32>
    %13 = arith.truncf %12 : vector<4x256x8xf32> to vector<4x256x8xbf16>
    %c0_8 = arith.constant 0 : index
    %c0_9 = arith.constant 0 : index
    %c0_10 = arith.constant 0 : index
    %c0_11 = arith.constant 0 : index
    %c0_12 = arith.constant 0 : index
    %14 = vector.load %arg5[%c0_8, %c0_9, %c0_10, %c0_11, %c0_12] : memref<1x1x4x256x8xbf16, #tpu.memory_space<vmem>>, vector<1x1x4x256x8xbf16>
    %15 = vector.shape_cast %14 : vector<1x1x4x256x8xbf16> to vector<4x256x8xbf16>
    %16 = vector.shape_cast %13 : vector<4x256x8xbf16> to vector<1x1x4x256x8xbf16>
    tpu.vector_store %arg5[%c0_8, %c0_9, %c0_10, %c0_11, %c0_12], %16 {strides = array<i32>} : memref<1x1x4x256x8xbf16, #tpu.memory_space<vmem>>, vector<1x1x4x256x8xbf16>,
    return
  }
  func.func @transform_0(%arg0: i32, %arg1: i32) -> (i32, i32, i32, i32, i32) {
    %c0_i32 = arith.constant 0 : i32
    %c0_i32_0 = arith.constant 0 : i32
    %c0_i32_1 = arith.constant 0 : i32
    %c0_i32_2 = arith.constant 0 : i32
    return %arg0, %arg1, %c0_i32, %c0_i32_0, %c0_i32_1 : i32, i32, i32, i32, i32
  }
  func.func @transform_1(%arg0: i32, %arg1: i32) -> (i32, i32) {
    %c0_i32 = arith.constant 0 : i32
    %c0_i32_0 = arith.constant 0 : i32
    %c0_i32_1 = arith.constant 0 : i32
    return %c0_i32, %c0_i32_0 : i32, i32
  }
  func.func @transform_2(%arg0: i32, %arg1: i32) -> (i32, i32) {
    %c0_i32 = arith.constant 0 : i32
    %c0_i32_0 = arith.constant 0 : i32
    %c0_i32_1 = arith.constant 0 : i32
    return %c0_i32, %c0_i32_0 : i32, i32
  }
  func.func @transform_3(%arg0: i32, %arg1: i32) -> (i32, i32, i32, i32, i32) {
    %c0_i32 = arith.constant 0 : i32
    %c0_i32_0 = arith.constant 0 : i32
    %c0_i32_1 = arith.constant 0 : i32
    %c0_i32_2 = arith.constant 0 : i32
    return %arg0, %arg1, %c0_i32, %c0_i32_0, %c0_i32_1 : i32, i32, i32, i32, i32
  }
}

module attributes {stable_mosaic.version = 11 : i64} {
  func.func @conv_subpixel_kernel(%arg0: i32, %arg1: i32, %arg2: memref<1x1x18x18x4xbf16, #tpu.memory_space<vmem>>, %arg3: memref<4x16x8xbf16, #tpu.memory_space<vmem>>, %arg4: memref<1x1x4x256x8xbf16, #tpu.memory_space<vmem>>, %arg5: memref<1x1x1x8xf32, #tpu.memory_space<vmem>>, %arg6: memref<1x1x1x8xf32, #tpu.memory_space<vmem>>) attributes {dimension_semantics = [#tpu.dimension_semantics<parallel>, #tpu.dimension_semantics<parallel>], iteration_bounds = array<i64: 2, 1>, scalar_prefetch = 0 : i64, scratch_operands = 0 : i64, tpu.core_type = #tpu.core_type<tc>, window_params = [{transform_indices = @transform_0, window_bounds = array<i64: 1, 1, 18, 18, 4>}, {pipeline_mode = #tpu.pipeline_mode<synchronous>, transform_indices = @transform_1, window_bounds = array<i64: 4, 16, 8>}, {transform_indices = @transform_2, window_bounds = array<i64: 1, 1, 4, 256, 8>}, {transform_indices = @transform_3, window_bounds = array<i64: 1, 1, 1, 8>}, {transform_indices = @transform_4, window_bounds = array<i64: 1, 1, 1, 8>}]} {
    %c0 = arith.constant 0 : index
    %c0_0 = arith.constant 0 : index
    %c0_1 = arith.constant 0 : index
    %c0_2 = arith.constant 0 : index
    %c0_3 = arith.constant 0 : index
    %0 = vector.load %arg2[%c0, %c0_0, %c0_1, %c0_2, %c0_3] : memref<1x1x18x18x4xbf16, #tpu.memory_space<vmem>>, vector<1x1x16x16x4xbf16>
    %1 = vector.shape_cast %0 : vector<1x1x16x16x4xbf16> to vector<16x16x4xbf16>
    %2 = vector.shape_cast %1 : vector<16x16x4xbf16> to vector<256x4xbf16>
    %c0_4 = arith.constant 0 : index
    %c0_5 = arith.constant 0 : index
    %c0_6 = arith.constant 0 : index
    %c1 = arith.constant 1 : index
    %c0_7 = arith.constant 0 : index
    %3 = vector.load %arg2[%c0_4, %c0_5, %c0_6, %c1, %c0_7] : memref<1x1x18x18x4xbf16, #tpu.memory_space<vmem>>, vector<1x1x16x16x4xbf16>
    %4 = vector.shape_cast %3 : vector<1x1x16x16x4xbf16> to vector<16x16x4xbf16>
    %5 = vector.shape_cast %4 : vector<16x16x4xbf16> to vector<256x4xbf16>
    %c0_8 = arith.constant 0 : index
    %c0_9 = arith.constant 0 : index
    %c0_10 = arith.constant 0 : index
    %c2 = arith.constant 2 : index
    %c0_11 = arith.constant 0 : index
    %6 = vector.load %arg2[%c0_8, %c0_9, %c0_10, %c2, %c0_11] : memref<1x1x18x18x4xbf16, #tpu.memory_space<vmem>>, vector<1x1x16x16x4xbf16>
    %7 = vector.shape_cast %6 : vector<1x1x16x16x4xbf16> to vector<16x16x4xbf16>
    %8 = vector.shape_cast %7 : vector<16x16x4xbf16> to vector<256x4xbf16>
    %c0_12 = arith.constant 0 : index
    %c0_13 = arith.constant 0 : index
    %c1_14 = arith.constant 1 : index
    %c0_15 = arith.constant 0 : index
    %c0_16 = arith.constant 0 : index
    %9 = vector.load %arg2[%c0_12, %c0_13, %c1_14, %c0_15, %c0_16] : memref<1x1x18x18x4xbf16, #tpu.memory_space<vmem>>, vector<1x1x16x16x4xbf16>
    %10 = vector.shape_cast %9 : vector<1x1x16x16x4xbf16> to vector<16x16x4xbf16>
    %11 = vector.shape_cast %10 : vector<16x16x4xbf16> to vector<256x4xbf16>
    %c0_17 = arith.constant 0 : index
    %c0_18 = arith.constant 0 : index
    %c1_19 = arith.constant 1 : index
    %c1_20 = arith.constant 1 : index
    %c0_21 = arith.constant 0 : index
    %12 = vector.load %arg2[%c0_17, %c0_18, %c1_19, %c1_20, %c0_21] : memref<1x1x18x18x4xbf16, #tpu.memory_space<vmem>>, vector<1x1x16x16x4xbf16>
    %13 = vector.shape_cast %12 : vector<1x1x16x16x4xbf16> to vector<16x16x4xbf16>
    %14 = vector.shape_cast %13 : vector<16x16x4xbf16> to vector<256x4xbf16>
    %c0_22 = arith.constant 0 : index
    %c0_23 = arith.constant 0 : index
    %c1_24 = arith.constant 1 : index
    %c2_25 = arith.constant 2 : index
    %c0_26 = arith.constant 0 : index
    %15 = vector.load %arg2[%c0_22, %c0_23, %c1_24, %c2_25, %c0_26] : memref<1x1x18x18x4xbf16, #tpu.memory_space<vmem>>, vector<1x1x16x16x4xbf16>
    %16 = vector.shape_cast %15 : vector<1x1x16x16x4xbf16> to vector<16x16x4xbf16>
    %17 = vector.shape_cast %16 : vector<16x16x4xbf16> to vector<256x4xbf16>
    %c0_27 = arith.constant 0 : index
    %c0_28 = arith.constant 0 : index
    %c2_29 = arith.constant 2 : index
    %c0_30 = arith.constant 0 : index
    %c0_31 = arith.constant 0 : index
    %18 = vector.load %arg2[%c0_27, %c0_28, %c2_29, %c0_30, %c0_31] : memref<1x1x18x18x4xbf16, #tpu.memory_space<vmem>>, vector<1x1x16x16x4xbf16>
    %19 = vector.shape_cast %18 : vector<1x1x16x16x4xbf16> to vector<16x16x4xbf16>
    %20 = vector.shape_cast %19 : vector<16x16x4xbf16> to vector<256x4xbf16>
    %c0_32 = arith.constant 0 : index
    %c0_33 = arith.constant 0 : index
    %c2_34 = arith.constant 2 : index
    %c1_35 = arith.constant 1 : index
    %c0_36 = arith.constant 0 : index
    %21 = vector.load %arg2[%c0_32, %c0_33, %c2_34, %c1_35, %c0_36] : memref<1x1x18x18x4xbf16, #tpu.memory_space<vmem>>, vector<1x1x16x16x4xbf16>
    %22 = vector.shape_cast %21 : vector<1x1x16x16x4xbf16> to vector<16x16x4xbf16>
    %23 = vector.shape_cast %22 : vector<16x16x4xbf16> to vector<256x4xbf16>
    %c0_37 = arith.constant 0 : index
    %c0_38 = arith.constant 0 : index
    %c2_39 = arith.constant 2 : index
    %c2_40 = arith.constant 2 : index
    %c0_41 = arith.constant 0 : index
    %24 = vector.load %arg2[%c0_37, %c0_38, %c2_39, %c2_40, %c0_41] : memref<1x1x18x18x4xbf16, #tpu.memory_space<vmem>>, vector<1x1x16x16x4xbf16>
    %25 = vector.shape_cast %24 : vector<1x1x16x16x4xbf16> to vector<16x16x4xbf16>
    %26 = vector.shape_cast %25 : vector<16x16x4xbf16> to vector<256x4xbf16>
    %cst = arith.constant 0.000000e+00 : f32
    %27 = vector.broadcast %cst : f32 to vector<1x8xf32>
    %cst_42 = arith.constant 0.000000e+00 : f32
    %28 = vector.broadcast %cst_42 : f32 to vector<1x8xf32>
    %29 = tpu.concatenate %2, %5, %11, %14 in 1 : vector<256x4xbf16>, vector<256x4xbf16>, vector<256x4xbf16>, vector<256x4xbf16> -> vector<256x16xbf16>
    %c0_43 = arith.constant 0 : index
    %c0_44 = arith.constant 0 : index
    %c0_45 = arith.constant 0 : index
    %30 = vector.load %arg3[%c0_43, %c0_44, %c0_45] : memref<4x16x8xbf16, #tpu.memory_space<vmem>>, vector<1x16x8xbf16>
    %31 = vector.shape_cast %30 : vector<1x16x8xbf16> to vector<16x8xbf16>
    %cst_46 = arith.constant dense<0.000000e+00> : vector<256x8xf32>
    %32 = tpu.matmul %29, %31, %cst_46 {dimension_numbers = #tpu.dot_dimension_numbers<[1], [0], [0], [1], [0, 0, 1, 1], [], []>} : vector<256x16xbf16>, vector<16x8xbf16>, vector<256x8xf32> -> vector<256x8xf32>
    %cst_47 = arith.constant dense<0.000000e+00> : vector<8xf32>
    %33 = vector.multi_reduction <add>, %32, %cst_47 [0] : vector<256x8xf32> to vector<8xf32>
    %34 = vector.shape_cast %33 : vector<8xf32> to vector<1x8xf32>
    %35 = arith.addf %27, %34 : vector<1x8xf32>
    %36 = arith.mulf %32, %32 : vector<256x8xf32>
    %cst_48 = arith.constant dense<0.000000e+00> : vector<8xf32>
    %37 = vector.multi_reduction <add>, %36, %cst_48 [0] : vector<256x8xf32> to vector<8xf32>
    %38 = vector.shape_cast %37 : vector<8xf32> to vector<1x8xf32>
    %39 = arith.addf %28, %38 : vector<1x8xf32>
    %40 = arith.truncf %32 : vector<256x8xf32> to vector<256x8xbf16>
    %c0_49 = arith.constant 0 : index
    %c0_50 = arith.constant 0 : index
    %c0_51 = arith.constant 0 : index
    %c0_52 = arith.constant 0 : index
    %c0_53 = arith.constant 0 : index
    %41 = vector.load %arg4[%c0_49, %c0_50, %c0_51, %c0_52, %c0_53] : memref<1x1x4x256x8xbf16, #tpu.memory_space<vmem>>, vector<1x1x1x256x8xbf16>
    %42 = vector.shape_cast %41 : vector<1x1x1x256x8xbf16> to vector<256x8xbf16>
    %43 = vector.shape_cast %40 : vector<256x8xbf16> to vector<1x1x1x256x8xbf16>
    tpu.vector_store %arg4[%c0_49, %c0_50, %c0_51, %c0_52, %c0_53], %43 {strides = array<i32>} : memref<1x1x4x256x8xbf16, #tpu.memory_space<vmem>>, vector<1x1x1x256x8xbf16>,
    %44 = tpu.concatenate %5, %8, %14, %17 in 1 : vector<256x4xbf16>, vector<256x4xbf16>, vector<256x4xbf16>, vector<256x4xbf16> -> vector<256x16xbf16>
    %c1_54 = arith.constant 1 : index
    %c0_55 = arith.constant 0 : index
    %c0_56 = arith.constant 0 : index
    %45 = vector.load %arg3[%c1_54, %c0_55, %c0_56] : memref<4x16x8xbf16, #tpu.memory_space<vmem>>, vector<1x16x8xbf16>
    %46 = vector.shape_cast %45 : vector<1x16x8xbf16> to vector<16x8xbf16>
    %cst_57 = arith.constant dense<0.000000e+00> : vector<256x8xf32>
    %47 = tpu.matmul %44, %46, %cst_57 {dimension_numbers = #tpu.dot_dimension_numbers<[1], [0], [0], [1], [0, 0, 1, 1], [], []>} : vector<256x16xbf16>, vector<16x8xbf16>, vector<256x8xf32> -> vector<256x8xf32>
    %cst_58 = arith.constant dense<0.000000e+00> : vector<8xf32>
    %48 = vector.multi_reduction <add>, %47, %cst_58 [0] : vector<256x8xf32> to vector<8xf32>
    %49 = vector.shape_cast %48 : vector<8xf32> to vector<1x8xf32>
    %50 = arith.addf %35, %49 : vector<1x8xf32>
    %51 = arith.mulf %47, %47 : vector<256x8xf32>
    %cst_59 = arith.constant dense<0.000000e+00> : vector<8xf32>
    %52 = vector.multi_reduction <add>, %51, %cst_59 [0] : vector<256x8xf32> to vector<8xf32>
    %53 = vector.shape_cast %52 : vector<8xf32> to vector<1x8xf32>
    %54 = arith.addf %39, %53 : vector<1x8xf32>
    %55 = arith.truncf %47 : vector<256x8xf32> to vector<256x8xbf16>
    %c0_60 = arith.constant 0 : index
    %c0_61 = arith.constant 0 : index
    %c1_62 = arith.constant 1 : index
    %c0_63 = arith.constant 0 : index
    %c0_64 = arith.constant 0 : index
    %56 = vector.load %arg4[%c0_60, %c0_61, %c1_62, %c0_63, %c0_64] : memref<1x1x4x256x8xbf16, #tpu.memory_space<vmem>>, vector<1x1x1x256x8xbf16>
    %57 = vector.shape_cast %56 : vector<1x1x1x256x8xbf16> to vector<256x8xbf16>
    %58 = vector.shape_cast %55 : vector<256x8xbf16> to vector<1x1x1x256x8xbf16>
    tpu.vector_store %arg4[%c0_60, %c0_61, %c1_62, %c0_63, %c0_64], %58 {strides = array<i32>} : memref<1x1x4x256x8xbf16, #tpu.memory_space<vmem>>, vector<1x1x1x256x8xbf16>,
    %59 = tpu.concatenate %11, %14, %20, %23 in 1 : vector<256x4xbf16>, vector<256x4xbf16>, vector<256x4xbf16>, vector<256x4xbf16> -> vector<256x16xbf16>
    %c2_65 = arith.constant 2 : index
    %c0_66 = arith.constant 0 : index
    %c0_67 = arith.constant 0 : index
    %60 = vector.load %arg3[%c2_65, %c0_66, %c0_67] : memref<4x16x8xbf16, #tpu.memory_space<vmem>>, vector<1x16x8xbf16>
    %61 = vector.shape_cast %60 : vector<1x16x8xbf16> to vector<16x8xbf16>
    %cst_68 = arith.constant dense<0.000000e+00> : vector<256x8xf32>
    %62 = tpu.matmul %59, %61, %cst_68 {dimension_numbers = #tpu.dot_dimension_numbers<[1], [0], [0], [1], [0, 0, 1, 1], [], []>} : vector<256x16xbf16>, vector<16x8xbf16>, vector<256x8xf32> -> vector<256x8xf32>
    %cst_69 = arith.constant dense<0.000000e+00> : vector<8xf32>
    %63 = vector.multi_reduction <add>, %62, %cst_69 [0] : vector<256x8xf32> to vector<8xf32>
    %64 = vector.shape_cast %63 : vector<8xf32> to vector<1x8xf32>
    %65 = arith.addf %50, %64 : vector<1x8xf32>
    %66 = arith.mulf %62, %62 : vector<256x8xf32>
    %cst_70 = arith.constant dense<0.000000e+00> : vector<8xf32>
    %67 = vector.multi_reduction <add>, %66, %cst_70 [0] : vector<256x8xf32> to vector<8xf32>
    %68 = vector.shape_cast %67 : vector<8xf32> to vector<1x8xf32>
    %69 = arith.addf %54, %68 : vector<1x8xf32>
    %70 = arith.truncf %62 : vector<256x8xf32> to vector<256x8xbf16>
    %c0_71 = arith.constant 0 : index
    %c0_72 = arith.constant 0 : index
    %c2_73 = arith.constant 2 : index
    %c0_74 = arith.constant 0 : index
    %c0_75 = arith.constant 0 : index
    %71 = vector.load %arg4[%c0_71, %c0_72, %c2_73, %c0_74, %c0_75] : memref<1x1x4x256x8xbf16, #tpu.memory_space<vmem>>, vector<1x1x1x256x8xbf16>
    %72 = vector.shape_cast %71 : vector<1x1x1x256x8xbf16> to vector<256x8xbf16>
    %73 = vector.shape_cast %70 : vector<256x8xbf16> to vector<1x1x1x256x8xbf16>
    tpu.vector_store %arg4[%c0_71, %c0_72, %c2_73, %c0_74, %c0_75], %73 {strides = array<i32>} : memref<1x1x4x256x8xbf16, #tpu.memory_space<vmem>>, vector<1x1x1x256x8xbf16>,
    %74 = tpu.concatenate %14, %17, %23, %26 in 1 : vector<256x4xbf16>, vector<256x4xbf16>, vector<256x4xbf16>, vector<256x4xbf16> -> vector<256x16xbf16>
    %c3 = arith.constant 3 : index
    %c0_76 = arith.constant 0 : index
    %c0_77 = arith.constant 0 : index
    %75 = vector.load %arg3[%c3, %c0_76, %c0_77] : memref<4x16x8xbf16, #tpu.memory_space<vmem>>, vector<1x16x8xbf16>
    %76 = vector.shape_cast %75 : vector<1x16x8xbf16> to vector<16x8xbf16>
    %cst_78 = arith.constant dense<0.000000e+00> : vector<256x8xf32>
    %77 = tpu.matmul %74, %76, %cst_78 {dimension_numbers = #tpu.dot_dimension_numbers<[1], [0], [0], [1], [0, 0, 1, 1], [], []>} : vector<256x16xbf16>, vector<16x8xbf16>, vector<256x8xf32> -> vector<256x8xf32>
    %cst_79 = arith.constant dense<0.000000e+00> : vector<8xf32>
    %78 = vector.multi_reduction <add>, %77, %cst_79 [0] : vector<256x8xf32> to vector<8xf32>
    %79 = vector.shape_cast %78 : vector<8xf32> to vector<1x8xf32>
    %80 = arith.addf %65, %79 : vector<1x8xf32>
    %81 = arith.mulf %77, %77 : vector<256x8xf32>
    %cst_80 = arith.constant dense<0.000000e+00> : vector<8xf32>
    %82 = vector.multi_reduction <add>, %81, %cst_80 [0] : vector<256x8xf32> to vector<8xf32>
    %83 = vector.shape_cast %82 : vector<8xf32> to vector<1x8xf32>
    %84 = arith.addf %69, %83 : vector<1x8xf32>
    %85 = arith.truncf %77 : vector<256x8xf32> to vector<256x8xbf16>
    %c0_81 = arith.constant 0 : index
    %c0_82 = arith.constant 0 : index
    %c3_83 = arith.constant 3 : index
    %c0_84 = arith.constant 0 : index
    %c0_85 = arith.constant 0 : index
    %86 = vector.load %arg4[%c0_81, %c0_82, %c3_83, %c0_84, %c0_85] : memref<1x1x4x256x8xbf16, #tpu.memory_space<vmem>>, vector<1x1x1x256x8xbf16>
    %87 = vector.shape_cast %86 : vector<1x1x1x256x8xbf16> to vector<256x8xbf16>
    %88 = vector.shape_cast %85 : vector<256x8xbf16> to vector<1x1x1x256x8xbf16>
    tpu.vector_store %arg4[%c0_81, %c0_82, %c3_83, %c0_84, %c0_85], %88 {strides = array<i32>} : memref<1x1x4x256x8xbf16, #tpu.memory_space<vmem>>, vector<1x1x1x256x8xbf16>,
    %c0_86 = arith.constant 0 : index
    %c0_87 = arith.constant 0 : index
    %c0_88 = arith.constant 0 : index
    %c0_89 = arith.constant 0 : index
    %89 = vector.load %arg5[%c0_86, %c0_87, %c0_88, %c0_89] : memref<1x1x1x8xf32, #tpu.memory_space<vmem>>, vector<1x1x1x8xf32>
    %90 = vector.shape_cast %89 : vector<1x1x1x8xf32> to vector<1x8xf32>
    %91 = vector.shape_cast %80 : vector<1x8xf32> to vector<1x1x1x8xf32>
    tpu.vector_store %arg5[%c0_86, %c0_87, %c0_88, %c0_89], %91 {strides = array<i32>} : memref<1x1x1x8xf32, #tpu.memory_space<vmem>>, vector<1x1x1x8xf32>,
    %c0_90 = arith.constant 0 : index
    %c0_91 = arith.constant 0 : index
    %c0_92 = arith.constant 0 : index
    %c0_93 = arith.constant 0 : index
    %92 = vector.load %arg6[%c0_90, %c0_91, %c0_92, %c0_93] : memref<1x1x1x8xf32, #tpu.memory_space<vmem>>, vector<1x1x1x8xf32>
    %93 = vector.shape_cast %92 : vector<1x1x1x8xf32> to vector<1x8xf32>
    %94 = vector.shape_cast %84 : vector<1x8xf32> to vector<1x1x1x8xf32>
    tpu.vector_store %arg6[%c0_90, %c0_91, %c0_92, %c0_93], %94 {strides = array<i32>} : memref<1x1x1x8xf32, #tpu.memory_space<vmem>>, vector<1x1x1x8xf32>,
    return
  }
  func.func @transform_0(%arg0: i32, %arg1: i32) -> (i32, i32, i32, i32, i32) {
    %c0_i32 = arith.constant 0 : i32
    %c0_i32_0 = arith.constant 0 : i32
    %c0_i32_1 = arith.constant 0 : i32
    %c0_i32_2 = arith.constant 0 : i32
    return %arg0, %arg1, %c0_i32, %c0_i32_0, %c0_i32_1 : i32, i32, i32, i32, i32
  }
  func.func @transform_1(%arg0: i32, %arg1: i32) -> (i32, i32, i32) {
    %c0_i32 = arith.constant 0 : i32
    %c0_i32_0 = arith.constant 0 : i32
    %c0_i32_1 = arith.constant 0 : i32
    %c0_i32_2 = arith.constant 0 : i32
    return %c0_i32, %c0_i32_0, %c0_i32_1 : i32, i32, i32
  }
  func.func @transform_2(%arg0: i32, %arg1: i32) -> (i32, i32, i32, i32, i32) {
    %c0_i32 = arith.constant 0 : i32
    %c0_i32_0 = arith.constant 0 : i32
    %c0_i32_1 = arith.constant 0 : i32
    %c0_i32_2 = arith.constant 0 : i32
    return %arg0, %arg1, %c0_i32, %c0_i32_0, %c0_i32_1 : i32, i32, i32, i32, i32
  }
  func.func @transform_3(%arg0: i32, %arg1: i32) -> (i32, i32, i32, i32) {
    %c0_i32 = arith.constant 0 : i32
    %c0_i32_0 = arith.constant 0 : i32
    %c0_i32_1 = arith.constant 0 : i32
    return %arg0, %arg1, %c0_i32, %c0_i32_0 : i32, i32, i32, i32
  }
  func.func @transform_4(%arg0: i32, %arg1: i32) -> (i32, i32, i32, i32) {
    %c0_i32 = arith.constant 0 : i32
    %c0_i32_0 = arith.constant 0 : i32
    %c0_i32_1 = arith.constant 0 : i32
    return %arg0, %arg1, %c0_i32, %c0_i32_0 : i32, i32, i32, i32
  }
}

</mosaic_0001>

<bundles_post_ra>
// kernel: up_conv_forward.3
= control target key start
LH: loop header
LB: loop body
LE: loop exit
PB: predicated region body
PF: predicated region fallthrough
CT: control target
= control target key end

     0   :  { %s2254_s12 = smov 0   ;;  %s2256_s13 = smov 0   ;;  %s2894_s0 = inlined_call_operand.vmem [shape: bf16[2,1,4,256,8], index: 0, kind: input, shape index: {}]   ;;  %s2895_s1 = inlined_call_operand.vmem [shape: f32[1,8], index: 1, kind: input, shape index: {}]   ;;  %s2896_s2 = inlined_call_operand.vmem [shape: f32[1,8], index: 2, kind: input, shape index: {}]   ;;  %s2897_s3 = inlined_call_operand.vmem [shape: bf16[2,1,4,256,8], index: 3, kind: output, shape index: {}]  }
   0x1   :  { %s2258_s14 = smov 0  }
   0x2 LB: > { %s25_s15 = sadd.s32 1, %s2228_s13  ;;  %p1598_p0 = scmp.ge.s32.totalorder %s2232_s14, 1  ;;  %s2232_s14 = sphi %s2258_s14, %s13_s14   ;;  %s2228_s13 = sphi %s2256_s13, %s2899_s13   ;;  %s2224_s12 = sphi %s2254_s12, %s2898_s12  }
   0x3   : > { %p27_p1 = scmp.ge.s32.totalorder %s25_s15, 2  ;;  %p157_p2 = scmp.lt.s32.totalorder %s2232_s14, 3 }
   0x5   : > { %s2901_s15 = smov (%p27_p1, %s25_s15), 0  ;;  %p158_p3 = pnand %p1598_p0, %p157_p2 }
   0x6   : > { %p189_p4 = scmp.lt.s32.totalorder (!%p158_p3), %s2224_s12, 1  ;;  %v2285_v0 = vld [vmem:[%s2895_s1] ss:$0 sm:$0xff] (!%p158_p3)  ;;  %vm1373_vm0 = vcmask (!%p158_p3), 60416  }
   0x7   : > { %161 = sbr.rel (%p158_p3) target bundleno = 182 (0xb6), region = 32  ;;  %v2294_v9 = vld [vmem:[%s2896_s2] ss:$0 sm:$0xff] (!%p158_p3) }
   0xe   : > { %s2903_s12 = smov (!%p189_p4, %s2224_s12), 1 }
   0xf   : > { %s1735_s16 = sshll.u32 %s2903_s12, 9 }
  0x10   : > { %s2280_s19 = scalar_lea.vmem %s2894_s0, %s1735_s16  ;;  %s2317_s26 = scalar_lea.vmem %s2897_s3, %s1735_s16 }
  0x11   : > { %v1866_v1 = vld [vmem:[%s2280_s19] sm:$0xff]   ;;  %v2121_v2 = vld [vmem:[%s2280_s19 + $0x8] sm:$0xff]   ;;  %v2122_v3 = vld [vmem:[%s2280_s19 + $0x10] sm:$0xff]  }
  0x12   : > { %v1867_v4 = vunpack.c.l.bf16 %v1866_v1  ;;  %v1868_v5 = vunpack.c.h.bf16 %v1866_v1  ;;  %v1871_v6 = vunpack.c.l.bf16 %v2121_v2  ;;  %v1872_v7 = vunpack.c.h.bf16 %v2121_v2  ;;  %v2123_v8 = vld [vmem:[%s2280_s19 + $0x18] sm:$0xff]   ;;  %v2124_v38 = vld [vmem:[%s2280_s19 + $0x20] sm:$0xff]   ;;  %v2125_v39 = vld [vmem:[%s2280_s19 + $0x28] sm:$0xff]  }
  0x13   : > { %v1875_v10 = vunpack.c.l.bf16 %v2122_v3  ;;  %v1876_v11 = vunpack.c.h.bf16 %v2122_v3  ;;  %v1879_v12 = vunpack.c.l.bf16 %v2123_v8  ;;  %v1880_v13 = vunpack.c.h.bf16 %v2123_v8  ;;  %v2126_v44 = vld [vmem:[%s2280_s19 + $0x30] sm:$0xff]   ;;  %v2127_v45 = vld [vmem:[%s2280_s19 + $0x38] sm:$0xff]  }
  0x14   : > { %v470_v14 = vmul.f32 %v1867_v4, %v2285_v0  ;;  %v471_v15 = vmul.f32 %v1868_v5, %v2285_v0  ;;  %v472_v16 = vmul.f32 %v1871_v6, %v2285_v0  ;;  %v473_v17 = vmul.f32 %v1872_v7, %v2285_v0 }
  0x15   : > { %v474_v18 = vmul.f32 %v1875_v10, %v2285_v0  ;;  %v475_v19 = vmul.f32 %v1876_v11, %v2285_v0  ;;  %v476_v20 = vmul.f32 %v1879_v12, %v2285_v0  ;;  %v477_v21 = vmul.f32 %v1880_v13, %v2285_v0 }
  0x16   : > { %v605_v22 = vadd.f32 %v2294_v9, %v470_v14  ;;  %v606_v23 = vadd.f32 %v2294_v9, %v471_v15  ;;  %v607_v24 = vadd.f32 %v2294_v9, %v472_v16  ;;  %v608_v25 = vadd.f32 %v2294_v9, %v473_v17 }
  0x17   : > { %v609_v26 = vadd.f32 %v2294_v9, %v474_v18  ;;  %v610_v27 = vadd.f32 %v2294_v9, %v475_v19  ;;  %v611_v28 = vadd.f32 %v2294_v9, %v476_v20  ;;  %v612_v29 = vadd.f32 %v2294_v9, %v477_v21  ;;  %v2128_v20 = vld [vmem:[%s2280_s19 + $0x40] sm:$0xff]   ;;  %v2129_v21 = vld [vmem:[%s2280_s19 + $0x48] sm:$0xff]  }
  0x18   : > { %v733_v30 = vmax.f32 %v605_v22, 0.0  ;;  %v734_v31 = vmax.f32 %v606_v23, 0.0  ;;  %v735_v32 = vmax.f32 %v607_v24, 0.0  ;;  %v736_v33 = vmax.f32 %v608_v25, 0.0 }
  0x19   : > { %v737_v34 = vmax.f32 %v609_v26, 0.0  ;;  %v738_v35 = vmax.f32 %v610_v27, 0.0  ;;  %v739_v36 = vmax.f32 %v611_v28, 0.0  ;;  %v740_v37 = vmax.f32 %v612_v29, 0.0  ;;  %v2130_v26 = vld [vmem:[%s2280_s19 + $0x50] sm:$0xff]   ;;  %v2131_v27 = vld [vmem:[%s2280_s19 + $0x58] sm:$0xff]  }
  0x1a   : > { %v1737_v40 = vpack.c.bf16 %v733_v30, %v733_v30  ;;  %v1738_v41 = vpack.c.bf16 %v734_v31, %v734_v31  ;;  %v1739_v42 = vpack.c.bf16 %v735_v32, %v735_v32  ;;  %v1740_v43 = vpack.c.bf16 %v736_v33, %v736_v33 }
  0x1b   : > { %v1741_v46 = vpack.c.bf16 %v737_v34, %v737_v34  ;;  %v1742_v47 = vpack.c.bf16 %v738_v35, %v738_v35  ;;  %v1743_v48 = vpack.c.bf16 %v739_v36, %v739_v36  ;;  %v1744_v49 = vpack.c.bf16 %v740_v37, %v740_v37 }
  0x1c   : > { %1374 = vst.msk [vmem:[%s2317_s26] sm:$0xf] %vm1373_vm0, %v1737_v40  ;;  %1375 = vst.msk [vmem:[%s2317_s26 + $0x4] sm:$0xf] %vm1373_vm0, %v1738_v41  ;;  %v1883_v50 = vunpack.c.l.bf16 %v2124_v38  ;;  %v1884_v51 = vunpack.c.h.bf16 %v2124_v38  ;;  %v1887_v52 = vunpack.c.l.bf16 %v2125_v39  ;;  %v1888_v53 = vunpack.c.h.bf16 %v2125_v39 }
  0x1d   : > { %1376 = vst.msk [vmem:[%s2317_s26 + $0x8] sm:$0xf] %vm1373_vm0, %v1739_v42  ;;  %1377 = vst.msk [vmem:[%s2317_s26 + $0xc] sm:$0xf] %vm1373_vm0, %v1740_v43  ;;  %v1891_v54 = vunpack.c.l.bf16 %v2126_v44  ;;  %v1892_v55 = vunpack.c.h.bf16 %v2126_v44  ;;  %v1895_v56 = vunpack.c.l.bf16 %v2127_v45  ;;  %v1896_v57 = vunpack.c.h.bf16 %v2127_v45 }
  0x1e   : > { %1378 = vst.msk [vmem:[%s2317_s26 + $0x10] sm:$0xf] %vm1373_vm0, %v1741_v46  ;;  %1379 = vst.msk [vmem:[%s2317_s26 + $0x14] sm:$0xf] %vm1373_vm0, %v1742_v47  ;;  %v478_v58 = vmul.f32 %v1883_v50, %v2285_v0  ;;  %v479_v59 = vmul.f32 %v1884_v51, %v2285_v0  ;;  %v480_v60 = vmul.f32 %v1887_v52, %v2285_v0  ;;  %v1899_v32 = vunpack.c.l.bf16 %v2128_v20 }
  0x1f   : > { %1380 = vst.msk [vmem:[%s2317_s26 + $0x18] sm:$0xf] %vm1373_vm0, %v1743_v48  ;;  %1381 = vst.msk [vmem:[%s2317_s26 + $0x1c] sm:$0xf] %vm1373_vm0, %v1744_v49  ;;  %v481_v61 = vmul.f32 %v1888_v53, %v2285_v0  ;;  %v482_v62 = vmul.f32 %v1891_v54, %v2285_v0  ;;  %v483_v63 = vmul.f32 %v1892_v55, %v2285_v0  ;;  %v1900_v33 = vunpack.c.h.bf16 %v2128_v20 }
  0x20   : > { %v484_v1 = vmul.f32 %v1895_v56, %v2285_v0  ;;  %v485_v2 = vmul.f32 %v1896_v57, %v2285_v0  ;;  %v613_v3 = vadd.f32 %v2294_v9, %v478_v58  ;;  %v614_v4 = vadd.f32 %v2294_v9, %v479_v59 }
  0x21   : > { %v615_v5 = vadd.f32 %v2294_v9, %v480_v60  ;;  %v616_v6 = vadd.f32 %v2294_v9, %v481_v61  ;;  %v617_v7 = vadd.f32 %v2294_v9, %v482_v62  ;;  %v618_v8 = vadd.f32 %v2294_v9, %v483_v63 }
  0x22   : > { %v619_v10 = vadd.f32 %v2294_v9, %v484_v1  ;;  %v620_v11 = vadd.f32 %v2294_v9, %v485_v2  ;;  %v741_v12 = vmax.f32 %v613_v3, 0.0  ;;  %v742_v13 = vmax.f32 %v614_v4, 0.0  ;;  %v2132_v1 = vld [vmem:[%s2280_s19 + $0x60] sm:$0xff]   ;;  %v2133_v2 = vld [vmem:[%s2280_s19 + $0x68] sm:$0xff]  }
  0x23   : > { %v743_v14 = vmax.f32 %v615_v5, 0.0  ;;  %v744_v15 = vmax.f32 %v616_v6, 0.0  ;;  %v745_v16 = vmax.f32 %v617_v7, 0.0  ;;  %v746_v17 = vmax.f32 %v618_v8, 0.0  ;;  %v2134_v7 = vld [vmem:[%s2280_s19 + $0x70] sm:$0xff]   ;;  %v2135_v8 = vld [vmem:[%s2280_s19 + $0x78] sm:$0xff]  }
  0x24   : > { %v747_v18 = vmax.f32 %v619_v10, 0.0  ;;  %v748_v19 = vmax.f32 %v620_v11, 0.0  ;;  %v1745_v22 = vpack.c.bf16 %v741_v12, %v741_v12  ;;  %v1746_v23 = vpack.c.bf16 %v742_v13, %v742_v13 }
  0x25   : > { %v1747_v24 = vpack.c.bf16 %v743_v14, %v743_v14  ;;  %v1748_v25 = vpack.c.bf16 %v744_v15, %v744_v15  ;;  %v1749_v28 = vpack.c.bf16 %v745_v16, %v745_v16  ;;  %v1750_v29 = vpack.c.bf16 %v746_v17, %v746_v17 }
  0x26   : > { %v1751_v30 = vpack.c.bf16 %v747_v18, %v747_v18  ;;  %v1752_v31 = vpack.c.bf16 %v748_v19, %v748_v19  ;;  %1382 = vst.msk [vmem:[%s2317_s26 + $0x20] sm:$0xf] %vm1373_vm0, %v1745_v22  ;;  %1383 = vst.msk [vmem:[%s2317_s26 + $0x24] sm:$0xf] %vm1373_vm0, %v1746_v23  ;;  %v1903_v34 = vunpack.c.l.bf16 %v2129_v21  ;;  %v1904_v35 = vunpack.c.h.bf16 %v2129_v21 }
  0x27   : > { %1384 = vst.msk [vmem:[%s2317_s26 + $0x28] sm:$0xf] %vm1373_vm0, %v1747_v24  ;;  %1385 = vst.msk [vmem:[%s2317_s26 + $0x2c] sm:$0xf] %vm1373_vm0, %v1748_v25  ;;  %v1907_v36 = vunpack.c.l.bf16 %v2130_v26  ;;  %v1908_v37 = vunpack.c.h.bf16 %v2130_v26  ;;  %v1911_v38 = vunpack.c.l.bf16 %v2131_v27  ;;  %v1912_v39 = vunpack.c.h.bf16 %v2131_v27 }
  0x28   : > { %1386 = vst.msk [vmem:[%s2317_s26 + $0x30] sm:$0xf] %vm1373_vm0, %v1749_v28  ;;  %1387 = vst.msk [vmem:[%s2317_s26 + $0x34] sm:$0xf] %vm1373_vm0, %v1750_v29  ;;  %v486_v40 = vmul.f32 %v1899_v32, %v2285_v0  ;;  %v487_v41 = vmul.f32 %v1900_v33, %v2285_v0  ;;  %v488_v42 = vmul.f32 %v1903_v34, %v2285_v0  ;;  %v1915_v14 = vunpack.c.l.bf16 %v2132_v1 }
  0x29   : > { %1388 = vst.msk [vmem:[%s2317_s26 + $0x38] sm:$0xf] %vm1373_vm0, %v1751_v30  ;;  %1389 = vst.msk [vmem:[%s2317_s26 + $0x3c] sm:$0xf] %vm1373_vm0, %v1752_v31  ;;  %v489_v43 = vmul.f32 %v1904_v35, %v2285_v0  ;;  %v490_v44 = vmul.f32 %v1907_v36, %v2285_v0  ;;  %v491_v45 = vmul.f32 %v1908_v37, %v2285_v0  ;;  %v1916_v15 = vunpack.c.h.bf16 %v2132_v1 }
  0x2a   : > { %v492_v46 = vmul.f32 %v1911_v38, %v2285_v0  ;;  %v493_v47 = vmul.f32 %v1912_v39, %v2285_v0  ;;  %v621_v48 = vadd.f32 %v2294_v9, %v486_v40  ;;  %v622_v49 = vadd.f32 %v2294_v9, %v487_v41 }
  0x2b   : > { %v623_v50 = vadd.f32 %v2294_v9, %v488_v42  ;;  %v624_v51 = vadd.f32 %v2294_v9, %v489_v43  ;;  %v625_v52 = vadd.f32 %v2294_v9, %v490_v44  ;;  %v626_v53 = vadd.f32 %v2294_v9, %v491_v45 }
  0x2c   : > { %v627_v54 = vadd.f32 %v2294_v9, %v492_v46  ;;  %v628_v55 = vadd.f32 %v2294_v9, %v493_v47  ;;  %v749_v56 = vmax.f32 %v621_v48, 0.0  ;;  %v750_v57 = vmax.f32 %v622_v49, 0.0  ;;  %v2136_v46 = vld [vmem:[%s2280_s19 + $0x80] sm:$0xff]   ;;  %v2137_v47 = vld [vmem:[%s2280_s19 + $0x88] sm:$0xff]  }
  0x2d   : > { %v751_v58 = vmax.f32 %v623_v50, 0.0  ;;  %v752_v59 = vmax.f32 %v624_v51, 0.0  ;;  %v753_v60 = vmax.f32 %v625_v52, 0.0  ;;  %v754_v61 = vmax.f32 %v626_v53, 0.0  ;;  %v2138_v52 = vld [vmem:[%s2280_s19 + $0x90] sm:$0xff]   ;;  %v2139_v53 = vld [vmem:[%s2280_s19 + $0x98] sm:$0xff]  }
  0x2e   : > { %v755_v62 = vmax.f32 %v627_v54, 0.0  ;;  %v756_v63 = vmax.f32 %v628_v55, 0.0  ;;  %v1753_v3 = vpack.c.bf16 %v749_v56, %v749_v56  ;;  %v1754_v4 = vpack.c.bf16 %v750_v57, %v750_v57 }
  0x2f   : > { %v1755_v5 = vpack.c.bf16 %v751_v58, %v751_v58  ;;  %v1756_v6 = vpack.c.bf16 %v752_v59, %v752_v59  ;;  %v1757_v10 = vpack.c.bf16 %v753_v60, %v753_v60  ;;  %v1758_v11 = vpack.c.bf16 %v754_v61, %v754_v61 }
  0x30   : > { %v1759_v12 = vpack.c.bf16 %v755_v62, %v755_v62  ;;  %v1760_v13 = vpack.c.bf16 %v756_v63, %v756_v63  ;;  %1390 = vst.msk [vmem:[%s2317_s26 + $0x40] sm:$0xf] %vm1373_vm0, %v1753_v3  ;;  %1391 = vst.msk [vmem:[%s2317_s26 + $0x44] sm:$0xf] %vm1373_vm0, %v1754_v4  ;;  %v1919_v16 = vunpack.c.l.bf16 %v2133_v2  ;;  %v1920_v17 = vunpack.c.h.bf16 %v2133_v2 }
  0x31   : > { %1392 = vst.msk [vmem:[%s2317_s26 + $0x48] sm:$0xf] %vm1373_vm0, %v1755_v5  ;;  %1393 = vst.msk [vmem:[%s2317_s26 + $0x4c] sm:$0xf] %vm1373_vm0, %v1756_v6  ;;  %v1923_v18 = vunpack.c.l.bf16 %v2134_v7  ;;  %v1924_v19 = vunpack.c.h.bf16 %v2134_v7  ;;  %v1927_v20 = vunpack.c.l.bf16 %v2135_v8  ;;  %v1928_v21 = vunpack.c.h.bf16 %v2135_v8 }
  0x32   : > { %1394 = vst.msk [vmem:[%s2317_s26 + $0x50] sm:$0xf] %vm1373_vm0, %v1757_v10  ;;  %1395 = vst.msk [vmem:[%s2317_s26 + $0x54] sm:$0xf] %vm1373_vm0, %v1758_v11  ;;  %v494_v22 = vmul.f32 %v1915_v14, %v2285_v0  ;;  %v495_v23 = vmul.f32 %v1916_v15, %v2285_v0  ;;  %v496_v24 = vmul.f32 %v1919_v16, %v2285_v0  ;;  %v1931_v58 = vunpack.c.l.bf16 %v2136_v46 }
  0x33   : > { %1396 = vst.msk [vmem:[%s2317_s26 + $0x58] sm:$0xf] %vm1373_vm0, %v1759_v12  ;;  %1397 = vst.msk [vmem:[%s2317_s26 + $0x5c] sm:$0xf] %vm1373_vm0, %v1760_v13  ;;  %v497_v25 = vmul.f32 %v1920_v17, %v2285_v0  ;;  %v498_v26 = vmul.f32 %v1923_v18, %v2285_v0  ;;  %v499_v27 = vmul.f32 %v1924_v19, %v2285_v0  ;;  %v1932_v59 = vunpack.c.h.bf16 %v2136_v46 }
  0x34   : > { %v500_v28 = vmul.f32 %v1927_v20, %v2285_v0  ;;  %v501_v29 = vmul.f32 %v1928_v21, %v2285_v0  ;;  %v629_v30 = vadd.f32 %v2294_v9, %v494_v22  ;;  %v630_v31 = vadd.f32 %v2294_v9, %v495_v23 }
  0x35   : > { %v631_v32 = vadd.f32 %v2294_v9, %v496_v24  ;;  %v632_v33 = vadd.f32 %v2294_v9, %v497_v25  ;;  %v633_v34 = vadd.f32 %v2294_v9, %v498_v26  ;;  %v634_v35 = vadd.f32 %v2294_v9, %v499_v27 }
  0x36   : > { %v635_v36 = vadd.f32 %v2294_v9, %v500_v28  ;;  %v636_v37 = vadd.f32 %v2294_v9, %v501_v29  ;;  %v757_v38 = vmax.f32 %v629_v30, 0.0  ;;  %v758_v39 = vmax.f32 %v630_v31, 0.0  ;;  %v2140_v28 = vld [vmem:[%s2280_s19 + $0xa0] sm:$0xff]   ;;  %v2141_v29 = vld [vmem:[%s2280_s19 + $0xa8] sm:$0xff]  }
  0x37   : > { %v759_v40 = vmax.f32 %v631_v32, 0.0  ;;  %v760_v41 = vmax.f32 %v632_v33, 0.0  ;;  %v761_v42 = vmax.f32 %v633_v34, 0.0  ;;  %v762_v43 = vmax.f32 %v634_v35, 0.0  ;;  %v2142_v34 = vld [vmem:[%s2280_s19 + $0xb0] sm:$0xff]   ;;  %v2143_v35 = vld [vmem:[%s2280_s19 + $0xb8] sm:$0xff]  }
  0x38   : > { %v763_v44 = vmax.f32 %v635_v36, 0.0  ;;  %v764_v45 = vmax.f32 %v636_v37, 0.0  ;;  %v1761_v48 = vpack.c.bf16 %v757_v38, %v757_v38  ;;  %v1762_v49 = vpack.c.bf16 %v758_v39, %v758_v39 }
  0x39   : > { %v1763_v50 = vpack.c.bf16 %v759_v40, %v759_v40  ;;  %v1764_v51 = vpack.c.bf16 %v760_v41, %v760_v41  ;;  %v1765_v54 = vpack.c.bf16 %v761_v42, %v761_v42  ;;  %v1766_v55 = vpack.c.bf16 %v762_v43, %v762_v43 }
  0x3a   : > { %v1767_v56 = vpack.c.bf16 %v763_v44, %v763_v44  ;;  %v1768_v57 = vpack.c.bf16 %v764_v45, %v764_v45  ;;  %1398 = vst.msk [vmem:[%s2317_s26 + $0x60] sm:$0xf] %vm1373_vm0, %v1761_v48  ;;  %1399 = vst.msk [vmem:[%s2317_s26 + $0x64] sm:$0xf] %vm1373_vm0, %v1762_v49  ;;  %v1935_v60 = vunpack.c.l.bf16 %v2137_v47  ;;  %v1936_v61 = vunpack.c.h.bf16 %v2137_v47 }
  0x3b   : > { %1400 = vst.msk [vmem:[%s2317_s26 + $0x68] sm:$0xf] %vm1373_vm0, %v1763_v50  ;;  %1401 = vst.msk [vmem:[%s2317_s26 + $0x6c] sm:$0xf] %vm1373_vm0, %v1764_v51  ;;  %v1939_v62 = vunpack.c.l.bf16 %v2138_v52  ;;  %v1940_v63 = vunpack.c.h.bf16 %v2138_v52  ;;  %v1943_v1 = vunpack.c.l.bf16 %v2139_v53  ;;  %v1944_v2 = vunpack.c.h.bf16 %v2139_v53 }
  0x3c   : > { %1402 = vst.msk [vmem:[%s2317_s26 + $0x70] sm:$0xf] %vm1373_vm0, %v1765_v54  ;;  %1403 = vst.msk [vmem:[%s2317_s26 + $0x74] sm:$0xf] %vm1373_vm0, %v1766_v55  ;;  %v502_v3 = vmul.f32 %v1931_v58, %v2285_v0  ;;  %v503_v4 = vmul.f32 %v1932_v59, %v2285_v0  ;;  %v504_v5 = vmul.f32 %v1935_v60, %v2285_v0  ;;  %v1947_v40 = vunpack.c.l.bf16 %v2140_v28 }
  0x3d   : > { %1404 = vst.msk [vmem:[%s2317_s26 + $0x78] sm:$0xf] %vm1373_vm0, %v1767_v56  ;;  %1405 = vst.msk [vmem:[%s2317_s26 + $0x7c] sm:$0xf] %vm1373_vm0, %v1768_v57  ;;  %v505_v6 = vmul.f32 %v1936_v61, %v2285_v0  ;;  %v506_v7 = vmul.f32 %v1939_v62, %v2285_v0  ;;  %v507_v8 = vmul.f32 %v1940_v63, %v2285_v0  ;;  %v1948_v41 = vunpack.c.h.bf16 %v2140_v28 }
  0x3e   : > { %v508_v10 = vmul.f32 %v1943_v1, %v2285_v0  ;;  %v509_v11 = vmul.f32 %v1944_v2, %v2285_v0  ;;  %v637_v12 = vadd.f32 %v2294_v9, %v502_v3  ;;  %v638_v13 = vadd.f32 %v2294_v9, %v503_v4 }
  0x3f   : > { %v639_v14 = vadd.f32 %v2294_v9, %v504_v5  ;;  %v640_v15 = vadd.f32 %v2294_v9, %v505_v6  ;;  %v641_v16 = vadd.f32 %v2294_v9, %v506_v7  ;;  %v642_v17 = vadd.f32 %v2294_v9, %v507_v8 }
  0x40   : > { %v643_v18 = vadd.f32 %v2294_v9, %v508_v10  ;;  %v644_v19 = vadd.f32 %v2294_v9, %v509_v11  ;;  %v765_v20 = vmax.f32 %v637_v12, 0.0  ;;  %v766_v21 = vmax.f32 %v638_v13, 0.0  ;;  %v2144_v10 = vld [vmem:[%s2280_s19 + $0xc0] sm:$0xff]   ;;  %v2145_v11 = vld [vmem:[%s2280_s19 + $0xc8] sm:$0xff]  }
  0x41   : > { %v767_v22 = vmax.f32 %v639_v14, 0.0  ;;  %v768_v23 = vmax.f32 %v640_v15, 0.0  ;;  %v769_v24 = vmax.f32 %v641_v16, 0.0  ;;  %v770_v25 = vmax.f32 %v642_v17, 0.0  ;;  %v2146_v16 = vld [vmem:[%s2280_s19 + $0xd0] sm:$0xff]   ;;  %v2147_v17 = vld [vmem:[%s2280_s19 + $0xd8] sm:$0xff]  }
  0x42   : > { %v771_v26 = vmax.f32 %v643_v18, 0.0  ;;  %v772_v27 = vmax.f32 %v644_v19, 0.0  ;;  %v1769_v30 = vpack.c.bf16 %v765_v20, %v765_v20  ;;  %v1770_v31 = vpack.c.bf16 %v766_v21, %v766_v21 }
  0x43   : > { %v1771_v32 = vpack.c.bf16 %v767_v22, %v767_v22  ;;  %v1772_v33 = vpack.c.bf16 %v768_v23, %v768_v23  ;;  %v1773_v36 = vpack.c.bf16 %v769_v24, %v769_v24  ;;  %v1774_v37 = vpack.c.bf16 %v770_v25, %v770_v25 }
  0x44   : > { %v1775_v38 = vpack.c.bf16 %v771_v26, %v771_v26  ;;  %v1776_v39 = vpack.c.bf16 %v772_v27, %v772_v27  ;;  %1406 = vst.msk [vmem:[%s2317_s26 + $0x80] sm:$0xf] %vm1373_vm0, %v1769_v30  ;;  %1407 = vst.msk [vmem:[%s2317_s26 + $0x84] sm:$0xf] %vm1373_vm0, %v1770_v31  ;;  %v1951_v42 = vunpack.c.l.bf16 %v2141_v29  ;;  %v1952_v43 = vunpack.c.h.bf16 %v2141_v29 }
  0x45   : > { %1408 = vst.msk [vmem:[%s2317_s26 + $0x88] sm:$0xf] %vm1373_vm0, %v1771_v32  ;;  %1409 = vst.msk [vmem:[%s2317_s26 + $0x8c] sm:$0xf] %vm1373_vm0, %v1772_v33  ;;  %v1955_v44 = vunpack.c.l.bf16 %v2142_v34  ;;  %v1956_v45 = vunpack.c.h.bf16 %v2142_v34  ;;  %v1959_v46 = vunpack.c.l.bf16 %v2143_v35  ;;  %v1960_v47 = vunpack.c.h.bf16 %v2143_v35 }
  0x46   : > { %1410 = vst.msk [vmem:[%s2317_s26 + $0x90] sm:$0xf] %vm1373_vm0, %v1773_v36  ;;  %1411 = vst.msk [vmem:[%s2317_s26 + $0x94] sm:$0xf] %vm1373_vm0, %v1774_v37  ;;  %v510_v48 = vmul.f32 %v1947_v40, %v2285_v0  ;;  %v511_v49 = vmul.f32 %v1948_v41, %v2285_v0  ;;  %v512_v50 = vmul.f32 %v1951_v42, %v2285_v0  ;;  %v1963_v22 = vunpack.c.l.bf16 %v2144_v10 }
  0x47   : > { %1412 = vst.msk [vmem:[%s2317_s26 + $0x98] sm:$0xf] %vm1373_vm0, %v1775_v38  ;;  %1413 = vst.msk [vmem:[%s2317_s26 + $0x9c] sm:$0xf] %vm1373_vm0, %v1776_v39  ;;  %v513_v51 = vmul.f32 %v1952_v43, %v2285_v0  ;;  %v514_v52 = vmul.f32 %v1955_v44, %v2285_v0  ;;  %v515_v53 = vmul.f32 %v1956_v45, %v2285_v0  ;;  %v1964_v23 = vunpack.c.h.bf16 %v2144_v10 }
  0x48   : > { %v516_v54 = vmul.f32 %v1959_v46, %v2285_v0  ;;  %v517_v55 = vmul.f32 %v1960_v47, %v2285_v0  ;;  %v645_v56 = vadd.f32 %v2294_v9, %v510_v48  ;;  %v646_v57 = vadd.f32 %v2294_v9, %v511_v49 }
  0x49   : > { %v647_v58 = vadd.f32 %v2294_v9, %v512_v50  ;;  %v648_v59 = vadd.f32 %v2294_v9, %v513_v51  ;;  %v649_v60 = vadd.f32 %v2294_v9, %v514_v52  ;;  %v650_v61 = vadd.f32 %v2294_v9, %v515_v53 }
  0x4a   : > { %v651_v62 = vadd.f32 %v2294_v9, %v516_v54  ;;  %v652_v63 = vadd.f32 %v2294_v9, %v517_v55  ;;  %v773_v1 = vmax.f32 %v645_v56, 0.0  ;;  %v774_v2 = vmax.f32 %v646_v57, 0.0  ;;  %v2148_v54 = vld [vmem:[%s2280_s19 + $0xe0] sm:$0xff]   ;;  %v2149_v55 = vld [vmem:[%s2280_s19 + $0xe8] sm:$0xff]  }
  0x4b   : > { %v775_v3 = vmax.f32 %v647_v58, 0.0  ;;  %v776_v4 = vmax.f32 %v648_v59, 0.0  ;;  %v777_v5 = vmax.f32 %v649_v60, 0.0  ;;  %v778_v6 = vmax.f32 %v650_v61, 0.0  ;;  %v2150_v60 = vld [vmem:[%s2280_s19 + $0xf0] sm:$0xff]   ;;  %v2151_v61 = vld [vmem:[%s2280_s19 + $0xf8] sm:$0xff]  }
  0x4c   : > { %v779_v7 = vmax.f32 %v651_v62, 0.0  ;;  %v780_v8 = vmax.f32 %v652_v63, 0.0  ;;  %v1777_v12 = vpack.c.bf16 %v773_v1, %v773_v1  ;;  %v1778_v13 = vpack.c.bf16 %v774_v2, %v774_v2 }
  0x4d   : > { %v1779_v14 = vpack.c.bf16 %v775_v3, %v775_v3  ;;  %v1780_v15 = vpack.c.bf16 %v776_v4, %v776_v4  ;;  %v1781_v18 = vpack.c.bf16 %v777_v5, %v777_v5  ;;  %v1782_v19 = vpack.c.bf16 %v778_v6, %v778_v6 }
  0x4e   : > { %v1783_v20 = vpack.c.bf16 %v779_v7, %v779_v7  ;;  %v1784_v21 = vpack.c.bf16 %v780_v8, %v780_v8  ;;  %1414 = vst.msk [vmem:[%s2317_s26 + $0xa0] sm:$0xf] %vm1373_vm0, %v1777_v12  ;;  %1415 = vst.msk [vmem:[%s2317_s26 + $0xa4] sm:$0xf] %vm1373_vm0, %v1778_v13  ;;  %v1967_v24 = vunpack.c.l.bf16 %v2145_v11  ;;  %v1968_v25 = vunpack.c.h.bf16 %v2145_v11 }
  0x4f   : > { %1416 = vst.msk [vmem:[%s2317_s26 + $0xa8] sm:$0xf] %vm1373_vm0, %v1779_v14  ;;  %1417 = vst.msk [vmem:[%s2317_s26 + $0xac] sm:$0xf] %vm1373_vm0, %v1780_v15  ;;  %v1971_v26 = vunpack.c.l.bf16 %v2146_v16  ;;  %v1972_v27 = vunpack.c.h.bf16 %v2146_v16  ;;  %v1975_v28 = vunpack.c.l.bf16 %v2147_v17  ;;  %v1976_v29 = vunpack.c.h.bf16 %v2147_v17 }
  0x50   : > { %1418 = vst.msk [vmem:[%s2317_s26 + $0xb0] sm:$0xf] %vm1373_vm0, %v1781_v18  ;;  %1419 = vst.msk [vmem:[%s2317_s26 + $0xb4] sm:$0xf] %vm1373_vm0, %v1782_v19  ;;  %v518_v30 = vmul.f32 %v1963_v22, %v2285_v0  ;;  %v519_v31 = vmul.f32 %v1964_v23, %v2285_v0  ;;  %v520_v32 = vmul.f32 %v1967_v24, %v2285_v0  ;;  %v1979_v3 = vunpack.c.l.bf16 %v2148_v54 }
  0x51   : > { %1420 = vst.msk [vmem:[%s2317_s26 + $0xb8] sm:$0xf] %vm1373_vm0, %v1783_v20  ;;  %1421 = vst.msk [vmem:[%s2317_s26 + $0xbc] sm:$0xf] %vm1373_vm0, %v1784_v21  ;;  %v521_v33 = vmul.f32 %v1968_v25, %v2285_v0  ;;  %v522_v34 = vmul.f32 %v1971_v26, %v2285_v0  ;;  %v523_v35 = vmul.f32 %v1972_v27, %v2285_v0  ;;  %v1980_v4 = vunpack.c.h.bf16 %v2148_v54 }
  0x52   : > { %v524_v36 = vmul.f32 %v1975_v28, %v2285_v0  ;;  %v525_v37 = vmul.f32 %v1976_v29, %v2285_v0  ;;  %v653_v38 = vadd.f32 %v2294_v9, %v518_v30  ;;  %v654_v39 = vadd.f32 %v2294_v9, %v519_v31 }
  0x53   : > { %v655_v40 = vadd.f32 %v2294_v9, %v520_v32  ;;  %v656_v41 = vadd.f32 %v2294_v9, %v521_v33  ;;  %v657_v42 = vadd.f32 %v2294_v9, %v522_v34  ;;  %v658_v43 = vadd.f32 %v2294_v9, %v523_v35 }
  0x54   : > { %v659_v44 = vadd.f32 %v2294_v9, %v524_v36  ;;  %v660_v45 = vadd.f32 %v2294_v9, %v525_v37  ;;  %v781_v46 = vmax.f32 %v653_v38, 0.0  ;;  %v782_v47 = vmax.f32 %v654_v39, 0.0  ;;  %v2152_v36 = vld [vmem:[%s2280_s19 + $0x100] sm:$0xff]   ;;  %v2153_v37 = vld [vmem:[%s2280_s19 + $0x108] sm:$0xff]  }
  0x55   : > { %v783_v48 = vmax.f32 %v655_v40, 0.0  ;;  %v784_v49 = vmax.f32 %v656_v41, 0.0  ;;  %v785_v50 = vmax.f32 %v657_v42, 0.0  ;;  %v786_v51 = vmax.f32 %v658_v43, 0.0  ;;  %v2154_v42 = vld [vmem:[%s2280_s19 + $0x110] sm:$0xff]   ;;  %v2155_v43 = vld [vmem:[%s2280_s19 + $0x118] sm:$0xff]  }
  0x56   : > { %v787_v52 = vmax.f32 %v659_v44, 0.0  ;;  %v788_v53 = vmax.f32 %v660_v45, 0.0  ;;  %v1785_v56 = vpack.c.bf16 %v781_v46, %v781_v46  ;;  %v1786_v57 = vpack.c.bf16 %v782_v47, %v782_v47 }
  0x57   : > { %v1787_v58 = vpack.c.bf16 %v783_v48, %v783_v48  ;;  %v1788_v59 = vpack.c.bf16 %v784_v49, %v784_v49  ;;  %v1789_v62 = vpack.c.bf16 %v785_v50, %v785_v50  ;;  %v1790_v63 = vpack.c.bf16 %v786_v51, %v786_v51 }
  0x58   : > { %v1791_v1 = vpack.c.bf16 %v787_v52, %v787_v52  ;;  %v1792_v2 = vpack.c.bf16 %v788_v53, %v788_v53  ;;  %1422 = vst.msk [vmem:[%s2317_s26 + $0xc0] sm:$0xf] %vm1373_vm0, %v1785_v56  ;;  %1423 = vst.msk [vmem:[%s2317_s26 + $0xc4] sm:$0xf] %vm1373_vm0, %v1786_v57  ;;  %v1983_v5 = vunpack.c.l.bf16 %v2149_v55  ;;  %v1984_v6 = vunpack.c.h.bf16 %v2149_v55 }
  0x59   : > { %1424 = vst.msk [vmem:[%s2317_s26 + $0xc8] sm:$0xf] %vm1373_vm0, %v1787_v58  ;;  %1425 = vst.msk [vmem:[%s2317_s26 + $0xcc] sm:$0xf] %vm1373_vm0, %v1788_v59  ;;  %v1987_v7 = vunpack.c.l.bf16 %v2150_v60  ;;  %v1988_v8 = vunpack.c.h.bf16 %v2150_v60  ;;  %v1991_v10 = vunpack.c.l.bf16 %v2151_v61  ;;  %v1992_v11 = vunpack.c.h.bf16 %v2151_v61 }
  0x5a   : > { %1426 = vst.msk [vmem:[%s2317_s26 + $0xd0] sm:$0xf] %vm1373_vm0, %v1789_v62  ;;  %1427 = vst.msk [vmem:[%s2317_s26 + $0xd4] sm:$0xf] %vm1373_vm0, %v1790_v63  ;;  %v526_v12 = vmul.f32 %v1979_v3, %v2285_v0  ;;  %v527_v13 = vmul.f32 %v1980_v4, %v2285_v0  ;;  %v528_v14 = vmul.f32 %v1983_v5, %v2285_v0  ;;  %v1995_v48 = vunpack.c.l.bf16 %v2152_v36 }
  0x5b   : > { %1428 = vst.msk [vmem:[%s2317_s26 + $0xd8] sm:$0xf] %vm1373_vm0, %v1791_v1  ;;  %1429 = vst.msk [vmem:[%s2317_s26 + $0xdc] sm:$0xf] %vm1373_vm0, %v1792_v2  ;;  %v529_v15 = vmul.f32 %v1984_v6, %v2285_v0  ;;  %v530_v16 = vmul.f32 %v1987_v7, %v2285_v0  ;;  %v531_v17 = vmul.f32 %v1988_v8, %v2285_v0  ;;  %v1996_v49 = vunpack.c.h.bf16 %v2152_v36 }
  0x5c   : > { %v532_v18 = vmul.f32 %v1991_v10, %v2285_v0  ;;  %v533_v19 = vmul.f32 %v1992_v11, %v2285_v0  ;;  %v661_v20 = vadd.f32 %v2294_v9, %v526_v12  ;;  %v662_v21 = vadd.f32 %v2294_v9, %v527_v13 }
  0x5d   : > { %v663_v22 = vadd.f32 %v2294_v9, %v528_v14  ;;  %v664_v23 = vadd.f32 %v2294_v9, %v529_v15  ;;  %v665_v24 = vadd.f32 %v2294_v9, %v530_v16  ;;  %v666_v25 = vadd.f32 %v2294_v9, %v531_v17 }
  0x5e   : > { %v667_v26 = vadd.f32 %v2294_v9, %v532_v18  ;;  %v668_v27 = vadd.f32 %v2294_v9, %v533_v19  ;;  %v789_v28 = vmax.f32 %v661_v20, 0.0  ;;  %v790_v29 = vmax.f32 %v662_v21, 0.0  ;;  %v2156_v18 = vld [vmem:[%s2280_s19 + $0x120] sm:$0xff]   ;;  %v2157_v19 = vld [vmem:[%s2280_s19 + $0x128] sm:$0xff]  }
  0x5f   : > { %v791_v30 = vmax.f32 %v663_v22, 0.0  ;;  %v792_v31 = vmax.f32 %v664_v23, 0.0  ;;  %v793_v32 = vmax.f32 %v665_v24, 0.0  ;;  %v794_v33 = vmax.f32 %v666_v25, 0.0  ;;  %v2158_v24 = vld [vmem:[%s2280_s19 + $0x130] sm:$0xff]   ;;  %v2159_v25 = vld [vmem:[%s2280_s19 + $0x138] sm:$0xff]  }
  0x60   : > { %v795_v34 = vmax.f32 %v667_v26, 0.0  ;;  %v796_v35 = vmax.f32 %v668_v27, 0.0  ;;  %v1793_v38 = vpack.c.bf16 %v789_v28, %v789_v28  ;;  %v1794_v39 = vpack.c.bf16 %v790_v29, %v790_v29 }
  0x61   : > { %v1795_v40 = vpack.c.bf16 %v791_v30, %v791_v30  ;;  %v1796_v41 = vpack.c.bf16 %v792_v31, %v792_v31  ;;  %v1797_v44 = vpack.c.bf16 %v793_v32, %v793_v32  ;;  %v1798_v45 = vpack.c.bf16 %v794_v33, %v794_v33 }
  0x62   : > { %v1799_v46 = vpack.c.bf16 %v795_v34, %v795_v34  ;;  %v1800_v47 = vpack.c.bf16 %v796_v35, %v796_v35  ;;  %1430 = vst.msk [vmem:[%s2317_s26 + $0xe0] sm:$0xf] %vm1373_vm0, %v1793_v38  ;;  %1431 = vst.msk [vmem:[%s2317_s26 + $0xe4] sm:$0xf] %vm1373_vm0, %v1794_v39  ;;  %v1999_v50 = vunpack.c.l.bf16 %v2153_v37  ;;  %v2000_v51 = vunpack.c.h.bf16 %v2153_v37 }
  0x63   : > { %1432 = vst.msk [vmem:[%s2317_s26 + $0xe8] sm:$0xf] %vm1373_vm0, %v1795_v40  ;;  %1433 = vst.msk [vmem:[%s2317_s26 + $0xec] sm:$0xf] %vm1373_vm0, %v1796_v41  ;;  %v2003_v52 = vunpack.c.l.bf16 %v2154_v42  ;;  %v2004_v53 = vunpack.c.h.bf16 %v2154_v42  ;;  %v2007_v54 = vunpack.c.l.bf16 %v2155_v43  ;;  %v2008_v55 = vunpack.c.h.bf16 %v2155_v43 }
  0x64   : > { %1434 = vst.msk [vmem:[%s2317_s26 + $0xf0] sm:$0xf] %vm1373_vm0, %v1797_v44  ;;  %1435 = vst.msk [vmem:[%s2317_s26 + $0xf4] sm:$0xf] %vm1373_vm0, %v1798_v45  ;;  %v534_v56 = vmul.f32 %v1995_v48, %v2285_v0  ;;  %v535_v57 = vmul.f32 %v1996_v49, %v2285_v0  ;;  %v536_v58 = vmul.f32 %v1999_v50, %v2285_v0  ;;  %v2011_v30 = vunpack.c.l.bf16 %v2156_v18 }
  0x65   : > { %1436 = vst.msk [vmem:[%s2317_s26 + $0xf8] sm:$0xf] %vm1373_vm0, %v1799_v46  ;;  %1437 = vst.msk [vmem:[%s2317_s26 + $0xfc] sm:$0xf] %vm1373_vm0, %v1800_v47  ;;  %v537_v59 = vmul.f32 %v2000_v51, %v2285_v0  ;;  %v538_v60 = vmul.f32 %v2003_v52, %v2285_v0  ;;  %v539_v61 = vmul.f32 %v2004_v53, %v2285_v0  ;;  %v2012_v31 = vunpack.c.h.bf16 %v2156_v18  ;;  %v2666_v18 = vld [vmem:[%s2895_s1] ss:$0 sm:$0xff] }
  0x66   : > { %v540_v62 = vmul.f32 %v2007_v54, %v2285_v0  ;;  %v541_v63 = vmul.f32 %v2008_v55, %v2285_v0  ;;  %v669_v1 = vadd.f32 %v2294_v9, %v534_v56  ;;  %v670_v2 = vadd.f32 %v2294_v9, %v535_v57 }
  0x67   : > { %v671_v3 = vadd.f32 %v2294_v9, %v536_v58  ;;  %v672_v4 = vadd.f32 %v2294_v9, %v537_v59  ;;  %v673_v5 = vadd.f32 %v2294_v9, %v538_v60  ;;  %v674_v6 = vadd.f32 %v2294_v9, %v539_v61  ;;  %v2160_v61 = vld [vmem:[%s2280_s19 + $0x140] sm:$0xff]  }
  0x68   : > { %v675_v7 = vadd.f32 %v2294_v9, %v540_v62  ;;  %v676_v8 = vadd.f32 %v2294_v9, %v541_v63  ;;  %v797_v10 = vmax.f32 %v669_v1, 0.0  ;;  %v798_v11 = vmax.f32 %v670_v2, 0.0  ;;  %v2161_v62 = vld [vmem:[%s2280_s19 + $0x148] sm:$0xff]  }
  0x69   : > { %v799_v12 = vmax.f32 %v671_v3, 0.0  ;;  %v800_v13 = vmax.f32 %v672_v4, 0.0  ;;  %v801_v14 = vmax.f32 %v673_v5, 0.0  ;;  %v802_v15 = vmax.f32 %v674_v6, 0.0  ;;  %v2162_v3 = vld [vmem:[%s2280_s19 + $0x150] sm:$0xff]   ;;  %v2163_v4 = vld [vmem:[%s2280_s19 + $0x158] sm:$0xff]  }
  0x6a   : > { %v803_v16 = vmax.f32 %v675_v7, 0.0  ;;  %v804_v17 = vmax.f32 %v676_v8, 0.0  ;;  %v1801_v20 = vpack.c.bf16 %v797_v10, %v797_v10  ;;  %v1802_v21 = vpack.c.bf16 %v798_v11, %v798_v11 }
  0x6b   : > { %v1803_v22 = vpack.c.bf16 %v799_v12, %v799_v12  ;;  %v1804_v23 = vpack.c.bf16 %v800_v13, %v800_v13  ;;  %v1805_v26 = vpack.c.bf16 %v801_v14, %v801_v14  ;;  %v1806_v27 = vpack.c.bf16 %v802_v15, %v802_v15 }
  0x6c   : > { %v1807_v28 = vpack.c.bf16 %v803_v16, %v803_v16  ;;  %v1808_v29 = vpack.c.bf16 %v804_v17, %v804_v17  ;;  %1438 = vst.msk [vmem:[%s2317_s26 + $0x100] sm:$0xf] %vm1373_vm0, %v1801_v20  ;;  %1439 = vst.msk [vmem:[%s2317_s26 + $0x104] sm:$0xf] %vm1373_vm0, %v1802_v21  ;;  %v2015_v32 = vunpack.c.l.bf16 %v2157_v19  ;;  %v2016_v33 = vunpack.c.h.bf16 %v2157_v19 }
  0x6d   : > { %1440 = vst.msk [vmem:[%s2317_s26 + $0x108] sm:$0xf] %vm1373_vm0, %v1803_v22  ;;  %1441 = vst.msk [vmem:[%s2317_s26 + $0x10c] sm:$0xf] %vm1373_vm0, %v1804_v23  ;;  %v2019_v34 = vunpack.c.l.bf16 %v2158_v24  ;;  %v2020_v35 = vunpack.c.h.bf16 %v2158_v24  ;;  %v2023_v36 = vunpack.c.l.bf16 %v2159_v25  ;;  %v2024_v37 = vunpack.c.h.bf16 %v2159_v25 }
  0x6e   : > { %1442 = vst.msk [vmem:[%s2317_s26 + $0x110] sm:$0xf] %vm1373_vm0, %v1805_v26  ;;  %1443 = vst.msk [vmem:[%s2317_s26 + $0x114] sm:$0xf] %vm1373_vm0, %v1806_v27  ;;  %v542_v38 = vmul.f32 %v2011_v30, %v2285_v0  ;;  %v543_v39 = vmul.f32 %v2012_v31, %v2285_v0  ;;  %v544_v40 = vmul.f32 %v2015_v32, %v2285_v0  ;;  %v2027_v10 = vunpack.c.l.bf16 %v2160_v61  ;;  %v2679_v27 = vld [vmem:[%s2896_s2] ss:$0 sm:$0xff] }
  0x6f   : > { %1444 = vst.msk [vmem:[%s2317_s26 + $0x118] sm:$0xf] %vm1373_vm0, %v1807_v28  ;;  %1445 = vst.msk [vmem:[%s2317_s26 + $0x11c] sm:$0xf] %vm1373_vm0, %v1808_v29  ;;  %v545_v41 = vmul.f32 %v2016_v33, %v2285_v0  ;;  %v546_v42 = vmul.f32 %v2019_v34, %v2285_v0  ;;  %v547_v43 = vmul.f32 %v2020_v35, %v2285_v0  ;;  %v2028_v11 = vunpack.c.h.bf16 %v2160_v61 }
  0x70   : > { %v548_v44 = vmul.f32 %v2023_v36, %v2285_v0  ;;  %v549_v45 = vmul.f32 %v2024_v37, %v2285_v0  ;;  %v677_v46 = vadd.f32 %v2294_v9, %v542_v38  ;;  %v678_v47 = vadd.f32 %v2294_v9, %v543_v39 }
  0x71   : > { %v679_v48 = vadd.f32 %v2294_v9, %v544_v40  ;;  %v680_v49 = vadd.f32 %v2294_v9, %v545_v41  ;;  %v681_v50 = vadd.f32 %v2294_v9, %v546_v42  ;;  %v682_v51 = vadd.f32 %v2294_v9, %v547_v43 }
  0x72   : > { %v683_v52 = vadd.f32 %v2294_v9, %v548_v44  ;;  %v684_v53 = vadd.f32 %v2294_v9, %v549_v45  ;;  %v805_v0 = vmax.f32 %v677_v46, 0.0  ;;  %v806_v54 = vmax.f32 %v678_v47, 0.0  ;;  %v2164_v44 = vld [vmem:[%s2280_s19 + $0x160] sm:$0xff]   ;;  %v2165_v45 = vld [vmem:[%s2280_s19 + $0x168] sm:$0xff]  }
  0x73   : > { %v807_v55 = vmax.f32 %v679_v48, 0.0  ;;  %v808_v56 = vmax.f32 %v680_v49, 0.0  ;;  %v809_v57 = vmax.f32 %v681_v50, 0.0  ;;  %v810_v58 = vmax.f32 %v682_v51, 0.0  ;;  %v2166_v50 = vld [vmem:[%s2280_s19 + $0x170] sm:$0xff]   ;;  %v2167_v51 = vld [vmem:[%s2280_s19 + $0x178] sm:$0xff]  }
  0x74   : > { %v811_v59 = vmax.f32 %v683_v52, 0.0  ;;  %v812_v60 = vmax.f32 %v684_v53, 0.0  ;;  %v1809_v63 = vpack.c.bf16 %v805_v0, %v805_v0  ;;  %v1810_v1 = vpack.c.bf16 %v806_v54, %v806_v54 }
  0x75   : > { %v1811_v2 = vpack.c.bf16 %v807_v55, %v807_v55  ;;  %v1812_v9 = vpack.c.bf16 %v808_v56, %v808_v56  ;;  %v1813_v5 = vpack.c.bf16 %v809_v57, %v809_v57  ;;  %v1814_v6 = vpack.c.bf16 %v810_v58, %v810_v58 }
  0x76   : > { %v1815_v7 = vpack.c.bf16 %v811_v59, %v811_v59  ;;  %v1816_v8 = vpack.c.bf16 %v812_v60, %v812_v60  ;;  %1446 = vst.msk [vmem:[%s2317_s26 + $0x120] sm:$0xf] %vm1373_vm0, %v1809_v63  ;;  %1447 = vst.msk [vmem:[%s2317_s26 + $0x124] sm:$0xf] %vm1373_vm0, %v1810_v1  ;;  %v2031_v12 = vunpack.c.l.bf16 %v2161_v62  ;;  %v2032_v13 = vunpack.c.h.bf16 %v2161_v62 }
  0x77   : > { %1448 = vst.msk [vmem:[%s2317_s26 + $0x128] sm:$0xf] %vm1373_vm0, %v1811_v2  ;;  %1449 = vst.msk [vmem:[%s2317_s26 + $0x12c] sm:$0xf] %vm1373_vm0, %v1812_v9  ;;  %v2035_v14 = vunpack.c.l.bf16 %v2162_v3  ;;  %v2036_v15 = vunpack.c.h.bf16 %v2162_v3  ;;  %v2039_v16 = vunpack.c.l.bf16 %v2163_v4  ;;  %v2040_v17 = vunpack.c.h.bf16 %v2163_v4 }
  0x78   : > { %1450 = vst.msk [vmem:[%s2317_s26 + $0x130] sm:$0xf] %vm1373_vm0, %v1813_v5  ;;  %1451 = vst.msk [vmem:[%s2317_s26 + $0x134] sm:$0xf] %vm1373_vm0, %v1814_v6  ;;  %v550_v19 = vmul.f32 %v2666_v18, %v2027_v10  ;;  %v551_v20 = vmul.f32 %v2666_v18, %v2028_v11  ;;  %v552_v21 = vmul.f32 %v2666_v18, %v2031_v12  ;;  %v2043_v55 = vunpack.c.l.bf16 %v2164_v44 }
  0x79   : > { %1452 = vst.msk [vmem:[%s2317_s26 + $0x138] sm:$0xf] %vm1373_vm0, %v1815_v7  ;;  %1453 = vst.msk [vmem:[%s2317_s26 + $0x13c] sm:$0xf] %vm1373_vm0, %v1816_v8  ;;  %v553_v22 = vmul.f32 %v2666_v18, %v2032_v13  ;;  %v554_v23 = vmul.f32 %v2666_v18, %v2035_v14  ;;  %v555_v24 = vmul.f32 %v2666_v18, %v2036_v15  ;;  %v2044_v56 = vunpack.c.h.bf16 %v2164_v44 }
  0x7a   : > { %v556_v25 = vmul.f32 %v2666_v18, %v2039_v16  ;;  %v557_v26 = vmul.f32 %v2666_v18, %v2040_v17  ;;  %v685_v28 = vadd.f32 %v2679_v27, %v550_v19  ;;  %v686_v29 = vadd.f32 %v2679_v27, %v551_v20 }
  0x7b   : > { %v687_v30 = vadd.f32 %v2679_v27, %v552_v21  ;;  %v688_v31 = vadd.f32 %v2679_v27, %v553_v22  ;;  %v689_v32 = vadd.f32 %v2679_v27, %v554_v23  ;;  %v690_v33 = vadd.f32 %v2679_v27, %v555_v24 }
  0x7c   : > { %v691_v34 = vadd.f32 %v2679_v27, %v556_v25  ;;  %v692_v35 = vadd.f32 %v2679_v27, %v557_v26  ;;  %v813_v36 = vmax.f32 %v685_v28, 0.0  ;;  %v814_v37 = vmax.f32 %v686_v29, 0.0  ;;  %v2168_v25 = vld [vmem:[%s2280_s19 + $0x180] sm:$0xff]   ;;  %v2169_v26 = vld [vmem:[%s2280_s19 + $0x188] sm:$0xff]  }
  0x7d   : > { %v815_v38 = vmax.f32 %v687_v30, 0.0  ;;  %v816_v39 = vmax.f32 %v688_v31, 0.0  ;;  %v817_v40 = vmax.f32 %v689_v32, 0.0  ;;  %v818_v41 = vmax.f32 %v690_v33, 0.0  ;;  %v2170_v32 = vld [vmem:[%s2280_s19 + $0x190] sm:$0xff]   ;;  %v2171_v33 = vld [vmem:[%s2280_s19 + $0x198] sm:$0xff]  }
  0x7e   : > { %v819_v42 = vmax.f32 %v691_v34, 0.0  ;;  %v820_v43 = vmax.f32 %v692_v35, 0.0  ;;  %v1817_v46 = vpack.c.bf16 %v813_v36, %v813_v36  ;;  %v1818_v47 = vpack.c.bf16 %v814_v37, %v814_v37 }
  0x7f   : > { %v1819_v48 = vpack.c.bf16 %v815_v38, %v815_v38  ;;  %v1820_v49 = vpack.c.bf16 %v816_v39, %v816_v39  ;;  %v1821_v52 = vpack.c.bf16 %v817_v40, %v817_v40  ;;  %v1822_v53 = vpack.c.bf16 %v818_v41, %v818_v41 }
  0x80   : > { %v1823_v0 = vpack.c.bf16 %v819_v42, %v819_v42  ;;  %v1824_v54 = vpack.c.bf16 %v820_v43, %v820_v43  ;;  %1454 = vst.msk [vmem:[%s2317_s26 + $0x140] sm:$0xf] %vm1373_vm0, %v1817_v46  ;;  %1455 = vst.msk [vmem:[%s2317_s26 + $0x144] sm:$0xf] %vm1373_vm0, %v1818_v47  ;;  %v2047_v57 = vunpack.c.l.bf16 %v2165_v45  ;;  %v2048_v58 = vunpack.c.h.bf16 %v2165_v45 }
  0x81   : > { %1456 = vst.msk [vmem:[%s2317_s26 + $0x148] sm:$0xf] %vm1373_vm0, %v1819_v48  ;;  %1457 = vst.msk [vmem:[%s2317_s26 + $0x14c] sm:$0xf] %vm1373_vm0, %v1820_v49  ;;  %v2051_v59 = vunpack.c.l.bf16 %v2166_v50  ;;  %v2052_v60 = vunpack.c.h.bf16 %v2166_v50  ;;  %v2055_v61 = vunpack.c.l.bf16 %v2167_v51  ;;  %v2056_v62 = vunpack.c.h.bf16 %v2167_v51 }
  0x82   : > { %1458 = vst.msk [vmem:[%s2317_s26 + $0x150] sm:$0xf] %vm1373_vm0, %v1821_v52  ;;  %1459 = vst.msk [vmem:[%s2317_s26 + $0x154] sm:$0xf] %vm1373_vm0, %v1822_v53  ;;  %v558_v63 = vmul.f32 %v2666_v18, %v2043_v55  ;;  %v559_v1 = vmul.f32 %v2666_v18, %v2044_v56  ;;  %v560_v2 = vmul.f32 %v2666_v18, %v2047_v57  ;;  %v2059_v38 = vunpack.c.l.bf16 %v2168_v25 }
  0x83   : > { %1460 = vst.msk [vmem:[%s2317_s26 + $0x158] sm:$0xf] %vm1373_vm0, %v1823_v0  ;;  %1461 = vst.msk [vmem:[%s2317_s26 + $0x15c] sm:$0xf] %vm1373_vm0, %v1824_v54  ;;  %v561_v9 = vmul.f32 %v2666_v18, %v2048_v58  ;;  %v562_v3 = vmul.f32 %v2666_v18, %v2051_v59  ;;  %v563_v4 = vmul.f32 %v2666_v18, %v2052_v60  ;;  %v2060_v39 = vunpack.c.h.bf16 %v2168_v25 }
  0x84   : > { %v564_v5 = vmul.f32 %v2666_v18, %v2055_v61  ;;  %v565_v6 = vmul.f32 %v2666_v18, %v2056_v62  ;;  %v693_v7 = vadd.f32 %v2679_v27, %v558_v63  ;;  %v694_v8 = vadd.f32 %v2679_v27, %v559_v1 }
  0x85   : > { %v695_v10 = vadd.f32 %v2679_v27, %v560_v2  ;;  %v696_v11 = vadd.f32 %v2679_v27, %v561_v9  ;;  %v697_v12 = vadd.f32 %v2679_v27, %v562_v3  ;;  %v698_v13 = vadd.f32 %v2679_v27, %v563_v4 }
  0x86   : > { %v699_v14 = vadd.f32 %v2679_v27, %v564_v5  ;;  %v700_v15 = vadd.f32 %v2679_v27, %v565_v6  ;;  %v821_v16 = vmax.f32 %v693_v7, 0.0  ;;  %v822_v17 = vmax.f32 %v694_v8, 0.0  ;;  %v2172_v5 = vld [vmem:[%s2280_s19 + $0x1a0] sm:$0xff]   ;;  %v2173_v6 = vld [vmem:[%s2280_s19 + $0x1a8] sm:$0xff]  }
  0x87   : > { %v823_v19 = vmax.f32 %v695_v10, 0.0  ;;  %v824_v20 = vmax.f32 %v696_v11, 0.0  ;;  %v825_v21 = vmax.f32 %v697_v12, 0.0  ;;  %v826_v22 = vmax.f32 %v698_v13, 0.0  ;;  %v2174_v12 = vld [vmem:[%s2280_s19 + $0x1b0] sm:$0xff]   ;;  %v2175_v13 = vld [vmem:[%s2280_s19 + $0x1b8] sm:$0xff]  }
  0x88   : > { %v827_v23 = vmax.f32 %v699_v14, 0.0  ;;  %v828_v24 = vmax.f32 %v700_v15, 0.0  ;;  %v1825_v28 = vpack.c.bf16 %v821_v16, %v821_v16  ;;  %v1826_v29 = vpack.c.bf16 %v822_v17, %v822_v17 }
  0x89   : > { %v1827_v30 = vpack.c.bf16 %v823_v19, %v823_v19  ;;  %v1828_v31 = vpack.c.bf16 %v824_v20, %v824_v20  ;;  %v1829_v34 = vpack.c.bf16 %v825_v21, %v825_v21  ;;  %v1830_v35 = vpack.c.bf16 %v826_v22, %v826_v22 }
  0x8a   : > { %v1831_v36 = vpack.c.bf16 %v827_v23, %v827_v23  ;;  %v1832_v37 = vpack.c.bf16 %v828_v24, %v828_v24  ;;  %1462 = vst.msk [vmem:[%s2317_s26 + $0x160] sm:$0xf] %vm1373_vm0, %v1825_v28  ;;  %1463 = vst.msk [vmem:[%s2317_s26 + $0x164] sm:$0xf] %vm1373_vm0, %v1826_v29  ;;  %v2063_v40 = vunpack.c.l.bf16 %v2169_v26  ;;  %v2064_v41 = vunpack.c.h.bf16 %v2169_v26 }
  0x8b   : > { %1464 = vst.msk [vmem:[%s2317_s26 + $0x168] sm:$0xf] %vm1373_vm0, %v1827_v30  ;;  %1465 = vst.msk [vmem:[%s2317_s26 + $0x16c] sm:$0xf] %vm1373_vm0, %v1828_v31  ;;  %v2067_v42 = vunpack.c.l.bf16 %v2170_v32  ;;  %v2068_v43 = vunpack.c.h.bf16 %v2170_v32  ;;  %v2071_v44 = vunpack.c.l.bf16 %v2171_v33  ;;  %v2072_v45 = vunpack.c.h.bf16 %v2171_v33 }
  0x8c   : > { %1466 = vst.msk [vmem:[%s2317_s26 + $0x170] sm:$0xf] %vm1373_vm0, %v1829_v34  ;;  %1467 = vst.msk [vmem:[%s2317_s26 + $0x174] sm:$0xf] %vm1373_vm0, %v1830_v35  ;;  %v566_v46 = vmul.f32 %v2666_v18, %v2059_v38  ;;  %v567_v47 = vmul.f32 %v2666_v18, %v2060_v39  ;;  %v568_v48 = vmul.f32 %v2666_v18, %v2063_v40  ;;  %v2075_v19 = vunpack.c.l.bf16 %v2172_v5 }
  0x8d   : > { %1468 = vst.msk [vmem:[%s2317_s26 + $0x178] sm:$0xf] %vm1373_vm0, %v1831_v36  ;;  %1469 = vst.msk [vmem:[%s2317_s26 + $0x17c] sm:$0xf] %vm1373_vm0, %v1832_v37  ;;  %v569_v49 = vmul.f32 %v2666_v18, %v2064_v41  ;;  %v570_v50 = vmul.f32 %v2666_v18, %v2067_v42  ;;  %v571_v51 = vmul.f32 %v2666_v18, %v2068_v43  ;;  %v2076_v20 = vunpack.c.h.bf16 %v2172_v5 }
  0x8e   : > { %v572_v52 = vmul.f32 %v2666_v18, %v2071_v44  ;;  %v573_v53 = vmul.f32 %v2666_v18, %v2072_v45  ;;  %v701_v0 = vadd.f32 %v2679_v27, %v566_v46  ;;  %v702_v54 = vadd.f32 %v2679_v27, %v567_v47 }
  0x8f   : > { %v703_v55 = vadd.f32 %v2679_v27, %v568_v48  ;;  %v704_v56 = vadd.f32 %v2679_v27, %v569_v49  ;;  %v705_v57 = vadd.f32 %v2679_v27, %v570_v50  ;;  %v706_v58 = vadd.f32 %v2679_v27, %v571_v51 }
  0x90   : > { %v707_v59 = vadd.f32 %v2679_v27, %v572_v52  ;;  %v708_v60 = vadd.f32 %v2679_v27, %v573_v53  ;;  %v829_v61 = vmax.f32 %v701_v0, 0.0  ;;  %v830_v62 = vmax.f32 %v702_v54, 0.0  ;;  %v2176_v52 = vld [vmem:[%s2280_s19 + $0x1c0] sm:$0xff]   ;;  %v2177_v53 = vld [vmem:[%s2280_s19 + $0x1c8] sm:$0xff]  }
  0x91   : > { %v831_v63 = vmax.f32 %v703_v55, 0.0  ;;  %v832_v1 = vmax.f32 %v704_v56, 0.0  ;;  %v833_v2 = vmax.f32 %v705_v57, 0.0  ;;  %v834_v9 = vmax.f32 %v706_v58, 0.0  ;;  %v2178_v57 = vld [vmem:[%s2280_s19 + $0x1d0] sm:$0xff]   ;;  %v2179_v58 = vld [vmem:[%s2280_s19 + $0x1d8] sm:$0xff]  }
  0x92   : > { %v835_v3 = vmax.f32 %v707_v59, 0.0  ;;  %v836_v4 = vmax.f32 %v708_v60, 0.0  ;;  %v1833_v7 = vpack.c.bf16 %v829_v61, %v829_v61  ;;  %v1834_v8 = vpack.c.bf16 %v830_v62, %v830_v62 }
  0x93   : > { %v1835_v10 = vpack.c.bf16 %v831_v63, %v831_v63  ;;  %v1836_v11 = vpack.c.bf16 %v832_v1, %v832_v1  ;;  %v1837_v14 = vpack.c.bf16 %v833_v2, %v833_v2  ;;  %v1838_v15 = vpack.c.bf16 %v834_v9, %v834_v9 }
  0x94   : > { %v1839_v16 = vpack.c.bf16 %v835_v3, %v835_v3  ;;  %v1840_v17 = vpack.c.bf16 %v836_v4, %v836_v4  ;;  %1470 = vst.msk [vmem:[%s2317_s26 + $0x180] sm:$0xf] %vm1373_vm0, %v1833_v7  ;;  %1471 = vst.msk [vmem:[%s2317_s26 + $0x184] sm:$0xf] %vm1373_vm0, %v1834_v8  ;;  %v2079_v21 = vunpack.c.l.bf16 %v2173_v6  ;;  %v2080_v22 = vunpack.c.h.bf16 %v2173_v6 }
  0x95   : > { %1472 = vst.msk [vmem:[%s2317_s26 + $0x188] sm:$0xf] %vm1373_vm0, %v1835_v10  ;;  %1473 = vst.msk [vmem:[%s2317_s26 + $0x18c] sm:$0xf] %vm1373_vm0, %v1836_v11  ;;  %v2083_v23 = vunpack.c.l.bf16 %v2174_v12  ;;  %v2084_v24 = vunpack.c.h.bf16 %v2174_v12  ;;  %v2087_v25 = vunpack.c.l.bf16 %v2175_v13  ;;  %v2088_v26 = vunpack.c.h.bf16 %v2175_v13 }
  0x96   : > { %1474 = vst.msk [vmem:[%s2317_s26 + $0x190] sm:$0xf] %vm1373_vm0, %v1837_v14  ;;  %1475 = vst.msk [vmem:[%s2317_s26 + $0x194] sm:$0xf] %vm1373_vm0, %v1838_v15  ;;  %v574_v28 = vmul.f32 %v2666_v18, %v2075_v19  ;;  %v575_v29 = vmul.f32 %v2666_v18, %v2076_v20  ;;  %v576_v30 = vmul.f32 %v2666_v18, %v2079_v21  ;;  %v2091_v63 = vunpack.c.l.bf16 %v2176_v52 }
  0x97   : > { %1476 = vst.msk [vmem:[%s2317_s26 + $0x198] sm:$0xf] %vm1373_vm0, %v1839_v16  ;;  %1477 = vst.msk [vmem:[%s2317_s26 + $0x19c] sm:$0xf] %vm1373_vm0, %v1840_v17  ;;  %v577_v31 = vmul.f32 %v2666_v18, %v2080_v22  ;;  %v578_v32 = vmul.f32 %v2666_v18, %v2083_v23  ;;  %v579_v33 = vmul.f32 %v2666_v18, %v2084_v24  ;;  %v2092_v1 = vunpack.c.h.bf16 %v2176_v52 }
  0x98   : > { %v580_v34 = vmul.f32 %v2666_v18, %v2087_v25  ;;  %v581_v35 = vmul.f32 %v2666_v18, %v2088_v26  ;;  %v709_v36 = vadd.f32 %v2679_v27, %v574_v28  ;;  %v710_v37 = vadd.f32 %v2679_v27, %v575_v29 }
  0x99   : > { %v711_v38 = vadd.f32 %v2679_v27, %v576_v30  ;;  %v712_v39 = vadd.f32 %v2679_v27, %v577_v31  ;;  %v713_v40 = vadd.f32 %v2679_v27, %v578_v32  ;;  %v714_v41 = vadd.f32 %v2679_v27, %v579_v33 }
  0x9a   : > { %v715_v42 = vadd.f32 %v2679_v27, %v580_v34  ;;  %v716_v43 = vadd.f32 %v2679_v27, %v581_v35  ;;  %v837_v44 = vmax.f32 %v709_v36, 0.0  ;;  %v838_v45 = vmax.f32 %v710_v37, 0.0  ;;  %v2180_v34 = vld [vmem:[%s2280_s19 + $0x1e0] sm:$0xff]   ;;  %v2181_v35 = vld [vmem:[%s2280_s19 + $0x1e8] sm:$0xff]  }
  0x9b   : > { %v839_v46 = vmax.f32 %v711_v38, 0.0  ;;  %v840_v47 = vmax.f32 %v712_v39, 0.0  ;;  %v841_v48 = vmax.f32 %v713_v40, 0.0  ;;  %v842_v49 = vmax.f32 %v714_v41, 0.0  ;;  %v2182_v40 = vld [vmem:[%s2280_s19 + $0x1f0] sm:$0xff]   ;;  %v2183_v41 = vld [vmem:[%s2280_s19 + $0x1f8] sm:$0xff]  }
  0x9c   : > { %v843_v50 = vmax.f32 %v715_v42, 0.0  ;;  %v844_v51 = vmax.f32 %v716_v43, 0.0  ;;  %v1841_v0 = vpack.c.bf16 %v837_v44, %v837_v44  ;;  %v1842_v54 = vpack.c.bf16 %v838_v45, %v838_v45 }
  0x9d   : > { %v1843_v55 = vpack.c.bf16 %v839_v46, %v839_v46  ;;  %v1844_v56 = vpack.c.bf16 %v840_v47, %v840_v47  ;;  %v1845_v59 = vpack.c.bf16 %v841_v48, %v841_v48  ;;  %v1846_v60 = vpack.c.bf16 %v842_v49, %v842_v49 }
  0x9e   : > { %v1847_v61 = vpack.c.bf16 %v843_v50, %v843_v50  ;;  %v1848_v62 = vpack.c.bf16 %v844_v51, %v844_v51  ;;  %1478 = vst.msk [vmem:[%s2317_s26 + $0x1a0] sm:$0xf] %vm1373_vm0, %v1841_v0  ;;  %1479 = vst.msk [vmem:[%s2317_s26 + $0x1a4] sm:$0xf] %vm1373_vm0, %v1842_v54  ;;  %v2095_v2 = vunpack.c.l.bf16 %v2177_v53  ;;  %v2096_v9 = vunpack.c.h.bf16 %v2177_v53 }
  0x9f   : > { %1480 = vst.msk [vmem:[%s2317_s26 + $0x1a8] sm:$0xf] %vm1373_vm0, %v1843_v55  ;;  %1481 = vst.msk [vmem:[%s2317_s26 + $0x1ac] sm:$0xf] %vm1373_vm0, %v1844_v56  ;;  %v2099_v3 = vunpack.c.l.bf16 %v2178_v57  ;;  %v2100_v4 = vunpack.c.h.bf16 %v2178_v57  ;;  %v2103_v5 = vunpack.c.l.bf16 %v2179_v58  ;;  %v2104_v6 = vunpack.c.h.bf16 %v2179_v58 }
  0xa0   : > { %1482 = vst.msk [vmem:[%s2317_s26 + $0x1b0] sm:$0xf] %vm1373_vm0, %v1845_v59  ;;  %1483 = vst.msk [vmem:[%s2317_s26 + $0x1b4] sm:$0xf] %vm1373_vm0, %v1846_v60  ;;  %v582_v7 = vmul.f32 %v2666_v18, %v2091_v63  ;;  %v583_v8 = vmul.f32 %v2666_v18, %v2092_v1  ;;  %v584_v10 = vmul.f32 %v2666_v18, %v2095_v2  ;;  %v2107_v46 = vunpack.c.l.bf16 %v2180_v34 }
  0xa1   : > { %1484 = vst.msk [vmem:[%s2317_s26 + $0x1b8] sm:$0xf] %vm1373_vm0, %v1847_v61  ;;  %1485 = vst.msk [vmem:[%s2317_s26 + $0x1bc] sm:$0xf] %vm1373_vm0, %v1848_v62  ;;  %v585_v11 = vmul.f32 %v2666_v18, %v2096_v9  ;;  %v586_v12 = vmul.f32 %v2666_v18, %v2099_v3  ;;  %v587_v13 = vmul.f32 %v2666_v18, %v2100_v4  ;;  %v2108_v47 = vunpack.c.h.bf16 %v2180_v34 }
  0xa2   : > { %v588_v14 = vmul.f32 %v2666_v18, %v2103_v5  ;;  %v589_v15 = vmul.f32 %v2666_v18, %v2104_v6  ;;  %v717_v16 = vadd.f32 %v2679_v27, %v582_v7  ;;  %v718_v17 = vadd.f32 %v2679_v27, %v583_v8 }
  0xa3   : > { %v719_v19 = vadd.f32 %v2679_v27, %v584_v10  ;;  %v720_v20 = vadd.f32 %v2679_v27, %v585_v11  ;;  %v721_v21 = vadd.f32 %v2679_v27, %v586_v12  ;;  %v722_v22 = vadd.f32 %v2679_v27, %v587_v13 }
  0xa4   : > { %v723_v23 = vadd.f32 %v2679_v27, %v588_v14  ;;  %v724_v24 = vadd.f32 %v2679_v27, %v589_v15  ;;  %v845_v25 = vmax.f32 %v717_v16, 0.0  ;;  %v846_v26 = vmax.f32 %v718_v17, 0.0 }
  0xa5   : > { %v847_v28 = vmax.f32 %v719_v19, 0.0  ;;  %v848_v29 = vmax.f32 %v720_v20, 0.0  ;;  %v849_v30 = vmax.f32 %v721_v21, 0.0  ;;  %v850_v31 = vmax.f32 %v722_v22, 0.0 }
  0xa6   : > { %v851_v32 = vmax.f32 %v723_v23, 0.0  ;;  %v852_v33 = vmax.f32 %v724_v24, 0.0  ;;  %v1849_v36 = vpack.c.bf16 %v845_v25, %v845_v25  ;;  %v1850_v37 = vpack.c.bf16 %v846_v26, %v846_v26 }
  0xa7   : > { %v1851_v38 = vpack.c.bf16 %v847_v28, %v847_v28  ;;  %v1852_v39 = vpack.c.bf16 %v848_v29, %v848_v29  ;;  %v1853_v42 = vpack.c.bf16 %v849_v30, %v849_v30  ;;  %v1854_v43 = vpack.c.bf16 %v850_v31, %v850_v31 }
  0xa8   : > { %v1855_v44 = vpack.c.bf16 %v851_v32, %v851_v32  ;;  %v1856_v45 = vpack.c.bf16 %v852_v33, %v852_v33  ;;  %1486 = vst.msk [vmem:[%s2317_s26 + $0x1c0] sm:$0xf] %vm1373_vm0, %v1849_v36  ;;  %1487 = vst.msk [vmem:[%s2317_s26 + $0x1c4] sm:$0xf] %vm1373_vm0, %v1850_v37  ;;  %v2111_v48 = vunpack.c.l.bf16 %v2181_v35  ;;  %v2112_v49 = vunpack.c.h.bf16 %v2181_v35 }
  0xa9   : > { %1488 = vst.msk [vmem:[%s2317_s26 + $0x1c8] sm:$0xf] %vm1373_vm0, %v1851_v38  ;;  %1489 = vst.msk [vmem:[%s2317_s26 + $0x1cc] sm:$0xf] %vm1373_vm0, %v1852_v39  ;;  %v2115_v50 = vunpack.c.l.bf16 %v2182_v40  ;;  %v2116_v51 = vunpack.c.h.bf16 %v2182_v40  ;;  %v2119_v52 = vunpack.c.l.bf16 %v2183_v41  ;;  %v2120_v53 = vunpack.c.h.bf16 %v2183_v41 }
  0xaa   : > { %1490 = vst.msk [vmem:[%s2317_s26 + $0x1d0] sm:$0xf] %vm1373_vm0, %v1853_v42  ;;  %1491 = vst.msk [vmem:[%s2317_s26 + $0x1d4] sm:$0xf] %vm1373_vm0, %v1854_v43  ;;  %v590_v0 = vmul.f32 %v2666_v18, %v2107_v46  ;;  %v591_v54 = vmul.f32 %v2666_v18, %v2108_v47  ;;  %v592_v55 = vmul.f32 %v2666_v18, %v2111_v48 }
  0xab   : > { %1492 = vst.msk [vmem:[%s2317_s26 + $0x1d8] sm:$0xf] %vm1373_vm0, %v1855_v44  ;;  %1493 = vst.msk [vmem:[%s2317_s26 + $0x1dc] sm:$0xf] %vm1373_vm0, %v1856_v45  ;;  %v593_v56 = vmul.f32 %v2666_v18, %v2112_v49  ;;  %v594_v57 = vmul.f32 %v2666_v18, %v2115_v50  ;;  %v595_v58 = vmul.f32 %v2666_v18, %v2116_v51 }
  0xac   : > { %v596_v59 = vmul.f32 %v2666_v18, %v2119_v52  ;;  %v597_v60 = vmul.f32 %v2666_v18, %v2120_v53  ;;  %v725_v61 = vadd.f32 %v2679_v27, %v590_v0  ;;  %v726_v62 = vadd.f32 %v2679_v27, %v591_v54 }
  0xad   : > { %v727_v63 = vadd.f32 %v2679_v27, %v592_v55  ;;  %v728_v1 = vadd.f32 %v2679_v27, %v593_v56  ;;  %v729_v2 = vadd.f32 %v2679_v27, %v594_v57  ;;  %v730_v9 = vadd.f32 %v2679_v27, %v595_v58 }
  0xae   : > { %v731_v3 = vadd.f32 %v2679_v27, %v596_v59  ;;  %v732_v4 = vadd.f32 %v2679_v27, %v597_v60  ;;  %v853_v5 = vmax.f32 %v725_v61, 0.0  ;;  %v854_v6 = vmax.f32 %v726_v62, 0.0 }
  0xaf   : > { %v855_v18 = vmax.f32 %v727_v63, 0.0  ;;  %v856_v7 = vmax.f32 %v728_v1, 0.0  ;;  %v857_v8 = vmax.f32 %v729_v2, 0.0  ;;  %v858_v10 = vmax.f32 %v730_v9, 0.0 }
  0xb0   : > { %v859_v11 = vmax.f32 %v731_v3, 0.0  ;;  %v860_v12 = vmax.f32 %v732_v4, 0.0  ;;  %v1857_v13 = vpack.c.bf16 %v853_v5, %v853_v5  ;;  %v1858_v14 = vpack.c.bf16 %v854_v6, %v854_v6 }
  0xb1   : > { %v1859_v15 = vpack.c.bf16 %v855_v18, %v855_v18  ;;  %v1860_v27 = vpack.c.bf16 %v856_v7, %v856_v7  ;;  %v1861_v16 = vpack.c.bf16 %v857_v8, %v857_v8  ;;  %v1862_v17 = vpack.c.bf16 %v858_v10, %v858_v10 }
  0xb2   : > { %v1863_v19 = vpack.c.bf16 %v859_v11, %v859_v11  ;;  %v1864_v20 = vpack.c.bf16 %v860_v12, %v860_v12  ;;  %1494 = vst.msk [vmem:[%s2317_s26 + $0x1e0] sm:$0xf] %vm1373_vm0, %v1857_v13  ;;  %1495 = vst.msk [vmem:[%s2317_s26 + $0x1e4] sm:$0xf] %vm1373_vm0, %v1858_v14 }
  0xb3   : > { %1496 = vst.msk [vmem:[%s2317_s26 + $0x1e8] sm:$0xf] %vm1373_vm0, %v1859_v15  ;;  %1497 = vst.msk [vmem:[%s2317_s26 + $0x1ec] sm:$0xf] %vm1373_vm0, %v1860_v27 }
  0xb4   : > { %1498 = vst.msk [vmem:[%s2317_s26 + $0x1f0] sm:$0xf] %vm1373_vm0, %v1861_v16  ;;  %1499 = vst.msk [vmem:[%s2317_s26 + $0x1f4] sm:$0xf] %vm1373_vm0, %v1862_v17 }
  0xb5   : > { %1500 = vst.msk [vmem:[%s2317_s26 + $0x1f8] sm:$0xf] %vm1373_vm0, %v1863_v19  ;;  %1501 = vst.msk [vmem:[%s2317_s26 + $0x1fc] sm:$0xf] %vm1373_vm0, %v1864_v20 }
  0xb6 PF: > { %s13_s14 = sadd.s32 1, %s2232_s14   ;;  %s2898_s12 = smov %s2228_s13 }
  0xb7   : > { %p10_p5 = scmp.ge.s32.totalorder %s13_s14, 4   ;;  %s2899_s13 = smov %s2901_s15 }
  0xb9   :  { %12 = sbr.rel (!%p10_p5) target bundleno = 2 (0x2), region = 62 }

// kernel: up_conv_forward.2
= control target key start
LH: loop header
LB: loop body
LE: loop exit
PB: predicated region body
PF: predicated region fallthrough
CT: control target
= control target key end

     0   :  { %s6845_s15 = smov 0   ;;  %s6847_s16 = smov 0   ;;  %s9532_s0 = inlined_call_operand.vmem [shape: bf16[2,1,18,18,4], index: 0, kind: input, shape index: {}]   ;;  %s9533_s1 = inlined_call_operand.vmem [shape: bf16[4,16,8], index: 1, kind: input, shape index: {}]   ;;  %s9534_s2 = inlined_call_operand.vmem [shape: bf16[2,1,4,256,8], index: 2, kind: output, shape index: {0}]   ;;  %s9535_s3 = inlined_call_operand.vmem [shape: f32[2,1,1,8], index: 3, kind: output, shape index: {1}]   ;;  %s9536_s4 = inlined_call_operand.vmem [shape: f32[2,1,1,8], index: 4, kind: output, shape index: {2}]  }
   0x1   :  { %s6849_s17 = smov 0  }
   0x2 LB: > { %s27_s18 = sadd.s32 1, %s6811_s16  ;;  %p5724_p0 = scmp.ge.s32.totalorder %s6815_s17, 1  ;;  %s6815_s17 = sphi %s6849_s17, %s15_s17   ;;  %s6811_s16 = sphi %s6847_s16, %s9644_s16   ;;  %s6807_s15 = sphi %s6845_s15, %s9643_s15  }
   0x3   : > { %p29_p1 = scmp.ge.s32.totalorder %s27_s18, 2  ;;  %p191_p2 = scmp.lt.s32.totalorder %s6815_s17, 3 }
   0x5   : > { %s9646_s18 = smov (%p29_p1, %s27_s18), 0  ;;  %p192_p3 = pnand %p5724_p0, %p191_p2 }
   0x7   : > { %195 = sbr.rel (%p192_p3) target bundleno = 788 (0x314), region = 28 }
   0xe   : > { %p237_p4 = scmp.lt.s32.totalorder %s6807_s15, 1  ;;  %vm767_vm0 = vcmask 1042432   ;;  %vm768_vm1 = vcmask 1046532   ;;  %vm316_vm2 = vsmask.f32 3328  ;;  %s6817_s23 = smov 8  }
   0xf   : > { %vm317_vm3 = vsmask.f32 7440  ;;  %vm6913_vm4 = vmor %vm767_vm0, %vm768_vm1  ;;  %s6818_s26 = smov 4   ;;  %s6819_s27 = smov 12   ;;  %vm2420_vm6 = vcmask 31744   ;;  %vm2469_vm7 = vcmask 64512  }
  0x10   : > { %s9648_s15 = smov (!%p237_p4, %s6807_s15), 1  ;;  %vm6921_vm5 = vmor %vm316_vm2, %vm317_vm3  ;;  %vm2502_vm8 = vcmask 97280   ;;  %vm2543_vm9 = vcmask 130048   ;;  %vm3037_vm10 = vcmask 60416   ;;  %vm5555_vm11 = vcmask 57344  }
  0x11   : > { %s6681_s19 = smul.u32 216, %s9648_s15  ;;  %s6348_s8 = sshll.u32 %s9648_s15, 9 }
  0x12   : > { %s8592_s11 = scalar_lea.vmem %s9534_s2, %s6348_s8  ;;  %s260_s14 = scalar_lea.vmem %s9535_s3, %s9648_s15 }
  0x13   : > { %s6869_s22 = scalar_lea.vmem %s9532_s0, %s6681_s19  ;;  %s266_s21 = scalar_lea.vmem %s9536_s4, %s9648_s15 }
  0x14   : > { %v5744_v0 = vld [vmem:[%s6869_s22 + $0xc] sm:$0xf]  ;;  %v6873_v1 = vld [vmem:[%s6869_s22 + $0x10] sm:$0xf]  ;;  %v5746_v2 = vld [vmem:[%s6869_s22 + $0x18] sm:$0xf] }
  0x15   : > { %v941_v3 = vshll.u32 %v6873_v1, 16  ;;  %v945_v4 = vshrl.u32 %v6873_v1, 16  ;;  %v6879_v5 = vcombine.low %v5744_v0, %v6873_v1  ;;  %v932_v6 = vshrl.u32 %v5744_v0, 16  ;;  %v6882_v7 = vld [vmem:[%s6869_s22 + $0x1c] sm:$0xf] }
  0x16   : > { %v935_v8 = vshll.u32 %v5744_v0, 16  ;;  %v956_v9 = vshrl.u32 %v5746_v2, 16  ;;  %v959_v10 = vshll.u32 %v5746_v2, 16  ;;  %v965_v11 = vshll.u32 %v6882_v7, 16  ;;  %v268_v12 = vld [vmem:[%s6869_s22] sm:$0xf] }
  0x17   : > { %9574 = vst [vmem:[#allocation2_spill] sm:$0xff] %v6879_v5  ;;  %v6886_v13 = vrot.slane %v941_v3, 5  ;;  %v947_v14 = vrot.slane %v945_v4, 4  ;;  %2308 = vrot.lane.b32.xlu1 %v6879_v5, %s6817_s23  ;;  %v934_v15 = vrot.slane %v932_v6, 4  ;;  %v969_v16 = vshrl.u32 %v6882_v7, 16 }
  0x18   : > { %v269_v17 = vld [vmem:[%s6869_s22 + $0x4] sm:$0xf]  ;;  %v937_v18 = vrot.slane %v935_v8, 5  ;;  %v958_v19 = vrot.slane %v956_v9, 4  ;;  %v961_v20 = vrot.slane %v959_v10, 5  ;;  %v6892_v21 = vrot.slane %v965_v11, 5 }
  0x19   : > { %v300_v22 = vld [vmem:[%s6869_s22 + $0x8] sm:$0x1]  ;;  %v948_v23 = vor.u32 %v947_v14, %v6886_v13  ;;  %v6896_v24 = vrot.slane %v969_v16, 4  ;;  %v6899_v25 = vcombine.low %v5746_v2, %v6882_v7  ;;  %v320_v26 = vshrl.u32 %v268_v12, 16  ;;  %v703_v31 = vld [vmem:[%s6869_s22] sm:$0xe] }
  0x1a   : > { %v938_v27 = vor.u32 %v937_v18, %v934_v15  ;;  %v962_v28 = vor.u32 %v961_v20, %v958_v19  ;;  %v323_v29 = vshll.u32 %v268_v12, 16  ;;  %v329_v30 = vshll.u32 %v269_v17, 16  ;;  %v270_v36 = vld [vmem:[%s6869_s22 + $0xc] sm:$0xf]  ;;  %v271_v42 = vld [vmem:[%s6869_s22 + $0x10] sm:$0xf] }
  0x1b   : > { %9575 = vst [vmem:[#allocation3_spill] sm:$0xff] %v6899_v25  ;;  %v6902_v32 = vrot.slane %v948_v23, 4  ;;  %2310 = vrot.lane.b32.xlu1 %v6899_v25, %s6817_s23  ;;  %v322_v33 = vrot.slane %v320_v26, 4  ;;  %v333_v34 = vshrl.u32 %v269_v17, 16  ;;  %v339_v35 = vshll.u32 %v300_v22, 16  ;;  %v6722_v15 = vld [vmem:[%s9533_s1] sm:$0xff]  }
  0x1c   : > { %v6907_v37 = vrot.slane %v938_v27, 4  ;;  %v6909_v38 = vrot.slane %v962_v28, 4  ;;  %v325_v39 = vrot.slane %v323_v29, 5  ;;  %v331_v40 = vrot.slane %v329_v30, 5  ;;  %v301_v49 = vld [vmem:[%s6869_s22 + $0x14] sm:$0x1]  ;;  %6545 = vmatprep.subr.bf16.mxu0 %v6722_v15 }
  0x1d   : > { %v335_v43 = vrot.slane %v333_v34, 4  ;;  %v341_v44 = vrot.slane %v339_v35, 5  ;;  %v5728_v45 = vrot.slane %v703_v31, 9  ;;  %v772_v46 = vrot.slane %v269_v17, 5  ;;  %v704_v61 = vld [vmem:[%s6869_s22 + $0xc] sm:$0xe]  ;;  %6546 = vmatpush3.bf16.msra.mxu0 %v6722_v15 }
  0x1e   : > { %v326_v47 = vor.u32 %v325_v39, %v322_v33  ;;  %v775_v48 = vrot.slane %v300_v22, 5  ;;  %v344_v50 = vshrl.u32 %v270_v36, 16  ;;  %v347_v51 = vshll.u32 %v270_v36, 16  ;;  %v6933_v9 = vld [vmem:[%s6869_s22 + $0x14] sm:$0x1] }
  0x1f   : > { %v336_v53 = vor.u32 %v335_v43, %v331_v40  ;;  %v773_v54 = vsel %vm6913_vm4, %v5728_v45, %v772_v46  ;;  %v774_v55 = vrot.slane %v772_v46, 4  ;;  %v353_v56 = vshll.u32 %v271_v42, 16  ;;  %v5777_v20 = vld [vmem:[%s6869_s22 + $0x20] sm:$0x1]  ;;  %v5793_v22 = vld [vmem:[%s6869_s22 + $0x18] sm:$0xe] }
  0x20   : > { %v327_v57 = vrot.slane %v326_v47, 4  ;;  %v346_v58 = vrot.slane %v344_v50, 4  ;;  %v349_v59 = vrot.slane %v347_v51, 5  ;;  %v357_v60 = vshrl.u32 %v271_v42, 16  ;;  %v6977_v46 = vld [vmem:[%s6869_s22 + $0x2c] sm:$0x1] }
  0x21   : > { %v337_v62 = vrot.slane %v336_v53, 4  ;;  %v776_v63 = vsel %vm6913_vm4, %v774_v55, %v775_v48  ;;  %v355_v0 = vrot.slane %v353_v56, 5  ;;  %v363_v2 = vshll.u32 %v301_v49, 16  ;;  %v713_v25 = vld [vmem:[%s6869_s22 + $0x78] sm:$0xe] }
  0x22   : > { %v332_v3 = vsel %vm6921_vm5, %v327_v57, %v331_v40  ;;  %v6017_v4 = vcombine.low %v773_v54, %v776_v63  ;;  %v350_v6 = vor.u32 %v349_v59, %v346_v58  ;;  %v359_v8 = vrot.slane %v357_v60, 4  ;;  %v5792_v54 = vld [vmem:[%s6869_s22 + $0xc] sm:$0xe] }
  0x23   : > { %v342_v10 = vsel %vm6921_vm5, %v337_v62, %v341_v44  ;;  %v365_v11 = vrot.slane %v363_v2, 5  ;;  %v5729_v12 = vrot.slane %v704_v61, 9  ;;  %v779_v14 = vrot.slane %v271_v42, 5 }
  0x24   : > { %v6940_v16 = vcombine.low %v332_v3, %v342_v10  ;;  %3118 = vrot.lane.b32.xlu1 %v6017_v4, %s6818_s26  ;;  %v351_v17 = vrot.slane %v350_v6, 4  ;;  %v360_v18 = vor.u32 %v359_v8, %v355_v0  ;;  %v782_v19 = vrot.slane %v301_v49, 5  ;;  %v5750_v4 = vld [vmem:[%s6869_s22 + $0x30] sm:$0xf]  ;;  %v7006_v10 = vld [vmem:[%s6869_s22 + $0x34] sm:$0xf] }
  0x25   : > { %v780_v23 = vsel %vm6913_vm4, %v5729_v12, %v779_v14  ;;  %v781_v26 = vrot.slane %v779_v14, 4  ;;  %v944_v27 = vsel %vm6921_vm5, %v6907_v37, %v6886_v13  ;;  %v951_v28 = vshll.u32 %v6933_v9, 16  ;;  %v274_v37 = vld [vmem:[%s6869_s22 + $0x24] sm:$0xf] }
  0x26   : > { %2212 = vrot.lane.b32.xlu0 %v6940_v16, %s6818_s26  ;;  %v356_v29 = vsel %vm6921_vm5, %v351_v17, %v355_v0  ;;  %v361_v30 = vrot.slane %v360_v18, 4  ;;  %v968_v31 = vsel %vm6921_vm5, %v6909_v38, %v6892_v21  ;;  %v972_v33 = vor.u32 %v6896_v24, %v6892_v21  ;;  %v6969_v38 = vld [vmem:[%s6869_s22 + $0x28] sm:$0xf]  ;;  %v272_v17 = vld [vmem:[%s6869_s22 + $0x18] sm:$0xf] }
  0x27   : > { %v783_v13 = vsel %vm6913_vm4, %v781_v26, %v782_v19  ;;  %v953_v34 = vrot.slane %v951_v28, 5  ;;  %v975_v35 = vshll.u32 %v5777_v20, 16  ;;  %v5809_v36 = vrot.slane %v5793_v22, 9  ;;  %v6724_v18 = vld [vmem:[%s9533_s1 + $0x8] sm:$0xff]   ;;  %v273_v26 = vld [vmem:[%s6869_s22 + $0x1c] sm:$0xf] }
  0x28   : > { %v366_v39 = vsel %vm6921_vm5, %v361_v30, %v365_v11  ;;  %v6018_v40 = vcombine.low %v780_v23, %v783_v13  ;;  %v973_v42 = vrot.slane %v972_v33, 4  ;;  %v1388_v43 = vrot.slane %v6882_v7, 5  ;;  %v705_v33 = vld [vmem:[%s6869_s22 + $0x18] sm:$0xe]  ;;  %6579 = vmatprep.subr.bf16.mxu1 %v6724_v18 }
  0x29   : > { %v6971_v21 = vcombine.low %v356_v29, %v366_v39  ;;  %v954_v24 = vsel %vm6921_vm5, %v6902_v32, %v953_v34  ;;  %v977_v44 = vrot.slane %v975_v35, 5  ;;  %v1391_v45 = vrot.slane %v5777_v20, 5  ;;  %6580 = vmatpush3.bf16.msra.mxu1 %v6724_v18 }
  0x2a   : > { %3120 = vrot.lane.b32.xlu1 %v6018_v40, %s6818_s26  ;;  %v6980_v47 = vcombine.low %v944_v27, %v954_v24  ;;  %v1389_v7 = vsel %vm6913_vm4, %v5809_v36, %v1388_v43  ;;  %v1390_v48 = vrot.slane %v1388_v43, 4  ;;  %v392_v49 = vshrl.u32 %v274_v37, 16  ;;  %v5748_v43 = vld [vmem:[%s6869_s22 + $0x24] sm:$0xf] }
  0x2b   : > { %2214 = vrot.lane.b32.xlu0 %v6971_v21, %s6818_s26  ;;  %v978_v50 = vsel %vm6921_vm5, %v973_v42, %v977_v44  ;;  %v395_v32 = vshll.u32 %v274_v37, 16  ;;  %v401_v51 = vshll.u32 %v6969_v38, 16  ;;  %v405_v53 = vshrl.u32 %v6969_v38, 16 }
  0x2c   : > { %v6991_v55 = vcombine.low %v968_v31, %v978_v50  ;;  %v1392_v56 = vsel %vm6913_vm4, %v1390_v48, %v1391_v45  ;;  %v394_v57 = vrot.slane %v392_v49, 4  ;;  %v411_v58 = vshll.u32 %v6977_v46, 16  ;;  %v302_v31 = vld [vmem:[%s6869_s22 + $0x20] sm:$0x1] }
  0x2d   : > { %v6996_v59 = vcombine.low %v1389_v7, %v1392_v56  ;;  %v397_v60 = vrot.slane %v395_v32, 5  ;;  %v403_v61 = vrot.slane %v401_v51, 5  ;;  %v407_v62 = vrot.slane %v405_v53, 4  ;;  %v7046_v51 = vld [vmem:[%s6869_s22 + $0x28] sm:$0xf] }
  0x2e   : > { %3152 = vrot.lane.b32.xlu1 %v6991_v55, %s6817_s23  ;;  %v413_v63 = vrot.slane %v411_v58, 5  ;;  %v5808_v0 = vrot.slane %v5792_v54, 9  ;;  %v1381_v2 = vrot.slane %v6873_v1, 5  ;;  %v1384_v3 = vrot.slane %v6933_v9, 5 }
  0x2f   : > { %2388 = vrot.lane.b32.xlu0 %v6980_v47, %s6819_s27  ;;  %v398_v6 = vor.u32 %v397_v60, %v394_v57  ;;  %v408_v8 = vor.u32 %v407_v62, %v403_v61  ;;  %v1004_v11 = vshrl.u32 %v5750_v4, 16  ;;  %v1007_v12 = vshll.u32 %v5750_v4, 16 }
  0x30   : > { %v1382_v14 = vsel %vm6913_vm4, %v5808_v0, %v1381_v2  ;;  %v1383_v15 = vrot.slane %v1381_v2, 4  ;;  %v1013_v1 = vshll.u32 %v7006_v10, 16  ;;  %v1017_v9 = vshrl.u32 %v7006_v10, 16 }
  0x31   : > { %v399_v19 = vrot.slane %v398_v6, 4  ;;  %v409_v20 = vrot.slane %v408_v8, 4  ;;  %v1006_v22 = vrot.slane %v1004_v11, 4  ;;  %v1009_v23 = vrot.slane %v1007_v12, 5 }
  0x32   : > { %3232 = vrot.lane.b32.xlu1 %v6996_v59, %s6819_s27  ;;  %v1385_v27 = vsel %vm6913_vm4, %v1383_v15, %v1384_v3  ;;  %v7021_v28 = vrot.slane %v1013_v1, 5  ;;  %v7023_v29 = vrot.slane %v1017_v9, 4  ;;  %v7026_v30 = vcombine.low %v5750_v4, %v7006_v10  ;;  %v706_v4 = vld [vmem:[%s6869_s22 + $0x24] sm:$0xe] }
  0x33   : > { %2390 = vrot.lane.b32.xlu0 %v6991_v55, %s6819_s27  ;;  %v404_v13 = vsel %vm6921_vm5, %v399_v19, %v403_v61  ;;  %v414_v34 = vsel %vm6921_vm5, %v409_v20, %v413_v63  ;;  %v7036_v35 = vcombine.low %v1382_v14, %v1385_v27  ;;  %v1010_v36 = vor.u32 %v1009_v23, %v1006_v22  ;;  %v7063_v14 = vld [vmem:[%s6869_s22 + $0x2c] sm:$0x1] }
  0x34   : > { %9580 = vst [vmem:[#allocation4_spill] sm:$0xff] %v7026_v30  ;;  %v7038_v37 = vcombine.low %v404_v13, %v414_v34  ;;  %v368_v39 = vshrl.u32 %v272_v17, 16  ;;  %v371_v40 = vshll.u32 %v272_v17, 16  ;;  %v377_v42 = vshll.u32 %v273_v26, 16  ;;  %v5795_v13 = vld [vmem:[%s6869_s22 + $0x30] sm:$0xe] }
  0x35   : > { %v7041_v24 = vrot.slane %v1010_v36, 4  ;;  %v381_v44 = vshrl.u32 %v273_v26, 16  ;;  %v387_v45 = vshll.u32 %v302_v31, 16  ;;  %v5730_v7 = vrot.slane %v705_v33, 9  ;;  %v5779_v33 = vld [vmem:[%s6869_s22 + $0x38] sm:$0x1] }
  0x36   : > { %2218 = vrot.lane.b32.xlu1 %v7038_v37, %s6818_s26  ;;  %v370_v48 = vrot.slane %v368_v39, 4  ;;  %v373_v49 = vrot.slane %v371_v40, 5  ;;  %v379_v50 = vrot.slane %v377_v42, 5  ;;  %v786_v32 = vrot.slane %v273_v26, 5 }
  0x37   : > { %3150 = vrot.lane.b32.xlu0 %v6980_v47, %s6817_s23  ;;  %v383_v53 = vrot.slane %v381_v44, 4  ;;  %v389_v54 = vrot.slane %v387_v45, 5  ;;  %v789_v56 = vrot.slane %v302_v31, 5  ;;  %v980_v57 = vshrl.u32 %v5748_v43, 16  ;;  %v278_v44 = vld [vmem:[%s6869_s22 + $0x3c] sm:$0xf] }
  0x38   : > { %v374_v58 = vor.u32 %v373_v49, %v370_v48  ;;  %v787_v60 = vsel %vm6913_vm4, %v5730_v7, %v786_v32  ;;  %v788_v61 = vrot.slane %v786_v32, 4  ;;  %v983_v62 = vshll.u32 %v5748_v43, 16 }
  0x39   : > { %v384_v63 = vor.u32 %v383_v53, %v379_v50  ;;  %v982_v0 = vrot.slane %v980_v57, 4  ;;  %v989_v2 = vshll.u32 %v7046_v51, 16  ;;  %v993_v3 = vshrl.u32 %v7046_v51, 16  ;;  %v7101_v53 = vld [vmem:[%s6869_s22 + $0x44] sm:$0x1] }
  0x3a   : > { %2314 = vrot.lane.b32.xlu1 %v7026_v30, %s6817_s23  ;;  %v375_v6 = vrot.slane %v374_v58, 4  ;;  %v790_v8 = vsel %vm6913_vm4, %v788_v61, %v789_v56  ;;  %v985_v11 = vrot.slane %v983_v62, 5  ;;  %v7060_v12 = vcombine.low %v5748_v43, %v7046_v51 }
  0x3b   : > { %3230 = vrot.lane.b32.xlu0 %v7036_v35, %s6819_s27  ;;  %v385_v15 = vrot.slane %v384_v63, 4  ;;  %v6019_v1 = vcombine.low %v787_v60, %v790_v8  ;;  %v991_v9 = vrot.slane %v989_v2, 5  ;;  %v995_v17 = vrot.slane %v993_v3, 4 }
  0x3c   : > { %9581 = vst [vmem:[#allocation5_spill] sm:$0xff] %v7060_v12  ;;  %v380_v18 = vsel %vm6921_vm5, %v375_v6, %v379_v50  ;;  %v986_v19 = vor.u32 %v985_v11, %v982_v0  ;;  %v5731_v20 = vrot.slane %v706_v4, 9  ;;  %v793_v22 = vrot.slane %v6969_v38, 5  ;;  %v7095_v50 = vld [vmem:[%s6869_s22 + $0x40] sm:$0xf] }
  0x3d   : > { %v390_v23 = vsel %vm6921_vm5, %v385_v15, %v389_v54  ;;  %v796_v26 = vrot.slane %v6977_v46, 5  ;;  %v996_v27 = vor.u32 %v995_v17, %v991_v9  ;;  %v999_v31 = vshll.u32 %v7063_v14, 16  ;;  %v5794_v0 = vld [vmem:[%s6869_s22 + $0x24] sm:$0xe] }
  0x3e   : > { %v7076_v34 = vcombine.low %v380_v18, %v390_v23  ;;  %3122 = vrot.lane.b32.xlu1 %v6019_v1, %s6818_s26  ;;  %v987_v36 = vrot.slane %v986_v19, 4  ;;  %v794_v38 = vsel %vm6913_vm4, %v5731_v20, %v793_v22  ;;  %v795_v39 = vrot.slane %v793_v22, 4  ;;  %v5754_v19 = vld [vmem:[%s6869_s22 + $0x48] sm:$0xf] }
  0x3f   : > { %v997_v40 = vrot.slane %v996_v27, 4  ;;  %v1001_v42 = vrot.slane %v999_v31, 5  ;;  %v1016_v46 = vsel %vm6921_vm5, %v7041_v24, %v7021_v28  ;;  %v1020_v43 = vor.u32 %v7023_v29, %v7021_v28 }
  0x40   : > { %2216 = vrot.lane.b32.xlu0 %v7076_v34, %s6818_s26  ;;  %v797_v45 = vsel %vm6913_vm4, %v795_v39, %v796_v26  ;;  %v992_v7 = vsel %vm6921_vm5, %v987_v36, %v991_v9  ;;  %v1023_v48 = vshll.u32 %v5779_v33, 16  ;;  %v5811_v49 = vrot.slane %v5795_v13, 9  ;;  %v7128_v26 = vld [vmem:[%s6869_s22 + $0x4c] sm:$0xf] }
  0x41   : > { %v6020_v32 = vcombine.low %v794_v38, %v797_v45  ;;  %v1002_v24 = vsel %vm6921_vm5, %v997_v40, %v1001_v42  ;;  %v1021_v28 = vrot.slane %v1020_v43, 4  ;;  %v1402_v29 = vrot.slane %v7006_v10, 5  ;;  %v276_v38 = vld [vmem:[%s6869_s22 + $0x30] sm:$0xf]  ;;  %v277_v45 = vld [vmem:[%s6869_s22 + $0x34] sm:$0xf] }
  0x42   : > { %v7103_v54 = vcombine.low %v992_v7, %v1002_v24  ;;  %v1025_v56 = vrot.slane %v1023_v48, 5  ;;  %v1405_v57 = vrot.slane %v5779_v33, 5  ;;  %v440_v58 = vshrl.u32 %v278_v44, 16 }
  0x43   : > { %3124 = vrot.lane.b32.xlu1 %v6020_v32, %s6818_s26  ;;  %v1403_v60 = vsel %vm6913_vm4, %v5811_v49, %v1402_v29  ;;  %v1404_v61 = vrot.slane %v1402_v29, 4  ;;  %v443_v62 = vshll.u32 %v278_v44, 16  ;;  %v449_v63 = vshll.u32 %v7095_v50, 16  ;;  %v304_v32 = vld [vmem:[%s6869_s22 + $0x38] sm:$0x1] }
  0x44   : > { %2312 = vrot.lane.b32.xlu0 %v7060_v12, %s6817_s23  ;;  %v1026_v10 = vsel %vm6921_vm5, %v1021_v28, %v1025_v56  ;;  %v442_v2 = vrot.slane %v440_v58, 4  ;;  %v453_v3 = vshrl.u32 %v7095_v50, 16  ;;  %v459_v4 = vshll.u32 %v7101_v53, 16  ;;  %v707_v28 = vld [vmem:[%s6869_s22 + $0x30] sm:$0xe] }
  0x45   : > { %v7116_v6 = vcombine.low %v1016_v46, %v1026_v10  ;;  %v1406_v8 = vsel %vm6913_vm4, %v1404_v61, %v1405_v57  ;;  %v445_v11 = vrot.slane %v443_v62, 5  ;;  %v451_v15 = vrot.slane %v449_v63, 5  ;;  %v5801_v12 = vld [vmem:[%s6869_s22 + $0x78] sm:$0xe] }
  0x46   : > { %v7120_v1 = vcombine.low %v1403_v60, %v1406_v8  ;;  %v455_v9 = vrot.slane %v453_v3, 4  ;;  %v461_v17 = vrot.slane %v459_v4, 5  ;;  %v5810_v18 = vrot.slane %v5794_v0, 9  ;;  %v5752_v0 = vld [vmem:[%s6869_s22 + $0x3c] sm:$0xf] }
  0x47   : > { %3156 = vrot.lane.b32.xlu1 %v7116_v6, %s6817_s23  ;;  %v446_v20 = vor.u32 %v445_v11, %v442_v2  ;;  %v1395_v22 = vrot.slane %v7046_v51, 5  ;;  %v1398_v23 = vrot.slane %v7063_v14, 5  ;;  %v1052_v27 = vshrl.u32 %v5754_v19, 16  ;;  %v7165_v8 = vld [vmem:[%s6869_s22 + $0x40] sm:$0xf] }
  0x48   : > { %2392 = vrot.lane.b32.xlu0 %v7103_v54, %s6819_s27  ;;  %v456_v31 = vor.u32 %v455_v9, %v451_v15  ;;  %v1055_v33 = vshll.u32 %v5754_v19, 16  ;;  %v1061_v13 = vshll.u32 %v7128_v26, 16  ;;  %v1065_v36 = vshrl.u32 %v7128_v26, 16 }
  0x49   : > { %v447_v39 = vrot.slane %v446_v20, 4  ;;  %v1396_v51 = vsel %vm6913_vm4, %v5810_v18, %v1395_v22  ;;  %v1397_v14 = vrot.slane %v1395_v22, 4  ;;  %v1054_v40 = vrot.slane %v1052_v27, 4 }
  0x4a   : > { %v457_v42 = vrot.slane %v456_v31, 4  ;;  %v1057_v46 = vrot.slane %v1055_v33, 5  ;;  %v7137_v43 = vrot.slane %v1061_v13, 5  ;;  %v7139_v44 = vrot.slane %v1065_v36, 4 }
  0x4b   : > { %3236 = vrot.lane.b32.xlu1 %v7120_v1, %s6819_s27  ;;  %v452_v7 = vsel %vm6921_vm5, %v447_v39, %v451_v15  ;;  %v1399_v48 = vsel %vm6913_vm4, %v1397_v14, %v1398_v23  ;;  %v7149_v49 = vcombine.low %v5754_v19, %v7128_v26  ;;  %v416_v24 = vshrl.u32 %v276_v38, 16 }
  0x4c   : > { %2394 = vrot.lane.b32.xlu0 %v7116_v6, %s6819_s27  ;;  %v462_v29 = vsel %vm6921_vm5, %v457_v42, %v461_v17  ;;  %v7157_v56 = vcombine.low %v1396_v51, %v1399_v48  ;;  %v1058_v57 = vor.u32 %v1057_v46, %v1054_v40  ;;  %v419_v58 = vshll.u32 %v276_v38, 16  ;;  %v708_v51 = vld [vmem:[%s6869_s22 + $0x3c] sm:$0xe] }
  0x4d   : > { %9582 = vst [vmem:[#allocation6_spill] sm:$0xff] %v7149_v49  ;;  %v7159_v60 = vcombine.low %v452_v7, %v462_v29  ;;  %v418_v61 = vrot.slane %v416_v24, 4  ;;  %v425_v62 = vshll.u32 %v277_v45, 16  ;;  %v429_v63 = vshrl.u32 %v277_v45, 16 }
  0x4e   : > { %v7162_v10 = vrot.slane %v1058_v57, 4  ;;  %v421_v2 = vrot.slane %v419_v58, 5  ;;  %v435_v3 = vshll.u32 %v304_v32, 16  ;;  %v5732_v4 = vrot.slane %v707_v28, 9 }
  0x4f   : > { %2222 = vrot.lane.b32.xlu1 %v7159_v60, %s6818_s26  ;;  %v427_v11 = vrot.slane %v425_v62, 5  ;;  %v431_v15 = vrot.slane %v429_v63, 4  ;;  %v800_v9 = vrot.slane %v277_v45, 5  ;;  %v803_v17 = vrot.slane %v304_v32, 5  ;;  %v7184_v45 = vld [vmem:[%s6869_s22 + $0x44] sm:$0x1] }
  0x50   : > { %3154 = vrot.lane.b32.xlu0 %v7103_v54, %s6817_s23  ;;  %v422_v18 = vor.u32 %v421_v2, %v418_v61  ;;  %v437_v19 = vrot.slane %v435_v3, 5  ;;  %v1028_v20 = vshrl.u32 %v5752_v0, 16  ;;  %v1031_v22 = vshll.u32 %v5752_v0, 16  ;;  %v5781_v61 = vld [vmem:[%s6869_s22 + $0x50] sm:$0x1] }
  0x51   : > { %v432_v23 = vor.u32 %v431_v15, %v427_v11  ;;  %v801_v27 = vsel %vm6913_vm4, %v5732_v4, %v800_v9  ;;  %v802_v31 = vrot.slane %v800_v9, 4  ;;  %v1037_v33 = vshll.u32 %v7165_v8, 16  ;;  %v5797_v3 = vld [vmem:[%s6869_s22 + $0x48] sm:$0xe] }
  0x52   : > { %v423_v13 = vrot.slane %v422_v18, 4  ;;  %v1030_v36 = vrot.slane %v1028_v20, 4  ;;  %v1033_v38 = vrot.slane %v1031_v22, 5  ;;  %v1041_v39 = vshrl.u32 %v7165_v8, 16 }
  0x53   : > { %2318 = vrot.lane.b32.xlu1 %v7149_v49, %s6817_s23  ;;  %v433_v14 = vrot.slane %v432_v23, 4  ;;  %v804_v40 = vsel %vm6913_vm4, %v802_v31, %v803_v17  ;;  %v1039_v42 = vrot.slane %v1037_v33, 5  ;;  %v7181_v46 = vcombine.low %v5752_v0, %v7165_v8 }
  0x54   : > { %3234 = vrot.lane.b32.xlu0 %v7157_v56, %s6819_s27  ;;  %v428_v7 = vsel %vm6921_vm5, %v423_v13, %v427_v11  ;;  %v6021_v48 = vcombine.low %v801_v27, %v804_v40  ;;  %v1034_v32 = vor.u32 %v1033_v38, %v1030_v36  ;;  %v1043_v24 = vrot.slane %v1041_v39, 4  ;;  %v7217_v27 = vld [vmem:[%s6869_s22 + $0x58] sm:$0xf]  ;;  %v7222_v13 = vld [vmem:[%s6869_s22 + $0x5c] sm:$0x1] }
  0x55   : > { %9583 = vst [vmem:[#allocation7_spill] sm:$0xff] %v7181_v46  ;;  %v438_v28 = vsel %vm6921_vm5, %v433_v14, %v437_v19  ;;  %v5733_v29 = vrot.slane %v708_v51, 9  ;;  %v807_v57 = vrot.slane %v7095_v50, 5  ;;  %v810_v58 = vrot.slane %v7101_v53, 5  ;;  %v282_v19 = vld [vmem:[%s6869_s22 + $0x54] sm:$0xf] }
  0x56   : > { %v7195_v62 = vcombine.low %v428_v7, %v438_v28  ;;  %v1035_v63 = vrot.slane %v1034_v32, 4  ;;  %v1044_v0 = vor.u32 %v1043_v24, %v1039_v42  ;;  %v1047_v2 = vshll.u32 %v7184_v45, 16  ;;  %v5796_v7 = vld [vmem:[%s6869_s22 + $0x3c] sm:$0xe] }
  0x57   : > { %3126 = vrot.lane.b32.xlu1 %v6021_v48, %s6818_s26  ;;  %v808_v4 = vsel %vm6913_vm4, %v5733_v29, %v807_v57  ;;  %v809_v11 = vrot.slane %v807_v57, 4  ;;  %v1064_v50 = vsel %vm6921_vm5, %v7162_v10, %v7137_v43  ;;  %v1068_v53 = vor.u32 %v7139_v44, %v7137_v43 }
  0x58   : > { %2220 = vrot.lane.b32.xlu0 %v7195_v62, %s6818_s26  ;;  %v1040_v15 = vsel %vm6921_vm5, %v1035_v63, %v1039_v42  ;;  %v1045_v9 = vrot.slane %v1044_v0, 4  ;;  %v1049_v17 = vrot.slane %v1047_v2, 5  ;;  %v1071_v18 = vshll.u32 %v5781_v61, 16 }
  0x59   : > { %v811_v20 = vsel %vm6913_vm4, %v809_v11, %v810_v58  ;;  %v1069_v22 = vrot.slane %v1068_v53, 4  ;;  %v5813_v23 = vrot.slane %v5797_v3, 9  ;;  %v1416_v10 = vrot.slane %v7128_v26, 5  ;;  %v7251_v53 = vld [vmem:[%s6869_s22 + $0x64] sm:$0xf] }
  0x5a   : > { %v6022_v43 = vcombine.low %v808_v4, %v811_v20  ;;  %v1050_v44 = vsel %vm6921_vm5, %v1045_v9, %v1049_v17  ;;  %v1073_v31 = vrot.slane %v1071_v18, 5  ;;  %v1419_v33 = vrot.slane %v5781_v61, 5  ;;  %v5758_v4 = vld [vmem:[%s6869_s22 + $0x60] sm:$0xf] }
  0x5b   : > { %v7224_v36 = vcombine.low %v1040_v15, %v1050_v44  ;;  %v1417_v38 = vsel %vm6913_vm4, %v5813_v23, %v1416_v10  ;;  %v1418_v39 = vrot.slane %v1416_v10, 4  ;;  %v488_v51 = vshrl.u32 %v282_v19, 16 }
  0x5c   : > { %2316 = vrot.lane.b32.xlu0 %v7181_v46, %s6817_s23  ;;  %3128 = vrot.lane.b32.xlu1 %v6022_v43, %s6818_s26  ;;  %v1074_v26 = vsel %vm6921_vm5, %v1069_v22, %v1073_v31  ;;  %v491_v14 = vshll.u32 %v282_v19, 16  ;;  %v497_v40 = vshll.u32 %v7217_v27, 16  ;;  %v501_v42 = vshrl.u32 %v7217_v27, 16  ;;  %v280_v19 = vld [vmem:[%s6869_s22 + $0x48] sm:$0xf] }
  0x5d   : > { %v7236_v48 = vcombine.low %v1064_v50, %v1074_v26  ;;  %v1420_v32 = vsel %vm6913_vm4, %v1418_v39, %v1419_v33  ;;  %v490_v24 = vrot.slane %v488_v51, 4  ;;  %v507_v28 = vshll.u32 %v7222_v13, 16  ;;  %v281_v43 = vld [vmem:[%s6869_s22 + $0x4c] sm:$0xf]  ;;  %v306_v39 = vld [vmem:[%s6869_s22 + $0x50] sm:$0x1] }
  0x5e   : > { %v7241_v29 = vcombine.low %v1417_v38, %v1420_v32  ;;  %v493_v57 = vrot.slane %v491_v14, 5  ;;  %v499_v58 = vrot.slane %v497_v40, 5  ;;  %v503_v61 = vrot.slane %v501_v42, 4  ;;  %v709_v51 = vld [vmem:[%s6869_s22 + $0x48] sm:$0xe] }
  0x5f   : > { %v509_v63 = vrot.slane %v507_v28, 5  ;;  %v5812_v0 = vrot.slane %v5796_v7, 9  ;;  %v1409_v2 = vrot.slane %v7165_v8, 5  ;;  %v1412_v3 = vrot.slane %v7184_v45, 5 }
  0x60   : > { %9584 = vst [vmem:[#allocation8_spill] sm:$0xff] %v7241_v29  ;;  %2396 = vrot.lane.b32.xlu0 %v7224_v36, %s6819_s27  ;;  %3160 = vrot.lane.b32.xlu1 %v7236_v48, %s6817_s23  ;;  %v494_v11 = vor.u32 %v493_v57, %v490_v24  ;;  %v504_v50 = vor.u32 %v503_v61, %v499_v58  ;;  %v1100_v15 = vshrl.u32 %v5758_v4, 16  ;;  %v1103_v9 = vshll.u32 %v5758_v4, 16  ;;  %v5756_v57 = vld [vmem:[%s6869_s22 + $0x54] sm:$0xf] }
  0x61   : > { %v1410_v8 = vsel %vm6913_vm4, %v5812_v0, %v1409_v2  ;;  %v1411_v45 = vrot.slane %v1409_v2, 4  ;;  %v1109_v17 = vshll.u32 %v7251_v53, 16  ;;  %v1113_v18 = vshrl.u32 %v7251_v53, 16 }
  0x62   : > { %v495_v20 = vrot.slane %v494_v11, 4  ;;  %v505_v22 = vrot.slane %v504_v50, 4  ;;  %v1102_v23 = vrot.slane %v1100_v15, 4  ;;  %v1105_v10 = vrot.slane %v1103_v9, 5 }
  0x63   : > { %v1413_v44 = vsel %vm6913_vm4, %v1411_v45, %v1412_v3  ;;  %v7261_v31 = vrot.slane %v1109_v17, 5  ;;  %v7263_v33 = vrot.slane %v1113_v18, 4  ;;  %v7266_v38 = vcombine.low %v5758_v4, %v7251_v53 }
  0x64   : > { %2398 = vrot.lane.b32.xlu0 %v7236_v48, %s6819_s27  ;;  %3240 = vrot.lane.b32.xlu1 %v7241_v29, %s6819_s27  ;;  %v500_v26 = vsel %vm6921_vm5, %v495_v20, %v499_v58  ;;  %v510_v14 = vsel %vm6921_vm5, %v505_v22, %v509_v63  ;;  %v7278_v40 = vcombine.low %v1410_v8, %v1413_v44  ;;  %v464_v42 = vshrl.u32 %v280_v19, 16  ;;  %v7286_v63 = vld [vmem:[%s6869_s22 + $0x58] sm:$0xf]  ;;  %v710_v44 = vld [vmem:[%s6869_s22 + $0x54] sm:$0xe] }
  0x65   : > { %9585 = vst [vmem:[#allocation9_spill] sm:$0xff] %v7266_v38  ;;  %v7280_v7 = vcombine.low %v500_v26, %v510_v14  ;;  %v1106_v32 = vor.u32 %v1105_v10, %v1102_v23  ;;  %v467_v24 = vshll.u32 %v280_v19, 16  ;;  %v473_v28 = vshll.u32 %v281_v43, 16 }
  0x66   : > { %v466_v61 = vrot.slane %v464_v42, 4  ;;  %v477_v0 = vshrl.u32 %v281_v43, 16  ;;  %v483_v2 = vshll.u32 %v306_v39, 16  ;;  %v5734_v3 = vrot.slane %v709_v51, 9  ;;  %v7303_v42 = vld [vmem:[%s6869_s22 + $0x5c] sm:$0x1] }
  0x67   : > { %v7283_v4 = vrot.slane %v1106_v32, 4  ;;  %v469_v58 = vrot.slane %v467_v24, 5  ;;  %v475_v11 = vrot.slane %v473_v28, 5  ;;  %v814_v50 = vrot.slane %v281_v43, 5 }
  0x68   : > { %3158 = vrot.lane.b32.xlu0 %v7224_v36, %s6817_s23  ;;  %2226 = vrot.lane.b32.xlu1 %v7280_v7, %s6818_s26  ;;  %v479_v15 = vrot.slane %v477_v0, 4  ;;  %v485_v9 = vrot.slane %v483_v2, 5  ;;  %v817_v8 = vrot.slane %v306_v39, 5  ;;  %v1076_v45 = vshrl.u32 %v5756_v57, 16 }
  0x69   : > { %v470_v17 = vor.u32 %v469_v58, %v466_v61  ;;  %v815_v18 = vsel %vm6913_vm4, %v5734_v3, %v814_v50  ;;  %v816_v19 = vrot.slane %v814_v50, 4  ;;  %v1079_v20 = vshll.u32 %v5756_v57, 16 }
  0x6a   : > { %v480_v22 = vor.u32 %v479_v15, %v475_v11  ;;  %v1078_v23 = vrot.slane %v1076_v45, 4  ;;  %v1085_v10 = vshll.u32 %v7286_v63, 16  ;;  %v1089_v43 = vshrl.u32 %v7286_v63, 16  ;;  %v5783_v45 = vld [vmem:[%s6869_s22 + $0x68] sm:$0x1] }
  0x6b   : > { %v471_v51 = vrot.slane %v470_v17, 4  ;;  %v818_v26 = vsel %vm6913_vm4, %v816_v19, %v817_v8  ;;  %v1081_v14 = vrot.slane %v1079_v20, 5  ;;  %v7300_v39 = vcombine.low %v5756_v57, %v7286_v63  ;;  %v5799_v17 = vld [vmem:[%s6869_s22 + $0x60] sm:$0xe] }
  0x6c   : > { %3238 = vrot.lane.b32.xlu0 %v7278_v40, %s6819_s27  ;;  %2322 = vrot.lane.b32.xlu1 %v7266_v38, %s6817_s23  ;;  %v481_v32 = vrot.slane %v480_v22, 4  ;;  %v6023_v24 = vcombine.low %v815_v18, %v818_v26  ;;  %v1087_v28 = vrot.slane %v1085_v10, 5  ;;  %v1091_v61 = vrot.slane %v1089_v43, 4  ;;  %v7337_v26 = vld [vmem:[%s6869_s22 + $0x70] sm:$0xf] }
  0x6d   : > { %9586 = vst [vmem:[#allocation10_spill] sm:$0xff] %v7300_v39  ;;  %v476_v0 = vsel %vm6921_vm5, %v471_v51, %v475_v11  ;;  %v1082_v2 = vor.u32 %v1081_v14, %v1078_v23  ;;  %v5735_v57 = vrot.slane %v710_v44, 9  ;;  %v821_v3 = vrot.slane %v7217_v27, 5  ;;  %v286_v23 = vld [vmem:[%s6869_s22 + $0x6c] sm:$0xf] }
  0x6e   : > { %v486_v58 = vsel %vm6921_vm5, %v481_v32, %v485_v9  ;;  %v824_v50 = vrot.slane %v7222_v13, 5  ;;  %v1092_v15 = vor.u32 %v1091_v61, %v1087_v28  ;;  %v1095_v8 = vshll.u32 %v7303_v42, 16  ;;  %v7343_v32 = vld [vmem:[%s6869_s22 + $0x74] sm:$0x1] }
  0x6f   : > { %v7318_v18 = vcombine.low %v476_v0, %v486_v58  ;;  %v1083_v19 = vrot.slane %v1082_v2, 4  ;;  %v822_v11 = vsel %vm6913_vm4, %v5735_v57, %v821_v3  ;;  %v823_v20 = vrot.slane %v821_v3, 4 }
  0x70   : > { %3130 = vrot.lane.b32.xlu1 %v6023_v24, %s6818_s26  ;;  %v1093_v27 = vrot.slane %v1092_v15, 4  ;;  %v1097_v9 = vrot.slane %v1095_v8, 5  ;;  %v1112_v13 = vsel %vm6921_vm5, %v7283_v4, %v7261_v31  ;;  %v1116_v22 = vor.u32 %v7263_v33, %v7261_v31 }
  0x71   : > { %2224 = vrot.lane.b32.xlu0 %v7318_v18, %s6818_s26  ;;  %v825_v10 = vsel %vm6913_vm4, %v823_v20, %v824_v50  ;;  %v1088_v43 = vsel %vm6921_vm5, %v1083_v19, %v1087_v28  ;;  %v1119_v44 = vshll.u32 %v5783_v45, 16  ;;  %v5815_v51 = vrot.slane %v5799_v17, 9  ;;  %v5798_v50 = vld [vmem:[%s6869_s22 + $0x54] sm:$0xe] }
  0x72   : > { %v6024_v14 = vcombine.low %v822_v11, %v825_v10  ;;  %v1098_v4 = vsel %vm6921_vm5, %v1093_v27, %v1097_v9  ;;  %v1117_v31 = vrot.slane %v1116_v22, 4  ;;  %v1430_v33 = vrot.slane %v7251_v53, 5  ;;  %v5762_v10 = vld [vmem:[%s6869_s22 + $0x78] sm:$0xf] }
  0x73   : > { %v7345_v24 = vcombine.low %v1088_v43, %v1098_v4  ;;  %v1121_v61 = vrot.slane %v1119_v44, 5  ;;  %v1433_v0 = vrot.slane %v5783_v45, 5  ;;  %v536_v2 = vshrl.u32 %v286_v23, 16 }
  0x74   : > { %3132 = vrot.lane.b32.xlu1 %v6024_v14, %s6818_s26  ;;  %v1431_v28 = vsel %vm6913_vm4, %v5815_v51, %v1430_v33  ;;  %v1432_v57 = vrot.slane %v1430_v33, 4  ;;  %v539_v3 = vshll.u32 %v286_v23, 16  ;;  %v545_v58 = vshll.u32 %v7337_v26, 16  ;;  %v7370_v51 = vld [vmem:[%s6869_s22 + $0x7c] sm:$0xf] }
  0x75   : > { %9587 = vst [vmem:[#allocation11_spill] sm:$0xff] %v7345_v24  ;;  %2320 = vrot.lane.b32.xlu0 %v7300_v39, %s6817_s23  ;;  %v1122_v53 = vsel %vm6921_vm5, %v1117_v31, %v1121_v61  ;;  %v538_v15 = vrot.slane %v536_v2, 4  ;;  %v549_v8 = vshrl.u32 %v7337_v26, 16  ;;  %v555_v45 = vshll.u32 %v7343_v32, 16  ;;  %v7407_v39 = vld [vmem:[%s6869_s22 + $0x70] sm:$0xf] }
  0x76   : > { %v7358_v17 = vcombine.low %v1112_v13, %v1122_v53  ;;  %v1434_v19 = vsel %vm6913_vm4, %v1432_v57, %v1433_v0  ;;  %v541_v11 = vrot.slane %v539_v3, 5  ;;  %v547_v20 = vrot.slane %v545_v58, 5  ;;  %v284_v0 = vld [vmem:[%s6869_s22 + $0x60] sm:$0xf]  ;;  %v285_v53 = vld [vmem:[%s6869_s22 + $0x64] sm:$0xf] }
  0x77   : > { %v7362_v27 = vcombine.low %v1431_v28, %v1434_v19  ;;  %v551_v9 = vrot.slane %v549_v8, 4  ;;  %v557_v22 = vrot.slane %v555_v45, 5  ;;  %v5814_v23 = vrot.slane %v5798_v50, 9  ;;  %v308_v19 = vld [vmem:[%s6869_s22 + $0x68] sm:$0x1] }
  0x78   : > { %9588 = vst [vmem:[#allocation12_spill] sm:$0xff] %v7358_v17  ;;  %3164 = vrot.lane.b32.xlu1 %v7358_v17, %s6817_s23  ;;  %v542_v43 = vor.u32 %v541_v11, %v538_v15  ;;  %v1423_v44 = vrot.slane %v7286_v63, 5  ;;  %v1426_v13 = vrot.slane %v7303_v42, 5  ;;  %v1148_v14 = vshrl.u32 %v5762_v10, 16 }
  0x79   : > { %9589 = vst [vmem:[#allocation13_spill] sm:$0xff] %v7362_v27  ;;  %2400 = vrot.lane.b32.xlu0 %v7345_v24, %s6819_s27  ;;  %v552_v4 = vor.u32 %v551_v9, %v547_v20  ;;  %v1151_v31 = vshll.u32 %v5762_v10, 16  ;;  %v1157_v33 = vshll.u32 %v7370_v51, 16  ;;  %v1161_v61 = vshrl.u32 %v7370_v51, 16  ;;  %v711_v9 = vld [vmem:[%s6869_s22 + $0x60] sm:$0xe] }
  0x7a   : > { %v543_v2 = vrot.slane %v542_v43, 4  ;;  %v1424_v63 = vsel %vm6913_vm4, %v5814_v23, %v1423_v44  ;;  %v1425_v42 = vrot.slane %v1423_v44, 4  ;;  %v1150_v28 = vrot.slane %v1148_v14, 4 }
  0x7b   : > { %v553_v57 = vrot.slane %v552_v4, 4  ;;  %v1153_v3 = vrot.slane %v1151_v31, 5  ;;  %v7379_v58 = vrot.slane %v1157_v33, 5  ;;  %v7381_v50 = vrot.slane %v1161_v61, 4  ;;  %v5760_v31 = vld [vmem:[%s6869_s22 + $0x6c] sm:$0xf] }
  0x7c   : > { %3244 = vrot.lane.b32.xlu1 %v7362_v27, %s6819_s27  ;;  %v548_v15 = vsel %vm6921_vm5, %v543_v2, %v547_v20  ;;  %v1427_v8 = vsel %vm6913_vm4, %v1425_v42, %v1426_v13  ;;  %v7391_v45 = vcombine.low %v5762_v10, %v7370_v51  ;;  %v512_v11 = vshrl.u32 %v284_v0, 16 }
  0x7d   : > { %2402 = vrot.lane.b32.xlu0 %v7358_v17, %s6819_s27  ;;  %v558_v23 = vsel %vm6921_vm5, %v553_v57, %v557_v22  ;;  %v7399_v43 = vcombine.low %v1424_v63, %v1427_v8  ;;  %v1154_v44 = vor.u32 %v1153_v3, %v1150_v28  ;;  %v515_v20 = vshll.u32 %v284_v0, 16 }
  0x7e   : > { %9590 = vst [vmem:[#allocation14_spill] sm:$0xff] %v7391_v45  ;;  %v7401_v14 = vcombine.low %v548_v15, %v558_v23  ;;  %v514_v13 = vrot.slane %v512_v11, 4  ;;  %v521_v4 = vshll.u32 %v285_v53, 16  ;;  %v525_v10 = vshrl.u32 %v285_v53, 16 }
  0x7f   : > { %9591 = vst [vmem:[#allocation15_spill] sm:$0xff] %v7399_v43  ;;  %v7404_v33 = vrot.slane %v1154_v44, 4  ;;  %v517_v61 = vrot.slane %v515_v20, 5  ;;  %v531_v2 = vshll.u32 %v308_v19, 16  ;;  %v5736_v42 = vrot.slane %v711_v9, 9 }
  0x80   : > { %2230 = vrot.lane.b32.xlu1 %v7401_v14, %s6818_s26  ;;  %v523_v22 = vrot.slane %v521_v4, 5  ;;  %v527_v63 = vrot.slane %v525_v10, 4  ;;  %v828_v0 = vrot.slane %v285_v53, 5  ;;  %v831_v28 = vrot.slane %v308_v19, 5  ;;  %v712_v19 = vld [vmem:[%s6869_s22 + $0x6c] sm:$0xe] }
  0x81   : > { %3162 = vrot.lane.b32.xlu0 %v7345_v24, %s6817_s23  ;;  %v518_v57 = vor.u32 %v517_v61, %v514_v13  ;;  %v533_v3 = vrot.slane %v531_v2, 5  ;;  %v1124_v15 = vshrl.u32 %v5760_v31, 16  ;;  %v1127_v8 = vshll.u32 %v5760_v31, 16 }
  0x82   : > { %v528_v11 = vor.u32 %v527_v63, %v523_v22  ;;  %v829_v9 = vsel %vm6913_vm4, %v5736_v42, %v828_v0  ;;  %v830_v23 = vrot.slane %v828_v0, 4  ;;  %v1133_v44 = vshll.u32 %v7407_v39, 16  ;;  %v7426_v63 = vld [vmem:[%s6869_s22 + $0x74] sm:$0x1] }
  0x83   : > { %v519_v20 = vrot.slane %v518_v57, 4  ;;  %v1126_v4 = vrot.slane %v1124_v15, 4  ;;  %v1129_v10 = vrot.slane %v1127_v8, 5  ;;  %v1137_v53 = vshrl.u32 %v7407_v39, 16 }
  0x84   : > { %2326 = vrot.lane.b32.xlu1 %v7391_v45, %s6817_s23  ;;  %v529_v13 = vrot.slane %v528_v11, 4  ;;  %v832_v61 = vsel %vm6913_vm4, %v830_v23, %v831_v28  ;;  %v1135_v2 = vrot.slane %v1133_v44, 5  ;;  %v7423_v42 = vcombine.low %v5760_v31, %v7407_v39  ;;  %v5785_v44 = vld [vmem:[%s6869_s22 + $0x80] sm:$0x1] }
  0x85   : > { %3242 = vrot.lane.b32.xlu0 %v7399_v43, %s6819_s27  ;;  %v524_v0 = vsel %vm6921_vm5, %v519_v20, %v523_v22  ;;  %v6025_v57 = vcombine.low %v829_v9, %v832_v61  ;;  %v1130_v15 = vor.u32 %v1129_v10, %v1126_v4  ;;  %v1139_v8 = vrot.slane %v1137_v53, 4 }
  0x86   : > { %9592 = vst [vmem:[#allocation16_spill] sm:$0xff] %v7423_v42  ;;  %v534_v11 = vsel %vm6921_vm5, %v529_v13, %v533_v3  ;;  %v5737_v28 = vrot.slane %v712_v19, 9  ;;  %v835_v23 = vrot.slane %v7337_v26, 5  ;;  %v838_v31 = vrot.slane %v7343_v32, 5 }
  0x87   : > { %v7437_v45 = vcombine.low %v524_v0, %v534_v11  ;;  %v1131_v38 = vrot.slane %v1130_v15, 4  ;;  %v1140_v49 = vor.u32 %v1139_v8, %v1135_v2  ;;  %v1143_v46 = vshll.u32 %v7426_v63, 16  ;;  %v7478_v8 = vld [vmem:[%s6869_s22] sm:$0xf]  ;;  %v7481_v11 = vld [vmem:[%s6869_s22 + $0x4] sm:$0xf] }
  0x88   : > { %3134 = vrot.lane.b32.xlu1 %v6025_v57, %s6818_s26  ;;  %v836_v22 = vsel %vm6913_vm4, %v5737_v28, %v835_v23  ;;  %v837_v3 = vrot.slane %v835_v23, 4  ;;  %v1160_v26 = vsel %vm6921_vm5, %v7404_v33, %v7379_v58  ;;  %v1164_v32 = vor.u32 %v7381_v50, %v7379_v58  ;;  %v290_v50 = vld [vmem:[%s6869_s22 + $0x84] sm:$0xf] }
  0x89   : > { %2228 = vrot.lane.b32.xlu0 %v7437_v45, %s6818_s26  ;;  %v1136_v9 = vsel %vm6921_vm5, %v1131_v38, %v1135_v2  ;;  %v1141_v20 = vrot.slane %v1140_v49, 4  ;;  %v1145_v4 = vrot.slane %v1143_v46, 5  ;;  %v1167_v10 = vshll.u32 %v5785_v44, 16  ;;  %v7456_v13 = vpop.permute.xlu1 %2308  ;;  %v7463_v2 = vld [vmem:[%s6869_s22 + $0x88] sm:$0xf] }
  0x8a   : > { %v839_v53 = vsel %vm6913_vm4, %v837_v3, %v838_v31  ;;  %v1165_v19 = vrot.slane %v1164_v32, 4  ;;  %v5817_v33 = vrot.slane %v5801_v12, 9  ;;  %v1444_v58 = vrot.slane %v7370_v51, 5  ;;  %v7470_v12 = vld [vmem:[%s6869_s22 + $0x8c] sm:$0x1] }
  0x8b   : > { %v6026_v61 = vcombine.low %v836_v22, %v839_v53  ;;  %v1146_v38 = vsel %vm6921_vm5, %v1141_v20, %v1145_v4  ;;  %v1169_v49 = vrot.slane %v1167_v10, 5  ;;  %v1447_v46 = vrot.slane %v5785_v44, 5  ;;  %v5800_v44 = vld [vmem:[%s6869_s22 + $0x6c] sm:$0xe] }
  0x8c   : > { %v7465_v0 = vcombine.low %v1136_v9, %v1146_v38  ;;  %v1445_v57 = vsel %vm6913_vm4, %v5817_v33, %v1444_v58  ;;  %v1446_v15 = vrot.slane %v1444_v58, 4  ;;  %v584_v23 = vshrl.u32 %v290_v50, 16 }
  0x8d   : > { %2324 = vrot.lane.b32.xlu0 %v7423_v42, %s6817_s23  ;;  %3136 = vrot.lane.b32.xlu1 %v6026_v61, %s6818_s26  ;;  %v1170_v51 = vsel %vm6921_vm5, %v1165_v19, %v1169_v49  ;;  %v587_v31 = vshll.u32 %v290_v50, 16  ;;  %v593_v32 = vshll.u32 %v7463_v2, 16  ;;  %v597_v9 = vshrl.u32 %v7463_v2, 16  ;;  %v7493_v53 = vpop.permute.xlu1 %2310 }
  0x8e   : > { %9593 = vst [vmem:[#allocation17_spill] sm:$0xff] %v7465_v0  ;;  %v7486_v22 = vcombine.low %v1160_v26, %v1170_v51  ;;  %v1448_v3 = vsel %vm6913_vm4, %v1446_v15, %v1447_v46  ;;  %v586_v20 = vrot.slane %v584_v23, 4  ;;  %v603_v10 = vshll.u32 %v7470_v12, 16  ;;  %v5766_v46 = vld [vmem:[%s6869_s22 + $0x90] sm:$0xf] }
  0x8f   : > { %v589_v4 = vrot.slane %v587_v31, 5  ;;  %v595_v19 = vrot.slane %v593_v32, 5  ;;  %v599_v33 = vrot.slane %v597_v9, 4  ;;  %v5816_v26 = vrot.slane %v5800_v44, 9  ;;  %v7507_v23 = vld [vmem:[%s6869_s22 + $0x94] sm:$0xf] }
  0x90   : > { %9594 = vst [vmem:[#allocation18_spill] sm:$0xff] %v7486_v22  ;;  %v1437_v58 = vrot.slane %v7407_v39, 5  ;;  %v7500_v50 = vcombine.low %v1445_v57, %v1448_v3  ;;  %v605_v38 = vrot.slane %v603_v10, 5  ;;  %v1440_v49 = vrot.slane %v7426_v63, 5  ;;  %v288_v9 = vld [vmem:[%s6869_s22 + $0x78] sm:$0xf] }
  0x91   : > { %2404 = vrot.lane.b32.xlu0 %v7465_v0, %s6819_s27  ;;  %3168 = vrot.lane.b32.xlu1 %v7486_v22, %s6817_s23  ;;  %v590_v61 = vor.u32 %v589_v4, %v586_v20  ;;  %v600_v15 = vor.u32 %v599_v33, %v595_v19  ;;  %v1196_v31 = vshrl.u32 %v5766_v46, 16  ;;  %v1199_v32 = vshll.u32 %v5766_v46, 16  ;;  %v6763_v4 = vld [vmem:[%s6869_s22 + $0xc] sm:$0xf]  ;;  %v6764_v10 = vld [vmem:[%s6869_s22 + $0x10] sm:$0xf] }
  0x92   : > { %9595 = vst [vmem:[#allocation19_spill] sm:$0xff] %v7500_v50  ;;  %v1438_v39 = vsel %vm6913_vm4, %v5816_v26, %v1437_v58  ;;  %v1439_v51 = vrot.slane %v1437_v58, 4  ;;  %v1205_v57 = vshll.u32 %v7507_v23, 16  ;;  %v1209_v3 = vshrl.u32 %v7507_v23, 16  ;;  %v289_v58 = vld [vmem:[%s6869_s22 + $0x7c] sm:$0xf] }
  0x93   : > { %v591_v44 = vrot.slane %v590_v61, 4  ;;  %v601_v20 = vrot.slane %v600_v15, 4  ;;  %v5905_v33 = vcombine.low %v6763_v4, %v6764_v10  ;;  %v1198_v26 = vrot.slane %v1196_v31, 4 }
  0x94   : > { %v1441_v63 = vsel %vm6913_vm4, %v1439_v51, %v1440_v49  ;;  %v1201_v28 = vrot.slane %v1199_v32, 5  ;;  %v7526_v49 = vcombine.low %v5766_v46, %v7507_v23  ;;  %v310_v51 = vld [vmem:[%s6869_s22 + $0x80] sm:$0x1]  ;;  %v7531_v10 = vrot.slane %v1205_v57, 5  ;;  %v7544_v57 = vld [vmem:[%s6869_s22 + $0x88] sm:$0xf] }
  0x95   : > { %2406 = vrot.lane.b32.xlu0 %v7486_v22, %s6819_s27  ;;  %3248 = vrot.lane.b32.xlu1 %v7500_v50, %s6819_s27  ;;  %v596_v61 = vsel %vm6921_vm5, %v591_v44, %v595_v19  ;;  %v7523_v15 = vcombine.low %v1438_v39, %v1441_v63  ;;  %v606_v31 = vsel %vm6921_vm5, %v601_v20, %v605_v38  ;;  %v560_v42 = vshrl.u32 %v288_v9, 16  ;;  %v5764_v44 = vld [vmem:[%s6869_s22 + $0x84] sm:$0xf] }
  0x96   : > { %9596 = vst [vmem:[#allocation20_spill] sm:$0xff] %v7526_v49  ;;  %v3119_v4 = vpop.permute.xlu1 %3118  ;;  %v563_v30 = vshll.u32 %v288_v9, 16  ;;  %v7534_v5 = vcombine.low %v596_v61, %v606_v31  ;;  %v7540_v39 = vrot.slane %v1209_v3, 4  ;;  %v569_v46 = vshll.u32 %v289_v58, 16 }
  0x97   : > { %v7538_v19 = vsel %vm2420_vm6, %v6940_v16, %v3119_v4  ;;  %v562_v63 = vrot.slane %v560_v42, 4  ;;  %v573_v20 = vshrl.u32 %v289_v58, 16  ;;  %v579_v50 = vshll.u32 %v310_v51, 16 }
  0x98   : > { %v2213_v32 = vpop.permute.xlu0 %2212  ;;  %v565_v38 = vrot.slane %v563_v30, 5  ;;  %v9597_v9 = vcombine.low %v7478_v8, %v7481_v11  ;;  %v1202_v3 = vor.u32 %v1201_v28, %v1198_v26  ;;  %v571_v61 = vrot.slane %v569_v46, 5 }
  0x99   : > { %3166 = vrot.lane.b32.xlu0 %v7465_v0, %s6817_s23  ;;  %2234 = vrot.lane.b32.xlu1 %v7534_v5, %s6818_s26  ;;  %v5738_v31 = vrot.slane %v713_v25, 9  ;;  %v575_v30 = vrot.slane %v573_v20, 4  ;;  %v581_v4 = vrot.slane %v579_v50, 5  ;;  %v842_v22 = vrot.slane %v289_v58, 5 }
  0x9a   : > { %v2423_v16 = vsel %vm2420_vm6, %v9597_v9, %v2213_v32  ;;  %v566_v42 = vor.u32 %v565_v38, %v562_v63  ;;  %v845_v27 = vrot.slane %v310_v51, 5  ;;  %v1172_v43 = vshrl.u32 %v5764_v44, 16 }
  0x9b   : > { %v1175_v24 = vshll.u32 %v5764_v44, 16  ;;  %v1181_v0 = vshll.u32 %v7544_v57, 16  ;;  %v576_v29 = vor.u32 %v575_v30, %v571_v61  ;;  %v843_v11 = vsel %vm6913_vm4, %v5738_v31, %v842_v22  ;;  %v714_v31 = vld [vmem:[%s6869_s22 + $0x84] sm:$0xe] }
  0x9c   : > { %v567_v17 = vrot.slane %v566_v42, 4  ;;  %v3121_v8 = vpop.permute.xlu1 %3120  ;;  %v844_v32 = vrot.slane %v842_v22, 4  ;;  %v7559_v28 = vrot.slane %v1202_v3, 4  ;;  %v1174_v26 = vrot.slane %v1172_v43, 4 }
  0x9d   : > { %3246 = vrot.lane.b32.xlu0 %v7523_v15, %s6819_s27  ;;  %v2215_v25 = vpop.permute.xlu0 %2214  ;;  %2330 = vrot.lane.b32.xlu1 %v7526_v49, %s6817_s23  ;;  %v3267_v50 = vsel %vm2420_vm6, %v6971_v21, %v3121_v8  ;;  %v1177_v58 = vrot.slane %v1175_v24, 5  ;;  %v577_v46 = vrot.slane %v576_v29, 4  ;;  %v1183_v63 = vrot.slane %v1181_v0, 5 }
  0x9e   : > { %v572_v51 = vsel %vm6921_vm5, %v567_v17, %v571_v61  ;;  %v846_v22 = vsel %vm6913_vm4, %v844_v32, %v845_v27  ;;  %v2426_v38 = vsel %vm2420_vm6, %v5905_v33, %v2215_v25  ;;  %v1185_v3 = vshrl.u32 %v7544_v57, 16  ;;  %v7580_v33 = vld [vmem:[%s6869_s22 + $0x8c] sm:$0x1]  ;;  %v5787_v61 = vld [vmem:[%s6869_s22 + $0x98] sm:$0x1] }
  0x9f   : > { %v6027_v20 = vcombine.low %v843_v11, %v846_v22  ;;  %v1178_v9 = vor.u32 %v1177_v58, %v1174_v26  ;;  %v582_v21 = vsel %vm6921_vm5, %v577_v46, %v581_v4  ;;  %v2471_v0 = vsel %vm2469_vm7, %v2423_v16, %v7456_v13 }
  0xa0   : > { %v3153_v29 = vpop.permute.xlu1 %3152  ;;  %v7574_v24 = vcombine.low %v572_v51, %v582_v21  ;;  %v1187_v43 = vrot.slane %v1185_v3, 4  ;;  %v7584_v42 = vcombine.low %v5764_v44, %v7544_v57  ;;  %v5739_v8 = vrot.slane %v714_v31, 9  ;;  %v5803_v51 = vld [vmem:[%s6869_s22 + $0x90] sm:$0xe]  ;;  %v6765_v3 = vld [vmem:[%s6869_s22 + $0x24] sm:$0xf] }
  0xa1   : > { %v2389_v17 = vpop.permute.xlu0 %2388  ;;  %3138 = vrot.lane.b32.xlu1 %v6027_v20, %s6818_s26  ;;  %v1179_v27 = vrot.slane %v1178_v9, 4  ;;  %v3313_v4 = vsel %vm2469_vm7, %v3267_v50, %v3153_v29  ;;  %v2473_v13 = vsel %vm2469_vm7, %v2426_v38, %v7493_v53  ;;  %v849_v16 = vrot.slane %v7463_v2, 5  ;;  %v6766_v31 = vld [vmem:[%s6869_s22 + $0x28] sm:$0xf]  ;;  %v294_v29 = vld [vmem:[%s6869_s22 + $0x9c] sm:$0xf] }
  0xa2   : > { %9598 = vst [vmem:[#allocation21_spill] sm:$0xff] %v7584_v42  ;;  %v2504_v30 = vsel %vm2502_vm8, %v2471_v0, %v2389_v17  ;;  %2232 = vrot.lane.b32.xlu0 %v7574_v24, %s6818_s26  ;;  %v852_v11 = vrot.slane %v7470_v12, 5  ;;  %v1188_v32 = vor.u32 %v1187_v43, %v1183_v63  ;;  %v1191_v25 = vshll.u32 %v7580_v33, 16 }
  0xa3   : > { %6547 = vmatprep.mubr.msk.bf16.mxu0 %vm2543_vm9, %v2504_v30  ;;  %v1184_v44 = vsel %vm6921_vm5, %v1179_v27, %v1183_v63  ;;  %v1212_v26 = vor.u32 %v7540_v39, %v7531_v10  ;;  %v1215_v58 = vshll.u32 %v5787_v61, 16  ;;  %v850_v2 = vsel %vm6913_vm4, %v5739_v8, %v849_v16  ;;  %v7622_v8 = vld [vmem:[%s6869_s22 + $0xa0] sm:$0xf] }
  0xa4   : > { %v3233_v50 = vpop.permute.xlu1 %3232  ;;  %v851_v12 = vrot.slane %v849_v16, 4  ;;  %v1189_v53 = vrot.slane %v1188_v32, 4  ;;  %v1208_v22 = vsel %vm6921_vm5, %v7559_v28, %v7531_v10  ;;  %v1193_v38 = vrot.slane %v1191_v25, 5 }
  0xa5   : > { %v2391_v46 = vpop.permute.xlu0 %2390  ;;  %v1213_v20 = vrot.slane %v1212_v26, 4  ;;  %v1217_v39 = vrot.slane %v1215_v58, 5  ;;  %v5907_v21 = vcombine.low %v6765_v3, %v6766_v31  ;;  %v5819_v10 = vrot.slane %v5803_v51, 9  ;;  %v5802_v26 = vld [vmem:[%s6869_s22 + $0x84] sm:$0xe] }
  0xa6   : > { %v2506_v63 = vsel %vm2502_vm8, %v2473_v13, %v2391_v46  ;;  %2328 = vrot.lane.b32.xlu0 %v7584_v42, %s6817_s23  ;;  %v853_v9 = vsel %vm6913_vm4, %v851_v12, %v852_v11  ;;  %v1458_v28 = vrot.slane %v7507_v23, 5  ;;  %v1194_v27 = vsel %vm6921_vm5, %v1189_v53, %v1193_v38  ;;  %v7625_v13 = vld [vmem:[%s6869_s22 + $0xa4] sm:$0x1] }
  0xa7   : > { %6548 = vmatmul.mubr.msk.bf16.vlgmr.msra.gmra.mrb[0].mxu0 %vm2543_vm9, %v2506_v63  ;;  %v6028_v17 = vcombine.low %v850_v2, %v853_v9  ;;  %v1218_v43 = vsel %vm6921_vm5, %v1213_v20, %v1217_v39  ;;  %v1461_v30 = vrot.slane %v5787_v61, 5  ;;  %v7627_v16 = vcombine.low %v1184_v44, %v1194_v27  ;;  %v6767_v39 = vld [vmem:[%s6869_s22 + $0x18] sm:$0xf]  ;;  %v6768_v9 = vld [vmem:[%s6869_s22 + $0x1c] sm:$0xf] }
  0xa8   : > { %v2219_v0 = vpop.permute.xlu1 %2218  ;;  %v3345_v11 = vsel %vm2502_vm8, %v3313_v4, %v3233_v50  ;;  %v7630_v23 = vcombine.low %v1208_v22, %v1218_v43  ;;  %v1459_v61 = vsel %vm6913_vm4, %v5819_v10, %v1458_v28  ;;  %v1460_v44 = vrot.slane %v1458_v28, 4 }
  0xa9   : > { %v3151_v32 = vpop.permute.xlu0 %3150  ;;  %v2432_v25 = vsel %vm2420_vm6, %v5907_v21, %v2219_v0  ;;  %3140 = vrot.lane.b32.xlu1 %v6028_v17, %s6818_s26  ;;  %v632_v51 = vshrl.u32 %v294_v29, 16  ;;  %v635_v4 = vshll.u32 %v294_v29, 16  ;;  %v641_v50 = vshll.u32 %v7622_v8, 16 }
  0xaa   : > { %v3311_v58 = vsel %vm2469_vm7, %v7538_v19, %v3151_v32  ;;  %2408 = vrot.lane.b32.xlu0 %v7627_v16, %s6819_s27  ;;  %v645_v46 = vshrl.u32 %v7622_v8, 16  ;;  %v651_v2 = vshll.u32 %v7625_v13, 16  ;;  %v1462_v19 = vsel %vm6913_vm4, %v1460_v44, %v1461_v30  ;;  %v7662_v30 = vld [vmem:[%s6869_s22 + $0xac] sm:$0xf] }
  0xab   : > { %v634_v53 = vrot.slane %v632_v51, 4  ;;  %v5818_v22 = vrot.slane %v5802_v26, 9  ;;  %v1451_v63 = vrot.slane %v7544_v57, 5  ;;  %v7647_v20 = vcombine.low %v1459_v61, %v1462_v19  ;;  %v5770_v57 = vld [vmem:[%s6869_s22 + $0xa8] sm:$0xf] }
  0xac   : > { %v2315_v12 = vpop.permute.xlu1 %2314  ;;  %v5906_v3 = vcombine.low %v6767_v39, %v6768_v9  ;;  %v637_v31 = vrot.slane %v635_v4, 5  ;;  %v643_v21 = vrot.slane %v641_v50, 5  ;;  %v647_v28 = vrot.slane %v645_v46, 4 }
  0xad   : > { %v3231_v38 = vpop.permute.xlu0 %3230  ;;  %9599 = vst [vmem:[#allocation22_spill] sm:$0xff] %v7647_v20  ;;  %3172 = vrot.lane.b32.xlu1 %v7630_v23, %s6817_s23  ;;  %v653_v29 = vrot.slane %v651_v2, 5  ;;  %v1452_v17 = vsel %vm6913_vm4, %v5818_v22, %v1451_v63  ;;  %v1453_v43 = vrot.slane %v1451_v63, 4  ;;  %v1454_v0 = vrot.slane %v7580_v33, 5  ;;  %v293_v2 = vld [vmem:[%s6869_s22 + $0x94] sm:$0xf] }
  0xae   : > { %v3343_v10 = vsel %vm2502_vm8, %v3311_v58, %v3231_v38  ;;  %2410 = vrot.lane.b32.xlu0 %v7630_v23, %s6819_s27  ;;  %v638_v27 = vor.u32 %v637_v31, %v634_v53  ;;  %v1244_v32 = vshrl.u32 %v5770_v57, 16  ;;  %v648_v26 = vor.u32 %v647_v28, %v643_v21 }
  0xaf   : > { %6581 = vmatprep.mubr.msk.bf16.mxu1 %vm2543_vm9, %v3343_v10  ;;  %v1247_v61 = vshll.u32 %v5770_v57, 16  ;;  %v1253_v44 = vshll.u32 %v7662_v30, 16  ;;  %v1257_v51 = vshrl.u32 %v7662_v30, 16  ;;  %v7668_v4 = vsel %vm2469_vm7, %v2432_v25, %v2315_v12  ;;  %v312_v12 = vld [vmem:[%s6869_s22 + $0x98] sm:$0x1] }
  0xb0   : > { %6582 = vmatmul.mubr.msk.bf16.vlgmr.msra.gmra.mrb[0].mxu1 %vm2543_vm9, %v3345_v11  ;;  %v3123_v58 = vpop.permute.xlu1 %3122  ;;  %v639_v50 = vrot.slane %v638_v27, 4  ;;  %v1455_v33 = vsel %vm6913_vm4, %v1453_v43, %v1454_v0  ;;  %v292_v11 = vld [vmem:[%s6869_s22 + $0x90] sm:$0xf]  ;;  %v649_v53 = vrot.slane %v648_v26, 4  ;;  %v1246_v63 = vrot.slane %v1244_v32, 4 }
  0xb1   : > { %v7674_v46 = vsel %vm2420_vm6, %v7076_v34, %v3123_v58  ;;  %3252 = vrot.lane.b32.xlu1 %v7647_v20, %s6819_s27  ;;  %v7680_v22 = vcombine.low %v1452_v17, %v1455_v33  ;;  %v1249_v25 = vrot.slane %v1247_v61, 5  ;;  %v7688_v39 = vrot.slane %v1253_v44, 5  ;;  %v715_v32 = vld [vmem:[%s6869_s22 + $0x90] sm:$0xe] }
  0xb2   : > { %v2217_v19 = vpop.permute.xlu0 %2216  ;;  %3170 = vrot.lane.b32.xlu0 %v7627_v16, %s6817_s23  ;;  %v644_v34 = vsel %vm6921_vm5, %v639_v50, %v643_v21  ;;  %v7690_v9 = vrot.slane %v1257_v51, 4  ;;  %v654_v31 = vsel %vm6921_vm5, %v649_v53, %v653_v29  ;;  %v7695_v10 = vcombine.low %v5770_v57, %v7662_v30  ;;  %v5768_v51 = vld [vmem:[%s6869_s22 + $0x9c] sm:$0xf]  ;;  %v7704_v50 = vld [vmem:[%s6869_s22 + $0xa0] sm:$0xf] }
  0xb3   : > { %v2429_v38 = vsel %vm2420_vm6, %v5906_v3, %v2217_v19  ;;  %v608_v28 = vshrl.u32 %v292_v11, 16  ;;  %v611_v17 = vshll.u32 %v292_v11, 16  ;;  %v7697_v27 = vcombine.low %v644_v34, %v654_v31 }
  0xb4   : > { %9600 = vst [vmem:[#allocation23_spill] sm:$0xff] %v7695_v10  ;;  %v617_v3 = vshll.u32 %v293_v2, 16  ;;  %v621_v43 = vshrl.u32 %v293_v2, 16  ;;  %v627_v0 = vshll.u32 %v312_v12, 16  ;;  %v1250_v58 = vor.u32 %v1249_v25, %v1246_v63 }
  0xb5   : > { %v3125_v21 = vpop.permute.xlu1 %3124  ;;  %v610_v61 = vrot.slane %v608_v28, 4  ;;  %v613_v44 = vrot.slane %v611_v17, 5  ;;  %2238 = vrot.lane.b32.xlu1 %v7697_v27, %s6818_s26  ;;  %v5740_v63 = vrot.slane %v715_v32, 9  ;;  %v856_v25 = vrot.slane %v293_v2, 5  ;;  %v716_v32 = vld [vmem:[%s6869_s22 + $0x9c] sm:$0xe] }
  0xb6   : > { %v2313_v26 = vpop.permute.xlu0 %2312  ;;  %v3273_v29 = vsel %vm2420_vm6, %v7038_v37, %v3125_v21  ;;  %3250 = vrot.lane.b32.xlu0 %v7680_v22, %s6819_s27  ;;  %v619_v33 = vrot.slane %v617_v3, 5  ;;  %v623_v11 = vrot.slane %v621_v43, 4  ;;  %v629_v19 = vrot.slane %v627_v0, 5 }
  0xb7   : > { %v2475_v57 = vsel %vm2469_vm7, %v2429_v38, %v2313_v26  ;;  %v614_v53 = vor.u32 %v613_v44, %v610_v61  ;;  %v859_v34 = vrot.slane %v312_v12, 5  ;;  %v1220_v31 = vshrl.u32 %v5768_v51, 16 }
  0xb8   : > { %v624_v37 = vor.u32 %v623_v11, %v619_v33  ;;  %v1223_v28 = vshll.u32 %v5768_v51, 16  ;;  %v1229_v17 = vshll.u32 %v7704_v50, 16  ;;  %v857_v20 = vsel %vm6913_vm4, %v5740_v63, %v856_v25 }
  0xb9   : > { %v3157_v21 = vpop.permute.xlu1 %3156  ;;  %v615_v42 = vrot.slane %v614_v53, 4  ;;  %v858_v38 = vrot.slane %v856_v25, 4  ;;  %v1233_v3 = vshrl.u32 %v7704_v50, 16  ;;  %2334 = vrot.lane.b32.xlu1 %v7695_v10, %s6817_s23  ;;  %v1222_v43 = vrot.slane %v1220_v31, 4  ;;  %v7729_v25 = vld [vmem:[%s6869_s22 + $0xa4] sm:$0x1] }
  0xba   : > { %v2393_v49 = vpop.permute.xlu0 %2392  ;;  %v625_v2 = vrot.slane %v624_v37, 4  ;;  %v1225_v0 = vrot.slane %v1223_v28, 5  ;;  %v1231_v44 = vrot.slane %v1229_v17, 5  ;;  %v7724_v53 = vrot.slane %v1250_v58, 4 }
  0xbb   : > { %v2508_v12 = vsel %vm2502_vm8, %v2475_v57, %v2393_v49  ;;  %v620_v26 = vsel %vm6921_vm5, %v615_v42, %v619_v33  ;;  %v860_v61 = vsel %vm6913_vm4, %v858_v38, %v859_v34  ;;  %v1235_v11 = vrot.slane %v1233_v3, 4  ;;  %v5789_v38 = vld [vmem:[%s6869_s22 + $0xb0] sm:$0x1] }
  0xbc   : > { %6551 = vmatprep.mubr.msk.bf16.mxu0 %vm2543_vm9, %v2508_v12  ;;  %v630_v63 = vsel %vm6921_vm5, %v625_v2, %v629_v19  ;;  %v6029_v49 = vcombine.low %v857_v20, %v860_v61  ;;  %v1226_v57 = vor.u32 %v1225_v0, %v1222_v43  ;;  %v3317_v42 = vsel %vm2469_vm7, %v3273_v29, %v3157_v21 }
  0xbd   : > { %v3237_v37 = vpop.permute.xlu1 %3236  ;;  %v7731_v31 = vcombine.low %v620_v26, %v630_v63  ;;  %v5741_v34 = vrot.slane %v716_v32, 9  ;;  %v863_v28 = vrot.slane %v7622_v8, 5  ;;  %v866_v20 = vrot.slane %v7625_v13, 5  ;;  %v5805_v13 = vld [vmem:[%s6869_s22 + $0xa8] sm:$0xe] }
  0xbe   : > { %v2395_v33 = vpop.permute.xlu0 %2394  ;;  %3142 = vrot.lane.b32.xlu1 %v6029_v49, %s6818_s26  ;;  %v1227_v58 = vrot.slane %v1226_v57, 4  ;;  %v1236_v17 = vor.u32 %v1235_v11, %v1231_v44  ;;  %v7743_v29 = vcombine.low %v5768_v51, %v7704_v50  ;;  %v1239_v3 = vshll.u32 %v7729_v25, 16  ;;  %v6769_v11 = vld [vmem:[%s6869_s22 + $0x3c] sm:$0xf]  ;;  %v6770_v63 = vld [vmem:[%s6869_s22 + $0x40] sm:$0xf] }
  0xbf   : > { %v2510_v19 = vsel %vm2502_vm8, %v7668_v4, %v2395_v33  ;;  %2236 = vrot.lane.b32.xlu0 %v7731_v31, %s6818_s26  ;;  %v864_v8 = vsel %vm6913_vm4, %v5741_v34, %v863_v28  ;;  %v865_v21 = vrot.slane %v863_v28, 4  ;;  %v3349_v12 = vsel %vm2502_vm8, %v3317_v42, %v3237_v37  ;;  %v298_v57 = vld [vmem:[%s6869_s22 + $0xb4] sm:$0xf] }
  0xc0   : > { %9601 = vst [vmem:[#allocation24_spill] sm:$0xff] %v7743_v29  ;;  %6552 = vmatmul.mubr.msk.bf16.gmra.mrb[4].mxu0 %vm2543_vm9, %v2510_v19  ;;  %v1232_v4 = vsel %vm6921_vm5, %v1227_v58, %v1231_v44  ;;  %v1237_v2 = vrot.slane %v1236_v17, 4  ;;  %v1260_v51 = vor.u32 %v7690_v9, %v7688_v39  ;;  %v1241_v32 = vrot.slane %v1239_v3, 5  ;;  %v7776_v17 = vld [vmem:[%s6869_s22 + $0xb8] sm:$0xf] }
  0xc1   : > { %v2223_v43 = vpop.permute.xlu1 %2222  ;;  %v867_v0 = vsel %vm6913_vm4, %v865_v21, %v866_v20  ;;  %v1263_v61 = vshll.u32 %v5789_v38, 16  ;;  %v5909_v49 = vcombine.low %v6769_v11, %v6770_v63  ;;  %v1256_v37 = vsel %vm6921_vm5, %v7724_v53, %v7688_v39 }
  0xc2   : > { %v3155_v26 = vpop.permute.xlu0 %3154  ;;  %v6030_v44 = vcombine.low %v864_v8, %v867_v0  ;;  %v1261_v9 = vrot.slane %v1260_v51, 4  ;;  %v5821_v42 = vrot.slane %v5805_v13, 9  ;;  %v1242_v33 = vsel %vm6921_vm5, %v1237_v2, %v1241_v32  ;;  %v7779_v8 = vld [vmem:[%s6869_s22 + $0xbc] sm:$0x1]  ;;  %v6771_v2 = vld [vmem:[%s6869_s22 + $0x30] sm:$0xf] }
  0xc3   : > { %2332 = vrot.lane.b32.xlu0 %v7743_v29, %s6817_s23  ;;  %v3315_v34 = vsel %vm2469_vm7, %v7674_v46, %v3155_v26  ;;  %v1265_v28 = vrot.slane %v1263_v61, 5  ;;  %v1472_v58 = vrot.slane %v7662_v30, 5  ;;  %v7772_v39 = vcombine.low %v1232_v4, %v1242_v33  ;;  %v6772_v4 = vld [vmem:[%s6869_s22 + $0x34] sm:$0xf]  ;;  %v5804_v0 = vld [vmem:[%s6869_s22 + $0x9c] sm:$0xe] }
  0xc4   : > { %3144 = vrot.lane.b32.xlu1 %v6030_v44, %s6818_s26  ;;  %v2438_v53 = vsel %vm2420_vm6, %v5909_v49, %v2223_v43  ;;  %v1475_v19 = vrot.slane %v5789_v38, 5  ;;  %v680_v21 = vshrl.u32 %v298_v57, 16  ;;  %v5908_v51 = vcombine.low %v6771_v2, %v6772_v4 }
  0xc5   : > { %9602 = vst [vmem:[#allocation25_spill] sm:$0xff] %v7772_v39  ;;  %v2319_v20 = vpop.permute.xlu1 %2318  ;;  %v1266_v46 = vsel %vm6921_vm5, %v1261_v9, %v1265_v28  ;;  %v1473_v30 = vsel %vm6913_vm4, %v5821_v42, %v1472_v58  ;;  %v1474_v13 = vrot.slane %v1472_v58, 4  ;;  %v683_v26 = vshll.u32 %v298_v57, 16 }
  0xc6   : > { %v3235_v3 = vpop.permute.xlu0 %3234  ;;  %v7788_v43 = vcombine.low %v1256_v37, %v1266_v46  ;;  %v682_v32 = vrot.slane %v680_v21, 4  ;;  %v689_v11 = vshll.u32 %v7776_v17, 16  ;;  %v693_v63 = vshrl.u32 %v7776_v17, 16 }
  0xc7   : > { %v3347_v38 = vsel %vm2502_vm8, %v3315_v34, %v3235_v3  ;;  %2412 = vrot.lane.b32.xlu0 %v7772_v39, %s6819_s27  ;;  %v1476_v61 = vsel %vm6913_vm4, %v1474_v13, %v1475_v19  ;;  %v699_v49 = vshll.u32 %v7779_v8, 16  ;;  %v685_v57 = vrot.slane %v683_v26, 5 }
  0xc8   : > { %9603 = vst [vmem:[#allocation26_spill] sm:$0xff] %v7788_v43  ;;  %6585 = vmatprep.mubr.msk.bf16.mxu1 %vm2543_vm9, %v3347_v38  ;;  %3176 = vrot.lane.b32.xlu1 %v7788_v43, %s6817_s23  ;;  %v7801_v44 = vcombine.low %v1473_v30, %v1476_v61  ;;  %v5820_v37 = vrot.slane %v5804_v0, 9  ;;  %v1465_v9 = vrot.slane %v7704_v50, 5  ;;  %v7806_v33 = vsel %vm2469_vm7, %v2438_v53, %v2319_v20  ;;  %v5774_v30 = vld [vmem:[%s6869_s22 + $0xc0] sm:$0xf] }
  0xc9   : > { %6586 = vmatmul.mubr.msk.bf16.gmra.mrb[4].mxu1 %vm2543_vm9, %v3349_v12  ;;  %v3127_v42 = vpop.permute.xlu1 %3126  ;;  %v691_v28 = vrot.slane %v689_v11, 5  ;;  %v695_v58 = vrot.slane %v693_v63, 4  ;;  %v1468_v19 = vrot.slane %v7729_v25, 5  ;;  %v686_v46 = vor.u32 %v685_v57, %v682_v32  ;;  %v7816_v20 = vld [vmem:[%s6869_s22 + $0xc4] sm:$0xf] }
  0xca   : > { %9604 = vst [vmem:[#allocation27_spill] sm:$0xff] %v7801_v44  ;;  %v2221_v34 = vpop.permute.xlu0 %2220  ;;  %v701_v3 = vrot.slane %v699_v49, 5  ;;  %v1467_v12 = vrot.slane %v1465_v9, 4  ;;  %v1466_v53 = vsel %vm6913_vm4, %v5820_v37, %v1465_v9  ;;  %v1292_v13 = vshrl.u32 %v5774_v30, 16  ;;  %v296_v38 = vld [vmem:[%s6869_s22 + $0xa8] sm:$0xf] }
  0xcb   : > { %v2435_v21 = vsel %vm2420_vm6, %v5908_v51, %v2221_v34  ;;  %2414 = vrot.lane.b32.xlu0 %v7788_v43, %s6819_s27  ;;  %v696_v50 = vor.u32 %v695_v58, %v691_v28  ;;  %v1295_v2 = vshll.u32 %v5774_v30, 16  ;;  %v687_v25 = vrot.slane %v686_v46, 4  ;;  %v297_v49 = vld [vmem:[%s6869_s22 + $0xac] sm:$0xf] }
  0xcc   : > { %3256 = vrot.lane.b32.xlu1 %v7801_v44, %s6819_s27  ;;  %v1469_v4 = vsel %vm6913_vm4, %v1467_v12, %v1468_v19  ;;  %v1301_v51 = vshll.u32 %v7816_v20, 16  ;;  %v1305_v0 = vshrl.u32 %v7816_v20, 16  ;;  %v7827_v26 = vsel %vm2420_vm6, %v7195_v62, %v3127_v42  ;;  %v314_v19 = vld [vmem:[%s6869_s22 + $0xb0] sm:$0x1] }
  0xcd   : > { %v697_v32 = vrot.slane %v696_v50, 4  ;;  %v1294_v11 = vrot.slane %v1292_v13, 4  ;;  %v1297_v63 = vrot.slane %v1295_v2, 5  ;;  %v692_v37 = vsel %vm6921_vm5, %v687_v25, %v691_v28  ;;  %v717_v13 = vld [vmem:[%s6869_s22 + $0xa8] sm:$0xe] }
  0xce   : > { %v2317_v61 = vpop.permute.xlu0 %2316  ;;  %v3129_v57 = vpop.permute.xlu1 %3128  ;;  %v7832_v9 = vcombine.low %v1466_v53, %v1469_v4  ;;  %v7835_v58 = vrot.slane %v1301_v51, 5  ;;  %v7842_v46 = vrot.slane %v1305_v0, 4  ;;  %v656_v12 = vshrl.u32 %v296_v38, 16 }
  0xcf   : > { %v2479_v34 = vsel %vm2469_vm7, %v2435_v21, %v2317_v61  ;;  %3174 = vrot.lane.b32.xlu0 %v7772_v39, %s6817_s23  ;;  %v702_v62 = vsel %vm6921_vm5, %v697_v32, %v701_v3  ;;  %v1298_v42 = vor.u32 %v1297_v63, %v1294_v11  ;;  %v659_v28 = vshll.u32 %v296_v38, 16  ;;  %v5772_v32 = vld [vmem:[%s6869_s22 + $0xb4] sm:$0xf] }
  0xd0   : > { %9605 = vst [vmem:[#allocation28_spill] sm:$0xff] %v7832_v9  ;;  %v7844_v50 = vcombine.low %v692_v37, %v702_v62  ;;  %v665_v53 = vshll.u32 %v297_v49, 16  ;;  %v669_v21 = vshrl.u32 %v297_v49, 16  ;;  %v7848_v2 = vcombine.low %v5774_v30, %v7816_v20  ;;  %v7857_v37 = vld [vmem:[%s6869_s22 + $0xb8] sm:$0xf] }
  0xd1   : > { %v658_v25 = vrot.slane %v656_v12, 4  ;;  %v675_v4 = vshll.u32 %v314_v19, 16  ;;  %v3279_v51 = vsel %vm2420_vm6, %v7159_v60, %v3129_v57  ;;  %v661_v61 = vrot.slane %v659_v28, 5 }
  0xd2   : > { %9606 = vst [vmem:[#allocation29_spill] sm:$0xff] %v7848_v2  ;;  %v2397_v3 = vpop.permute.xlu0 %2396  ;;  %v3161_v0 = vpop.permute.xlu1 %3160  ;;  %2242 = vrot.lane.b32.xlu1 %v7844_v50, %s6818_s26  ;;  %v667_v38 = vrot.slane %v665_v53, 5  ;;  %v671_v11 = vrot.slane %v669_v21, 4  ;;  %v5742_v62 = vrot.slane %v717_v13, 9  ;;  %v870_v12 = vrot.slane %v297_v49, 5 }
  0xd3   : > { %v2512_v63 = vsel %vm2502_vm8, %v2479_v34, %v2397_v3  ;;  %3254 = vrot.lane.b32.xlu0 %v7832_v9, %s6819_s27  ;;  %v677_v30 = vrot.slane %v675_v4, 5  ;;  %v873_v60 = vrot.slane %v314_v19, 5  ;;  %v662_v57 = vor.u32 %v661_v61, %v658_v25  ;;  %v718_v61 = vld [vmem:[%s6869_s22 + $0xb4] sm:$0xe] }
  0xd4   : > { %6555 = vmatprep.mubr.msk.bf16.mxu0 %vm2543_vm9, %v2512_v63  ;;  %v672_v10 = vor.u32 %v671_v11, %v667_v38  ;;  %v1268_v29 = vshrl.u32 %v5772_v32, 16  ;;  %v1271_v28 = vshll.u32 %v5772_v32, 16  ;;  %v871_v53 = vsel %vm6913_vm4, %v5742_v62, %v870_v12 }
  0xd5   : > { %v872_v34 = vrot.slane %v870_v12, 4  ;;  %v1277_v21 = vshll.u32 %v7857_v37, 16  ;;  %v1281_v3 = vshrl.u32 %v7857_v37, 16  ;;  %v663_v49 = vrot.slane %v662_v57, 4  ;;  %v7876_v57 = vld [vmem:[%s6869_s22 + $0xbc] sm:$0x1] }
  0xd6   : > { %v2399_v44 = vpop.permute.xlu0 %2398  ;;  %v3241_v13 = vpop.permute.xlu1 %3240  ;;  %2338 = vrot.lane.b32.xlu1 %v7848_v2, %s6817_s23  ;;  %v673_v19 = vrot.slane %v672_v10, 4  ;;  %v1270_v25 = vrot.slane %v1268_v29, 4  ;;  %v1273_v4 = vrot.slane %v1271_v28, 5  ;;  %v1299_v11 = vrot.slane %v1298_v42, 4 }
  0xd7   : > { %v874_v63 = vsel %vm6913_vm4, %v872_v34, %v873_v60  ;;  %v1279_v62 = vrot.slane %v1277_v21, 5  ;;  %v1283_v12 = vrot.slane %v1281_v3, 4  ;;  %v668_v9 = vsel %vm6921_vm5, %v663_v49, %v667_v38 }
  0xd8   : > { %v678_v39 = vsel %vm6921_vm5, %v673_v19, %v677_v30  ;;  %v6031_v43 = vcombine.low %v871_v53, %v874_v63  ;;  %v1274_v2 = vor.u32 %v1273_v4, %v1270_v25  ;;  %v3321_v29 = vsel %vm2469_vm7, %v3279_v51, %v3161_v0 }
  0xd9   : > { %v7878_v10 = vcombine.low %v668_v9, %v678_v39  ;;  %v2514_v42 = vsel %vm2502_vm8, %v7806_v33, %v2399_v44  ;;  %v5743_v60 = vrot.slane %v718_v61, 9  ;;  %v877_v30 = vrot.slane %v7776_v17, 5  ;;  %v5791_v39 = vld [vmem:[%s6869_s22 + $0xc8] sm:$0x1]  ;;  %v5807_v17 = vld [vmem:[%s6869_s22 + $0xc0] sm:$0xe] }
  0xda   : > { %v3159_v28 = vpop.permute.xlu0 %3158  ;;  %v7883_v34 = vpop.permute.xlu1 %2226  ;;  %3146 = vrot.lane.b32.xlu1 %v6031_v43, %s6818_s26  ;;  %v1275_v38 = vrot.slane %v1274_v2, 4  ;;  %v880_v53 = vrot.slane %v7779_v8, 5  ;;  %v1284_v21 = vor.u32 %v1283_v12, %v1279_v62  ;;  %6556 = vmatmul.mubr.msk.bf16.gmra.mrb[8].mxu0 %vm2543_vm9, %v2514_v42  ;;  %v7893_v44 = vcombine.low %v5772_v32, %v7857_v37 }
  0xdb   : > { %2240 = vrot.lane.b32.xlu0 %v7878_v10, %s6818_s26  ;;  %v1287_v33 = vshll.u32 %v7876_v57, 16  ;;  %v3353_v9 = vsel %vm2502_vm8, %v3321_v29, %v3241_v13  ;;  %v3319_v43 = vsel %vm2469_vm7, %v7827_v26, %v3159_v28  ;;  %v878_v8 = vsel %vm6913_vm4, %v5743_v60, %v877_v30 }
  0xdc   : > { %9607 = vst [vmem:[#allocation30_spill] sm:$0xff] %v7893_v44  ;;  %v879_v2 = vrot.slane %v877_v30, 4  ;;  %v1285_v51 = vrot.slane %v1284_v21, 4  ;;  %v1304_v0 = vsel %vm6921_vm5, %v1299_v11, %v7835_v58  ;;  %v1280_v32 = vsel %vm6921_vm5, %v1275_v38, %v1279_v62 }
  0xdd   : > { %v1289_v3 = vrot.slane %v1287_v33, 5  ;;  %v1308_v13 = vor.u32 %v7842_v46, %v7835_v58  ;;  %v1311_v49 = vshll.u32 %v5791_v39, 16  ;;  %v5823_v61 = vrot.slane %v5807_v17, 9  ;;  %v7935_v33 = vld [vmem:[%s6869_s22 + $0x18] sm:$0xf] }
  0xde   : > { %v3239_v26 = vpop.permute.xlu0 %3238  ;;  %v7909_v19 = vpop.permute.xlu1 %2322  ;;  %v881_v25 = vsel %vm6913_vm4, %v879_v2, %v880_v53  ;;  %v1486_v11 = vrot.slane %v7816_v20, 5  ;;  %v5806_v20 = vld [vmem:[%s6869_s22 + $0xb4] sm:$0xe]  ;;  %v1489_v60 = vrot.slane %v5791_v39, 5  ;;  %v1479_v21 = vrot.slane %v7857_v37, 5 }
  0xdf   : > { %v3351_v4 = vsel %vm2502_vm8, %v3319_v43, %v3239_v26  ;;  %2336 = vrot.lane.b32.xlu0 %v7893_v44, %s6817_s23  ;;  %v6032_v63 = vcombine.low %v878_v8, %v881_v25  ;;  %v1290_v58 = vsel %vm6921_vm5, %v1285_v51, %v1289_v3  ;;  %v1309_v46 = vrot.slane %v1308_v13, 4  ;;  %v6774_v43 = vld [vmem:[%s6869_s22 + $0x4c] sm:$0xf]  ;;  %v7953_v3 = vld [vmem:[%s6869_s22 + $0x28] sm:$0xf] }
  0xe0   : > { %v1313_v62 = vrot.slane %v1311_v49, 5  ;;  %6589 = vmatprep.mubr.msk.bf16.mxu1 %vm2543_vm9, %v3351_v4  ;;  %v7920_v12 = vcombine.low %v1280_v32, %v1290_v58  ;;  %v1488_v29 = vrot.slane %v1486_v11, 4  ;;  %v1487_v30 = vsel %vm6913_vm4, %v5823_v61, %v1486_v11  ;;  %v7946_v32 = vld [vmem:[%s6869_s22 + $0x1c] sm:$0xf]  ;;  %v6775_v11 = vld [vmem:[%s6869_s22 + $0x54] sm:$0xf] }
  0xe1   : > { %6590 = vmatmul.mubr.msk.bf16.gmra.mrb[8].mxu1 %vm2543_vm9, %v3353_v9  ;;  %3148 = vrot.lane.b32.xlu1 %v6032_v63, %s6818_s26  ;;  %v6773_v9 = vld [vmem:[%s6869_s22 + $0x48] sm:$0xf]  ;;  %v5822_v8 = vrot.slane %v5806_v20, 9  ;;  %v1481_v2 = vrot.slane %v1479_v21, 4  ;;  %v1482_v51 = vrot.slane %v7876_v57, 5  ;;  %v1541_v25 = vshrl.u32 %v7935_v33, 16 }
  0xe2   : > { %v1314_v42 = vsel %vm6921_vm5, %v1309_v46, %v1313_v62  ;;  %v7927_v28 = vpop.permute.xlu1 %3130  ;;  %v1490_v39 = vsel %vm6913_vm4, %v1488_v29, %v1489_v60  ;;  %v5910_v17 = vcombine.low %v6773_v9, %v6774_v43  ;;  %v1578_v61 = vshrl.u32 %v7953_v3, 16  ;;  %v6776_v63 = vld [vmem:[%s6869_s22 + $0x58] sm:$0xf] }
  0xe3   : > { %v7929_v38 = vcombine.low %v1304_v0, %v1314_v42  ;;  %v2225_v53 = vpop.permute.xlu0 %2224  ;;  %2416 = vrot.lane.b32.xlu0 %v7920_v12, %s6819_s27  ;;  %v5826_v0 = vld [vmem:[%s6869_s22 + $0x24] sm:$0xf]  ;;  %v7950_v37 = vcombine.low %v1487_v30, %v1490_v39  ;;  %v1544_v57 = vshll.u32 %v7935_v33, 16  ;;  %v5911_v58 = vcombine.low %v6775_v11, %v6776_v63 }
  0xe4   : > { %v1565_v13 = vshrl.u32 %v5826_v0, 16  ;;  %v1568_v49 = vshll.u32 %v5826_v0, 16  ;;  %v2441_v46 = vsel %vm2420_vm6, %v5910_v17, %v2225_v53  ;;  %v1480_v62 = vsel %vm6913_vm4, %v5822_v8, %v1479_v21  ;;  %v7972_v53 = vld [vmem:[%s6869_s22 + $0x20] sm:$0x1] }
  0xe5   : > { %3180 = vrot.lane.b32.xlu1 %v7929_v38, %s6817_s23  ;;  %9608 = vst [vmem:[#allocation31_spill] sm:$0xff] %v7950_v37  ;;  %v1554_v29 = vshrl.u32 %v7946_v32, 16  ;;  %v1483_v20 = vsel %vm6913_vm4, %v1481_v2, %v1482_v51  ;;  %v1543_v42 = vrot.slane %v1541_v25, 4  ;;  %v1546_v60 = vrot.slane %v1544_v57, 5 }
  0xe6   : > { %v3133_v26 = vpop.permute.xlu1 %3132  ;;  %v1550_v30 = vshll.u32 %v7946_v32, 16  ;;  %v1567_v39 = vrot.slane %v1565_v13, 4  ;;  %v1570_v9 = vrot.slane %v1568_v49, 5  ;;  %v1574_v21 = vshll.u32 %v7953_v3, 16  ;;  %v7984_v49 = vld [vmem:[%s6869_s22 + $0x2c] sm:$0x1] }
  0xe7   : > { %v2321_v4 = vpop.permute.xlu0 %2320  ;;  %2418 = vrot.lane.b32.xlu0 %v7929_v38, %s6819_s27  ;;  %v1556_v17 = vrot.slane %v1554_v29, 4  ;;  %v1580_v51 = vrot.slane %v1578_v61, 4  ;;  %v2444_v25 = vsel %vm2420_vm6, %v5911_v58, %v7883_v34  ;;  %v7980_v57 = vcombine.low %v1480_v62, %v1483_v20  ;;  %v6754_v62 = vld [vmem:[%s9533_s1 + $0x10] sm:$0xff]  }
  0xe8   : > { %v2483_v8 = vsel %vm2469_vm7, %v2441_v46, %v2321_v4  ;;  %v1552_v2 = vrot.slane %v1550_v30, 5  ;;  %v1576_v63 = vrot.slane %v1574_v21, 5  ;;  %v1547_v29 = vor.u32 %v1546_v60, %v1543_v42  ;;  %6613 = vmatprep.subr.bf16.mxu0 %v6754_v62 }
  0xe9   : > { %3260 = vrot.lane.b32.xlu1 %v7950_v37, %s6819_s27  ;;  %9609 = vst [vmem:[#allocation32_spill] sm:$0xff] %v7980_v57  ;;  %v1560_v46 = vshll.u32 %v7972_v53, 16  ;;  %v6133_v34 = vcombine.low %v5826_v0, %v7953_v3  ;;  %v1571_v58 = vor.u32 %v1570_v9, %v1567_v39  ;;  %v2485_v20 = vsel %vm2469_vm7, %v2444_v25, %v7909_v19  ;;  %v8079_v37 = vld [vmem:[%s6869_s22 + $0x38] sm:$0x1] }
  0xea   : > { %v3165_v43 = vpop.permute.xlu1 %3164  ;;  %v1557_v4 = vor.u32 %v1556_v17, %v1552_v2  ;;  %v1581_v21 = vor.u32 %v1580_v51, %v1576_v63  ;;  %v1584_v42 = vshll.u32 %v7984_v49, 16  ;;  %v1548_v0 = vrot.slane %v1547_v29, 4  ;;  %6614 = vmatpush3.bf16.msra.mxu0 %v6754_v62 }
  0xeb   : > { %v2401_v11 = vpop.permute.xlu0 %2400  ;;  %3178 = vrot.lane.b32.xlu0 %v7920_v12, %s6817_s23  ;;  %v1562_v9 = vrot.slane %v1560_v46, 5  ;;  %v1572_v17 = vrot.slane %v1571_v58, 4  ;;  %v6132_v29 = vcombine.low %v7935_v33, %v7946_v32 }
  0xec   : > { %v2516_v13 = vsel %vm2502_vm8, %v2483_v8, %v2401_v11  ;;  %v1558_v39 = vrot.slane %v1557_v4, 4  ;;  %v3285_v8 = vsel %vm2420_vm6, %v7280_v7, %v3133_v26  ;;  %v1582_v51 = vrot.slane %v1581_v21, 4 }
  0xed   : > { %6559 = vmatprep.mubr.msk.bf16.mxu0 %vm2543_vm9, %v2516_v13  ;;  %3911 = vrot.lane.b32.xlu1 %v6991_v55, %s6818_s26  ;;  %v1586_v25 = vrot.slane %v1584_v42, 5  ;;  %v5873_v13 = vld [vmem:[%s6869_s22 + $0x24] sm:$0xe]  ;;  %v1553_v4 = vsel %vm6921_vm5, %v1548_v0, %v1552_v2  ;;  %v3282_v7 = vsel %vm2420_vm6, %v7318_v18, %v7927_v28  ;;  %v1577_v26 = vsel %vm6921_vm5, %v1572_v17, %v1576_v63  ;;  %v6756_v28 = vld [vmem:[%s9533_s1 + $0x18] sm:$0xff]   ;;  %v8045_v0 = vld [vmem:[%s6869_s22 + $0x30] sm:$0xf] }
  0xee   : > { %v3245_v61 = vpop.permute.xlu1 %3244  ;;  %v1563_v46 = vsel %vm6921_vm5, %v1558_v39, %v1562_v9  ;;  %v5889_v33 = vrot.slane %v5873_v13, 9  ;;  %v5872_v42 = vld [vmem:[%s6869_s22 + $0x18] sm:$0xe]  ;;  %6647 = vmatprep.subr.bf16.mxu1 %v6756_v28  ;;  %v8048_v39 = vld [vmem:[%s6869_s22 + $0x34] sm:$0xf] }
  0xef   : > { %v2403_v30 = vpop.permute.xlu0 %2402  ;;  %3258 = vrot.lane.b32.xlu0 %v7980_v57, %s6819_s27  ;;  %v1587_v58 = vsel %vm6921_vm5, %v1582_v51, %v1586_v25  ;;  %6648 = vmatpush3.bf16.msra.mxu1 %v6756_v28  ;;  %v1589_v51 = vshrl.u32 %v8045_v0, 16  ;;  %v1592_v25 = vshll.u32 %v8045_v0, 16  ;;  %v1602_v13 = vshrl.u32 %v8048_v39, 16 }
  0xf0   : > { %v2518_v60 = vsel %vm2502_vm8, %v2485_v20, %v2403_v30  ;;  %v1997_v20 = vrot.slane %v7953_v3, 5  ;;  %v3325_v3 = vsel %vm2469_vm7, %v3285_v8, %v3165_v43  ;;  %v6148_v43 = vcombine.low %v1553_v4, %v1563_v46  ;;  %v6777_v4 = vld [vmem:[%s6869_s22 + $0x60] sm:$0xf]  ;;  %v6778_v46 = vld [vmem:[%s6869_s22 + $0x64] sm:$0xf] }
  0xf1   : > { %6560 = vmatmul.mubr.msk.bf16.gmra.mrb[12].mxu0 %vm2543_vm9, %v2518_v60  ;;  %4007 = vrot.lane.b32.xlu1 %v6133_v34, %s6817_s23  ;;  %v1990_v30 = vrot.slane %v7946_v32, 5  ;;  %v3357_v21 = vsel %vm2502_vm8, %v3325_v3, %v3245_v61  ;;  %v1993_v8 = vrot.slane %v7972_v53, 5  ;;  %v8065_v3 = vld [vmem:[%s6869_s22 + $0x40] sm:$0xf] }
  0xf2   : > { %v8002_v19 = vpop.permute.xlu1 %2230  ;;  %v1999_v18 = vrot.slane %v1997_v20, 4  ;;  %v1998_v32 = vsel %vm6913_vm4, %v5889_v33, %v1997_v20  ;;  %v1598_v20 = vshll.u32 %v8048_v39, 16 }
  0xf3   : > { %v3163_v11 = vpop.permute.xlu0 %3162  ;;  %3909 = vrot.lane.b32.xlu0 %v6980_v47, %s6818_s26  ;;  %v1992_v17 = vrot.slane %v1990_v30, 4 }
  0xf4   : > { %v3323_v2 = vsel %vm2469_vm7, %v3282_v7, %v3163_v11  ;;  %v5830_v11 = vld [vmem:[%s6869_s22 + $0x3c] sm:$0xf]  ;;  %v5912_v7 = vcombine.low %v6777_v4, %v6778_v46  ;;  %v1604_v4 = vrot.slane %v1602_v13, 4 }
  0xf5   : > { %4764 = vrot.lane.b32.xlu1 %v7036_v35, %s6818_s26  ;;  %v2000_v35 = vrot.slane %v7984_v49, 5  ;;  %v6149_v49 = vcombine.low %v1577_v26, %v1587_v58  ;;  %v1613_v53 = vshrl.u32 %v5830_v11, 16  ;;  %v1616_v26 = vshll.u32 %v5830_v11, 16 }
  0xf6   : > { %v8024_v34 = vpop.permute.xlu1 %2326 }
  0xf7   : > { %v3243_v62 = vpop.permute.xlu0 %3242  ;;  %4005 = vrot.lane.b32.xlu0 %v6132_v29, %s6817_s23  ;;  %v2001_v61 = vsel %vm6913_vm4, %v1999_v18, %v2000_v35  ;;  %v6779_v18 = vld [vmem:[%s6869_s22 + $0x6c] sm:$0xf]  ;;  %v6780_v35 = vld [vmem:[%s6869_s22 + $0x70] sm:$0xf]  ;;  %v1615_v44 = vrot.slane %v1613_v53, 4 }
  0xf8   : > { %v3355_v63 = vsel %vm2502_vm8, %v3323_v2, %v3243_v62  ;;  %v6248_v29 = vcombine.low %v1998_v32, %v2001_v61  ;;  %v1626_v2 = vshrl.u32 %v8065_v3, 16  ;;  %v1622_v62 = vshll.u32 %v8065_v3, 16 }
  0xf9   : > { %6593 = vmatprep.mubr.msk.bf16.mxu1 %vm2543_vm9, %v3355_v63  ;;  %4766 = vrot.lane.b32.xlu1 %v6996_v59, %s6818_s26  ;;  %v5888_v59 = vrot.slane %v5872_v42, 9  ;;  %v5913_v28 = vcombine.low %v6779_v18, %v6780_v35  ;;  %v1591_v42 = vrot.slane %v1589_v51, 4  ;;  %v1594_v32 = vrot.slane %v1592_v25, 5  ;;  %v5859_v25 = vld [vmem:[%s6869_s22 + $0x44] sm:$0x1] }
  0xfa   : > { %6594 = vmatmul.mubr.msk.bf16.gmra.mrb[12].mxu1 %vm2543_vm9, %v3357_v21  ;;  %v8042_v60 = vpop.permute.xlu1 %3134  ;;  %v1994_v21 = vsel %vm6913_vm4, %v1992_v17, %v1993_v8  ;;  %v1600_v61 = vrot.slane %v1598_v20, 5  ;;  %v1628_v57 = vrot.slane %v1626_v2, 4  ;;  %v1608_v20 = vshll.u32 %v8079_v37, 16 }
  0xfb   : > { %v2229_v9 = vpop.permute.xlu0 %2228  ;;  %4085 = vrot.lane.b32.xlu0 %v6148_v43, %s6819_s27  ;;  %v1991_v63 = vsel %vm6913_vm4, %v5888_v59, %v1990_v30  ;;  %v1624_v59 = vrot.slane %v1622_v62, 5  ;;  %v2450_v17 = vsel %vm2420_vm6, %v5913_v28, %v8002_v19 }
  0xfc   : > { %v2447_v46 = vsel %vm2420_vm6, %v5912_v7, %v2229_v9  ;;  %v6247_v8 = vcombine.low %v1991_v63, %v1994_v21  ;;  %v1595_v9 = vor.u32 %v1594_v32, %v1591_v42  ;;  %v1605_v13 = vor.u32 %v1604_v4, %v1600_v61  ;;  %v5875_v32 = vld [vmem:[%s6869_s22 + $0x3c] sm:$0xe] }
  0xfd   : > { %4798 = vrot.lane.b32.xlu1 %v6149_v49, %s6817_s23  ;;  %v2489_v19 = vsel %vm2469_vm7, %v2450_v17, %v8024_v34  ;;  %v1610_v63 = vrot.slane %v1608_v20, 5  ;;  %v2011_v4 = vrot.slane %v8065_v3, 5  ;;  %v8138_v20 = vld [vmem:[%s6869_s22 + $0x4c] sm:$0xf] }
  0xfe   : > { %v1596_v62 = vrot.slane %v1595_v9, 4  ;;  %v1606_v28 = vrot.slane %v1605_v13, 4  ;;  %v8135_v13 = vld [vmem:[%s6869_s22 + $0x48] sm:$0xf] }
  0xff   : > { %v2325_v33 = vpop.permute.xlu0 %2324  ;;  %v3137_v58 = vpop.permute.xlu1 %3136  ;;  %4087 = vrot.lane.b32.xlu0 %v6149_v49, %s6819_s27  ;;  %v1618_v49 = vrot.slane %v1616_v26, 5  ;;  %v1629_v26 = vor.u32 %v1628_v57, %v1624_v59 }
 0x100   : > { %v2487_v18 = vsel %vm2469_vm7, %v2447_v46, %v2325_v33  ;;  %v1632_v33 = vshll.u32 %v5859_v25, 16  ;;  %v3291_v34 = vsel %vm2420_vm6, %v7401_v14, %v3137_v58  ;;  %v6134_v46 = vcombine.low %v8045_v0, %v8048_v39 }
 0x101   : > { %4878 = vrot.lane.b32.xlu1 %v6248_v29, %s6819_s27  ;;  %v6135_v29 = vcombine.low %v5830_v11, %v8065_v3  ;;  %v1619_v7 = vor.u32 %v1618_v49, %v1615_v44  ;;  %v1630_v21 = vrot.slane %v1629_v26, 4  ;;  %v1601_v49 = vsel %vm6921_vm5, %v1596_v62, %v1600_v61 }
 0x102   : > { %v1634_v42 = vrot.slane %v1632_v33, 5  ;;  %v1611_v14 = vsel %vm6921_vm5, %v1606_v28, %v1610_v63  ;;  %v3288_v58 = vsel %vm2420_vm6, %v7437_v45, %v8042_v60  ;;  %v2013_v45 = vrot.slane %v2011_v4, 4 }
 0x103   : > { %v2405_v35 = vpop.permute.xlu0 %2404  ;;  %v3169_v30 = vpop.permute.xlu1 %3168  ;;  %4796 = vrot.lane.b32.xlu0 %v6148_v43, %s6817_s23  ;;  %v1620_v44 = vrot.slane %v1619_v7, 4  ;;  %v1637_v26 = vshrl.u32 %v8135_v13, 16  ;;  %v1640_v33 = vshll.u32 %v8135_v13, 16  ;;  %v1646_v62 = vshll.u32 %v8138_v20, 16 }
 0x104   : > { %v2520_v51 = vsel %vm2502_vm8, %v2487_v18, %v2405_v35  ;;  %v3329_v3 = vsel %vm2469_vm7, %v3291_v34, %v3169_v30  ;;  %v5891_v18 = vrot.slane %v5875_v32, 9  ;;  %v2014_v35 = vrot.slane %v5859_v25, 5  ;;  %v6782_v32 = vld [vmem:[%s6869_s22 + $0x7c] sm:$0xf] }
 0x105   : > { %6563 = vmatprep.mubr.msk.bf16.mxu0 %vm2543_vm9, %v2520_v51  ;;  %3915 = vrot.lane.b32.xlu1 %v7116_v6, %s6818_s26  ;;  %v1625_v61 = vsel %vm6921_vm5, %v1620_v44, %v1624_v59  ;;  %v1635_v17 = vsel %vm6921_vm5, %v1630_v21, %v1634_v42  ;;  %v2004_v51 = vrot.slane %v8048_v39, 5  ;;  %v5874_v59 = vld [vmem:[%s6869_s22 + $0x30] sm:$0xe]  ;;  %v8155_v44 = vld [vmem:[%s6869_s22 + $0x58] sm:$0xf] }
 0x106   : > { %v6151_v9 = vcombine.low %v1625_v61, %v1635_v17  ;;  %v2012_v39 = vsel %vm6913_vm4, %v5891_v18, %v2011_v4  ;;  %v5890_v7 = vrot.slane %v5874_v59, 9  ;;  %v1670_v21 = vshll.u32 %v8155_v44, 16  ;;  %v6781_v42 = vld [vmem:[%s6869_s22 + $0x78] sm:$0xf]  ;;  %v6784_v61 = vld [vmem:[%s6869_s22 + $0x88] sm:$0xf] }
 0x107   : > { %v2407_v43 = vpop.permute.xlu0 %2406  ;;  %v3249_v53 = vpop.permute.xlu1 %3248  ;;  %4876 = vrot.lane.b32.xlu0 %v6247_v8, %s6819_s27  ;;  %v5914_v4 = vcombine.low %v6781_v42, %v6782_v32  ;;  %v1648_v18 = vrot.slane %v1646_v62, 5 }
 0x108   : > { %v2522_v2 = vsel %vm2502_vm8, %v2489_v19, %v2407_v43  ;;  %v3361_v25 = vsel %vm2502_vm8, %v3329_v3, %v3249_v53  ;;  %v2006_v19 = vrot.slane %v2004_v51, 4  ;;  %v5834_v53 = vld [vmem:[%s6869_s22 + $0x54] sm:$0xf]  ;;  %v1642_v3 = vrot.slane %v1640_v33, 5 }
 0x109   : > { %6564 = vmatmul.mubr.msk.bf16.gmra.mrb[16].mxu0 %vm2543_vm9, %v2522_v2  ;;  %4011 = vrot.lane.b32.xlu1 %v6135_v29, %s6817_s23  ;;  %v2015_v29 = vsel %vm6913_vm4, %v2013_v45, %v2014_v35  ;;  %v1650_v2 = vshrl.u32 %v8138_v20, 16  ;;  %v1664_v34 = vshll.u32 %v5834_v53, 16 }
 0x10a   : > { %v6250_v28 = vcombine.low %v2012_v39, %v2015_v29  ;;  %v5861_v29 = vld [vmem:[%s6869_s22 + $0x5c] sm:$0x1] }
 0x10b   : > { %v3167_v11 = vpop.permute.xlu0 %3166  ;;  %v8100_v57 = vpop.permute.xlu1 %2234  ;;  %3913 = vrot.lane.b32.xlu0 %v7103_v54, %s6818_s26  ;;  %v1652_v35 = vrot.slane %v1650_v2, 4  ;;  %v1666_v45 = vrot.slane %v1664_v34, 5 }
 0x10c   : > { %v3327_v0 = vsel %vm2469_vm7, %v3288_v58, %v3167_v11  ;;  %v1674_v11 = vshrl.u32 %v8155_v44, 16  ;;  %v1639_v58 = vrot.slane %v1637_v26, 4 }
 0x10d   : > { %4768 = vrot.lane.b32.xlu1 %v7157_v56, %s6818_s26  ;;  %v6150_v56 = vcombine.low %v1601_v49, %v1611_v14  ;;  %v1653_v26 = vor.u32 %v1652_v35, %v1648_v18 }
 0x10f   : > { %v3247_v8 = vpop.permute.xlu0 %3246  ;;  %4009 = vrot.lane.b32.xlu0 %v6134_v46, %s6817_s23  ;;  %v8125_v30 = vpop.permute.xlu1 %2330  ;;  %v2005_v46 = vsel %vm6913_vm4, %v5890_v7, %v2004_v51  ;;  %v1676_v51 = vrot.slane %v1674_v11, 4  ;;  %v1654_v42 = vrot.slane %v1653_v26, 4 }
 0x110   : > { %v3359_v60 = vsel %vm2502_vm8, %v3327_v0, %v3247_v8  ;;  %v6783_v0 = vld [vmem:[%s6869_s22 + $0x84] sm:$0xf] }
 0x111   : > { %6597 = vmatprep.mubr.msk.bf16.mxu1 %vm2543_vm9, %v3359_v60  ;;  %4770 = vrot.lane.b32.xlu1 %v7120_v1, %s6818_s26  ;;  %v2007_v1 = vrot.slane %v8079_v37, 5  ;;  %v1661_v37 = vshrl.u32 %v5834_v53, 16  ;;  %v5915_v17 = vcombine.low %v6783_v0, %v6784_v61  ;;  %v8170_v60 = vld [vmem:[%s6869_s22 + $0x50] sm:$0x1] }
 0x112   : > { %6598 = vmatmul.mubr.msk.bf16.gmra.mrb[16].mxu1 %vm2543_vm9, %v3361_v25  ;;  %v1672_v25 = vrot.slane %v1670_v21, 5  ;;  %v1656_v33 = vshll.u32 %v8170_v60, 16 }
 0x113   : > { %4089 = vrot.lane.b32.xlu0 %v6150_v56, %s6819_s27  ;;  %v8152_v63 = vpop.permute.xlu1 %3138  ;;  %v2008_v49 = vsel %vm6913_vm4, %v2006_v19, %v2007_v1  ;;  %v1663_v8 = vrot.slane %v1661_v37, 4  ;;  %v1643_v1 = vor.u32 %v1642_v3, %v1639_v58  ;;  %v2456_v2 = vsel %vm2420_vm6, %v5915_v17, %v8100_v57  ;;  %v5877_v3 = vld [vmem:[%s6869_s22 + $0x54] sm:$0xe] }
 0x114   : > { %v2233_v43 = vpop.permute.xlu0 %2232  ;;  %v1680_v37 = vshll.u32 %v5861_v29, 16  ;;  %v2493_v11 = vsel %vm2469_vm7, %v2456_v2, %v8125_v30  ;;  %v1658_v32 = vrot.slane %v1656_v33, 5  ;;  %v6136_v30 = vcombine.low %v8135_v13, %v8138_v20 }
 0x115   : > { %4802 = vrot.lane.b32.xlu1 %v6151_v9, %s6817_s23  ;;  %v2453_v59 = vsel %vm2420_vm6, %v5914_v4, %v2233_v43  ;;  %v1667_v62 = vor.u32 %v1666_v45, %v1663_v8  ;;  %v1644_v21 = vrot.slane %v1643_v1, 4  ;;  %v5893_v8 = vrot.slane %v5877_v3, 9  ;;  %v8225_v1 = vld [vmem:[%s6869_s22 + $0x64] sm:$0xf] }
 0x116   : > { %v1659_v61 = vsel %vm6921_vm5, %v1654_v42, %v1658_v32  ;;  %v2028_v45 = vrot.slane %v5861_v29, 5  ;;  %v8245_v42 = vld [vmem:[%s6869_s22 + $0x70] sm:$0xf] }
 0x117   : > { %4091 = vrot.lane.b32.xlu0 %v6151_v9, %s6819_s27  ;;  %v6249_v9 = vcombine.low %v2005_v46, %v2008_v49  ;;  %v1668_v4 = vrot.slane %v1667_v62, 4  ;;  %v1682_v49 = vrot.slane %v1680_v37, 5  ;;  %v1649_v0 = vsel %vm6921_vm5, %v1644_v21, %v1648_v18 }
 0x118   : > { %v2329_v14 = vpop.permute.xlu0 %2328  ;;  %v3294_v18 = vsel %vm2420_vm6, %v7574_v24, %v8152_v63  ;;  %v8222_v63 = vld [vmem:[%s6869_s22 + $0x60] sm:$0xf] }
 0x119   : > { %4882 = vrot.lane.b32.xlu1 %v6250_v28, %s6819_s27  ;;  %v2491_v7 = vsel %vm2469_vm7, %v2453_v59, %v2329_v14  ;;  %v1677_v28 = vor.u32 %v1676_v51, %v1672_v25  ;;  %v2025_v14 = vrot.slane %v8155_v44, 5  ;;  %v2018_v59 = vrot.slane %v8138_v20, 5 }
 0x11a   : > { %v1685_v37 = vshrl.u32 %v8222_v63, 16 }
 0x11b   : > { %4800 = vrot.lane.b32.xlu0 %v6150_v56, %s6817_s23  ;;  %v3141_v39 = vpop.permute.xlu1 %3140  ;;  %v6137_v56 = vcombine.low %v5834_v53, %v8155_v44  ;;  %v1678_v46 = vrot.slane %v1677_v28, 4  ;;  %v1673_v44 = vsel %vm6921_vm5, %v1668_v4, %v1672_v25  ;;  %v2026_v20 = vsel %vm6913_vm4, %v5893_v8, %v2025_v14  ;;  %v5838_v28 = vld [vmem:[%s6869_s22 + $0x6c] sm:$0xf] }
 0x11c   : > { %v2409_v19 = vpop.permute.xlu0 %2408  ;;  %v3297_v35 = vsel %vm2420_vm6, %v7534_v5, %v3141_v39  ;;  %v2027_v5 = vrot.slane %v2025_v14, 4  ;;  %v1709_v32 = vshrl.u32 %v5838_v28, 16  ;;  %v1718_v4 = vshll.u32 %v8245_v42, 16 }
 0x11d   : > { %3919 = vrot.lane.b32.xlu1 %v7236_v48, %s6818_s26  ;;  %v2524_v43 = vsel %vm2502_vm8, %v2491_v7, %v2409_v19  ;;  %v1683_v13 = vsel %vm6921_vm5, %v1678_v46, %v1682_v49  ;;  %v5876_v7 = vld [vmem:[%s6869_s22 + $0x48] sm:$0xe]  ;;  %v9610_v19 = vld [vmem:[#allocation8_spill] sm:$0xff] }
 0x11e   : > { %6567 = vmatprep.mubr.msk.bf16.mxu0 %vm2543_vm9, %v2524_v43  ;;  %v6153_v29 = vcombine.low %v1673_v44, %v1683_v13  ;;  %v2029_v33 = vsel %vm6913_vm4, %v2027_v5, %v2028_v45  ;;  %v5892_v2 = vrot.slane %v5876_v7, 9  ;;  %v2021_v43 = vrot.slane %v8170_v60, 5  ;;  %v8258_v44 = vld [vmem:[%s6869_s22 + $0x68] sm:$0x1]  ;;  %v8261_v13 = vld [vmem:[%s6869_s22 + $0x74] sm:$0x1] }
 0x11f   : > { %4880 = vrot.lane.b32.xlu0 %v6249_v9, %s6819_s27  ;;  %v3173_v34 = vpop.permute.xlu1 %3172  ;;  %v6252_v21 = vcombine.low %v2026_v20, %v2029_v33  ;;  %v1722_v60 = vshrl.u32 %v8245_v42, 16  ;;  %v1720_v8 = vrot.slane %v1718_v4, 5  ;;  %v1704_v7 = vshll.u32 %v8258_v44, 16  ;;  %v6787_v33 = vld [vmem:[%s6869_s22 + $0x9c] sm:$0xf] }
 0x120   : > { %v2411_v57 = vpop.permute.xlu0 %2410  ;;  %v3333_v51 = vsel %vm2469_vm7, %v3297_v35, %v3173_v34  ;;  %v1688_v34 = vshll.u32 %v8222_v63, 16  ;;  %v2019_v46 = vsel %vm6913_vm4, %v5892_v2, %v2018_v59  ;;  %v1728_v20 = vshll.u32 %v8261_v13, 16  ;;  %v6788_v2 = vld [vmem:[%s6869_s22 + $0xa0] sm:$0xf] }
 0x121   : > { %4015 = vrot.lane.b32.xlu1 %v6137_v56, %s6817_s23  ;;  %v2526_v53 = vsel %vm2502_vm8, %v2493_v11, %v2411_v57  ;;  %v2020_v56 = vrot.slane %v2018_v59, 4  ;;  %v1698_v11 = vshrl.u32 %v8225_v1, 16  ;;  %v1694_v57 = vshll.u32 %v8225_v1, 16 }
 0x122   : > { %6568 = vmatmul.mubr.msk.bf16.gmra.mrb[20].mxu0 %vm2543_vm9, %v2526_v53  ;;  %v1712_v53 = vshll.u32 %v5838_v28, 16  ;;  %v1724_v5 = vrot.slane %v1722_v60, 4 }
 0x123   : > { %3917 = vrot.lane.b32.xlu0 %v7224_v36, %s6818_s26  ;;  %v3253_v58 = vpop.permute.xlu1 %3252  ;;  %v2022_v49 = vsel %vm6913_vm4, %v2020_v56, %v2021_v43  ;;  %v1696_v3 = vrot.slane %v1694_v57, 5  ;;  %v1700_v35 = vrot.slane %v1698_v11, 4  ;;  %v1706_v57 = vrot.slane %v1704_v7, 5 }
 0x124   : > { %v3171_v17 = vpop.permute.xlu0 %3170  ;;  %v3365_v26 = vsel %vm2502_vm8, %v3333_v51, %v3253_v58  ;;  %v1690_v58 = vrot.slane %v1688_v34, 5  ;;  %v6251_v45 = vcombine.low %v2019_v46, %v2022_v49  ;;  %v6786_v51 = vld [vmem:[%s6869_s22 + $0x94] sm:$0xf]  ;;  %v1725_v43 = vor.u32 %v1724_v5, %v1720_v8 }
 0x125   : > { %4772 = vrot.lane.b32.xlu1 %v7278_v40, %s6818_s26  ;;  %v6152_v40 = vcombine.low %v1649_v0, %v1659_v61  ;;  %v3331_v25 = vsel %vm2469_vm7, %v3294_v18, %v3171_v17  ;;  %v1711_v61 = vrot.slane %v1709_v32, 4  ;;  %v1714_v17 = vrot.slane %v1712_v53, 5  ;;  %v6785_v18 = vld [vmem:[%s6869_s22 + $0x90] sm:$0xf] }
 0x126   : > { %v5916_v59 = vcombine.low %v6785_v18, %v6786_v51  ;;  %v1730_v53 = vrot.slane %v1728_v20, 5  ;;  %v1726_v49 = vrot.slane %v1725_v43, 4  ;;  %v2032_v7 = vrot.slane %v8225_v1, 5  ;;  %v8313_v20 = vld [vmem:[%s6869_s22 + $0x7c] sm:$0xf] }
 0x127   : > { %4013 = vrot.lane.b32.xlu0 %v6136_v30, %s6817_s23  ;;  %v8215_v9 = vpop.permute.xlu1 %2238  ;;  %v1687_v30 = vrot.slane %v1685_v37, 4 }
 0x128   : > { %v3251_v39 = vpop.permute.xlu0 %3250 }
 0x129   : > { %4774 = vrot.lane.b32.xlu1 %v9610_v19, %s6818_s26  ;;  %v3363_v24 = vsel %vm2502_vm8, %v3331_v25, %v3251_v39  ;;  %v1691_v25 = vor.u32 %v1690_v58, %v1687_v30  ;;  %v1701_v39 = vor.u32 %v1700_v35, %v1696_v3  ;;  %v9611_v19 = vld [vmem:[#allocation12_spill] sm:$0xff]  ;;  %v5879_v30 = vld [vmem:[%s6869_s22 + $0x6c] sm:$0xe]  ;;  %v2039_v58 = vrot.slane %v8245_v42, 5 }
 0x12a   : > { %6601 = vmatprep.mubr.msk.bf16.mxu1 %vm2543_vm9, %v3363_v24  ;;  %v6139_v24 = vcombine.low %v5838_v28, %v8245_v42  ;;  %v9612_v35 = vld [vmem:[#allocation11_spill] sm:$0xff] }
 0x12b   : > { %4093 = vrot.lane.b32.xlu0 %v6152_v40, %s6819_s27  ;;  %6602 = vmatmul.mubr.msk.bf16.gmra.mrb[20].mxu1 %vm2543_vm9, %v3365_v26  ;;  %v8236_v62 = vpop.permute.xlu1 %2334  ;;  %v1715_v26 = vor.u32 %v1714_v17, %v1711_v61  ;;  %v1692_v34 = vrot.slane %v1691_v25, 4  ;;  %v1702_v11 = vrot.slane %v1701_v39, 4  ;;  %v9613_v42 = vld [vmem:[#allocation15_spill] sm:$0xff]  ;;  %v2041_v25 = vrot.slane %v2039_v58, 4  ;;  %v5878_v39 = vld [vmem:[%s6869_s22 + $0x60] sm:$0xe] }
 0x12d   : > { %4806 = vrot.lane.b32.xlu1 %v6153_v29, %s6817_s23  ;;  %v1716_v32 = vrot.slane %v1715_v26, 4  ;;  %v1697_v61 = vsel %vm6921_vm5, %v1692_v34, %v1696_v3 }
 0x12f   : > { %4095 = vrot.lane.b32.xlu0 %v6153_v29, %s6819_s27  ;;  %v1721_v3 = vsel %vm6921_vm5, %v1716_v32, %v1720_v8 }
 0x130   : > { %v8254_v14 = vpop.permute.xlu1 %3142 }
 0x131   : > { %4886 = vrot.lane.b32.xlu1 %v6252_v21, %s6819_s27  ;;  %v2237_v0 = vpop.permute.xlu0 %2236 }
 0x132   : > { %v2459_v37 = vsel %vm2420_vm6, %v5916_v59, %v2237_v0  ;;  %v6138_v0 = vcombine.low %v8222_v63, %v8225_v1  ;;  %v2042_v63 = vrot.slane %v8261_v13, 5  ;;  %v1731_v59 = vsel %vm6921_vm5, %v1726_v49, %v1730_v53  ;;  %v8306_v13 = vld [vmem:[%s6869_s22 + $0x78] sm:$0xf] }
 0x133   : > { %4804 = vrot.lane.b32.xlu0 %v6152_v40, %s6817_s23  ;;  %v5917_v40 = vcombine.low %v6787_v33, %v6788_v2  ;;  %v6155_v26 = vcombine.low %v1721_v3, %v1731_v59  ;;  %v5894_v1 = vrot.slane %v5878_v39, 9  ;;  %v1736_v43 = vshll.u32 %v8306_v13, 16 }
 0x134   : > { %v2043_v2 = vsel %vm6913_vm4, %v2041_v25, %v2042_v63  ;;  %v8358_v25 = vld [vmem:[%s6869_s22 + $0x8c] sm:$0x1] }
 0x135   : > { %3923 = vrot.lane.b32.xlu1 %v9611_v19, %s6818_s26  ;;  %v2333_v29 = vpop.permute.xlu0 %2332  ;;  %v2462_v60 = vsel %vm2420_vm6, %v5917_v40, %v8215_v9  ;;  %v1707_v9 = vsel %vm6921_vm5, %v1702_v11, %v1706_v57  ;;  %v2034_v40 = vrot.slane %v2032_v7, 4  ;;  %v5842_v57 = vld [vmem:[%s6869_s22 + $0x84] sm:$0xf] }
 0x136   : > { %v3145_v56 = vpop.permute.xlu1 %3144  ;;  %v2495_v21 = vsel %vm2469_vm7, %v2459_v37, %v2333_v29  ;;  %v2497_v17 = vsel %vm2469_vm7, %v2462_v60, %v8236_v62  ;;  %v6154_v62 = vcombine.low %v1697_v61, %v1707_v9  ;;  %v3300_v37 = vsel %vm2420_vm6, %v7731_v31, %v8254_v14  ;;  %v8335_v60 = vld [vmem:[%s6869_s22 + $0x88] sm:$0xf] }
 0x137   : > { %4884 = vrot.lane.b32.xlu0 %v6251_v45, %s6819_s27  ;;  %v5895_v45 = vrot.slane %v5879_v30, 9  ;;  %v3303_v29 = vsel %vm2420_vm6, %v7697_v27, %v3145_v56  ;;  %v2035_v27 = vrot.slane %v8258_v44, 5  ;;  %v1733_v56 = vshrl.u32 %v8306_v13, 16 }
 0x138   : > { %v1760_v49 = vshll.u32 %v5842_v57, 16  ;;  %v1770_v14 = vshrl.u32 %v8335_v60, 16 }
 0x139   : > { %4019 = vrot.lane.b32.xlu1 %v6139_v24, %s6817_s23  ;;  %v2413_v28 = vpop.permute.xlu0 %2412  ;;  %v9614_v24 = vld [vmem:[#allocation13_spill] sm:$0xff]  ;;  %v2040_v33 = vsel %vm6913_vm4, %v5895_v45, %v2039_v58  ;;  %v2033_v58 = vsel %vm6913_vm4, %v5894_v1, %v2032_v7  ;;  %v1735_v9 = vrot.slane %v1733_v56, 4  ;;  %v1776_v1 = vshll.u32 %v8358_v25, 16 }
 0x13a   : > { %v2528_v4 = vsel %vm2502_vm8, %v2495_v21, %v2413_v28  ;;  %v3177_v46 = vpop.permute.xlu1 %3176  ;;  %v1746_v21 = vshrl.u32 %v8313_v20, 16  ;;  %v1742_v28 = vshll.u32 %v8313_v20, 16  ;;  %v6254_v53 = vcombine.low %v2040_v33, %v2043_v2 }
 0x13b   : > { %3921 = vrot.lane.b32.xlu0 %v9612_v35, %s6818_s26  ;;  %6571 = vmatprep.mubr.msk.bf16.mxu0 %vm2543_vm9, %v2528_v4  ;;  %v3337_v34 = vsel %vm2469_vm7, %v3303_v29, %v3177_v46  ;;  %v1757_v4 = vshrl.u32 %v5842_v57, 16  ;;  %v1766_v46 = vshll.u32 %v8335_v60, 16  ;;  %v1762_v63 = vrot.slane %v1760_v49, 5 }
 0x13c   : > { %v1772_v3 = vrot.slane %v1770_v14, 4  ;;  %v6141_v33 = vcombine.low %v5842_v57, %v8335_v60  ;;  %v5881_v57 = vld [vmem:[%s6869_s22 + $0x84] sm:$0xe]  ;;  %v9616_v14 = vld [vmem:[#allocation17_spill] sm:$0xff] }
 0x13d   : > { %4776 = vrot.lane.b32.xlu1 %v9613_v42, %s6818_s26  ;;  %v2415_v5 = vpop.permute.xlu0 %2414  ;;  %v1744_v42 = vrot.slane %v1742_v28, 5  ;;  %v1759_v45 = vrot.slane %v1757_v4, 4 }
 0x13e   : > { %v2530_v18 = vsel %vm2502_vm8, %v2497_v17, %v2415_v5  ;;  %v3257_v51 = vpop.permute.xlu1 %3256  ;;  %v1738_v17 = vrot.slane %v1736_v43, 5  ;;  %v1748_v5 = vrot.slane %v1746_v21, 4 }
 0x13f   : > { %4017 = vrot.lane.b32.xlu0 %v6138_v0, %s6817_s23  ;;  %6572 = vmatmul.mubr.msk.bf16.gmra.mrb[24].mxu0 %vm2543_vm9, %v2530_v18  ;;  %v3369_v30 = vsel %vm2502_vm8, %v3337_v34, %v3257_v51  ;;  %v2036_v0 = vsel %vm6913_vm4, %v2034_v40, %v2035_v27  ;;  %v8352_v18 = vld [vmem:[%s6869_s22 + $0x80] sm:$0x1]  ;;  %v8354_v51 = vrot.slane %v1766_v46, 5  ;;  %v1763_v2 = vor.u32 %v1762_v63, %v1759_v45  ;;  %v6789_v40 = vld [vmem:[%s6869_s22 + $0xa8] sm:$0xf] }
 0x140   : > { %v6253_v59 = vcombine.low %v2033_v58, %v2036_v0  ;;  %v1739_v39 = vor.u32 %v1738_v17, %v1735_v9  ;;  %v1749_v7 = vor.u32 %v1748_v5, %v1744_v42  ;;  %v1752_v29 = vshll.u32 %v8352_v18, 16  ;;  %v6790_v27 = vld [vmem:[%s6869_s22 + $0xac] sm:$0xf] }
 0x141   : > { %4778 = vrot.lane.b32.xlu1 %v9614_v24, %s6818_s26  ;;  %v3175_v8 = vpop.permute.xlu0 %3174  ;;  %v5918_v56 = vcombine.low %v6789_v40, %v6790_v27  ;;  %v1764_v28 = vrot.slane %v1763_v2, 4  ;;  %v5897_v9 = vrot.slane %v5881_v57, 9  ;;  %v2056_v63 = vrot.slane %v8358_v25, 5  ;;  %v8402_v25 = vld [vmem:[%s6869_s22 + $0x9c] sm:$0xf]  ;;  %v9617_v40 = vld [vmem:[#allocation19_spill] sm:$0xff] }
 0x142   : > { %v3335_v32 = vsel %vm2469_vm7, %v3300_v37, %v3175_v8  ;;  %v9615_v8 = vld [vmem:[#allocation18_spill] sm:$0xff]  ;;  %v1740_v43 = vrot.slane %v1739_v39, 4  ;;  %v1750_v37 = vrot.slane %v1749_v7, 4  ;;  %v1754_v34 = vrot.slane %v1752_v29, 5  ;;  %v8405_v29 = vld [vmem:[%s6869_s22 + $0x90] sm:$0xf] }
 0x143   : > { %4097 = vrot.lane.b32.xlu0 %v6154_v62, %s6819_s27  ;;  %v2046_v7 = vrot.slane %v8313_v20, 5  ;;  %v1805_v2 = vshrl.u32 %v8402_v25, 16 }
 0x144   : > { %v8327_v11 = vpop.permute.xlu1 %2242  ;;  %v1745_v0 = vsel %vm6921_vm5, %v1740_v43, %v1744_v42  ;;  %v5880_v42 = vld [vmem:[%s6869_s22 + $0x78] sm:$0xe]  ;;  %v1808_v43 = vshll.u32 %v8402_v25, 16 }
 0x145   : > { %4810 = vrot.lane.b32.xlu1 %v6155_v26, %s6817_s23  ;;  %v3255_v44 = vpop.permute.xlu0 %3254 }
 0x146   : > { %v3367_v31 = vsel %vm2502_vm8, %v3335_v32, %v3255_v44  ;;  %v2053_v32 = vrot.slane %v8335_v60, 5  ;;  %v6791_v44 = vld [vmem:[%s6869_s22 + $0xb4] sm:$0xf]  ;;  %v1755_v60 = vsel %vm6921_vm5, %v1750_v37, %v1754_v34  ;;  %v8423_v34 = vld [vmem:[%s6869_s22 + $0xa0] sm:$0xf] }
 0x147   : > { %4099 = vrot.lane.b32.xlu0 %v6155_v26, %s6819_s27  ;;  %6605 = vmatprep.mubr.msk.bf16.mxu1 %vm2543_vm9, %v3367_v31  ;;  %v1778_v31 = vrot.slane %v1776_v1, 5  ;;  %v1818_v57 = vshrl.u32 %v8423_v34, 16 }
 0x148   : > { %v8347_v61 = vpop.permute.xlu1 %2338  ;;  %6606 = vmatmul.mubr.msk.bf16.gmra.mrb[24].mxu1 %vm2543_vm9, %v3369_v30  ;;  %v6140_v30 = vcombine.low %v8306_v13, %v8313_v20  ;;  %v1769_v13 = vsel %vm6921_vm5, %v1764_v28, %v8354_v51  ;;  %v2055_v45 = vrot.slane %v2053_v32, 4  ;;  %v8412_v20 = vld [vmem:[%s6869_s22 + $0x94] sm:$0xf]  ;;  %v1784_v28 = vshll.u32 %v8405_v29, 16 }
 0x149   : > { %4890 = vrot.lane.b32.xlu1 %v6254_v53, %s6819_s27  ;;  %v6792_v53 = vld [vmem:[%s6869_s22 + $0xb8] sm:$0xf] }
 0x14a   : > { %v5919_v4 = vcombine.low %v6791_v44, %v6792_v53  ;;  %v1790_v44 = vshll.u32 %v8412_v20, 16  ;;  %v1814_v53 = vshll.u32 %v8423_v34, 16 }
 0x14b   : > { %4808 = vrot.lane.b32.xlu0 %v6154_v62, %s6817_s23  ;;  %v1773_v62 = vor.u32 %v1772_v3, %v8354_v51  ;;  %v6156_v51 = vcombine.low %v1745_v0, %v1755_v60  ;;  %v1810_v60 = vrot.slane %v1808_v43, 5  ;;  %v8476_v43 = vld [vmem:[%s6869_s22 + $0xa8] sm:$0xf] }
 0x14c   : > { %v8363_v26 = vpop.permute.xlu1 %3146  ;;  %v2468_v3 = vsel %vm2420_vm6, %v5919_v4, %v8327_v11  ;;  %v2054_v11 = vsel %vm6913_vm4, %v5897_v9, %v2053_v32  ;;  %v1794_v32 = vshrl.u32 %v8412_v20, 16 }
 0x14d   : > { %v2241_v24 = vpop.permute.xlu0 %2240  ;;  %3927 = vrot.lane.b32.xlu1 %v9615_v8, %s6818_s26  ;;  %v1774_v49 = vrot.slane %v1773_v62, 4  ;;  %v2501_v62 = vsel %vm2469_vm7, %v2468_v3, %v8347_v61 }
 0x14e   : > { %v2465_v58 = vsel %vm2420_vm6, %v5918_v56, %v2241_v24  ;;  %v5896_v24 = vrot.slane %v5880_v42, 9  ;;  %v2057_v56 = vsel %vm6913_vm4, %v2055_v45, %v2056_v63  ;;  %v8448_v45 = vrot.slane %v1814_v53, 5 }
 0x14f   : > { %4888 = vrot.lane.b32.xlu0 %v6253_v59, %s6819_s27  ;;  %v1779_v39 = vsel %vm6921_vm5, %v1774_v49, %v1778_v31  ;;  %v6256_v31 = vcombine.low %v2054_v11, %v2057_v56  ;;  %v1820_v63 = vrot.slane %v1818_v57, 4  ;;  %v3306_v42 = vsel %vm2420_vm6, %v7878_v10, %v8363_v26  ;;  %v5883_v56 = vld [vmem:[%s6869_s22 + $0x9c] sm:$0xe] }
 0x150   : > { %v6157_v27 = vcombine.low %v1769_v13, %v1779_v39  ;;  %v1796_v13 = vrot.slane %v1794_v32, 4 }
 0x151   : > { %v2337_v21 = vpop.permute.xlu0 %2336  ;;  %4023 = vrot.lane.b32.xlu1 %v6141_v33, %s6817_s23  ;;  %v2049_v33 = vrot.slane %v8352_v18, 5  ;;  %v2048_v18 = vrot.slane %v2046_v7, 4 }
 0x152   : > { %v2499_v17 = vsel %vm2469_vm7, %v2465_v58, %v2337_v21  ;;  %v1781_v21 = vshrl.u32 %v8405_v29, 16  ;;  %v1807_v58 = vrot.slane %v1805_v2, 4 }
 0x153   : > { %3925 = vrot.lane.b32.xlu0 %v9616_v14, %s6818_s26  ;;  %v3149_v46 = vpop.permute.xlu1 %3148  ;;  %v2050_v0 = vsel %vm6913_vm4, %v2048_v18, %v2049_v33 }
 0x154   : > { %v3309_v4 = vsel %vm2420_vm6, %v7844_v50, %v3149_v46  ;;  %v1783_v9 = vrot.slane %v1781_v21, 4  ;;  %v8444_v50 = vld [vmem:[%s6869_s22 + $0x98] sm:$0x1]  ;;  %v8446_v46 = vrot.slane %v1790_v44, 5 }
 0x155   : > { %v2417_v5 = vpop.permute.xlu0 %2416  ;;  %4780 = vrot.lane.b32.xlu1 %v7523_v15, %s6818_s26  ;;  %v1800_v2 = vshll.u32 %v8444_v50, 16 }
 0x156   : > { %v2532_v59 = vsel %vm2502_vm8, %v2499_v17, %v2417_v5  ;;  %v1786_v17 = vrot.slane %v1784_v28, 5  ;;  %v2067_v28 = vrot.slane %v8423_v34, 5 }
 0x157   : > { %4021 = vrot.lane.b32.xlu0 %v6140_v30, %s6817_s23  ;;  %6575 = vmatprep.mubr.msk.bf16.mxu0 %vm2543_vm9, %v2532_v59  ;;  %v3181_v15 = vpop.permute.xlu1 %3180  ;;  %v2047_v30 = vsel %vm6913_vm4, %v5896_v24, %v2046_v7  ;;  %v8455_v59 = vld [vmem:[%s6869_s22 + $0xa4] sm:$0x1]  ;;  %v1802_v21 = vrot.slane %v1800_v2, 5  ;;  %v5882_v2 = vld [vmem:[%s6869_s22 + $0x90] sm:$0xe] }
 0x158   : > { %v3341_v3 = vsel %vm2469_vm7, %v3309_v4, %v3181_v15  ;;  %v6255_v11 = vcombine.low %v2047_v30, %v2050_v0  ;;  %v1787_v33 = vor.u32 %v1786_v17, %v1783_v9  ;;  %v1797_v15 = vor.u32 %v1796_v13, %v8446_v46  ;;  %v8488_v4 = vld [vmem:[%s6869_s22 + $0xb4] sm:$0xf]  ;;  %v8496_v0 = vld [vmem:[%s6869_s22 + $0xb8] sm:$0xf] }
 0x159   : > { %v2419_v1 = vpop.permute.xlu0 %2418  ;;  %4782 = vrot.lane.b32.xlu1 %v9617_v40, %s6818_s26  ;;  %v1824_v40 = vshll.u32 %v8455_v59, 16 }
 0x15a   : > { %v2534_v37 = vsel %vm2502_vm8, %v2501_v62, %v2419_v1  ;;  %v1811_v62 = vor.u32 %v1810_v60, %v1807_v58  ;;  %v1821_v1 = vor.u32 %v1820_v63, %v8448_v45  ;;  %v1788_v18 = vrot.slane %v1787_v33, 4 }
 0x15b   : > { %4101 = vrot.lane.b32.xlu0 %v6156_v51, %s6819_s27  ;;  %6576 = vmatmul.mubr.msk.bf16.gmra.mrb[28].mxu0 %vm2543_vm9, %v2534_v37  ;;  %v3261_v61 = vpop.permute.xlu1 %3260  ;;  %v6142_v37 = vcombine.low %v8405_v29, %v8412_v20  ;;  %v1798_v32 = vrot.slane %v1797_v15, 4  ;;  %v1826_v53 = vrot.slane %v1824_v40, 5  ;;  %v1853_v29 = vshrl.u32 %v8488_v4, 16 }
 0x15c   : > { %v3373_v10 = vsel %vm2502_vm8, %v3341_v3, %v3261_v61  ;;  %v8482_v61 = vld [vmem:[%s6869_s22 + $0xac] sm:$0xf]  ;;  %v1812_v44 = vrot.slane %v1811_v62, 4  ;;  %v2070_v58 = vrot.slane %v8455_v59, 5  ;;  %v1832_v60 = vshll.u32 %v8476_v43, 16 }
 0x15d   : > { %v3179_v49 = vpop.permute.xlu0 %3178  ;;  %4814 = vrot.lane.b32.xlu1 %v6157_v27, %s6817_s23  ;;  %v1842_v9 = vshrl.u32 %v8482_v61, 16  ;;  %v1838_v17 = vshll.u32 %v8482_v61, 16  ;;  %v1793_v13 = vsel %vm6921_vm5, %v1788_v18, %v8446_v46  ;;  %v2069_v63 = vrot.slane %v2067_v28, 4  ;;  %v9619_v18 = vld [vmem:[#allocation3_spill] sm:$0xff] }
 0x15e   : > { %v3339_v39 = vsel %vm2469_vm7, %v3306_v42, %v3179_v49  ;;  %v5899_v49 = vrot.slane %v5883_v56, 9  ;;  %v1866_v42 = vshrl.u32 %v8496_v0, 16  ;;  %v1862_v3 = vshll.u32 %v8496_v0, 16 }
 0x15f   : > { %4103 = vrot.lane.b32.xlu0 %v6157_v27, %s6819_s27  ;;  %v8441_v5 = vpop.permute.xlu1 %3911  ;;  %v1855_v62 = vrot.slane %v1853_v29, 4  ;;  %v8525_v56 = vrot.slane %v1838_v17, 5  ;;  %v2071_v29 = vsel %vm6913_vm4, %v2069_v63, %v2070_v58 }
 0x161   : > { %v3259_v7 = vpop.permute.xlu0 %3258  ;;  %4894 = vrot.lane.b32.xlu1 %v6256_v31, %s6819_s27  ;;  %v1856_v31 = vshll.u32 %v8488_v4, 16 }
 0x162   : > { %v3371_v24 = vsel %vm2502_vm8, %v3339_v39, %v3259_v7  ;;  %v1803_v39 = vsel %vm6921_vm5, %v1798_v32, %v1802_v21  ;;  %v1817_v7 = vsel %vm6921_vm5, %v1812_v44, %v8448_v45  ;;  %v1834_v45 = vrot.slane %v1832_v60, 5 }
 0x163   : > { %4812 = vrot.lane.b32.xlu0 %v6156_v51, %s6817_s23  ;;  %6609 = vmatprep.mubr.msk.bf16.mxu1 %vm2543_vm9, %v3371_v24  ;;  %v8464_v26 = vpop.permute.xlu1 %4007  ;;  %v6143_v51 = vcombine.low %v8402_v25, %v8423_v34  ;;  %v1822_v25 = vrot.slane %v1821_v1, 4  ;;  %v1829_v34 = vshrl.u32 %v8476_v43, 16  ;;  %v9618_v24 = vld [vmem:[#allocation2_spill] sm:$0xff]  ;;  %v8531_v32 = vrot.slane %v1862_v3, 5 }
 0x164   : > { %6610 = vmatmul.mubr.msk.bf16.gmra.mrb[28].mxu1 %vm2543_vm9, %v3373_v10  ;;  %v1858_v10 = vrot.slane %v1856_v31, 5  ;;  %v1868_v44 = vrot.slane %v1866_v42, 4  ;;  %v5869_v31 = vld [vmem:[%s6869_s22 + $0xbc] sm:$0x1] }
 0x165   : > { %v3910_v27 = vpop.permute.xlu0 %3909  ;;  %3931 = vrot.lane.b32.xlu1 %v7630_v23, %s6818_s26  ;;  %v1827_v46 = vsel %vm6921_vm5, %v1822_v25, %v1826_v53  ;;  %v1831_v15 = vrot.slane %v1829_v34, 4  ;;  %v8535_v25 = vcombine.low %v1793_v13, %v1803_v39  ;;  %v2068_v53 = vsel %vm6913_vm4, %v5899_v49, %v2067_v28  ;;  %v9620_v13 = vld [vmem:[#allocation22_spill] sm:$0xff] }
 0x166   : > { %v4119_v33 = vsel %vm2420_vm6, %v9618_v24, %v3910_v27  ;;  %v4122_v27 = vsel %vm2420_vm6, %v9619_v18, %v8441_v5  ;;  %v5898_v5 = vrot.slane %v5882_v2, 9  ;;  %v6159_v28 = vcombine.low %v1817_v7, %v1827_v46 }
 0x167   : > { %4892 = vrot.lane.b32.xlu0 %v6255_v11, %s6819_s27  ;;  %v8485_v57 = vpop.permute.xlu1 %4764  ;;  %v2060_v11 = vrot.slane %v8412_v20, 5  ;;  %v1844_v20 = vrot.slane %v1842_v9, 4  ;;  %v4168_v9 = vsel %vm2469_vm7, %v4122_v27, %v8464_v26  ;;  %v1835_v49 = vor.u32 %v1834_v45, %v1831_v15 }
 0x168   : > { %v1869_v42 = vor.u32 %v1868_v44, %v8531_v32  ;;  %v1872_v3 = vshll.u32 %v5869_v31, 16  ;;  %v2081_v39 = vrot.slane %v8496_v0, 5  ;;  %v6258_v24 = vcombine.low %v2068_v53, %v2071_v29 }
 0x169   : > { %v4006_v30 = vpop.permute.xlu0 %4005  ;;  %4027 = vrot.lane.b32.xlu1 %v6143_v51, %s6817_s23  ;;  %v8523_v51 = vld [vmem:[%s6869_s22 + $0xb0] sm:$0x1]  ;;  %v2062_v34 = vrot.slane %v2060_v11, 4  ;;  %v1845_v58 = vor.u32 %v1844_v20, %v8525_v56  ;;  %v8558_v7 = vsel %vm6913_vm4, %v5898_v5, %v2060_v11  ;;  %v1836_v15 = vrot.slane %v1835_v49, 4  ;;  %v8585_v5 = vld [vmem:[%s6869_s22 + $0xa8] sm:$0xe] }
 0x16a   : > { %v4166_v1 = vsel %vm2469_vm7, %v4119_v33, %v4006_v30  ;;  %v2063_v30 = vrot.slane %v8444_v50, 5  ;;  %v1848_v60 = vshll.u32 %v8523_v51, 16  ;;  %v5885_v50 = vld [vmem:[%s6869_s22 + $0xb4] sm:$0xe]  ;;  %v1870_v45 = vrot.slane %v1869_v42, 4 }
 0x16b   : > { %3929 = vrot.lane.b32.xlu0 %v7627_v16, %s6818_s26  ;;  %v4767_v59 = vpop.permute.xlu1 %4766  ;;  %v1874_v11 = vrot.slane %v1872_v3, 5  ;;  %v2083_v20 = vrot.slane %v2081_v39, 4  ;;  %v2084_v18 = vrot.slane %v5869_v31, 5  ;;  %v6144_v53 = vcombine.low %v8476_v43, %v8482_v61 }
 0x16c   : > { %v8562_v46 = vsel %vm6913_vm4, %v2062_v34, %v2063_v30  ;;  %v1850_v33 = vrot.slane %v1848_v60, 5  ;;  %v5900_v49 = vrot.slane %v8585_v5, 9 }
 0x16d   : > { %v4086_v40 = vpop.permute.xlu0 %4085  ;;  %4784 = vrot.lane.b32.xlu1 %v7680_v22, %s6818_s26  ;;  %v1875_v60 = vsel %vm6921_vm5, %v1870_v45, %v1874_v11 }
 0x16e   : > { %v4198_v21 = vsel %vm2502_vm8, %v4166_v1, %v4086_v40  ;;  %v1846_v1 = vrot.slane %v1845_v58, 4  ;;  %v5901_v40 = vrot.slane %v5885_v50, 9  ;;  %v8618_v58 = vld [vmem:[%s6869_s22 + $0xcc] sm:$0xf] }
 0x16f   : > { %4025 = vrot.lane.b32.xlu0 %v6142_v37, %s6817_s23  ;;  %6615 = vmatprep.mubr.msk.bf16.mxu0 %vm2543_vm9, %v4198_v21  ;;  %v4799_v22 = vpop.permute.xlu1 %4798  ;;  %v1859_v37 = vor.u32 %v1858_v10, %v1855_v62  ;;  %v4913_v62 = vsel %vm2420_vm6, %v6991_v55, %v4767_v59  ;;  %v6257_v21 = vcombine.low %v8558_v7, %v8562_v46  ;;  %v1901_v50 = vshrl.u32 %v8618_v58, 16 }
 0x170   : > { %v6145_v55 = vcombine.low %v8488_v4, %v8496_v0  ;;  %v4910_v59 = vsel %vm2420_vm6, %v6980_v47, %v8485_v57  ;;  %v4959_v44 = vsel %vm2469_vm7, %v4913_v62, %v4799_v22  ;;  %v1841_v57 = vsel %vm6921_vm5, %v1836_v15, %v8525_v56 }
 0x171   : > { %v4088_v17 = vpop.permute.xlu0 %4087  ;;  %4786 = vrot.lane.b32.xlu1 %v9620_v13, %s6818_s26  ;;  %v1860_v2 = vrot.slane %v1859_v37, 4  ;;  %v1851_v4 = vsel %vm6921_vm5, %v1846_v1, %v1850_v33  ;;  %v8601_v0 = vsel %vm6913_vm4, %v5901_v40, %v2081_v39  ;;  %v8608_v37 = vsel %vm6913_vm4, %v2083_v20, %v2084_v18  ;;  %v8646_v18 = vld [vmem:[%s6869_s22 + $0xc0] sm:$0xf] }
 0x172   : > { %v4200_v63 = vsel %vm2502_vm8, %v4168_v9, %v4088_v17  ;;  %v1904_v20 = vshll.u32 %v8618_v58, 16 }
 0x173   : > { %4105 = vrot.lane.b32.xlu0 %v8535_v25, %s6819_s27  ;;  %6616 = vmatmul.mubr.msk.bf16.vlgmr.msra.gmra.mrb[32].mxu0 %vm2543_vm9, %v4200_v63  ;;  %v4879_v26 = vpop.permute.xlu1 %4878  ;;  %v1865_v29 = vsel %vm6921_vm5, %v1860_v2, %v8531_v32 }
 0x174   : > { %v4991_v56 = vsel %vm2502_vm8, %v4959_v44, %v4879_v26  ;;  %v9621_v26 = vld [vmem:[#allocation26_spill] sm:$0xff]  ;;  %v8634_v15 = vcombine.low %v1865_v29, %v1875_v60  ;;  %v8655_v29 = vld [vmem:[%s6869_s22 + $0xd0] sm:$0xf] }
 0x175   : > { %v4797_v10 = vpop.permute.xlu0 %4796  ;;  %4818 = vrot.lane.b32.xlu1 %v6159_v28, %s6817_s23 }
 0x176   : > { %v4957_v31 = vsel %vm2469_vm7, %v4910_v59, %v4797_v10  ;;  %v8632_v10 = vcombine.low %v1841_v57, %v1851_v4 }
 0x177   : > { %4107 = vrot.lane.b32.xlu0 %v6159_v28, %s6819_s27  ;;  %v8569_v27 = vpop.permute.xlu1 %3915 }
 0x179   : > { %v4877_v34 = vpop.permute.xlu0 %4876  ;;  %4898 = vrot.lane.b32.xlu1 %v6258_v24, %s6819_s27 }
 0x17a   : > { %v6549_v47 = vpop.f32.mrb[0].mxu0  ;;  %v4989_v32 = vsel %vm2502_vm8, %v4957_v31, %v4877_v34  ;;  %v8657_v31 = vrot.slane %v1901_v50, 4  ;;  %v8660_v34 = vld [vmem:[%s6869_s22 + $0xc4] sm:$0xf] }
 0x17b   : > { %v6351_v22 = vpack.c.bf16 %v6549_v47, %v6549_v47  ;;  %v2610_v30 = vpop.f32.mrb[1].mxu0  ;;  %4816 = vrot.lane.b32.xlu0 %v8535_v25, %s6817_s23  ;;  %6649 = vmatprep.mubr.msk.bf16.mxu1 %vm2543_vm9, %v4989_v32  ;;  %v8614_v9 = vpop.permute.xlu1 %4011  ;;  %v2809_v63 = vmul.f32 %v6549_v47, %v6549_v47  ;;  %v2074_v25 = vrot.slane %v8482_v61, 5  ;;  %v2740_v40 = vsel %vm2469_vm7, %v6549_v47, 0.0 }
 0x17c   : > { %v2807_v17 = vmul.f32 %v2610_v30, %v2610_v30  ;;  %v6349_v13 = vpack.c.bf16 %v2610_v30, %v2610_v30  ;;  %v6550_v28 = vpop.f32.mrb[2].mxu0  ;;  %6650 = vmatmul.mubr.msk.bf16.vlgmr.msra.gmra.mrb[32].mxu1 %vm2543_vm9, %v4991_v56  ;;  %v2737_v24 = vsel %vm2469_vm7, %v2610_v30, 0.0 }
 0x17d   : > { %3040 = vst.msk [vmem:[%s8592_s11 + $0x8] sm:$0xf] %vm3037_vm10, %v6351_v22  ;;  %v2613_v42 = vpop.f32.mrb[3].mxu0  ;;  %v3914_v39 = vpop.permute.xlu0 %3913  ;;  %3935 = vrot.lane.b32.xlu1 %v9621_v26, %s6818_s26  ;;  %v6352_v7 = vpack.c.bf16 %v6550_v28, %v6550_v28  ;;  %v2842_v57 = vsel %vm2469_vm7, %v2809_v63, 0.0  ;;  %v2742_v4 = vsel %vm2469_vm7, %v6550_v28, 0.0  ;;  %v2810_v32 = vmul.f32 %v6550_v28, %v6550_v28 }
 0x17e   : > { %3038 = vst.msk [vmem:[%s8592_s11] sm:$0xf] %vm3037_vm10, %v6349_v13  ;;  %v2738_v46 = vsel %vm2469_vm7, %v2613_v42, 0.0  ;;  %v2808_v33 = vmul.f32 %v2613_v42, %v2613_v42  ;;  %v6350_v62 = vpack.c.bf16 %v2613_v42, %v2613_v42  ;;  %v2839_v45 = vsel %vm2469_vm7, %v2807_v17, 0.0  ;;  %v9622_v42 = vld [vmem:[#allocation25_spill] sm:$0xff] }
 0x17f   : > { %v2739_v2 = vadd.f32 %v2738_v46, %v2737_v24  ;;  %4896 = vrot.lane.b32.xlu0 %v6257_v21, %s6819_s27  ;;  %v8637_v1 = vpop.permute.xlu1 %4768  ;;  %3041 = vst.msk [vmem:[%s8592_s11 + $0xc] sm:$0xf] %vm3037_vm10, %v6352_v7  ;;  %v8652_v21 = vrot.slane %v2074_v25, 4  ;;  %v1877_v17 = vshrl.u32 %v8646_v18, 16  ;;  %v1880_v13 = vshll.u32 %v8646_v18, 16  ;;  %v9623_v46 = vld [vmem:[#allocation4_spill] sm:$0xff] }
 0x180   : > { %v2840_v11 = vsel %vm2469_vm7, %v2808_v33, 0.0  ;;  %3039 = vst.msk [vmem:[%s8592_s11 + $0x4] sm:$0xf] %vm3037_vm10, %v6350_v62  ;;  %v8672_v24 = vrot.slane %v1904_v20, 5  ;;  %v1890_v28 = vshrl.u32 %v8660_v34, 16  ;;  %v1886_v7 = vshll.u32 %v8660_v34, 16 }
 0x181   : > { %v2741_v59 = vadd.f32 %v2740_v40, %v2739_v2  ;;  %v2841_v44 = vadd.f32 %v2840_v11, %v2839_v45  ;;  %v4010_v47 = vpop.permute.xlu0 %4009  ;;  %4031 = vrot.lane.b32.xlu1 %v6145_v55, %s6817_s23  ;;  %v4128_v33 = vsel %vm2420_vm6, %v9623_v46, %v8569_v27  ;;  %v9624_v2 = vld [vmem:[#allocation5_spill] sm:$0xff] }
 0x182   : > { %v4125_v62 = vsel %vm2420_vm6, %v9624_v2, %v3914_v39  ;;  %v4172_v43 = vsel %vm2469_vm7, %v4128_v33, %v8614_v9  ;;  %v8743_v5 = vrot.slane %v1886_v7, 5 }
 0x183   : > { %v2843_v30 = vadd.f32 %v2842_v57, %v2841_v44  ;;  %v6583_v60 = vpop.f32.mrb[0].mxu1  ;;  %v8666_v56 = vadd.f32 %v2742_v4, %v2741_v59  ;;  %3933 = vrot.lane.b32.xlu0 %v9622_v42, %s6818_s26  ;;  %v4771_v50 = vpop.permute.xlu1 %4770  ;;  %v4170_v59 = vsel %vm2469_vm7, %v4125_v62, %v4010_v47  ;;  %v9625_v44 = vld [vmem:[#allocation28_spill] sm:$0xff]  ;;  %v2844_v57 = vsel %vm2469_vm7, %v2810_v32, 0.0 }
 0x184   : > { %v6383_v55 = vpack.c.bf16 %v6583_v60, %v6583_v60  ;;  %v3449_v63 = vpop.f32.mrb[1].mxu1  ;;  %v3648_v4 = vmul.f32 %v6583_v60, %v6583_v60 }
 0x185   : > { %v3646_v40 = vmul.f32 %v3449_v63, %v3449_v63  ;;  %v6381_v45 = vpack.c.bf16 %v3449_v63, %v3449_v63  ;;  %v6584_v11 = vpop.f32.mrb[2].mxu1  ;;  %v4090_v20 = vpop.permute.xlu0 %4089  ;;  %4788 = vrot.lane.b32.xlu1 %v9625_v44, %s6818_s26  ;;  %v3576_v39 = vsel %vm2469_vm7, %v3449_v63, 0.0  ;;  %v1879_v63 = vrot.slane %v1877_v17, 4 }
 0x186   : > { %6102 = vst.msk [vmem:[%s8592_s11 + $0x88] sm:$0xf] %vm3037_vm10, %v6383_v55  ;;  %v6384_v22 = vpack.c.bf16 %v6584_v11, %v6584_v11  ;;  %v3452_v27 = vpop.f32.mrb[3].mxu1  ;;  %v4202_v46 = vsel %vm2502_vm8, %v4170_v59, %v4090_v20  ;;  %v8699_v59 = vadd.f32 %v2844_v57, %v2843_v30  ;;  %v3649_v44 = vmul.f32 %v6584_v11, %v6584_v11 }
 0x187   : > { %6100 = vst.msk [vmem:[%s8592_s11 + $0x80] sm:$0xf] %vm3037_vm10, %v6381_v45  ;;  %v3577_v47 = vsel %vm2469_vm7, %v3452_v27, 0.0  ;;  %v3647_v2 = vmul.f32 %v3452_v27, %v3452_v27  ;;  %4029 = vrot.lane.b32.xlu0 %v6144_v53, %s6817_s23  ;;  %6619 = vmatprep.mubr.msk.bf16.mxu0 %vm2543_vm9, %v4202_v46  ;;  %v4803_v32 = vpop.permute.xlu1 %4802  ;;  %v6382_v62 = vpack.c.bf16 %v3452_v27, %v3452_v27  ;;  %v3579_v45 = vsel %vm2469_vm7, %v6583_v60, 0.0  ;;  %v9626_v46 = vld [vmem:[#allocation27_spill] sm:$0xff] }
 0x188   : > { %6103 = vst.msk [vmem:[%s8592_s11 + $0x8c] sm:$0xf] %vm3037_vm10, %v6384_v22  ;;  %v3578_v55 = vadd.f32 %v3577_v47, %v3576_v39  ;;  %v3678_v20 = vsel %vm2469_vm7, %v3646_v40, 0.0  ;;  %v1882_v30 = vrot.slane %v1880_v13, 5  ;;  %v3681_v17 = vsel %vm2469_vm7, %v3648_v4, 0.0 }
 0x189   : > { %v3679_v3 = vsel %vm2469_vm7, %v3647_v2, 0.0  ;;  %v4092_v53 = vpop.permute.xlu0 %4091  ;;  %4790 = vrot.lane.b32.xlu1 %v9626_v46, %s6818_s26  ;;  %6101 = vst.msk [vmem:[%s8592_s11 + $0x84] sm:$0xf] %vm3037_vm10, %v6382_v62  ;;  %v3581_v40 = vsel %vm2469_vm7, %v6584_v11, 0.0  ;;  %v1910_v57 = vshll.u32 %v8655_v29, 16  ;;  %v3683_v4 = vsel %vm2469_vm7, %v3649_v44, 0.0 }
 0x18a   : > { %v3580_v22 = vadd.f32 %v3579_v45, %v3578_v55  ;;  %v3680_v27 = vadd.f32 %v3679_v3, %v3678_v20  ;;  %v4204_v60 = vsel %vm2502_vm8, %v4172_v43, %v4092_v53  ;;  %v6260_v3 = vcombine.low %v8601_v0, %v8608_v37  ;;  %v8720_v13 = vld [vmem:[%s6869_s22 + $0xc8] sm:$0x1]  ;;  %v8737_v2 = vld [vmem:[%s6869_s22 + $0xd4] sm:$0x1] }
 0x18b   : > { %4109 = vrot.lane.b32.xlu0 %v8632_v10, %s6819_s27  ;;  %6620 = vmatmul.mubr.msk.bf16.gmra.mrb[36].mxu0 %vm2543_vm9, %v4204_v60  ;;  %v4883_v9 = vpop.permute.xlu1 %4882  ;;  %v2075_v11 = vsel %vm6913_vm4, %v5900_v49, %v2074_v25  ;;  %v9627_v47 = vrot.slane %v8523_v51, 5  ;;  %v1892_v37 = vrot.slane %v1890_v28, 4  ;;  %v4919_v55 = vsel %vm2420_vm6, %v7116_v6, %v4771_v50 }
 0x18c   : > { %v3682_v33 = vadd.f32 %v3681_v17, %v3680_v27  ;;  %v8722_v39 = vadd.f32 %v3581_v40, %v3580_v22  ;;  %v1883_v61 = vor.u32 %v1882_v30, %v1879_v63  ;;  %v1896_v51 = vshll.u32 %v8720_v13, 16 }
 0x18d   : > { %v2078_v0 = vsel %vm6913_vm4, %v8652_v21, %v9627_v47  ;;  %v4801_v62 = vpop.permute.xlu0 %4800  ;;  %4822 = vrot.lane.b32.xlu1 %v8634_v15, %s6817_s23  ;;  %v1907_v25 = vor.u32 %v8672_v24, %v8657_v31  ;;  %v8750_v21 = vrot.slane %v1910_v57, 5  ;;  %v9628_v28 = vshrl.u32 %v8655_v29, 16  ;;  %v5887_v24 = vld [vmem:[%s6869_s22 + $0xcc] sm:$0xe] }
 0x18e   : > { %v8745_v49 = vadd.f32 %v3683_v4, %v3682_v33  ;;  %v1920_v7 = vshll.u32 %v8737_v2, 16  ;;  %v4916_v63 = vsel %vm2420_vm6, %v7103_v54, %v8637_v1  ;;  %v4963_v45 = vsel %vm2469_vm7, %v4919_v55, %v4803_v32 }
 0x18f   : > { %v1916_v6 = vrot.slane %v9628_v28, 4  ;;  %4111 = vrot.lane.b32.xlu0 %v8634_v15, %s6819_s27  ;;  %v8756_v50 = vpop.permute.xlu1 %3919  ;;  %v6259_v20 = vcombine.low %v2075_v11, %v2078_v0  ;;  %v6147_v31 = vcombine.low %v8618_v58, %v8655_v29  ;;  %v4961_v44 = vsel %vm2469_vm7, %v4916_v63, %v4801_v62 }
 0x190   : > { %v6146_v15 = vcombine.low %v8646_v18, %v8660_v34  ;;  %v8770_v53 = vrot.slane %v1883_v61, 4  ;;  %v1893_v46 = vor.u32 %v1892_v37, %v8743_v5  ;;  %v1898_v32 = vrot.slane %v1896_v51, 5 }
 0x191   : > { %v4881_v43 = vpop.permute.xlu0 %4880  ;;  %4902 = vrot.lane.b32.xlu1 %v6260_v3, %s6819_s27  ;;  %v8774_v22 = vrot.slane %v1907_v25, 4  ;;  %v1917_v58 = vor.u32 %v1916_v6, %v8750_v21  ;;  %v4995_v27 = vsel %vm2502_vm8, %v4963_v45, %v4883_v9  ;;  %v8783_v40 = vrot.slane %v1920_v7, 5 }
 0x192   : > { %v4993_v54 = vsel %vm2502_vm8, %v4961_v44, %v4881_v43  ;;  %v5903_v57 = vrot.slane %v5887_v24, 9  ;;  %v2095_v11 = vrot.slane %v8655_v29, 5  ;;  %v1889_v37 = vsel %vm6921_vm5, %v8770_v53, %v8743_v5 }
 0x193   : > { %v6553_v1 = vpop.f32.mrb[4].mxu0  ;;  %4820 = vrot.lane.b32.xlu0 %v8632_v10, %s6817_s23  ;;  %6653 = vmatprep.mubr.msk.bf16.mxu1 %vm2543_vm9, %v4993_v54  ;;  %v8781_v30 = vpop.permute.xlu1 %4015  ;;  %v1894_v55 = vrot.slane %v1893_v46, 4  ;;  %v2098_v62 = vrot.slane %v8737_v2, 5  ;;  %v1918_v25 = vrot.slane %v1917_v58, 4  ;;  %v1913_v45 = vsel %vm6921_vm5, %v8774_v22, %v8750_v21 }
 0x194   : > { %v6355_v60 = vpack.c.bf16 %v6553_v1, %v6553_v1  ;;  %v2626_v17 = vpop.f32.mrb[5].mxu0  ;;  %6654 = vmatmul.mubr.msk.bf16.gmra.mrb[36].mxu1 %vm2543_vm9, %v4995_v27  ;;  %v2813_v28 = vmul.f32 %v6553_v1, %v6553_v1  ;;  %v2748_v2 = vsel %vm2469_vm7, %v6553_v1, 0.0  ;;  %v2097_v24 = vrot.slane %v2095_v11, 4  ;;  %v9629_v1 = vld [vmem:[#allocation7_spill] sm:$0xff] }
 0x195   : > { %v2744_v3 = vsel %vm2469_vm7, %v2626_v17, 0.0  ;;  %v2811_v33 = vmul.f32 %v2626_v17, %v2626_v17  ;;  %v6353_v9 = vpack.c.bf16 %v2626_v17, %v2626_v17  ;;  %v6554_v4 = vpop.f32.mrb[6].mxu0  ;;  %v3918_v10 = vpop.permute.xlu0 %3917  ;;  %3939 = vrot.lane.b32.xlu1 %v7929_v38, %s6818_s26  ;;  %v1899_v43 = vsel %vm6921_vm5, %v1894_v55, %v1898_v32 }
 0x196   : > { %3044 = vst.msk [vmem:[%s8592_s11 + $0x18] sm:$0xf] %vm3037_vm10, %v6355_v60  ;;  %v2745_v47 = vadd.f32 %v2744_v3, %v8666_v56  ;;  %v2629_v0 = vpop.f32.mrb[7].mxu0  ;;  %v6356_v61 = vpack.c.bf16 %v6554_v4, %v6554_v4  ;;  %v8819_v53 = vsel %vm6913_vm4, %v5903_v57, %v2095_v11  ;;  %v2750_v46 = vsel %vm2469_vm7, %v6554_v4, 0.0  ;;  %v9630_v11 = vld [vmem:[#allocation32_spill] sm:$0xff] }
 0x197   : > { %v2846_v29 = vsel %vm2469_vm7, %v2811_v33, 0.0  ;;  %3042 = vst.msk [vmem:[%s8592_s11 + $0x10] sm:$0xf] %vm3037_vm10, %v6353_v9  ;;  %v2746_v51 = vsel %vm2469_vm7, %v2629_v0, 0.0  ;;  %4900 = vrot.lane.b32.xlu0 %v6259_v20, %s6819_s27  ;;  %v8803_v56 = vpop.permute.xlu1 %4772  ;;  %v2812_v7 = vmul.f32 %v2629_v0, %v2629_v0  ;;  %v6354_v63 = vpack.c.bf16 %v2629_v0, %v2629_v0 }
 0x198   : > { %v2847_v6 = vadd.f32 %v2846_v29, %v8699_v59  ;;  %v2747_v5 = vadd.f32 %v2746_v51, %v2745_v47  ;;  %3045 = vst.msk [vmem:[%s8592_s11 + $0x1c] sm:$0xf] %vm3037_vm10, %v6356_v61  ;;  %v1923_v21 = vsel %vm6921_vm5, %v1918_v25, %v8783_v40  ;;  %v4131_v22 = vsel %vm2420_vm6, %v9629_v1, %v3918_v10 }
 0x199   : > { %v4014_v20 = vpop.permute.xlu0 %4013  ;;  %4035 = vrot.lane.b32.xlu1 %v6147_v31, %s6817_s23  ;;  %v2848_v59 = vsel %vm2469_vm7, %v2812_v7, 0.0  ;;  %3043 = vst.msk [vmem:[%s8592_s11 + $0x14] sm:$0xf] %vm3037_vm10, %v6354_v63  ;;  %v2088_v31 = vrot.slane %v8660_v34, 5  ;;  %v2850_v58 = vsel %vm2469_vm7, %v2813_v28, 0.0  ;;  %v2814_v27 = vmul.f32 %v6554_v4, %v6554_v4 }
 0x19a   : > { %v2749_v44 = vadd.f32 %v2748_v2, %v2747_v5  ;;  %v2849_v54 = vadd.f32 %v2848_v59, %v2847_v6  ;;  %v4174_v57 = vsel %vm2469_vm7, %v4131_v22, %v4014_v20  ;;  %v8836_v52 = vcombine.low %v1889_v37, %v1899_v43  ;;  %v9631_v37 = vld [vmem:[#allocation6_spill] sm:$0xff]  ;;  %v9632_v20 = vld [vmem:[#allocation31_spill] sm:$0xff] }
 0x19b   : > { %3937 = vrot.lane.b32.xlu0 %v7920_v12, %s6818_s26  ;;  %v4775_v32 = vpop.permute.xlu1 %4774  ;;  %v8840_v33 = vsel %vm6913_vm4, %v2097_v24, %v2098_v62  ;;  %v4134_v29 = vsel %vm2420_vm6, %v9631_v37, %v8756_v50  ;;  %v6163_v62 = vcombine.low %v1913_v45, %v1923_v21  ;;  %v2852_v6 = vsel %vm2469_vm7, %v2814_v27, 0.0  ;;  %v5886_v63 = vld [vmem:[%s6869_s22 + $0xc0] sm:$0xe] }
 0x19c   : > { %v6587_v60 = vpop.f32.mrb[4].mxu1  ;;  %v8833_v17 = vadd.f32 %v2750_v46, %v2749_v44  ;;  %v2851_v3 = vadd.f32 %v2850_v58, %v2849_v54  ;;  %v4176_v45 = vsel %vm2469_vm7, %v4134_v29, %v8781_v30  ;;  %v5902_v58 = vrot.slane %v5886_v63, 9 }
 0x19d   : > { %v3465_v40 = vpop.f32.mrb[5].mxu1  ;;  %v4094_v9 = vpop.permute.xlu0 %4093  ;;  %4792 = vrot.lane.b32.xlu1 %v9630_v11, %s6818_s26  ;;  %v6387_v10 = vpack.c.bf16 %v6587_v60, %v6587_v60  ;;  %v3652_v7 = vmul.f32 %v6587_v60, %v6587_v60  ;;  %v3587_v44 = vsel %vm2469_vm7, %v6587_v60, 0.0  ;;  %v2090_v60 = vrot.slane %v2088_v31, 4 }
 0x19e   : > { %v3583_v4 = vsel %vm2469_vm7, %v3465_v40, 0.0  ;;  %v3650_v47 = vmul.f32 %v3465_v40, %v3465_v40  ;;  %v6385_v0 = vpack.c.bf16 %v3465_v40, %v3465_v40  ;;  %v6588_v55 = vpop.f32.mrb[6].mxu1  ;;  %v4206_v61 = vsel %vm2502_vm8, %v4174_v57, %v4094_v9 }
 0x19f   : > { %v3584_v51 = vadd.f32 %v3583_v4, %v8722_v39  ;;  %v3468_v25 = vpop.f32.mrb[7].mxu1  ;;  %4033 = vrot.lane.b32.xlu0 %v6146_v15, %s6817_s23  ;;  %6623 = vmatprep.mubr.msk.bf16.mxu0 %vm2543_vm9, %v4206_v61  ;;  %v4807_v28 = vpop.permute.xlu1 %4806  ;;  %6106 = vst.msk [vmem:[%s8592_s11 + $0x98] sm:$0xf] %vm3037_vm10, %v6387_v10  ;;  %v6388_v5 = vpack.c.bf16 %v6588_v55, %v6588_v55  ;;  %v3589_v1 = vsel %vm2469_vm7, %v6588_v55, 0.0  ;;  %v3689_v27 = vsel %vm2469_vm7, %v3652_v7, 0.0 }
 0x1a0   : > { %v3685_v50 = vsel %vm2469_vm7, %v3650_v47, 0.0  ;;  %6104 = vst.msk [vmem:[%s8592_s11 + $0x90] sm:$0xf] %vm3037_vm10, %v6385_v0  ;;  %v3585_v39 = vsel %vm2469_vm7, %v3468_v25, 0.0  ;;  %v3651_v15 = vmul.f32 %v3468_v25, %v3468_v25  ;;  %v6386_v59 = vpack.c.bf16 %v3468_v25, %v3468_v25 }
 0x1a1   : > { %v3686_v2 = vadd.f32 %v3685_v50, %v8745_v49  ;;  %v3586_v18 = vadd.f32 %v3585_v39, %v3584_v51  ;;  %v4096_v24 = vpop.permute.xlu0 %4095  ;;  %4794 = vrot.lane.b32.xlu1 %v9632_v20, %s6818_s26  ;;  %6107 = vst.msk [vmem:[%s8592_s11 + $0x9c] sm:$0xf] %vm3037_vm10, %v6388_v5  ;;  %v2853_v43 = vadd.f32 %v2852_v6, %v2851_v3  ;;  %v2091_v57 = vrot.slane %v8720_v13, 5 }
 0x1a2   : > { %v4208_v46 = vsel %vm2502_vm8, %v4176_v45, %v4096_v24  ;;  %v3653_v49 = vmul.f32 %v6588_v55, %v6588_v55  ;;  %v3687_v21 = vsel %vm2469_vm7, %v3651_v15, 0.0  ;;  %6105 = vst.msk [vmem:[%s8592_s11 + $0x94] sm:$0xf] %vm3037_vm10, %v6386_v59  ;;  %v4925_v40 = vsel %vm2420_vm6, %v7236_v48, %v4775_v32  ;;  %v9633_v24 = vld [vmem:[#allocation9_spill] sm:$0xff] }
 0x1a3   : > { %v3588_v54 = vadd.f32 %v3587_v44, %v3586_v18  ;;  %4113 = vrot.lane.b32.xlu0 %v8836_v52, %s6819_s27  ;;  %6624 = vmatmul.mubr.msk.bf16.gmra.mrb[40].mxu0 %vm2543_vm9, %v4208_v46  ;;  %v4887_v30 = vpop.permute.xlu1 %4886  ;;  %v3688_v22 = vadd.f32 %v3687_v21, %v3686_v2  ;;  %v6262_v11 = vcombine.low %v8819_v53, %v8840_v33 }
 0x1a4   : > { %v3691_v4 = vsel %vm2469_vm7, %v3653_v49, 0.0  ;;  %v4922_v13 = vsel %vm2420_vm6, %v7224_v36, %v8803_v56  ;;  %v4967_v48 = vsel %vm2469_vm7, %v4925_v40, %v4807_v28  ;;  %v2089_v32 = vsel %vm6913_vm4, %v5902_v58, %v2088_v31 }
 0x1a5   : > { %v8883_v3 = vadd.f32 %v3589_v1, %v3588_v54  ;;  %v4805_v9 = vpop.permute.xlu0 %4804  ;;  %4826 = vrot.lane.b32.xlu1 %v6163_v62, %s6817_s23  ;;  %v3690_v10 = vadd.f32 %v3689_v27, %v3688_v22  ;;  %v2092_v53 = vsel %vm6913_vm4, %v2090_v60, %v2091_v57  ;;  %v4999_v29 = vsel %vm2502_vm8, %v4967_v48, %v4887_v30  ;;  %v9634_v54 = vld [vmem:[#allocation10_spill] sm:$0xff] }
 0x1a6   : > { %v4965_v33 = vsel %vm2469_vm7, %v4922_v13, %v4805_v9  ;;  %v6261_v34 = vcombine.low %v2089_v32, %v2092_v53 }
 0x1a7   : > { %4115 = vrot.lane.b32.xlu0 %v6163_v62, %s6819_s27  ;;  %v3924_v47 = vpop.permute.xlu1 %3923  ;;  %v8892_v0 = vadd.f32 %v3691_v4, %v3690_v10 }
 0x1a8   : > { %v4140_v20 = vsel %vm2420_vm6, %v9633_v24, %v3924_v47 }
 0x1a9   : > { %v4885_v55 = vpop.permute.xlu0 %4884  ;;  %4906 = vrot.lane.b32.xlu1 %v6262_v11, %s6819_s27 }
 0x1aa   : > { %v4997_v37 = vsel %vm2502_vm8, %v4965_v33, %v4885_v55 }
 0x1ab   : > { %4824 = vrot.lane.b32.xlu0 %v8836_v52, %s6817_s23  ;;  %6657 = vmatprep.mubr.msk.bf16.mxu1 %vm2543_vm9, %v4997_v37  ;;  %v4020_v36 = vpop.permute.xlu1 %4019 }
 0x1ac   : > { %6658 = vmatmul.mubr.msk.bf16.gmra.mrb[40].mxu1 %vm2543_vm9, %v4999_v29  ;;  %v4180_v48 = vsel %vm2469_vm7, %v4140_v20, %v4020_v36 }
 0x1ad   : > { %v3922_v41 = vpop.permute.xlu0 %3921  ;;  %v6557_v56 = vpop.f32.mrb[8].mxu0 }
 0x1ae   : > { %v6359_v31 = vpack.c.bf16 %v6557_v56, %v6557_v56  ;;  %v2642_v61 = vpop.f32.mrb[9].mxu0  ;;  %v2817_v6 = vmul.f32 %v6557_v56, %v6557_v56  ;;  %v2756_v59 = vsel %vm2469_vm7, %v6557_v56, 0.0  ;;  %v4137_v21 = vsel %vm2420_vm6, %v9634_v54, %v3922_v41 }
 0x1af   : > { %4904 = vrot.lane.b32.xlu0 %v6261_v34, %s6819_s27  ;;  %v8913_v62 = vpop.permute.xlu1 %4776  ;;  %v2752_v51 = vsel %vm2469_vm7, %v2642_v61, 0.0  ;;  %v2815_v25 = vmul.f32 %v2642_v61, %v2642_v61  ;;  %v6357_v52 = vpack.c.bf16 %v2642_v61, %v2642_v61  ;;  %v6558_v28 = vpop.f32.mrb[10].mxu0 }
 0x1b0   : > { %3048 = vst.msk [vmem:[%s8592_s11 + $0x28] sm:$0xf] %vm3037_vm10, %v6359_v31  ;;  %v2753_v50 = vadd.f32 %v2752_v51, %v8833_v17  ;;  %v2645_v5 = vpop.f32.mrb[11].mxu0  ;;  %v6360_v2 = vpack.c.bf16 %v6558_v28, %v6558_v28  ;;  %v2818_v17 = vmul.f32 %v6558_v28, %v6558_v28  ;;  %v2858_v30 = vsel %vm2469_vm7, %v2817_v6, 0.0 }
 0x1b1   : > { %v4018_v39 = vpop.permute.xlu0 %4017  ;;  %v2854_v7 = vsel %vm2469_vm7, %v2815_v25, 0.0  ;;  %3046 = vst.msk [vmem:[%s8592_s11 + $0x20] sm:$0xf] %vm3037_vm10, %v6357_v52  ;;  %v2754_v18 = vsel %vm2469_vm7, %v2645_v5, 0.0  ;;  %v2816_v45 = vmul.f32 %v2645_v5, %v2645_v5  ;;  %v6358_v46 = vpack.c.bf16 %v2645_v5, %v2645_v5 }
 0x1b2   : > { %v2855_v15 = vadd.f32 %v2854_v7, %v2853_v43  ;;  %v2755_v63 = vadd.f32 %v2754_v18, %v2753_v50  ;;  %3049 = vst.msk [vmem:[%s8592_s11 + $0x2c] sm:$0xf] %vm3037_vm10, %v6360_v2  ;;  %v4178_v58 = vsel %vm2469_vm7, %v4137_v21, %v4018_v39  ;;  %v2758_v53 = vsel %vm2469_vm7, %v6558_v28, 0.0 }
 0x1b3   : > { %v4779_v44 = vpop.permute.xlu1 %4778  ;;  %v2856_v1 = vsel %vm2469_vm7, %v2816_v45, 0.0  ;;  %3047 = vst.msk [vmem:[%s8592_s11 + $0x24] sm:$0xf] %vm3037_vm10, %v6358_v46  ;;  %v2860_v33 = vsel %vm2469_vm7, %v2818_v17, 0.0 }
 0x1b4   : > { %v6591_v49 = vpop.f32.mrb[8].mxu1  ;;  %v2757_v43 = vadd.f32 %v2756_v59, %v2755_v63  ;;  %v2857_v60 = vadd.f32 %v2856_v1, %v2855_v15  ;;  %v4928_v59 = vsel %vm2420_vm6, %v9612_v35, %v8913_v62 }
 0x1b5   : > { %v3481_v22 = vpop.f32.mrb[9].mxu1  ;;  %v4098_v27 = vpop.permute.xlu0 %4097  ;;  %v6391_v57 = vpack.c.bf16 %v6591_v49, %v6591_v49  ;;  %v3595_v37 = vsel %vm2469_vm7, %v6591_v49, 0.0  ;;  %v3656_v41 = vmul.f32 %v6591_v49, %v6591_v49 }
 0x1b6   : > { %v3591_v40 = vsel %vm2469_vm7, %v3481_v22, 0.0  ;;  %v6592_v9 = vpop.f32.mrb[10].mxu1  ;;  %v4210_v11 = vsel %vm2502_vm8, %v4178_v58, %v4098_v27  ;;  %v3654_v4 = vmul.f32 %v3481_v22, %v3481_v22  ;;  %v6389_v47 = vpack.c.bf16 %v3481_v22, %v3481_v22 }
 0x1b7   : > { %v3592_v10 = vadd.f32 %v3591_v40, %v8883_v3  ;;  %v3484_v13 = vpop.f32.mrb[11].mxu1  ;;  %6627 = vmatprep.mubr.msk.bf16.mxu0 %vm2543_vm9, %v4210_v11  ;;  %v4811_v32 = vpop.permute.xlu1 %4810  ;;  %v2859_v55 = vadd.f32 %v2858_v30, %v2857_v60  ;;  %6110 = vst.msk [vmem:[%s8592_s11 + $0xa8] sm:$0xf] %vm3037_vm10, %v6391_v57  ;;  %v6392_v29 = vpack.c.bf16 %v6592_v9, %v6592_v9  ;;  %v3597_v7 = vsel %vm2469_vm7, %v6592_v9, 0.0 }
 0x1b8   : > { %v3693_v3 = vsel %vm2469_vm7, %v3654_v4, 0.0  ;;  %6108 = vst.msk [vmem:[%s8592_s11 + $0xa0] sm:$0xf] %vm3037_vm10, %v6389_v47  ;;  %v3593_v36 = vsel %vm2469_vm7, %v3484_v13, 0.0  ;;  %v3655_v61 = vmul.f32 %v3484_v13, %v3484_v13  ;;  %v6390_v25 = vpack.c.bf16 %v3484_v13, %v3484_v13 }
 0x1b9   : > { %v4100_v34 = vpop.permute.xlu0 %4099  ;;  %v3694_v56 = vadd.f32 %v3693_v3, %v8892_v0  ;;  %v3594_v31 = vadd.f32 %v3593_v36, %v3592_v10  ;;  %6111 = vst.msk [vmem:[%s8592_s11 + $0xac] sm:$0xf] %vm3037_vm10, %v6392_v29  ;;  %v2759_v52 = vadd.f32 %v2758_v53, %v2757_v43  ;;  %v2861_v28 = vadd.f32 %v2860_v33, %v2859_v55  ;;  %v9635_v3 = vld [vmem:[#allocation14_spill] sm:$0xff] }
 0x1ba   : > { %v4212_v51 = vsel %vm2502_vm8, %v4180_v48, %v4100_v34  ;;  %v3657_v50 = vmul.f32 %v6592_v9, %v6592_v9  ;;  %v3695_v39 = vsel %vm2469_vm7, %v3655_v61, 0.0  ;;  %6109 = vst.msk [vmem:[%s8592_s11 + $0xa4] sm:$0xf] %vm3037_vm10, %v6390_v25  ;;  %v4931_v0 = vsel %vm2420_vm6, %v9611_v19, %v4779_v44 }
 0x1bb   : > { %6628 = vmatmul.mubr.msk.bf16.gmra.mrb[44].mxu0 %vm2543_vm9, %v4212_v51  ;;  %v4891_v6 = vpop.permute.xlu1 %4890  ;;  %v3596_v5 = vadd.f32 %v3595_v37, %v3594_v31  ;;  %v3696_v2 = vadd.f32 %v3695_v39, %v3694_v56  ;;  %v3697_v15 = vsel %vm2469_vm7, %v3656_v41, 0.0  ;;  %v4971_v17 = vsel %vm2469_vm7, %v4931_v0, %v4811_v32  ;;  %v9636_v56 = vld [vmem:[#allocation16_spill] sm:$0xff] }
 0x1bc   : > { %v3699_v20 = vsel %vm2469_vm7, %v3657_v50, 0.0  ;;  %v5003_v54 = vsel %vm2502_vm8, %v4971_v17, %v4891_v6 }
 0x1bd   : > { %v4809_v18 = vpop.permute.xlu0 %4808  ;;  %v8961_v63 = vadd.f32 %v3597_v7, %v3596_v5  ;;  %v3698_v45 = vadd.f32 %v3697_v15, %v3696_v2 }
 0x1be   : > { %v4969_v19 = vsel %vm2469_vm7, %v4928_v59, %v4809_v18 }
 0x1bf   : > { %v3928_v24 = vpop.permute.xlu1 %3927  ;;  %v8968_v46 = vadd.f32 %v3699_v20, %v3698_v45 }
 0x1c0   : > { %v4146_v29 = vsel %vm2420_vm6, %v9635_v3, %v3928_v24 }
 0x1c1   : > { %v4889_v44 = vpop.permute.xlu0 %4888 }
 0x1c2   : > { %v5001_v49 = vsel %vm2502_vm8, %v4969_v19, %v4889_v44 }
 0x1c3   : > { %6661 = vmatprep.mubr.msk.bf16.mxu1 %vm2543_vm9, %v5001_v49  ;;  %v4024_v21 = vpop.permute.xlu1 %4023 }
 0x1c4   : > { %v6561_v30 = vpop.f32.mrb[12].mxu0  ;;  %6662 = vmatmul.mubr.msk.bf16.gmra.mrb[44].mxu1 %vm2543_vm9, %v5003_v54  ;;  %v4184_v45 = vsel %vm2469_vm7, %v4146_v29, %v4024_v21 }
 0x1c5   : > { %v6363_v35 = vpack.c.bf16 %v6561_v30, %v6561_v30  ;;  %v2658_v62 = vpop.f32.mrb[13].mxu0  ;;  %v3926_v43 = vpop.permute.xlu0 %3925  ;;  %v2821_v4 = vmul.f32 %v6561_v30, %v6561_v30  ;;  %v2764_v53 = vsel %vm2469_vm7, %v6561_v30, 0.0 }
 0x1c6   : > { %v2760_v1 = vsel %vm2469_vm7, %v2658_v62, 0.0  ;;  %v2819_v22 = vmul.f32 %v2658_v62, %v2658_v62  ;;  %v6361_v58 = vpack.c.bf16 %v2658_v62, %v2658_v62  ;;  %v6562_v27 = vpop.f32.mrb[14].mxu0  ;;  %v4143_v31 = vsel %vm2420_vm6, %v9636_v56, %v3926_v43 }
 0x1c7   : > { %3052 = vst.msk [vmem:[%s8592_s11 + $0x38] sm:$0xf] %vm3037_vm10, %v6363_v35  ;;  %v2761_v60 = vadd.f32 %v2760_v1, %v2759_v52  ;;  %v2661_v57 = vpop.f32.mrb[15].mxu0  ;;  %v8978_v40 = vpop.permute.xlu1 %4780  ;;  %v6364_v11 = vpack.c.bf16 %v6562_v27, %v6562_v27  ;;  %v2766_v34 = vsel %vm2469_vm7, %v6562_v27, 0.0  ;;  %v2866_v61 = vsel %vm2469_vm7, %v2821_v4, 0.0 }
 0x1c8   : > { %v2862_v9 = vsel %vm2469_vm7, %v2819_v22, 0.0  ;;  %3050 = vst.msk [vmem:[%s8592_s11 + $0x30] sm:$0xf] %vm3037_vm10, %v6361_v58  ;;  %v2762_v10 = vsel %vm2469_vm7, %v2661_v57, 0.0  ;;  %v2820_v48 = vmul.f32 %v2661_v57, %v2661_v57  ;;  %v6362_v33 = vpack.c.bf16 %v2661_v57, %v2661_v57 }
 0x1c9   : > { %v2863_v47 = vadd.f32 %v2862_v9, %v2861_v28  ;;  %v2763_v13 = vadd.f32 %v2762_v10, %v2761_v60  ;;  %v4022_v32 = vpop.permute.xlu0 %4021  ;;  %3053 = vst.msk [vmem:[%s8592_s11 + $0x3c] sm:$0xf] %vm3037_vm10, %v6364_v11  ;;  %v2822_v51 = vmul.f32 %v6562_v27, %v6562_v27 }
 0x1ca   : > { %v2864_v37 = vsel %vm2469_vm7, %v2820_v48, 0.0  ;;  %3051 = vst.msk [vmem:[%s8592_s11 + $0x34] sm:$0xf] %vm3037_vm10, %v6362_v33  ;;  %v4182_v28 = vsel %vm2469_vm7, %v4143_v31, %v4022_v32 }
 0x1cb   : > { %v2765_v55 = vadd.f32 %v2764_v53, %v2763_v13  ;;  %v4783_v36 = vpop.permute.xlu1 %4782  ;;  %v2865_v41 = vadd.f32 %v2864_v37, %v2863_v47  ;;  %v2868_v17 = vsel %vm2469_vm7, %v2822_v51, 0.0  ;;  %v4934_v53 = vsel %vm2420_vm6, %v9616_v14, %v8978_v40 }
 0x1cc   : > { %v4937_v11 = vsel %vm2420_vm6, %v9615_v8, %v4783_v36 }
 0x1cd   : > { %v6595_v25 = vpop.f32.mrb[12].mxu1  ;;  %v8996_v52 = vadd.f32 %v2766_v34, %v2765_v55  ;;  %v4102_v6 = vpop.permute.xlu0 %4101  ;;  %v2867_v50 = vadd.f32 %v2866_v61, %v2865_v41 }
 0x1ce   : > { %v6395_v5 = vpack.c.bf16 %v6595_v25, %v6595_v25  ;;  %v3497_v39 = vpop.f32.mrb[13].mxu1  ;;  %v4214_v7 = vsel %vm2502_vm8, %v4182_v28, %v4102_v6  ;;  %v3660_v21 = vmul.f32 %v6595_v25, %v6595_v25 }
 0x1cf   : > { %v3599_v2 = vsel %vm2469_vm7, %v3497_v39, 0.0  ;;  %v3658_v0 = vmul.f32 %v3497_v39, %v3497_v39  ;;  %v6393_v18 = vpack.c.bf16 %v3497_v39, %v3497_v39  ;;  %v6596_v15 = vpop.f32.mrb[14].mxu1  ;;  %6631 = vmatprep.mubr.msk.bf16.mxu0 %vm2543_vm9, %v4214_v7  ;;  %v4815_v24 = vpop.permute.xlu1 %4814  ;;  %v2869_v22 = vadd.f32 %v2868_v17, %v2867_v50 }
 0x1d0   : > { %6114 = vst.msk [vmem:[%s8592_s11 + $0xb8] sm:$0xf] %vm3037_vm10, %v6395_v5  ;;  %v3600_v20 = vadd.f32 %v3599_v2, %v8961_v63  ;;  %v3500_v59 = vpop.f32.mrb[15].mxu1  ;;  %v6396_v44 = vpack.c.bf16 %v6596_v15, %v6596_v15  ;;  %v3603_v63 = vsel %vm2469_vm7, %v6595_v25, 0.0  ;;  %v3661_v27 = vmul.f32 %v6596_v15, %v6596_v15 }
 0x1d1   : > { %v3701_v19 = vsel %vm2469_vm7, %v3658_v0, 0.0  ;;  %6112 = vst.msk [vmem:[%s8592_s11 + $0xb0] sm:$0xf] %vm3037_vm10, %v6393_v18  ;;  %v3601_v49 = vsel %vm2469_vm7, %v3500_v59, 0.0  ;;  %v4104_v54 = vpop.permute.xlu0 %4103  ;;  %v3659_v62 = vmul.f32 %v3500_v59, %v3500_v59  ;;  %v6394_v1 = vpack.c.bf16 %v3500_v59, %v3500_v59  ;;  %v9637_v59 = vld [vmem:[#allocation20_spill] sm:$0xff] }
 0x1d2   : > { %v3702_v30 = vadd.f32 %v3701_v19, %v8968_v46  ;;  %v3602_v35 = vadd.f32 %v3601_v49, %v3600_v20  ;;  %v4216_v43 = vsel %vm2502_vm8, %v4184_v45, %v4104_v54  ;;  %6115 = vst.msk [vmem:[%s8592_s11 + $0xbc] sm:$0xf] %vm3037_vm10, %v6396_v44  ;;  %v3605_v9 = vsel %vm2469_vm7, %v6596_v15, 0.0  ;;  %v9638_v54 = vld [vmem:[#allocation21_spill] sm:$0xff] }
 0x1d3   : > { %6632 = vmatmul.mubr.msk.bf16.gmra.mrb[48].mxu0 %vm2543_vm9, %v4216_v43  ;;  %v4895_v58 = vpop.permute.xlu1 %4894  ;;  %v3703_v57 = vsel %vm2469_vm7, %v3659_v62, 0.0  ;;  %6113 = vst.msk [vmem:[%s8592_s11 + $0xb4] sm:$0xf] %vm3037_vm10, %v6394_v1  ;;  %v3705_v4 = vsel %vm2469_vm7, %v3660_v21, 0.0  ;;  %v3707_v32 = vsel %vm2469_vm7, %v3661_v27, 0.0  ;;  %v4975_v33 = vsel %vm2469_vm7, %v4937_v11, %v4815_v24 }
 0x1d4   : > { %v3604_v60 = vadd.f32 %v3603_v63, %v3602_v35  ;;  %v3704_v46 = vadd.f32 %v3703_v57, %v3702_v30  ;;  %v5007_v29 = vsel %vm2502_vm8, %v4975_v33, %v4895_v58 }
 0x1d5   : > { %v4813_v10 = vpop.permute.xlu0 %4812 }
 0x1d6   : > { %v9024_v47 = vadd.f32 %v3605_v9, %v3604_v60  ;;  %v3706_v13 = vadd.f32 %v3705_v4, %v3704_v46  ;;  %v4973_v8 = vsel %vm2469_vm7, %v4934_v53, %v4813_v10 }
 0x1d7   : > { %v3932_v48 = vpop.permute.xlu1 %3931 }
 0x1d8   : > { %v9031_v55 = vadd.f32 %v3707_v32, %v3706_v13  ;;  %v4152_v17 = vsel %vm2420_vm6, %v9637_v59, %v3932_v48 }
 0x1d9   : > { %v4893_v37 = vpop.permute.xlu0 %4892 }
 0x1da   : > { %v5005_v3 = vsel %vm2502_vm8, %v4973_v8, %v4893_v37 }
 0x1db   : > { %6665 = vmatprep.mubr.msk.bf16.mxu1 %vm2543_vm9, %v5005_v3  ;;  %v4028_v36 = vpop.permute.xlu1 %4027 }
 0x1dc   : > { %v6565_v34 = vpop.f32.mrb[16].mxu0  ;;  %6666 = vmatmul.mubr.msk.bf16.gmra.mrb[48].mxu1 %vm2543_vm9, %v5007_v29  ;;  %v4188_v10 = vsel %vm2469_vm7, %v4152_v17, %v4028_v36 }
 0x1dd   : > { %v6367_v14 = vpack.c.bf16 %v6565_v34, %v6565_v34  ;;  %v2674_v40 = vpop.f32.mrb[17].mxu0  ;;  %v3930_v41 = vpop.permute.xlu0 %3929  ;;  %v2825_v7 = vmul.f32 %v6565_v34, %v6565_v34  ;;  %v2772_v45 = vsel %vm2469_vm7, %v6565_v34, 0.0 }
 0x1de   : > { %v2768_v56 = vsel %vm2469_vm7, %v2674_v40, 0.0  ;;  %v2823_v31 = vmul.f32 %v2674_v40, %v2674_v40  ;;  %v6365_v61 = vpack.c.bf16 %v2674_v40, %v2674_v40  ;;  %v6566_v51 = vpop.f32.mrb[18].mxu0  ;;  %v4149_v21 = vsel %vm2420_vm6, %v9638_v54, %v3930_v41 }
 0x1df   : > { %3056 = vst.msk [vmem:[%s8592_s11 + $0x48] sm:$0xf] %vm3037_vm10, %v6367_v14  ;;  %v2769_v25 = vadd.f32 %v2768_v56, %v8996_v52  ;;  %v2677_v28 = vpop.f32.mrb[19].mxu0  ;;  %v9042_v6 = vpop.permute.xlu1 %4784  ;;  %v6368_v5 = vpack.c.bf16 %v6566_v51, %v6566_v51  ;;  %v2774_v44 = vsel %vm2469_vm7, %v6566_v51, 0.0  ;;  %v2874_v30 = vsel %vm2469_vm7, %v2825_v7, 0.0 }
 0x1e0   : > { %v2870_v50 = vsel %vm2469_vm7, %v2823_v31, 0.0  ;;  %3054 = vst.msk [vmem:[%s8592_s11 + $0x40] sm:$0xf] %vm3037_vm10, %v6365_v61  ;;  %v2770_v39 = vsel %vm2469_vm7, %v2677_v28, 0.0  ;;  %v2824_v18 = vmul.f32 %v2677_v28, %v2677_v28  ;;  %v6366_v52 = vpack.c.bf16 %v2677_v28, %v2677_v28 }
 0x1e1   : > { %v2871_v2 = vadd.f32 %v2870_v50, %v2869_v22  ;;  %v2771_v0 = vadd.f32 %v2770_v39, %v2769_v25  ;;  %v4026_v15 = vpop.permute.xlu0 %4025  ;;  %3057 = vst.msk [vmem:[%s8592_s11 + $0x4c] sm:$0xf] %vm3037_vm10, %v6368_v5  ;;  %v2826_v35 = vmul.f32 %v6566_v51, %v6566_v51 }
 0x1e2   : > { %v2872_v20 = vsel %vm2469_vm7, %v2824_v18, 0.0  ;;  %3055 = vst.msk [vmem:[%s8592_s11 + $0x44] sm:$0xf] %vm3037_vm10, %v6366_v52  ;;  %v4186_v63 = vsel %vm2469_vm7, %v4149_v21, %v4026_v15  ;;  %v4940_v18 = vsel %vm2420_vm6, %v7627_v16, %v9042_v6 }
 0x1e3   : > { %v2773_v24 = vadd.f32 %v2772_v45, %v2771_v0  ;;  %v4787_v19 = vpop.permute.xlu1 %4786  ;;  %v2873_v49 = vadd.f32 %v2872_v20, %v2871_v2  ;;  %v2876_v32 = vsel %vm2469_vm7, %v2826_v35, 0.0 }
 0x1e4   : > { %v4943_v28 = vsel %vm2420_vm6, %v7630_v23, %v4787_v19 }
 0x1e5   : > { %v6599_v62 = vpop.f32.mrb[16].mxu1  ;;  %v9060_v43 = vadd.f32 %v2774_v44, %v2773_v24  ;;  %v4106_v1 = vpop.permute.xlu0 %4105  ;;  %v2875_v22 = vadd.f32 %v2874_v30, %v2873_v49 }
 0x1e6   : > { %v6399_v58 = vpack.c.bf16 %v6599_v62, %v6599_v62  ;;  %v3513_v27 = vpop.f32.mrb[17].mxu1  ;;  %v4218_v60 = vsel %vm2502_vm8, %v4186_v63, %v4106_v1  ;;  %v3664_v3 = vmul.f32 %v6599_v62, %v6599_v62 }
 0x1e7   : > { %v3607_v57 = vsel %vm2469_vm7, %v3513_v27, 0.0  ;;  %v3662_v9 = vmul.f32 %v3513_v27, %v3513_v27  ;;  %v6397_v46 = vpack.c.bf16 %v3513_v27, %v3513_v27  ;;  %v6600_v11 = vpop.f32.mrb[18].mxu1  ;;  %6635 = vmatprep.mubr.msk.bf16.mxu0 %vm2543_vm9, %v4218_v60  ;;  %v4819_v4 = vpop.permute.xlu1 %4818  ;;  %v2877_v41 = vadd.f32 %v2876_v32, %v2875_v22 }
 0x1e8   : > { %6118 = vst.msk [vmem:[%s8592_s11 + $0xc8] sm:$0xf] %vm3037_vm10, %v6399_v58  ;;  %v3608_v13 = vadd.f32 %v3607_v57, %v9024_v47  ;;  %v3516_v48 = vpop.f32.mrb[19].mxu1  ;;  %v6400_v33 = vpack.c.bf16 %v6600_v11, %v6600_v11  ;;  %v3611_v47 = vsel %vm2469_vm7, %v6599_v62, 0.0  ;;  %v3665_v31 = vmul.f32 %v6600_v11, %v6600_v11 }
 0x1e9   : > { %v3709_v53 = vsel %vm2469_vm7, %v3662_v9, 0.0  ;;  %6116 = vst.msk [vmem:[%s8592_s11 + $0xc0] sm:$0xf] %vm3037_vm10, %v6397_v46  ;;  %v3609_v8 = vsel %vm2469_vm7, %v3516_v48, 0.0  ;;  %v4108_v37 = vpop.permute.xlu0 %4107  ;;  %v3663_v34 = vmul.f32 %v3516_v48, %v3516_v48  ;;  %v6398_v40 = vpack.c.bf16 %v3516_v48, %v3516_v48 }
 0x1ea   : > { %v3710_v29 = vadd.f32 %v3709_v53, %v9031_v55  ;;  %v3610_v36 = vadd.f32 %v3609_v8, %v3608_v13  ;;  %v4220_v14 = vsel %vm2502_vm8, %v4188_v10, %v4108_v37  ;;  %6119 = vst.msk [vmem:[%s8592_s11 + $0xcc] sm:$0xf] %vm3037_vm10, %v6400_v33  ;;  %v3613_v25 = vsel %vm2469_vm7, %v6600_v11, 0.0  ;;  %v9639_v10 = vld [vmem:[#allocation24_spill] sm:$0xff] }
 0x1eb   : > { %6636 = vmatmul.mubr.msk.bf16.gmra.mrb[52].mxu0 %vm2543_vm9, %v4220_v14  ;;  %v4899_v56 = vpop.permute.xlu1 %4898  ;;  %v3711_v51 = vsel %vm2469_vm7, %v3663_v34, 0.0  ;;  %6117 = vst.msk [vmem:[%s8592_s11 + $0xc4] sm:$0xf] %vm3037_vm10, %v6398_v40  ;;  %v3713_v5 = vsel %vm2469_vm7, %v3664_v3, 0.0  ;;  %v3715_v0 = vsel %vm2469_vm7, %v3665_v31, 0.0  ;;  %v4979_v15 = vsel %vm2469_vm7, %v4943_v28, %v4819_v4  ;;  %v9640_v3 = vld [vmem:[#allocation23_spill] sm:$0xff] }
 0x1ec   : > { %v3612_v61 = vadd.f32 %v3611_v47, %v3610_v36  ;;  %v3712_v55 = vadd.f32 %v3711_v51, %v3710_v29  ;;  %v5011_v20 = vsel %vm2502_vm8, %v4979_v15, %v4899_v56 }
 0x1ed   : > { %v4817_v50 = vpop.permute.xlu0 %4816 }
 0x1ee   : > { %v9088_v39 = vadd.f32 %v3613_v25, %v3612_v61  ;;  %v3714_v7 = vadd.f32 %v3713_v5, %v3712_v55  ;;  %v4977_v52 = vsel %vm2469_vm7, %v4940_v18, %v4817_v50 }
 0x1ef   : > { %v3936_v2 = vpop.permute.xlu1 %3935 }
 0x1f0   : > { %v9095_v45 = vadd.f32 %v3715_v0, %v3714_v7  ;;  %v4158_v29 = vsel %vm2420_vm6, %v9640_v3, %v3936_v2 }
 0x1f1   : > { %v4897_v23 = vpop.permute.xlu0 %4896 }
 0x1f2   : > { %v5009_v24 = vsel %vm2502_vm8, %v4977_v52, %v4897_v23 }
 0x1f3   : > { %6669 = vmatprep.mubr.msk.bf16.mxu1 %vm2543_vm9, %v5009_v24  ;;  %v4032_v59 = vpop.permute.xlu1 %4031 }
 0x1f4   : > { %6670 = vmatmul.mubr.msk.bf16.gmra.mrb[52].mxu1 %vm2543_vm9, %v5011_v20  ;;  %v4192_v28 = vsel %vm2469_vm7, %v4158_v29, %v4032_v59 }
 0x1f5   : > { %v3934_v17 = vpop.permute.xlu0 %3933  ;;  %v6569_v16 = vpop.f32.mrb[20].mxu0 }
 0x1f6   : > { %v6371_v6 = vpack.c.bf16 %v6569_v16, %v6569_v16  ;;  %v2690_v19 = vpop.f32.mrb[21].mxu0  ;;  %v2829_v27 = vmul.f32 %v6569_v16, %v6569_v16  ;;  %v2780_v11 = vsel %vm2469_vm7, %v6569_v16, 0.0  ;;  %v4155_v4 = vsel %vm2420_vm6, %v9639_v10, %v3934_v17 }
 0x1f7   : > { %v9102_v44 = vpop.permute.xlu1 %4788  ;;  %v2776_v49 = vsel %vm2469_vm7, %v2690_v19, 0.0  ;;  %v2827_v54 = vmul.f32 %v2690_v19, %v2690_v19  ;;  %v6369_v21 = vpack.c.bf16 %v2690_v19, %v2690_v19  ;;  %v6570_v30 = vpop.f32.mrb[22].mxu0 }
 0x1f8   : > { %3060 = vst.msk [vmem:[%s8592_s11 + $0x58] sm:$0xf] %vm3037_vm10, %v6371_v6  ;;  %v2777_v35 = vadd.f32 %v2776_v49, %v9060_v43  ;;  %v2693_v62 = vpop.f32.mrb[23].mxu0  ;;  %v6372_v22 = vpack.c.bf16 %v6570_v30, %v6570_v30  ;;  %v2782_v33 = vsel %vm2469_vm7, %v6570_v30, 0.0  ;;  %v2830_v8 = vmul.f32 %v6570_v30, %v6570_v30 }
 0x1f9   : > { %v4030_v63 = vpop.permute.xlu0 %4029  ;;  %v2878_v1 = vsel %vm2469_vm7, %v2827_v54, 0.0  ;;  %3058 = vst.msk [vmem:[%s8592_s11 + $0x50] sm:$0xf] %vm3037_vm10, %v6369_v21  ;;  %v2778_v58 = vsel %vm2469_vm7, %v2693_v62, 0.0  ;;  %v2828_v9 = vmul.f32 %v2693_v62, %v2693_v62  ;;  %v6370_v43 = vpack.c.bf16 %v2693_v62, %v2693_v62 }
 0x1fa   : > { %v2879_v60 = vadd.f32 %v2878_v1, %v2877_v41  ;;  %v2779_v57 = vadd.f32 %v2778_v58, %v2777_v35  ;;  %3061 = vst.msk [vmem:[%s8592_s11 + $0x5c] sm:$0xf] %vm3037_vm10, %v6372_v22  ;;  %v4190_v32 = vsel %vm2469_vm7, %v4155_v4, %v4030_v63  ;;  %v2882_v34 = vsel %vm2469_vm7, %v2829_v27, 0.0 }
 0x1fb   : > { %v4791_v46 = vpop.permute.xlu1 %4790  ;;  %v2880_v48 = vsel %vm2469_vm7, %v2828_v9, 0.0  ;;  %3059 = vst.msk [vmem:[%s8592_s11 + $0x54] sm:$0xf] %vm3037_vm10, %v6370_v43  ;;  %v2884_v50 = vsel %vm2469_vm7, %v2830_v8, 0.0  ;;  %v4946_v22 = vsel %vm2420_vm6, %v9622_v42, %v9102_v44 }
 0x1fc   : > { %v2781_v13 = vadd.f32 %v2780_v11, %v2779_v57  ;;  %v2881_v37 = vadd.f32 %v2880_v48, %v2879_v60  ;;  %v4949_v19 = vsel %vm2420_vm6, %v9621_v26, %v4791_v46 }
 0x1fd   : > { %v4110_v53 = vpop.permute.xlu0 %4109 }
 0x1fe   : > { %v4222_v36 = vsel %vm2502_vm8, %v4190_v32, %v4110_v53  ;;  %v6603_v14 = vpop.f32.mrb[20].mxu1  ;;  %v9126_v47 = vadd.f32 %v2782_v33, %v2781_v13  ;;  %v2883_v41 = vadd.f32 %v2882_v34, %v2881_v37  ;;  %v9641_v32 = vld [vmem:[#allocation30_spill] sm:$0xff] }
 0x1ff   : > { %6639 = vmatprep.mubr.msk.bf16.mxu0 %vm2543_vm9, %v4222_v36  ;;  %v4823_v40 = vpop.permute.xlu1 %4822  ;;  %v6403_v56 = vpack.c.bf16 %v6603_v14, %v6603_v14  ;;  %v3529_v31 = vpop.f32.mrb[21].mxu1  ;;  %v3668_v24 = vmul.f32 %v6603_v14, %v6603_v14  ;;  %v9642_v36 = vld [vmem:[#allocation29_spill] sm:$0xff] }
 0x200   : > { %v3615_v61 = vsel %vm2469_vm7, %v3529_v31, 0.0  ;;  %v3666_v51 = vmul.f32 %v3529_v31, %v3529_v31  ;;  %v6401_v25 = vpack.c.bf16 %v3529_v31, %v3529_v31  ;;  %v6604_v55 = vpop.f32.mrb[22].mxu1  ;;  %v2885_v6 = vadd.f32 %v2884_v50, %v2883_v41 }
 0x201   : > { %v4112_v5 = vpop.permute.xlu0 %4111  ;;  %6122 = vst.msk [vmem:[%s8592_s11 + $0xd8] sm:$0xf] %vm3037_vm10, %v6403_v56  ;;  %v3616_v7 = vadd.f32 %v3615_v61, %v9088_v39  ;;  %v3532_v2 = vpop.f32.mrb[23].mxu1  ;;  %v6404_v15 = vpack.c.bf16 %v6604_v55, %v6604_v55  ;;  %v3619_v39 = vsel %vm2469_vm7, %v6603_v14, 0.0  ;;  %v3669_v54 = vmul.f32 %v6604_v55, %v6604_v55 }
 0x202   : > { %v4224_v0 = vsel %vm2502_vm8, %v4192_v28, %v4112_v5  ;;  %v3717_v18 = vsel %vm2469_vm7, %v3666_v51, 0.0  ;;  %6120 = vst.msk [vmem:[%s8592_s11 + $0xd0] sm:$0xf] %vm3037_vm10, %v6401_v25  ;;  %v3617_v52 = vsel %vm2469_vm7, %v3532_v2, 0.0  ;;  %v3667_v17 = vmul.f32 %v3532_v2, %v3532_v2 }
 0x203   : > { %6640 = vmatmul.mubr.msk.bf16.gmra.mrb[56].mxu0 %vm2543_vm9, %v4224_v0  ;;  %v4903_v23 = vpop.permute.xlu1 %4902  ;;  %v3718_v20 = vadd.f32 %v3717_v18, %v9095_v45  ;;  %v3618_v59 = vadd.f32 %v3617_v52, %v3616_v7  ;;  %6123 = vst.msk [vmem:[%s8592_s11 + $0xdc] sm:$0xf] %vm3037_vm10, %v6404_v15  ;;  %v6402_v16 = vpack.c.bf16 %v3532_v2, %v3532_v2  ;;  %v3621_v35 = vsel %vm2469_vm7, %v6604_v55, 0.0 }
 0x204   : > { %v3719_v30 = vsel %vm2469_vm7, %v3667_v17, 0.0  ;;  %v3721_v45 = vsel %vm2469_vm7, %v3668_v24, 0.0  ;;  %v4983_v26 = vsel %vm2469_vm7, %v4949_v19, %v4823_v40  ;;  %v3723_v57 = vsel %vm2469_vm7, %v3669_v54, 0.0 }
 0x205   : > { %v4821_v49 = vpop.permute.xlu0 %4820  ;;  %v3620_v21 = vadd.f32 %v3619_v39, %v3618_v59  ;;  %v3720_v62 = vadd.f32 %v3719_v30, %v3718_v20  ;;  %6121 = vst.msk [vmem:[%s8592_s11 + $0xd4] sm:$0xf] %vm3037_vm10, %v6402_v16  ;;  %v5015_v11 = vsel %vm2502_vm8, %v4983_v26, %v4903_v23 }
 0x206   : > { %v4981_v27 = vsel %vm2469_vm7, %v4946_v22, %v4821_v49 }
 0x207   : > { %v3940_v63 = vpop.permute.xlu1 %3939  ;;  %v9152_v1 = vadd.f32 %v3621_v35, %v3620_v21  ;;  %v3722_v58 = vadd.f32 %v3721_v45, %v3720_v62 }
 0x208   : > { %v4164_v34 = vsel %vm2420_vm6, %v9642_v36, %v3940_v63 }
 0x209   : > { %v4901_v60 = vpop.permute.xlu0 %4900  ;;  %v9161_v46 = vadd.f32 %v3723_v57, %v3722_v58 }
 0x20a   : > { %v5013_v9 = vsel %vm2502_vm8, %v4981_v27, %v4901_v60 }
 0x20b   : > { %6673 = vmatprep.mubr.msk.bf16.mxu1 %vm2543_vm9, %v5013_v9  ;;  %v4036_v43 = vpop.permute.xlu1 %4035 }
 0x20c   : > { %6674 = vmatmul.mubr.msk.bf16.gmra.mrb[56].mxu1 %vm2543_vm9, %v5015_v11  ;;  %v4196_v2 = vsel %vm2469_vm7, %v4164_v34, %v4036_v43 }
 0x20d   : > { %v3938_v42 = vpop.permute.xlu0 %3937 }
 0x20e   : > { %v4161_v53 = vsel %vm2420_vm6, %v9641_v32, %v3938_v42 }
 0x20f   : > { %v4793_v44 = vpop.permute.xlu1 %4792 }
 0x211   : > { %v4034_v10 = vpop.permute.xlu0 %4033 }
 0x212   : > { %v6573_v4 = vpop.f32.mrb[24].mxu0  ;;  %v4194_v14 = vsel %vm2469_vm7, %v4161_v53, %v4034_v10 }
 0x213   : > { %v6375_v13 = vpack.c.bf16 %v6573_v4, %v6573_v4  ;;  %v2706_v48 = vpop.f32.mrb[25].mxu0  ;;  %v4795_v33 = vpop.permute.xlu1 %4794  ;;  %v2833_v55 = vmul.f32 %v6573_v4, %v6573_v4  ;;  %v2788_v7 = vsel %vm2469_vm7, %v6573_v4, 0.0 }
 0x214   : > { %v2784_v8 = vsel %vm2469_vm7, %v2706_v48, 0.0  ;;  %v2831_v37 = vmul.f32 %v2706_v48, %v2706_v48  ;;  %v6373_v3 = vpack.c.bf16 %v2706_v48, %v2706_v48  ;;  %v6574_v29 = vpop.f32.mrb[26].mxu0  ;;  %v4955_v17 = vsel %vm2420_vm6, %v7929_v38, %v4795_v33 }
 0x215   : > { %v4114_v40 = vpop.permute.xlu0 %4113  ;;  %3064 = vst.msk [vmem:[%s8592_s11 + $0x68] sm:$0xf] %vm3037_vm10, %v6375_v13  ;;  %v2785_v41 = vadd.f32 %v2784_v8, %v9126_v47  ;;  %v2709_v56 = vpop.f32.mrb[27].mxu0  ;;  %v6376_v51 = vpack.c.bf16 %v6574_v29, %v6574_v29  ;;  %v2790_v23 = vsel %vm2469_vm7, %v6574_v29, 0.0  ;;  %v2834_v24 = vmul.f32 %v6574_v29, %v6574_v29 }
 0x216   : > { %v4226_v31 = vsel %vm2502_vm8, %v4194_v14, %v4114_v40  ;;  %v2886_v61 = vsel %vm2469_vm7, %v2831_v37, 0.0  ;;  %3062 = vst.msk [vmem:[%s8592_s11 + $0x60] sm:$0xf] %vm3037_vm10, %v6373_v3  ;;  %v2786_v25 = vsel %vm2469_vm7, %v2709_v56, 0.0  ;;  %v2832_v5 = vmul.f32 %v2709_v56, %v2709_v56 }
 0x217   : > { %v2887_v28 = vadd.f32 %v2886_v61, %v2885_v6  ;;  %6643 = vmatprep.mubr.msk.bf16.mxu0 %vm2543_vm9, %v4226_v31  ;;  %v2787_v50 = vadd.f32 %v2786_v25, %v2785_v41  ;;  %3065 = vst.msk [vmem:[%s8592_s11 + $0x6c] sm:$0xf] %vm3037_vm10, %v6376_v51  ;;  %v6374_v47 = vpack.c.bf16 %v2709_v56, %v2709_v56  ;;  %v4827_v52 = vpop.permute.xlu1 %4826  ;;  %v2890_v39 = vsel %vm2469_vm7, %v2833_v55, 0.0 }
 0x218   : > { %v2888_v18 = vsel %vm2469_vm7, %v2832_v5, 0.0  ;;  %v4952_v38 = vsel %vm2420_vm6, %v7920_v12, %v4793_v44  ;;  %v4987_v63 = vsel %vm2469_vm7, %v4955_v17, %v4827_v52  ;;  %v2892_v22 = vsel %vm2469_vm7, %v2834_v24, 0.0 }
 0x219   : > { %v2789_v0 = vadd.f32 %v2788_v7, %v2787_v50  ;;  %v4116_v15 = vpop.permute.xlu0 %4115  ;;  %v2889_v20 = vadd.f32 %v2888_v18, %v2887_v28  ;;  %3063 = vst.msk [vmem:[%s8592_s11 + $0x64] sm:$0xf] %vm3037_vm10, %v6374_v47 }
 0x21a   : > { %v4228_v59 = vsel %vm2502_vm8, %v4196_v2, %v4116_v15 }
 0x21b   : > { %6644 = vmatmul.mubr.msk.bf16.gmra.mrb[60].mxu0 %vm2543_vm9, %v4228_v59  ;;  %v6607_v16 = vpop.f32.mrb[24].mxu1  ;;  %v2791_v6 = vadd.f32 %v2790_v23, %v2789_v0  ;;  %v2891_v19 = vadd.f32 %v2890_v39, %v2889_v20  ;;  %v4907_v12 = vpop.permute.xlu1 %4906 }
 0x21c   : > { %v3545_v49 = vpop.f32.mrb[25].mxu1  ;;  %v6407_v21 = vpack.c.bf16 %v6607_v16, %v6607_v16  ;;  %v3672_v27 = vmul.f32 %v6607_v16, %v6607_v16  ;;  %v3627_v10 = vsel %vm2469_vm7, %v6607_v16, 0.0 }
 0x21d   : > { %v4825_v54 = vpop.permute.xlu0 %4824  ;;  %v3623_v30 = vsel %vm2469_vm7, %v3545_v49, 0.0  ;;  %v3670_v35 = vmul.f32 %v3545_v49, %v3545_v49  ;;  %v6405_v62 = vpack.c.bf16 %v3545_v49, %v3545_v49  ;;  %v6608_v45 = vpop.f32.mrb[26].mxu1  ;;  %v2893_v13 = vadd.f32 %v2892_v22, %v2891_v19 }
 0x21e   : > { %v3624_v26 = vadd.f32 %v3623_v30, %v9152_v1  ;;  %v3548_v58 = vpop.f32.mrb[27].mxu1  ;;  %6126 = vst.msk [vmem:[%s8592_s11 + $0xe8] sm:$0xf] %vm3037_vm10, %v6407_v21  ;;  %v6408_v57 = vpack.c.bf16 %v6608_v45, %v6608_v45  ;;  %v4985_v1 = vsel %vm2469_vm7, %v4952_v38, %v4825_v54  ;;  %v3673_v32 = vmul.f32 %v6608_v45, %v6608_v45 }
 0x21f   : > { %v3725_v60 = vsel %vm2469_vm7, %v3670_v35, 0.0  ;;  %6124 = vst.msk [vmem:[%s8592_s11 + $0xe0] sm:$0xf] %vm3037_vm10, %v6405_v62  ;;  %v3625_v9 = vsel %vm2469_vm7, %v3548_v58, 0.0  ;;  %v3671_v42 = vmul.f32 %v3548_v58, %v3548_v58  ;;  %v6406_v44 = vpack.c.bf16 %v3548_v58, %v3548_v58 }
 0x220   : > { %v3726_v11 = vadd.f32 %v3725_v60, %v9161_v46  ;;  %v3626_v43 = vadd.f32 %v3625_v9, %v3624_v26  ;;  %6127 = vst.msk [vmem:[%s8592_s11 + $0xec] sm:$0xf] %vm3037_vm10, %v6408_v57  ;;  %v5019_v46 = vsel %vm2502_vm8, %v4987_v63, %v4907_v12  ;;  %v3629_v8 = vsel %vm2469_vm7, %v6608_v45, 0.0 }
 0x221   : > { %v4905_v4 = vpop.permute.xlu0 %4904  ;;  %v3727_v33 = vsel %vm2469_vm7, %v3671_v42, 0.0  ;;  %6125 = vst.msk [vmem:[%s8592_s11 + $0xe4] sm:$0xf] %vm3037_vm10, %v6406_v44  ;;  %v3729_v3 = vsel %vm2469_vm7, %v3672_v27, 0.0  ;;  %v3731_v34 = vsel %vm2469_vm7, %v3673_v32, 0.0 }
 0x222   : > { %v5017_v48 = vsel %vm2502_vm8, %v4985_v1, %v4905_v4  ;;  %v3628_v53 = vadd.f32 %v3627_v10, %v3626_v43  ;;  %v3728_v37 = vadd.f32 %v3727_v33, %v3726_v11 }
 0x223   : > { %6677 = vmatprep.mubr.msk.bf16.mxu1 %vm2543_vm9, %v5017_v48 }
 0x224   : > { %6678 = vmatmul.mubr.msk.bf16.gmra.mrb[60].mxu1 %vm2543_vm9, %v5019_v46  ;;  %v3630_v29 = vadd.f32 %v3629_v8, %v3628_v53  ;;  %v3730_v36 = vadd.f32 %v3729_v3, %v3728_v37 }
 0x226   : > { %v3732_v14 = vadd.f32 %v3731_v34, %v3730_v36 }
 0x22e   : > { %v6577_v40 = vpop.f32.mrb[28].mxu0 }
 0x22f   : > { %v6379_v41 = vpack.c.bf16 %v6577_v40, %v6577_v40  ;;  %v2722_v56 = vpop.f32.mrb[29].mxu0  ;;  %v2837_v55 = vmul.f32 %v6577_v40, %v6577_v40  ;;  %v2796_v52 = vsel %vm2469_vm7, %v6577_v40, 0.0 }
 0x230   : > { %v2792_v31 = vsel %vm2469_vm7, %v2722_v56, 0.0  ;;  %v2835_v61 = vmul.f32 %v2722_v56, %v2722_v56  ;;  %v6377_v51 = vpack.c.bf16 %v2722_v56, %v2722_v56  ;;  %v6578_v25 = vpop.f32.mrb[30].mxu0 }
 0x231   : > { %3068 = vst.msk [vmem:[%s8592_s11 + $0x78] sm:$0xf] %vm3037_vm10, %v6379_v41  ;;  %v2793_v28 = vadd.f32 %v2792_v31, %v2791_v6  ;;  %v2725_v50 = vpop.f32.mrb[31].mxu0  ;;  %v6380_v7 = vpack.c.bf16 %v6578_v25, %v6578_v25  ;;  %v2838_v23 = vmul.f32 %v6578_v25, %v6578_v25  ;;  %v2898_v17 = vsel %vm2469_vm7, %v2837_v55, 0.0 }
 0x232   : > { %v2894_v5 = vsel %vm2469_vm7, %v2835_v61, 0.0  ;;  %3066 = vst.msk [vmem:[%s8592_s11 + $0x70] sm:$0xf] %vm3037_vm10, %v6377_v51  ;;  %v2794_v47 = vsel %vm2469_vm7, %v2725_v50, 0.0  ;;  %v2836_v2 = vmul.f32 %v2725_v50, %v2725_v50  ;;  %v6378_v15 = vpack.c.bf16 %v2725_v50, %v2725_v50 }
 0x233   : > { %v2895_v0 = vadd.f32 %v2894_v5, %v2893_v13  ;;  %v2795_v18 = vadd.f32 %v2794_v47, %v2793_v28  ;;  %3069 = vst.msk [vmem:[%s8592_s11 + $0x7c] sm:$0xf] %vm3037_vm10, %v6380_v7  ;;  %v2798_v39 = vsel %vm2469_vm7, %v6578_v25, 0.0  ;;  %v2900_v49 = vsel %vm2469_vm7, %v2838_v23, 0.0 }
 0x234   : > { %v2896_v24 = vsel %vm2469_vm7, %v2836_v2, 0.0  ;;  %3067 = vst.msk [vmem:[%s8592_s11 + $0x74] sm:$0xf] %vm3037_vm10, %v6378_v15 }
 0x235   : > { %v2797_v20 = vadd.f32 %v2796_v52, %v2795_v18  ;;  %v2897_v59 = vadd.f32 %v2896_v24, %v2895_v0 }
 0x237   : > { %v2799_v16 = vadd.f32 %v2798_v39, %v2797_v20  ;;  %v2899_v6 = vadd.f32 %v2898_v17, %v2897_v59  ;;  %v6611_v19 = vpop.f32.mrb[28].mxu1 }
 0x238   : > { %v6411_v54 = vpack.c.bf16 %v6611_v19, %v6611_v19  ;;  %v3561_v21 = vpop.f32.mrb[29].mxu1  ;;  %v3676_v60 = vmul.f32 %v6611_v19, %v6611_v19  ;;  %v3635_v1 = vsel %vm2469_vm7, %v6611_v19, 0.0 }
 0x239   : > { %v2800_v30 = vrot.slane %v2799_v16, 4  ;;  %v2901_v35 = vadd.f32 %v2900_v49, %v2899_v6  ;;  %v3631_v62 = vsel %vm2469_vm7, %v3561_v21, 0.0  ;;  %v3674_v45 = vmul.f32 %v3561_v21, %v3561_v21  ;;  %v6612_v38 = vpop.f32.mrb[30].mxu1 }
 0x23a   : > { %6130 = vst.msk [vmem:[%s8592_s11 + $0xf8] sm:$0xf] %vm3037_vm10, %v6411_v54  ;;  %v3632_v63 = vadd.f32 %v3631_v62, %v3630_v29  ;;  %v6409_v22 = vpack.c.bf16 %v3561_v21, %v3561_v21  ;;  %v3564_v26 = vpop.f32.mrb[31].mxu1  ;;  %v6412_v12 = vpack.c.bf16 %v6612_v38, %v6612_v38  ;;  %v3677_v10 = vmul.f32 %v6612_v38, %v6612_v38 }
 0x23b   : > { %v2801_v58 = vadd.f32 %v2800_v30, %v2799_v16  ;;  %v2902_v27 = vrot.slane %v2901_v35, 4  ;;  %v3733_v57 = vsel %vm2469_vm7, %v3674_v45, 0.0  ;;  %v3633_v11 = vsel %vm2469_vm7, %v3564_v26, 0.0 }
 0x23c   : > { %v3734_v9 = vadd.f32 %v3733_v57, %v3732_v14  ;;  %6128 = vst.msk [vmem:[%s8592_s11 + $0xf0] sm:$0xf] %vm3037_vm10, %v6409_v22  ;;  %v3675_v43 = vmul.f32 %v3564_v26, %v3564_v26  ;;  %v3634_v44 = vadd.f32 %v3633_v11, %v3632_v63  ;;  %6131 = vst.msk [vmem:[%s8592_s11 + $0xfc] sm:$0xf] %vm3037_vm10, %v6412_v12  ;;  %v3737_v33 = vsel %vm2469_vm7, %v3676_v60, 0.0 }
 0x23d   : > { %v2903_v42 = vadd.f32 %v2902_v27, %v2901_v35  ;;  %v6410_v13 = vpack.c.bf16 %v3564_v26, %v3564_v26  ;;  %v2802_v53 = vrot.slane %v2801_v58, 2  ;;  %v3637_v46 = vsel %vm2469_vm7, %v6612_v38, 0.0 }
 0x23e   : > { %v3735_v4 = vsel %vm2469_vm7, %v3675_v43, 0.0  ;;  %v3636_v48 = vadd.f32 %v3635_v1, %v3634_v44  ;;  %v3739_v29 = vsel %vm2469_vm7, %v3677_v10, 0.0 }
 0x23f   : > { %v3736_v32 = vadd.f32 %v3735_v4, %v3734_v9  ;;  %6129 = vst.msk [vmem:[%s8592_s11 + $0xf4] sm:$0xf] %vm3037_vm10, %v6410_v13  ;;  %v2904_v8 = vrot.slane %v2903_v42, 2  ;;  %v2803_v14 = vadd.f32 %v2802_v53, %v2801_v58 }
 0x240   : > { %v3638_v37 = vadd.f32 %v3637_v46, %v3636_v48 }
 0x241   : > { %v3738_v3 = vadd.f32 %v3737_v33, %v3736_v32  ;;  %v2905_v40 = vadd.f32 %v2904_v8, %v2903_v42  ;;  %v2804_v55 = vrot.slane %v2803_v14, 1 }
 0x242   : > { %v3639_v36 = vrot.slane %v3638_v37, 4 }
 0x243   : > { %v3740_v34 = vadd.f32 %v3739_v29, %v3738_v3  ;;  %v2906_v47 = vrot.slane %v2905_v40, 1  ;;  %v2805_v16 = vadd.f32 %v2804_v55, %v2803_v14 }
 0x244   : > { %v3640_v41 = vadd.f32 %v3639_v36, %v3638_v37 }
 0x245   : > { %v3741_v56 = vrot.slane %v3740_v34, 4  ;;  %v2907_v62 = vadd.f32 %v2906_v47, %v2905_v40 }
 0x246   : > { %v6617_v31 = vpop.f32.mrb[32].mxu0  ;;  %v3641_v61 = vrot.slane %v3640_v41, 2 }
 0x247   : > { %v3742_v51 = vadd.f32 %v3741_v56, %v3740_v34  ;;  %v4304_v25 = vpop.f32.mrb[33].mxu0  ;;  %v6415_v28 = vpack.c.bf16 %v6617_v31, %v6617_v31  ;;  %v4503_v15 = vmul.f32 %v6617_v31, %v6617_v31  ;;  %v4434_v6 = vsel %vm2469_vm7, %v6617_v31, 0.0 }
 0x248   : > { %v4501_v50 = vmul.f32 %v4304_v25, %v4304_v25  ;;  %v6413_v5 = vpack.c.bf16 %v4304_v25, %v4304_v25  ;;  %v6618_v7 = vpop.f32.mrb[34].mxu0  ;;  %v3642_v2 = vadd.f32 %v3641_v61, %v3640_v41  ;;  %v4431_v52 = vsel %vm2469_vm7, %v4304_v25, 0.0 }
 0x249   : > { %v3743_v0 = vrot.slane %v3742_v51, 2  ;;  %v4307_v18 = vpop.f32.mrb[35].mxu0  ;;  %6217 = vst.msk [vmem:[%s8592_s11 + $0x108] sm:$0xf] %vm3037_vm10, %v6415_v28  ;;  %v6416_v23 = vpack.c.bf16 %v6618_v7, %v6618_v7  ;;  %v4436_v45 = vsel %vm2469_vm7, %v6618_v7, 0.0  ;;  %v4504_v38 = vmul.f32 %v6618_v7, %v6618_v7 }
 0x24a   : > { %6215 = vst.msk [vmem:[%s8592_s11 + $0x100] sm:$0xf] %vm3037_vm10, %v6413_v5  ;;  %v4432_v24 = vsel %vm2469_vm7, %v4307_v18, 0.0  ;;  %v3643_v20 = vrot.slane %v3642_v2, 1  ;;  %v4502_v39 = vmul.f32 %v4307_v18, %v4307_v18  ;;  %v4533_v19 = vsel %vm2469_vm7, %v4501_v50, 0.0 }
 0x24b   : > { %v3744_v59 = vadd.f32 %v3743_v0, %v3742_v51  ;;  %v4433_v17 = vadd.f32 %v4432_v24, %v4431_v52  ;;  %6218 = vst.msk [vmem:[%s8592_s11 + $0x10c] sm:$0xf] %vm3037_vm10, %v6416_v23  ;;  %v6414_v49 = vpack.c.bf16 %v4307_v18, %v4307_v18  ;;  %v4536_v58 = vsel %vm2469_vm7, %v4503_v15, 0.0 }
 0x24c   : > { %v3644_v54 = vadd.f32 %v3643_v20, %v3642_v2  ;;  %v4534_v35 = vsel %vm2469_vm7, %v4502_v39, 0.0  ;;  %v4538_v1 = vsel %vm2469_vm7, %v4504_v38, 0.0 }
 0x24d   : > { %v3745_v21 = vrot.slane %v3744_v59, 1  ;;  %v4435_v30 = vadd.f32 %v4434_v6, %v4433_v17  ;;  %v4535_v63 = vadd.f32 %v4534_v35, %v4533_v19  ;;  %6216 = vst.msk [vmem:[%s8592_s11 + $0x104] sm:$0xf] %vm3037_vm10, %v6414_v49 }
 0x24e   : > { %v9267_v22 = vadd.f32 %v3644_v54, %v2805_v16 }
 0x24f   : > { %v3746_v26 = vadd.f32 %v3745_v21, %v3744_v59  ;;  %v6651_v27 = vpop.f32.mrb[32].mxu1  ;;  %v4437_v60 = vadd.f32 %v4436_v45, %v4435_v30  ;;  %v4537_v57 = vadd.f32 %v4536_v58, %v4535_v63 }
 0x250   : > { %v6447_v9 = vpack.c.bf16 %v6651_v27, %v6651_v27  ;;  %v5095_v12 = vpop.f32.mrb[33].mxu1  ;;  %v5294_v10 = vmul.f32 %v6651_v27, %v6651_v27  ;;  %v5225_v37 = vsel %vm2469_vm7, %v6651_v27, 0.0 }
 0x251   : > { %v9270_v11 = vadd.f32 %v3746_v26, %v2907_v62  ;;  %v5292_v43 = vmul.f32 %v5095_v12, %v5095_v12  ;;  %v6445_v42 = vpack.c.bf16 %v5095_v12, %v5095_v12  ;;  %v6652_v44 = vpop.f32.mrb[34].mxu1  ;;  %v5222_v48 = vsel %vm2469_vm7, %v5095_v12, 0.0 }
 0x252   : > { %6316 = vst.msk [vmem:[%s8592_s11 + $0x188] sm:$0xf] %vm3037_vm10, %v6447_v9  ;;  %v6448_v4 = vpack.c.bf16 %v6652_v44, %v6652_v44  ;;  %v5098_v13 = vpop.f32.mrb[35].mxu1  ;;  %v4539_v8 = vadd.f32 %v4538_v1, %v4537_v57  ;;  %v5295_v29 = vmul.f32 %v6652_v44, %v6652_v44  ;;  %v5327_v40 = vsel %vm2469_vm7, %v5294_v10, 0.0 }
 0x253   : > { %6314 = vst.msk [vmem:[%s8592_s11 + $0x180] sm:$0xf] %vm3037_vm10, %v6445_v42  ;;  %v5223_v32 = vsel %vm2469_vm7, %v5098_v13, 0.0  ;;  %v5293_v53 = vmul.f32 %v5098_v13, %v5098_v13  ;;  %v6446_v33 = vpack.c.bf16 %v5098_v13, %v5098_v13  ;;  %v5324_v3 = vsel %vm2469_vm7, %v5292_v43, 0.0 }
 0x254   : > { %6317 = vst.msk [vmem:[%s8592_s11 + $0x18c] sm:$0xf] %vm3037_vm10, %v6448_v4  ;;  %v5224_v46 = vadd.f32 %v5223_v32, %v5222_v48  ;;  %v5227_v41 = vsel %vm2469_vm7, %v6652_v44, 0.0  ;;  %v5329_v61 = vsel %vm2469_vm7, %v5295_v29, 0.0 }
 0x255   : > { %v5325_v36 = vsel %vm2469_vm7, %v5293_v53, 0.0  ;;  %6315 = vst.msk [vmem:[%s8592_s11 + $0x184] sm:$0xf] %vm3037_vm10, %v6446_v33 }
 0x256   : > { %v5226_v34 = vadd.f32 %v5225_v37, %v5224_v46  ;;  %v5326_v14 = vadd.f32 %v5325_v36, %v5324_v3 }
 0x258   : > { %v5328_v56 = vadd.f32 %v5327_v40, %v5326_v14  ;;  %v5228_v31 = vadd.f32 %v5227_v41, %v5226_v34 }
 0x25a   : > { %v5330_v51 = vadd.f32 %v5329_v61, %v5328_v56 }
 0x25e   : > { %v6621_v25 = vpop.f32.mrb[36].mxu0 }
 0x25f   : > { %v6419_v55 = vpack.c.bf16 %v6621_v25, %v6621_v25  ;;  %v4320_v28 = vpop.f32.mrb[37].mxu0  ;;  %v4507_v2 = vmul.f32 %v6621_v25, %v6621_v25  ;;  %v4442_v39 = vsel %vm2469_vm7, %v6621_v25, 0.0 }
 0x260   : > { %v4438_v50 = vsel %vm2469_vm7, %v4320_v28, 0.0  ;;  %v4505_v5 = vmul.f32 %v4320_v28, %v4320_v28  ;;  %v6417_v7 = vpack.c.bf16 %v4320_v28, %v4320_v28  ;;  %v6622_v47 = vpop.f32.mrb[38].mxu0 }
 0x261   : > { %6221 = vst.msk [vmem:[%s8592_s11 + $0x118] sm:$0xf] %vm3037_vm10, %v6419_v55  ;;  %v4439_v0 = vadd.f32 %v4438_v50, %v4437_v60  ;;  %v4323_v18 = vpop.f32.mrb[39].mxu0  ;;  %v6420_v52 = vpack.c.bf16 %v6622_v47, %v6622_v47  ;;  %v4508_v16 = vmul.f32 %v6622_v47, %v6622_v47  ;;  %v4544_v54 = vsel %vm2469_vm7, %v4507_v2, 0.0 }
 0x262   : > { %v4540_v15 = vsel %vm2469_vm7, %v4505_v5, 0.0  ;;  %6219 = vst.msk [vmem:[%s8592_s11 + $0x110] sm:$0xf] %vm3037_vm10, %v6417_v7  ;;  %v4440_v23 = vsel %vm2469_vm7, %v4323_v18, 0.0  ;;  %v4506_v24 = vmul.f32 %v4323_v18, %v4323_v18  ;;  %v6418_v17 = vpack.c.bf16 %v4323_v18, %v4323_v18 }
 0x263   : > { %v4541_v20 = vadd.f32 %v4540_v15, %v4539_v8  ;;  %v4441_v59 = vadd.f32 %v4440_v23, %v4439_v0  ;;  %6222 = vst.msk [vmem:[%s8592_s11 + $0x11c] sm:$0xf] %vm3037_vm10, %v6420_v52  ;;  %v4444_v21 = vsel %vm2469_vm7, %v6622_v47, 0.0  ;;  %v4546_v45 = vsel %vm2469_vm7, %v4508_v16, 0.0 }
 0x264   : > { %v4542_v6 = vsel %vm2469_vm7, %v4506_v24, 0.0  ;;  %6220 = vst.msk [vmem:[%s8592_s11 + $0x114] sm:$0xf] %vm3037_vm10, %v6418_v17 }
 0x265   : > { %v4443_v19 = vadd.f32 %v4442_v39, %v4441_v59  ;;  %v4543_v49 = vadd.f32 %v4542_v6, %v4541_v20 }
 0x267   : > { %v4545_v30 = vadd.f32 %v4544_v54, %v4543_v49  ;;  %v6655_v35 = vpop.f32.mrb[36].mxu1  ;;  %v4445_v62 = vadd.f32 %v4444_v21, %v4443_v19 }
 0x268   : > { %v6451_v38 = vpack.c.bf16 %v6655_v35, %v6655_v35  ;;  %v5111_v63 = vpop.f32.mrb[37].mxu1  ;;  %v5298_v9 = vmul.f32 %v6655_v35, %v6655_v35  ;;  %v5233_v32 = vsel %vm2469_vm7, %v6655_v35, 0.0 }
 0x269   : > { %v5229_v26 = vsel %vm2469_vm7, %v5111_v63, 0.0  ;;  %v5296_v58 = vmul.f32 %v5111_v63, %v5111_v63  ;;  %v6449_v27 = vpack.c.bf16 %v5111_v63, %v5111_v63  ;;  %v6656_v60 = vpop.f32.mrb[38].mxu1  ;;  %v4547_v57 = vadd.f32 %v4546_v45, %v4545_v30 }
 0x26a   : > { %6320 = vst.msk [vmem:[%s8592_s11 + $0x198] sm:$0xf] %vm3037_vm10, %v6451_v38  ;;  %v5230_v12 = vadd.f32 %v5229_v26, %v5228_v31  ;;  %v5114_v43 = vpop.f32.mrb[39].mxu1  ;;  %v6452_v44 = vpack.c.bf16 %v6656_v60, %v6656_v60  ;;  %v5299_v53 = vmul.f32 %v6656_v60, %v6656_v60  ;;  %v5335_v37 = vsel %vm2469_vm7, %v5298_v9, 0.0 }
 0x26b   : > { %v5331_v42 = vsel %vm2469_vm7, %v5296_v58, 0.0  ;;  %6318 = vst.msk [vmem:[%s8592_s11 + $0x190] sm:$0xf] %vm3037_vm10, %v6449_v27  ;;  %v5231_v1 = vsel %vm2469_vm7, %v5114_v43, 0.0  ;;  %v5297_v10 = vmul.f32 %v5114_v43, %v5114_v43  ;;  %v6450_v48 = vpack.c.bf16 %v5114_v43, %v5114_v43 }
 0x26c   : > { %v5332_v4 = vadd.f32 %v5331_v42, %v5330_v51  ;;  %v5232_v13 = vadd.f32 %v5231_v1, %v5230_v12  ;;  %6321 = vst.msk [vmem:[%s8592_s11 + $0x19c] sm:$0xf] %vm3037_vm10, %v6452_v44  ;;  %v5235_v3 = vsel %vm2469_vm7, %v6656_v60, 0.0  ;;  %v5337_v34 = vsel %vm2469_vm7, %v5299_v53, 0.0 }
 0x26d   : > { %v5333_v33 = vsel %vm2469_vm7, %v5297_v10, 0.0  ;;  %6319 = vst.msk [vmem:[%s8592_s11 + $0x194] sm:$0xf] %vm3037_vm10, %v6450_v48 }
 0x26e   : > { %v5234_v46 = vadd.f32 %v5233_v32, %v5232_v13  ;;  %v5334_v8 = vadd.f32 %v5333_v33, %v5332_v4 }
 0x270   : > { %v5336_v29 = vadd.f32 %v5335_v37, %v5334_v8  ;;  %v5236_v36 = vadd.f32 %v5235_v3, %v5234_v46 }
 0x272   : > { %v5338_v14 = vadd.f32 %v5337_v34, %v5336_v29 }
 0x276   : > { %v6625_v40 = vpop.f32.mrb[40].mxu0 }
 0x277   : > { %v6423_v41 = vpack.c.bf16 %v6625_v40, %v6625_v40  ;;  %v4336_v56 = vpop.f32.mrb[41].mxu0  ;;  %v4511_v55 = vmul.f32 %v6625_v40, %v6625_v40  ;;  %v4450_v52 = vsel %vm2469_vm7, %v6625_v40, 0.0 }
 0x278   : > { %v4446_v31 = vsel %vm2469_vm7, %v4336_v56, 0.0  ;;  %v4509_v61 = vmul.f32 %v4336_v56, %v4336_v56  ;;  %v6421_v51 = vpack.c.bf16 %v4336_v56, %v4336_v56  ;;  %v6626_v25 = vpop.f32.mrb[42].mxu0 }
 0x279   : > { %6225 = vst.msk [vmem:[%s8592_s11 + $0x128] sm:$0xf] %vm3037_vm10, %v6423_v41  ;;  %v4447_v28 = vadd.f32 %v4446_v31, %v4445_v62  ;;  %v4339_v50 = vpop.f32.mrb[43].mxu0  ;;  %v6424_v7 = vpack.c.bf16 %v6626_v25, %v6626_v25  ;;  %v4512_v23 = vmul.f32 %v6626_v25, %v6626_v25  ;;  %v4552_v17 = vsel %vm2469_vm7, %v4511_v55, 0.0 }
 0x27a   : > { %v4548_v5 = vsel %vm2469_vm7, %v4509_v61, 0.0  ;;  %6223 = vst.msk [vmem:[%s8592_s11 + $0x120] sm:$0xf] %vm3037_vm10, %v6421_v51  ;;  %v4448_v47 = vsel %vm2469_vm7, %v4339_v50, 0.0  ;;  %v4510_v2 = vmul.f32 %v4339_v50, %v4339_v50  ;;  %v6422_v15 = vpack.c.bf16 %v4339_v50, %v4339_v50 }
 0x27b   : > { %v4549_v0 = vadd.f32 %v4548_v5, %v4547_v57  ;;  %v4449_v18 = vadd.f32 %v4448_v47, %v4447_v28  ;;  %6226 = vst.msk [vmem:[%s8592_s11 + $0x12c] sm:$0xf] %vm3037_vm10, %v6424_v7  ;;  %v4452_v39 = vsel %vm2469_vm7, %v6626_v25, 0.0  ;;  %v4554_v49 = vsel %vm2469_vm7, %v4512_v23, 0.0 }
 0x27c   : > { %v4550_v24 = vsel %vm2469_vm7, %v4510_v2, 0.0  ;;  %6224 = vst.msk [vmem:[%s8592_s11 + $0x124] sm:$0xf] %vm3037_vm10, %v6422_v15 }
 0x27d   : > { %v4451_v20 = vadd.f32 %v4450_v52, %v4449_v18  ;;  %v4551_v59 = vadd.f32 %v4550_v24, %v4549_v0 }
 0x27f   : > { %v4553_v16 = vadd.f32 %v4552_v17, %v4551_v59  ;;  %v6659_v6 = vpop.f32.mrb[40].mxu1  ;;  %v4453_v19 = vadd.f32 %v4452_v39, %v4451_v20 }
 0x280   : > { %v6455_v54 = vpack.c.bf16 %v6659_v6, %v6659_v6  ;;  %v5127_v21 = vpop.f32.mrb[41].mxu1  ;;  %v5302_v63 = vmul.f32 %v6659_v6, %v6659_v6  ;;  %v5241_v44 = vsel %vm2469_vm7, %v6659_v6, 0.0 }
 0x281   : > { %v5237_v30 = vsel %vm2469_vm7, %v5127_v21, 0.0  ;;  %v5300_v35 = vmul.f32 %v5127_v21, %v5127_v21  ;;  %v6453_v62 = vpack.c.bf16 %v5127_v21, %v5127_v21  ;;  %v6660_v45 = vpop.f32.mrb[42].mxu1  ;;  %v4555_v38 = vadd.f32 %v4554_v49, %v4553_v16 }
 0x282   : > { %6324 = vst.msk [vmem:[%s8592_s11 + $0x1a8] sm:$0xf] %vm3037_vm10, %v6455_v54  ;;  %v5238_v26 = vadd.f32 %v5237_v30, %v5236_v36  ;;  %v5130_v58 = vpop.f32.mrb[43].mxu1  ;;  %v6456_v60 = vpack.c.bf16 %v6660_v45, %v6660_v45  ;;  %v5303_v1 = vmul.f32 %v6660_v45, %v6660_v45  ;;  %v5343_v48 = vsel %vm2469_vm7, %v5302_v63, 0.0 }
 0x283   : > { %v5339_v27 = vsel %vm2469_vm7, %v5300_v35, 0.0  ;;  %6322 = vst.msk [vmem:[%s8592_s11 + $0x1a0] sm:$0xf] %vm3037_vm10, %v6453_v62  ;;  %v5239_v57 = vsel %vm2469_vm7, %v5130_v58, 0.0  ;;  %v5301_v9 = vmul.f32 %v5130_v58, %v5130_v58  ;;  %v6454_v42 = vpack.c.bf16 %v5130_v58, %v5130_v58 }
 0x284   : > { %v5340_v12 = vadd.f32 %v5339_v27, %v5338_v14  ;;  %v5240_v43 = vadd.f32 %v5239_v57, %v5238_v26  ;;  %6325 = vst.msk [vmem:[%s8592_s11 + $0x1ac] sm:$0xf] %vm3037_vm10, %v6456_v60  ;;  %v5243_v32 = vsel %vm2469_vm7, %v6660_v45, 0.0  ;;  %v5345_v46 = vsel %vm2469_vm7, %v5303_v1, 0.0 }
 0x285   : > { %v5341_v10 = vsel %vm2469_vm7, %v5301_v9, 0.0  ;;  %6323 = vst.msk [vmem:[%s8592_s11 + $0x1a4] sm:$0xf] %vm3037_vm10, %v6454_v42 }
 0x286   : > { %v5242_v4 = vadd.f32 %v5241_v44, %v5240_v43  ;;  %v5342_v13 = vadd.f32 %v5341_v10, %v5340_v12 }
 0x288   : > { %v5344_v53 = vadd.f32 %v5343_v48, %v5342_v13  ;;  %v5244_v33 = vadd.f32 %v5243_v32, %v5242_v4 }
 0x28a   : > { %v5346_v8 = vadd.f32 %v5345_v46, %v5344_v53 }
 0x28e   : > { %v6629_v37 = vpop.f32.mrb[44].mxu0 }
 0x28f   : > { %v6427_v3 = vpack.c.bf16 %v6629_v37, %v6629_v37  ;;  %v4352_v29 = vpop.f32.mrb[45].mxu0  ;;  %v4515_v41 = vmul.f32 %v6629_v37, %v6629_v37  ;;  %v4458_v7 = vsel %vm2469_vm7, %v6629_v37, 0.0 }
 0x290   : > { %v4454_v36 = vsel %vm2469_vm7, %v4352_v29, 0.0  ;;  %v4513_v34 = vmul.f32 %v4352_v29, %v4352_v29  ;;  %v6425_v14 = vpack.c.bf16 %v4352_v29, %v4352_v29  ;;  %v6630_v40 = vpop.f32.mrb[46].mxu0 }
 0x291   : > { %6229 = vst.msk [vmem:[%s8592_s11 + $0x138] sm:$0xf] %vm3037_vm10, %v6427_v3  ;;  %v4455_v56 = vadd.f32 %v4454_v36, %v4453_v19  ;;  %v4355_v31 = vpop.f32.mrb[47].mxu0  ;;  %v6428_v51 = vpack.c.bf16 %v6630_v40, %v6630_v40  ;;  %v4516_v47 = vmul.f32 %v6630_v40, %v6630_v40  ;;  %v4560_v15 = vsel %vm2469_vm7, %v4515_v41, 0.0 }
 0x292   : > { %v4556_v61 = vsel %vm2469_vm7, %v4513_v34, 0.0  ;;  %6227 = vst.msk [vmem:[%s8592_s11 + $0x130] sm:$0xf] %vm3037_vm10, %v6425_v14  ;;  %v4456_v25 = vsel %vm2469_vm7, %v4355_v31, 0.0  ;;  %v4514_v55 = vmul.f32 %v4355_v31, %v4355_v31  ;;  %v6426_v5 = vpack.c.bf16 %v4355_v31, %v4355_v31 }
 0x293   : > { %v4557_v28 = vadd.f32 %v4556_v61, %v4555_v38  ;;  %v4457_v50 = vadd.f32 %v4456_v25, %v4455_v56  ;;  %6230 = vst.msk [vmem:[%s8592_s11 + $0x13c] sm:$0xf] %vm3037_vm10, %v6428_v51  ;;  %v4460_v52 = vsel %vm2469_vm7, %v6630_v40, 0.0  ;;  %v4562_v59 = vsel %vm2469_vm7, %v4516_v47, 0.0 }
 0x294   : > { %v4558_v2 = vsel %vm2469_vm7, %v4514_v55, 0.0  ;;  %6228 = vst.msk [vmem:[%s8592_s11 + $0x134] sm:$0xf] %vm3037_vm10, %v6426_v5 }
 0x295   : > { %v4459_v0 = vadd.f32 %v4458_v7, %v4457_v50  ;;  %v4559_v18 = vadd.f32 %v4558_v2, %v4557_v28 }
 0x297   : > { %v4561_v23 = vadd.f32 %v4560_v15, %v4559_v18  ;;  %v6663_v24 = vpop.f32.mrb[44].mxu1  ;;  %v4461_v20 = vadd.f32 %v4460_v52, %v4459_v0 }
 0x298   : > { %v6459_v17 = vpack.c.bf16 %v6663_v24, %v6663_v24  ;;  %v5143_v39 = vpop.f32.mrb[45].mxu1  ;;  %v5306_v21 = vmul.f32 %v6663_v24, %v6663_v24  ;;  %v5249_v60 = vsel %vm2469_vm7, %v6663_v24, 0.0 }
 0x299   : > { %v5245_v16 = vsel %vm2469_vm7, %v5143_v39, 0.0  ;;  %v5304_v6 = vmul.f32 %v5143_v39, %v5143_v39  ;;  %v6457_v19 = vpack.c.bf16 %v5143_v39, %v5143_v39  ;;  %v6664_v49 = vpop.f32.mrb[46].mxu1  ;;  %v4563_v54 = vadd.f32 %v4562_v59, %v4561_v23 }
 0x29a   : > { %6328 = vst.msk [vmem:[%s8592_s11 + $0x1b8] sm:$0xf] %vm3037_vm10, %v6459_v17  ;;  %v5246_v30 = vadd.f32 %v5245_v16, %v5244_v33  ;;  %v5146_v35 = vpop.f32.mrb[47].mxu1  ;;  %v6460_v45 = vpack.c.bf16 %v6664_v49, %v6664_v49  ;;  %v5307_v57 = vmul.f32 %v6664_v49, %v6664_v49  ;;  %v5351_v42 = vsel %vm2469_vm7, %v5306_v21, 0.0 }
 0x29b   : > { %v5347_v62 = vsel %vm2469_vm7, %v5304_v6, 0.0  ;;  %6326 = vst.msk [vmem:[%s8592_s11 + $0x1b0] sm:$0xf] %vm3037_vm10, %v6457_v19  ;;  %v5247_v38 = vsel %vm2469_vm7, %v5146_v35, 0.0  ;;  %v5305_v63 = vmul.f32 %v5146_v35, %v5146_v35  ;;  %v6458_v27 = vpack.c.bf16 %v5146_v35, %v5146_v35 }
 0x29c   : > { %v5348_v26 = vadd.f32 %v5347_v62, %v5346_v8  ;;  %v5248_v58 = vadd.f32 %v5247_v38, %v5246_v30  ;;  %6329 = vst.msk [vmem:[%s8592_s11 + $0x1bc] sm:$0xf] %vm3037_vm10, %v6460_v45  ;;  %v5251_v44 = vsel %vm2469_vm7, %v6664_v49, 0.0  ;;  %v5353_v4 = vsel %vm2469_vm7, %v5307_v57, 0.0 }
 0x29d   : > { %v5349_v9 = vsel %vm2469_vm7, %v5305_v63, 0.0  ;;  %6327 = vst.msk [vmem:[%s8592_s11 + $0x1b4] sm:$0xf] %vm3037_vm10, %v6458_v27 }
 0x29e   : > { %v5250_v12 = vadd.f32 %v5249_v60, %v5248_v58  ;;  %v5350_v43 = vadd.f32 %v5349_v9, %v5348_v26 }
 0x2a0   : > { %v5352_v1 = vadd.f32 %v5351_v42, %v5350_v43  ;;  %v5252_v10 = vadd.f32 %v5251_v44, %v5250_v12 }
 0x2a2   : > { %v5354_v13 = vadd.f32 %v5353_v4, %v5352_v1 }
 0x2a6   : > { %v6633_v48 = vpop.f32.mrb[48].mxu0 }
 0x2a7   : > { %v6431_v32 = vpack.c.bf16 %v6633_v48, %v6633_v48  ;;  %v4368_v53 = vpop.f32.mrb[49].mxu0  ;;  %v4519_v3 = vmul.f32 %v6633_v48, %v6633_v48  ;;  %v4466_v51 = vsel %vm2469_vm7, %v6633_v48, 0.0 }
 0x2a8   : > { %v4462_v33 = vsel %vm2469_vm7, %v4368_v53, 0.0  ;;  %v4517_v46 = vmul.f32 %v4368_v53, %v4368_v53  ;;  %v6429_v8 = vpack.c.bf16 %v4368_v53, %v4368_v53  ;;  %v6634_v37 = vpop.f32.mrb[50].mxu0 }
 0x2a9   : > { %6233 = vst.msk [vmem:[%s8592_s11 + $0x148] sm:$0xf] %vm3037_vm10, %v6431_v32  ;;  %v4463_v29 = vadd.f32 %v4462_v33, %v4461_v20  ;;  %v4371_v36 = vpop.f32.mrb[51].mxu0  ;;  %v6432_v14 = vpack.c.bf16 %v6634_v37, %v6634_v37  ;;  %v4520_v25 = vmul.f32 %v6634_v37, %v6634_v37  ;;  %v4568_v5 = vsel %vm2469_vm7, %v4519_v3, 0.0 }
 0x2aa   : > { %v4564_v34 = vsel %vm2469_vm7, %v4517_v46, 0.0  ;;  %6231 = vst.msk [vmem:[%s8592_s11 + $0x140] sm:$0xf] %vm3037_vm10, %v6429_v8  ;;  %v4464_v40 = vsel %vm2469_vm7, %v4371_v36, 0.0  ;;  %v4518_v41 = vmul.f32 %v4371_v36, %v4371_v36  ;;  %v6430_v61 = vpack.c.bf16 %v4371_v36, %v4371_v36 }
 0x2ab   : > { %v4565_v56 = vadd.f32 %v4564_v34, %v4563_v54  ;;  %v4465_v31 = vadd.f32 %v4464_v40, %v4463_v29  ;;  %6234 = vst.msk [vmem:[%s8592_s11 + $0x14c] sm:$0xf] %vm3037_vm10, %v6432_v14  ;;  %v4468_v7 = vsel %vm2469_vm7, %v6634_v37, 0.0  ;;  %v4570_v18 = vsel %vm2469_vm7, %v4520_v25, 0.0 }
 0x2ac   : > { %v4566_v55 = vsel %vm2469_vm7, %v4518_v41, 0.0  ;;  %6232 = vst.msk [vmem:[%s8592_s11 + $0x144] sm:$0xf] %vm3037_vm10, %v6430_v61 }
 0x2ad   : > { %v4467_v28 = vadd.f32 %v4466_v51, %v4465_v31  ;;  %v4567_v50 = vadd.f32 %v4566_v55, %v4565_v56 }
 0x2af   : > { %v4569_v47 = vadd.f32 %v4568_v5, %v4567_v50  ;;  %v6667_v2 = vpop.f32.mrb[48].mxu1  ;;  %v4469_v0 = vadd.f32 %v4468_v7, %v4467_v28 }
 0x2b0   : > { %v6463_v15 = vpack.c.bf16 %v6667_v2, %v6667_v2  ;;  %v5159_v52 = vpop.f32.mrb[49].mxu1  ;;  %v5310_v39 = vmul.f32 %v6667_v2, %v6667_v2  ;;  %v5257_v45 = vsel %vm2469_vm7, %v6667_v2, 0.0 }
 0x2b1   : > { %v5253_v23 = vsel %vm2469_vm7, %v5159_v52, 0.0  ;;  %v5308_v24 = vmul.f32 %v5159_v52, %v5159_v52  ;;  %v6461_v20 = vpack.c.bf16 %v5159_v52, %v5159_v52  ;;  %v6668_v59 = vpop.f32.mrb[50].mxu1  ;;  %v4571_v17 = vadd.f32 %v4570_v18, %v4569_v47 }
 0x2b2   : > { %6332 = vst.msk [vmem:[%s8592_s11 + $0x1c8] sm:$0xf] %vm3037_vm10, %v6463_v15  ;;  %v5254_v16 = vadd.f32 %v5253_v23, %v5252_v10  ;;  %v5162_v6 = vpop.f32.mrb[51].mxu1  ;;  %v6464_v49 = vpack.c.bf16 %v6668_v59, %v6668_v59  ;;  %v5311_v38 = vmul.f32 %v6668_v59, %v6668_v59  ;;  %v5359_v27 = vsel %vm2469_vm7, %v5310_v39, 0.0 }
 0x2b3   : > { %v5355_v19 = vsel %vm2469_vm7, %v5308_v24, 0.0  ;;  %6330 = vst.msk [vmem:[%s8592_s11 + $0x1c0] sm:$0xf] %vm3037_vm10, %v6461_v20  ;;  %v5255_v54 = vsel %vm2469_vm7, %v5162_v6, 0.0  ;;  %v5309_v21 = vmul.f32 %v5162_v6, %v5162_v6  ;;  %v6462_v62 = vpack.c.bf16 %v5162_v6, %v5162_v6 }
 0x2b4   : > { %v5356_v30 = vadd.f32 %v5355_v19, %v5354_v13  ;;  %v5256_v35 = vadd.f32 %v5255_v54, %v5254_v16  ;;  %6333 = vst.msk [vmem:[%s8592_s11 + $0x1cc] sm:$0xf] %vm3037_vm10, %v6464_v49  ;;  %v5259_v60 = vsel %vm2469_vm7, %v6668_v59, 0.0  ;;  %v5361_v12 = vsel %vm2469_vm7, %v5311_v38, 0.0 }
 0x2b5   : > { %v5357_v63 = vsel %vm2469_vm7, %v5309_v21, 0.0  ;;  %6331 = vst.msk [vmem:[%s8592_s11 + $0x1c4] sm:$0xf] %vm3037_vm10, %v6462_v62 }
 0x2b6   : > { %v5258_v26 = vadd.f32 %v5257_v45, %v5256_v35  ;;  %v5358_v58 = vadd.f32 %v5357_v63, %v5356_v30 }
 0x2b8   : > { %v5360_v57 = vadd.f32 %v5359_v27, %v5358_v58  ;;  %v5260_v9 = vadd.f32 %v5259_v60, %v5258_v26 }
 0x2ba   : > { %v5362_v43 = vadd.f32 %v5361_v12, %v5360_v57 }
 0x2be   : > { %v6637_v42 = vpop.f32.mrb[52].mxu0 }
 0x2bf   : > { %v6435_v44 = vpack.c.bf16 %v6637_v42, %v6637_v42  ;;  %v4384_v1 = vpop.f32.mrb[53].mxu0  ;;  %v4523_v32 = vmul.f32 %v6637_v42, %v6637_v42  ;;  %v4474_v14 = vsel %vm2469_vm7, %v6637_v42, 0.0 }
 0x2c0   : > { %v4470_v10 = vsel %vm2469_vm7, %v4384_v1, 0.0  ;;  %v4521_v4 = vmul.f32 %v4384_v1, %v4384_v1  ;;  %v6433_v13 = vpack.c.bf16 %v4384_v1, %v4384_v1  ;;  %v6638_v48 = vpop.f32.mrb[54].mxu0 }
 0x2c1   : > { %6237 = vst.msk [vmem:[%s8592_s11 + $0x158] sm:$0xf] %vm3037_vm10, %v6435_v44  ;;  %v4471_v53 = vadd.f32 %v4470_v10, %v4469_v0  ;;  %v4387_v33 = vpop.f32.mrb[55].mxu0  ;;  %v6436_v8 = vpack.c.bf16 %v6638_v48, %v6638_v48  ;;  %v4524_v40 = vmul.f32 %v6638_v48, %v6638_v48  ;;  %v4576_v61 = vsel %vm2469_vm7, %v4523_v32, 0.0 }
 0x2c2   : > { %v4572_v46 = vsel %vm2469_vm7, %v4521_v4, 0.0  ;;  %6235 = vst.msk [vmem:[%s8592_s11 + $0x150] sm:$0xf] %vm3037_vm10, %v6433_v13  ;;  %v4472_v37 = vsel %vm2469_vm7, %v4387_v33, 0.0  ;;  %v4522_v3 = vmul.f32 %v4387_v33, %v4387_v33  ;;  %v6434_v34 = vpack.c.bf16 %v4387_v33, %v4387_v33 }
 0x2c3   : > { %v4573_v29 = vadd.f32 %v4572_v46, %v4571_v17  ;;  %v4473_v36 = vadd.f32 %v4472_v37, %v4471_v53  ;;  %6238 = vst.msk [vmem:[%s8592_s11 + $0x15c] sm:$0xf] %vm3037_vm10, %v6436_v8  ;;  %v4476_v51 = vsel %vm2469_vm7, %v6638_v48, 0.0  ;;  %v4578_v50 = vsel %vm2469_vm7, %v4524_v40, 0.0 }
 0x2c4   : > { %v4574_v41 = vsel %vm2469_vm7, %v4522_v3, 0.0  ;;  %6236 = vst.msk [vmem:[%s8592_s11 + $0x154] sm:$0xf] %vm3037_vm10, %v6434_v34 }
 0x2c5   : > { %v4475_v56 = vadd.f32 %v4474_v14, %v4473_v36  ;;  %v4575_v31 = vadd.f32 %v4574_v41, %v4573_v29 }
 0x2c7   : > { %v4577_v25 = vadd.f32 %v4576_v61, %v4575_v31  ;;  %v6671_v55 = vpop.f32.mrb[52].mxu1  ;;  %v4477_v28 = vadd.f32 %v4476_v51, %v4475_v56 }
 0x2c8   : > { %v6467_v5 = vpack.c.bf16 %v6671_v55, %v6671_v55  ;;  %v5175_v7 = vpop.f32.mrb[53].mxu1  ;;  %v5314_v52 = vmul.f32 %v6671_v55, %v6671_v55  ;;  %v5265_v49 = vsel %vm2469_vm7, %v6671_v55, 0.0 }
 0x2c9   : > { %v5261_v47 = vsel %vm2469_vm7, %v5175_v7, 0.0  ;;  %v5312_v2 = vmul.f32 %v5175_v7, %v5175_v7  ;;  %v6465_v0 = vpack.c.bf16 %v5175_v7, %v5175_v7  ;;  %v6672_v18 = vpop.f32.mrb[54].mxu1  ;;  %v4579_v15 = vadd.f32 %v4578_v50, %v4577_v25 }
 0x2ca   : > { %6336 = vst.msk [vmem:[%s8592_s11 + $0x1d8] sm:$0xf] %vm3037_vm10, %v6467_v5  ;;  %v5262_v23 = vadd.f32 %v5261_v47, %v5260_v9  ;;  %v5178_v24 = vpop.f32.mrb[55].mxu1  ;;  %v6468_v59 = vpack.c.bf16 %v6672_v18, %v6672_v18  ;;  %v5315_v54 = vmul.f32 %v6672_v18, %v6672_v18  ;;  %v5367_v62 = vsel %vm2469_vm7, %v5314_v52, 0.0 }
 0x2cb   : > { %v5363_v20 = vsel %vm2469_vm7, %v5312_v2, 0.0  ;;  %6334 = vst.msk [vmem:[%s8592_s11 + $0x1d0] sm:$0xf] %vm3037_vm10, %v6465_v0  ;;  %v5263_v17 = vsel %vm2469_vm7, %v5178_v24, 0.0  ;;  %v5313_v39 = vmul.f32 %v5178_v24, %v5178_v24  ;;  %v6466_v19 = vpack.c.bf16 %v5178_v24, %v5178_v24 }
 0x2cc   : > { %v5364_v16 = vadd.f32 %v5363_v20, %v5362_v43  ;;  %v5264_v6 = vadd.f32 %v5263_v17, %v5262_v23  ;;  %6337 = vst.msk [vmem:[%s8592_s11 + $0x1dc] sm:$0xf] %vm3037_vm10, %v6468_v59  ;;  %v5267_v45 = vsel %vm2469_vm7, %v6672_v18, 0.0  ;;  %v5369_v26 = vsel %vm2469_vm7, %v5315_v54, 0.0 }
 0x2cd   : > { %v5365_v21 = vsel %vm2469_vm7, %v5313_v39, 0.0  ;;  %6335 = vst.msk [vmem:[%s8592_s11 + $0x1d4] sm:$0xf] %vm3037_vm10, %v6466_v19 }
 0x2ce   : > { %v5266_v30 = vadd.f32 %v5265_v49, %v5264_v6  ;;  %v5366_v35 = vadd.f32 %v5365_v21, %v5364_v16 }
 0x2d0   : > { %v5368_v38 = vadd.f32 %v5367_v62, %v5366_v35  ;;  %v5268_v63 = vadd.f32 %v5267_v45, %v5266_v30 }
 0x2d2   : > { %v5370_v58 = vadd.f32 %v5369_v26, %v5368_v38 }
 0x2d6   : > { %v6641_v27 = vpop.f32.mrb[56].mxu0 }
 0x2d7   : > { %v6439_v60 = vpack.c.bf16 %v6641_v27, %v6641_v27  ;;  %v4400_v57 = vpop.f32.mrb[57].mxu0  ;;  %v4527_v44 = vmul.f32 %v6641_v27, %v6641_v27  ;;  %v4482_v8 = vsel %vm2469_vm7, %v6641_v27, 0.0 }
 0x2d8   : > { %v4478_v9 = vsel %vm2469_vm7, %v4400_v57, 0.0  ;;  %v4525_v12 = vmul.f32 %v4400_v57, %v4400_v57  ;;  %v6437_v43 = vpack.c.bf16 %v4400_v57, %v4400_v57  ;;  %v6642_v42 = vpop.f32.mrb[58].mxu0 }
 0x2d9   : > { %6241 = vst.msk [vmem:[%s8592_s11 + $0x168] sm:$0xf] %vm3037_vm10, %v6439_v60  ;;  %v4479_v1 = vadd.f32 %v4478_v9, %v4477_v28  ;;  %v4403_v10 = vpop.f32.mrb[59].mxu0  ;;  %v6440_v13 = vpack.c.bf16 %v6642_v42, %v6642_v42  ;;  %v4528_v37 = vmul.f32 %v6642_v42, %v6642_v42  ;;  %v4584_v34 = vsel %vm2469_vm7, %v4527_v44, 0.0 }
 0x2da   : > { %v4580_v4 = vsel %vm2469_vm7, %v4525_v12, 0.0  ;;  %6239 = vst.msk [vmem:[%s8592_s11 + $0x160] sm:$0xf] %vm3037_vm10, %v6437_v43  ;;  %v4480_v48 = vsel %vm2469_vm7, %v4403_v10, 0.0  ;;  %v4526_v32 = vmul.f32 %v4403_v10, %v4403_v10  ;;  %v6438_v46 = vpack.c.bf16 %v4403_v10, %v4403_v10 }
 0x2db   : > { %v4581_v53 = vadd.f32 %v4580_v4, %v4579_v15  ;;  %v4481_v33 = vadd.f32 %v4480_v48, %v4479_v1  ;;  %6242 = vst.msk [vmem:[%s8592_s11 + $0x16c] sm:$0xf] %vm3037_vm10, %v6440_v13  ;;  %v4484_v14 = vsel %vm2469_vm7, %v6642_v42, 0.0  ;;  %v4586_v31 = vsel %vm2469_vm7, %v4528_v37, 0.0 }
 0x2dc   : > { %v4582_v3 = vsel %vm2469_vm7, %v4526_v32, 0.0  ;;  %6240 = vst.msk [vmem:[%s8592_s11 + $0x164] sm:$0xf] %vm3037_vm10, %v6438_v46 }
 0x2dd   : > { %v4483_v29 = vadd.f32 %v4482_v8, %v4481_v33  ;;  %v4583_v36 = vadd.f32 %v4582_v3, %v4581_v53 }
 0x2df   : > { %v4585_v40 = vadd.f32 %v4584_v34, %v4583_v36  ;;  %v6675_v41 = vpop.f32.mrb[56].mxu1  ;;  %v4485_v56 = vadd.f32 %v4484_v14, %v4483_v29 }
 0x2e0   : > { %v6471_v61 = vpack.c.bf16 %v6675_v41, %v6675_v41  ;;  %v5191_v51 = vpop.f32.mrb[57].mxu1  ;;  %v5318_v7 = vmul.f32 %v6675_v41, %v6675_v41  ;;  %v5273_v59 = vsel %vm2469_vm7, %v6675_v41, 0.0 }
 0x2e1   : > { %v5269_v25 = vsel %vm2469_vm7, %v5191_v51, 0.0  ;;  %v5316_v55 = vmul.f32 %v5191_v51, %v5191_v51  ;;  %v6469_v28 = vpack.c.bf16 %v5191_v51, %v5191_v51  ;;  %v6676_v50 = vpop.f32.mrb[58].mxu1  ;;  %v4587_v5 = vadd.f32 %v4586_v31, %v4585_v40 }
 0x2e2   : > { %6340 = vst.msk [vmem:[%s8592_s11 + $0x1e8] sm:$0xf] %vm3037_vm10, %v6471_v61  ;;  %v5270_v47 = vadd.f32 %v5269_v25, %v5268_v63  ;;  %v5194_v2 = vpop.f32.mrb[59].mxu1  ;;  %v6472_v18 = vpack.c.bf16 %v6676_v50, %v6676_v50  ;;  %v5319_v17 = vmul.f32 %v6676_v50, %v6676_v50  ;;  %v5375_v19 = vsel %vm2469_vm7, %v5318_v7, 0.0 }
 0x2e3   : > { %v5371_v0 = vsel %vm2469_vm7, %v5316_v55, 0.0  ;;  %6338 = vst.msk [vmem:[%s8592_s11 + $0x1e0] sm:$0xf] %vm3037_vm10, %v6469_v28  ;;  %v5271_v15 = vsel %vm2469_vm7, %v5194_v2, 0.0  ;;  %v5317_v52 = vmul.f32 %v5194_v2, %v5194_v2  ;;  %v6470_v20 = vpack.c.bf16 %v5194_v2, %v5194_v2 }
 0x2e4   : > { %v5372_v23 = vadd.f32 %v5371_v0, %v5370_v58  ;;  %v5272_v24 = vadd.f32 %v5271_v15, %v5270_v47  ;;  %6341 = vst.msk [vmem:[%s8592_s11 + $0x1ec] sm:$0xf] %vm3037_vm10, %v6472_v18  ;;  %v5275_v49 = vsel %vm2469_vm7, %v6676_v50, 0.0  ;;  %v5377_v30 = vsel %vm2469_vm7, %v5319_v17, 0.0 }
 0x2e5   : > { %v5373_v39 = vsel %vm2469_vm7, %v5317_v52, 0.0  ;;  %6339 = vst.msk [vmem:[%s8592_s11 + $0x1e4] sm:$0xf] %vm3037_vm10, %v6470_v20 }
 0x2e6   : > { %v5274_v16 = vadd.f32 %v5273_v59, %v5272_v24  ;;  %v5374_v6 = vadd.f32 %v5373_v39, %v5372_v23 }
 0x2e8   : > { %v5376_v54 = vadd.f32 %v5375_v19, %v5374_v6  ;;  %v5276_v21 = vadd.f32 %v5275_v49, %v5274_v16 }
 0x2ea   : > { %v5378_v35 = vadd.f32 %v5377_v30, %v5376_v54 }
 0x2ee   : > { %v6645_v62 = vpop.f32.mrb[60].mxu0 }
 0x2ef   : > { %v6443_v45 = vpack.c.bf16 %v6645_v62, %v6645_v62  ;;  %v4416_v38 = vpop.f32.mrb[61].mxu0  ;;  %v4531_v60 = vmul.f32 %v6645_v62, %v6645_v62  ;;  %v4490_v13 = vsel %vm2469_vm7, %v6645_v62, 0.0 }
 0x2f0   : > { %v4486_v63 = vsel %vm2469_vm7, %v4416_v38, 0.0  ;;  %v4529_v26 = vmul.f32 %v4416_v38, %v4416_v38  ;;  %v6441_v58 = vpack.c.bf16 %v4416_v38, %v4416_v38  ;;  %v6646_v27 = vpop.f32.mrb[62].mxu0 }
 0x2f1   : > { %6245 = vst.msk [vmem:[%s8592_s11 + $0x178] sm:$0xf] %vm3037_vm10, %v6443_v45  ;;  %v4487_v57 = vadd.f32 %v4486_v63, %v4485_v56  ;;  %v4419_v9 = vpop.f32.mrb[63].mxu0  ;;  %v6444_v43 = vpack.c.bf16 %v6646_v27, %v6646_v27  ;;  %v4532_v48 = vmul.f32 %v6646_v27, %v6646_v27  ;;  %v4592_v46 = vsel %vm2469_vm7, %v4531_v60, 0.0 }
 0x2f2   : > { %v4588_v12 = vsel %vm2469_vm7, %v4529_v26, 0.0  ;;  %6243 = vst.msk [vmem:[%s8592_s11 + $0x170] sm:$0xf] %vm3037_vm10, %v6441_v58  ;;  %v4488_v42 = vsel %vm2469_vm7, %v4419_v9, 0.0  ;;  %v4530_v44 = vmul.f32 %v4419_v9, %v4419_v9  ;;  %v6442_v4 = vpack.c.bf16 %v4419_v9, %v4419_v9 }
 0x2f3   : > { %v4589_v1 = vadd.f32 %v4588_v12, %v4587_v5  ;;  %v4489_v10 = vadd.f32 %v4488_v42, %v4487_v57  ;;  %6246 = vst.msk [vmem:[%s8592_s11 + $0x17c] sm:$0xf] %vm3037_vm10, %v6444_v43  ;;  %v4492_v8 = vsel %vm2469_vm7, %v6646_v27, 0.0  ;;  %v4594_v36 = vsel %vm2469_vm7, %v4532_v48, 0.0 }
 0x2f4   : > { %v4590_v32 = vsel %vm2469_vm7, %v4530_v44, 0.0  ;;  %6244 = vst.msk [vmem:[%s8592_s11 + $0x174] sm:$0xf] %vm3037_vm10, %v6442_v4 }
 0x2f5   : > { %v4491_v53 = vadd.f32 %v4490_v13, %v4489_v10  ;;  %v4591_v33 = vadd.f32 %v4590_v32, %v4589_v1 }
 0x2f7   : > { %v4493_v37 = vadd.f32 %v4492_v8, %v4491_v53  ;;  %v4593_v3 = vadd.f32 %v4592_v46, %v4591_v33  ;;  %v6679_v29 = vpop.f32.mrb[60].mxu1 }
 0x2f8   : > { %v6475_v34 = vpack.c.bf16 %v6679_v29, %v6679_v29  ;;  %v5207_v14 = vpop.f32.mrb[61].mxu1  ;;  %v5322_v5 = vmul.f32 %v6679_v29, %v6679_v29  ;;  %v5281_v24 = vsel %vm2469_vm7, %v6679_v29, 0.0 }
 0x2f9   : > { %v4494_v40 = vrot.slane %v4493_v37, 4  ;;  %v4595_v41 = vadd.f32 %v4594_v36, %v4593_v3  ;;  %v5277_v56 = vsel %vm2469_vm7, %v5207_v14, 0.0  ;;  %v5320_v31 = vmul.f32 %v5207_v14, %v5207_v14  ;;  %v6680_v61 = vpop.f32.mrb[62].mxu1 }
 0x2fa   : > { %6344 = vst.msk [vmem:[%s8592_s11 + $0x1f8] sm:$0xf] %vm3037_vm10, %v6475_v34  ;;  %v5278_v51 = vadd.f32 %v5277_v56, %v5276_v21  ;;  %v6473_v25 = vpack.c.bf16 %v5207_v14, %v5207_v14  ;;  %v5210_v55 = vpop.f32.mrb[63].mxu1  ;;  %v6476_v2 = vpack.c.bf16 %v6680_v61, %v6680_v61  ;;  %v5323_v20 = vmul.f32 %v6680_v61, %v6680_v61 }
 0x2fb   : > { %v4495_v28 = vadd.f32 %v4494_v40, %v4493_v37  ;;  %v4596_v50 = vrot.slane %v4595_v41, 4  ;;  %v5379_v7 = vsel %vm2469_vm7, %v5320_v31, 0.0  ;;  %v5279_v0 = vsel %vm2469_vm7, %v5210_v55, 0.0 }
 0x2fc   : > { %v5380_v47 = vadd.f32 %v5379_v7, %v5378_v35  ;;  %6342 = vst.msk [vmem:[%s8592_s11 + $0x1f0] sm:$0xf] %vm3037_vm10, %v6473_v25  ;;  %v5321_v18 = vmul.f32 %v5210_v55, %v5210_v55  ;;  %v5280_v23 = vadd.f32 %v5279_v0, %v5278_v51  ;;  %6345 = vst.msk [vmem:[%s8592_s11 + $0x1fc] sm:$0xf] %vm3037_vm10, %v6476_v2  ;;  %v5383_v49 = vsel %vm2469_vm7, %v5322_v5, 0.0 }
 0x2fd   : > { %v4496_v15 = vrot.slane %v4495_v28, 2  ;;  %v4597_v52 = vadd.f32 %v4596_v50, %v4595_v41  ;;  %v6474_v17 = vpack.c.bf16 %v5210_v55, %v5210_v55  ;;  %v5283_v54 = vsel %vm2469_vm7, %v6680_v61, 0.0 }
 0x2fe   : > { %v5381_v59 = vsel %vm2469_vm7, %v5321_v18, 0.0  ;;  %v5282_v6 = vadd.f32 %v5281_v24, %v5280_v23  ;;  %v5385_v45 = vsel %vm2469_vm7, %v5323_v20, 0.0 }
 0x2ff   : > { %v4497_v39 = vadd.f32 %v4496_v15, %v4495_v28  ;;  %v4598_v16 = vrot.slane %v4597_v52, 2  ;;  %v5382_v19 = vadd.f32 %v5381_v59, %v5380_v47  ;;  %6343 = vst.msk [vmem:[%s8592_s11 + $0x1f4] sm:$0xf] %vm3037_vm10, %v6474_v17 }
 0x300   : > { %v5284_v35 = vadd.f32 %v5283_v54, %v5282_v6 }
 0x301   : > { %v4498_v21 = vrot.slane %v4497_v39, 1  ;;  %v4599_v30 = vadd.f32 %v4598_v16, %v4597_v52  ;;  %v5384_v62 = vadd.f32 %v5383_v49, %v5382_v19 }
 0x302   : > { %v5285_v26 = vrot.slane %v5284_v35, 4 }
 0x303   : > { %v4499_v38 = vadd.f32 %v4498_v21, %v4497_v39  ;;  %v4600_v63 = vrot.slane %v4599_v30, 1  ;;  %v5386_v58 = vadd.f32 %v5385_v45, %v5384_v62 }
 0x304   : > { %v5286_v57 = vadd.f32 %v5285_v26, %v5284_v35 }
 0x305   : > { %v4500_v27 = vadd.f32 %v4499_v38, %v9267_v22  ;;  %v4601_v60 = vadd.f32 %v4600_v63, %v4599_v30  ;;  %v5387_v9 = vrot.slane %v5386_v58, 4 }
 0x306   : > { %v5287_v43 = vrot.slane %v5286_v57, 2 }
 0x307   : > { %v4602_v12 = vadd.f32 %v4601_v60, %v9270_v11  ;;  %v5388_v42 = vadd.f32 %v5387_v9, %v5386_v58 }
 0x308   : > { %v5288_v44 = vadd.f32 %v5287_v43, %v5286_v57 }
 0x309   : > { %v5389_v1 = vrot.slane %v5388_v42, 2 }
 0x30a   : > { %v5289_v10 = vrot.slane %v5288_v44, 1 }
 0x30b   : > { %v5390_v4 = vadd.f32 %v5389_v1, %v5388_v42 }
 0x30c   : > { %v5290_v13 = vadd.f32 %v5289_v10, %v5288_v44 }
 0x30d   : > { %v5391_v48 = vrot.slane %v5390_v4, 1 }
 0x30e   : > { %v5291_v22 = vadd.f32 %v5290_v13, %v4500_v27 }
 0x30f   : > { %v5392_v32 = vadd.f32 %v5391_v48, %v5390_v4 }
 0x310   : > { %5556 = vst.msk [vmem:[%s260_s14] sm:$0x1] %vm5555_vm11, %v5291_v22 }
 0x311   : > { %v5393_v11 = vadd.f32 %v5392_v32, %v4602_v12 }
 0x313   : > { %5557 = vst.msk [vmem:[%s266_s21] sm:$0x1] %vm5555_vm11, %v5393_v11 }
 0x314 PF: > { %s15_s17 = sadd.s32 1, %s6815_s17   ;;  %s9643_s15 = smov %s6811_s16 }
 0x315   : > { %p12_p5 = scmp.ge.s32.totalorder %s15_s17, 4   ;;  %s9644_s16 = smov %s9646_s18 }
 0x317   :  { %14 = sbr.rel (!%p12_p5) target bundleno = 2 (0x2), region = 90 }

</bundles_post_ra>
